<compile_context>
chip_gen: v6e
topology: v6e:2x2x1
jax: 0.10.0
libtpu: 0.0.40
codegen_flags: <defaults>
</compile_context>

<pallas_src>
import math

import numpy as np
import jax
import jax.numpy as jnp
from jax.experimental import pallas as pl
from jax.experimental.pallas import tpu as pltpu


# ----------------------------------------------------------------------------
# helpers replicated from the reference repo (network/stylegan2.py)
# ----------------------------------------------------------------------------
def _setup_kernel(k):
    k = np.asarray(k, dtype=np.float32)
    if k.ndim == 1:
        k = np.outer(k, k)
    k /= np.sum(k)
    assert k.ndim == 2 and k.shape[0] == k.shape[1]
    return k


def _approximate_size(feature_size):
    # nearest power of two, as used by the repo's size fixup
    return int(2 ** int(np.rint(math.log2(feature_size))))


def _nearest_resize(y, out_h, out_w):
    # F.interpolate(..., mode='nearest'): src = floor(dst * in/out)
    in_h, in_w = y.shape[2], y.shape[3]
    hi = np.minimum(np.floor(np.arange(out_h) * (in_h / out_h)).astype(np.int32), in_h - 1)
    wi = np.minimum(np.floor(np.arange(out_w) * (in_w / out_w)).astype(np.int32), in_w - 1)
    y = jnp.take(y, jnp.asarray(hi), axis=2)
    y = jnp.take(y, jnp.asarray(wi), axis=3)
    return y


def _round_up(v, m):
    return ((v + m - 1) // m) * m


# ----------------------------------------------------------------------------
# device-dependent tiling preferences
# ----------------------------------------------------------------------------
def _tile_prefs():
    """(cout lane-tile pref, cin lane-tile pref, vmem_limit_bytes)."""
    try:
        kind = jax.devices()[0].device_kind.lower()
    except Exception:
        kind = ""
    if "v7" in kind:
        # v7x: 64 MiB VMEM -> keep the Cin tile (activation block) at 128, leave headroom.
        return 256, 128, 48 * 1024 * 1024
    if ("v4" in kind) or ("v5 lite" in kind) or ("v5e" in kind):
        return 128, 128, 64 * 1024 * 1024
    # v5p / v6e
    return 256, 256, 64 * 1024 * 1024


def _pick_tile(dim, pref, align=128):
    """Largest `align`-aligned divisor of `dim` that is <= pref.

    Falls back to the full dim (untiled) only when no aligned divisor exists, which always
    satisfies the BlockSpec full-extent rule instead of silently blowing up VMEM.
    """
    if dim <= pref:
        return dim
    d = (pref // align) * align
    while d >= align:
        if dim % d == 0:
            return d
        d -= align
    return dim


def _pick_row_tile(n_rows, n_cols, n_phases, co_t, budget_bytes=8 << 20):
    """Largest divisor of n_rows whose f32 accumulator fits the budget (sublane friendly)."""
    cands = [d for d in range(1, n_rows + 1)
             if n_rows % d == 0 and (d == n_rows or (d * n_cols) % 8 == 0)]
    within = [d for d in cands if n_phases * d * n_cols * co_t * 4 <= budget_bytes]
    return max(within) if within else min(cands)


# ----------------------------------------------------------------------------
# Pallas conv kernel: per-tap im2col matmuls on the MXU, channels on lanes
# ----------------------------------------------------------------------------
def _make_phase_conv_kernel(n_phases, t_h, t_w, n_cols, row_tile, offs, tap_active):
    """Kernel body.

    xp_ref  : (1, Hp, Wp, Cin_tile)               padded bf16 NHWC input block (VMEM)
    e_ref   : (P, t_h, t_w, Cin_tile, Cout_tile)  bf16 per-phase filter taps (VMEM)
    o_ref   : (1, P, row_tile*n_cols, Cout_tile)  bf16 output block (written on last Cin step)
    acc_ref : (P, row_tile*n_cols, Cout_tile)     f32 VMEM scratch accumulator (P3 pattern)
    """
    def kernel(xp_ref, e_ref, o_ref, acc_ref):
        k = pl.program_id(3)

        @pl.when(k == 0)
        def _init():
            acc_ref[...] = jnp.zeros_like(acc_ref)

        row0 = pl.multiple_of(pl.program_id(1) * row_tile, row_tile)
        cx_t = xp_ref.shape[-1]
        co_t = acc_ref.shape[-1]
        for p in range(n_phases):
            off_h, off_w = offs[p]
            acc = jnp.zeros((row_tile * n_cols, co_t), jnp.float32)
            for a in range(t_h):
                for b in range(t_w):
                    if not tap_active[p][a][b]:          # statically-zero tap: skip matmul
                        continue
                    lhs = xp_ref[0,
                                 pl.ds(row0 + a + off_h, row_tile),
                                 pl.ds(off_w + b, n_cols),
                                 :]                      # (row_tile, n_cols, cx_t)
                    lhs = lhs.reshape(row_tile * n_cols, cx_t)
                    acc = acc + jnp.dot(lhs, e_ref[p, a, b],
                                        preferred_element_type=jnp.float32)
            acc_ref[p] = acc_ref[p] + acc

        @pl.when(k == pl.num_programs(3) - 1)
        def _store():
            o_ref[0] = acc_ref[...].astype(o_ref.dtype)

    return kernel


def _conv_phases_pallas(xp_nhwc, e_phases, n_rows, n_cols, offs, tap_active=None):
    """out[n, p, q*n_cols + r, co] =
           sum_{a,b,ci} xp[n, q+a+offh(p), r+b+offw(p), ci] * E[p, a, b, ci, co]."""
    n, hp, wp, cx = xp_nhwc.shape
    n_ph, t_h, t_w, cx2, co = e_phases.shape
    assert cx == cx2 and n_ph == len(offs)
    if tap_active is None:
        tap_active = tuple(tuple((True,) * t_w for _ in range(t_h)) for _ in range(n_ph))

    co_pref, cx_pref, vmem_limit = _tile_prefs()
    co_t = _pick_tile(co, co_pref)
    cx_t = _pick_tile(cx, cx_pref)
    n_co, n_cx = co // co_t, cx // cx_t
    row_tile = _pick_row_tile(n_rows, n_cols, n_ph, co_t)
    n_row = n_rows // row_tile

    kernel = _make_phase_conv_kernel(n_ph, t_h, t_w, n_cols, row_tile, tuple(offs),
                                     tap_active)

    active_taps = sum(1 for p in range(n_ph) for a in range(t_h) for b in range(t_w)
                      if tap_active[p][a][b])
    flops = 2 * n * n_rows * n_cols * active_taps * cx * co
    bytes_accessed = (n * hp * wp * cx * 2
                      + n_ph * t_h * t_w * cx * co * 2
                      + n * n_ph * n_rows * n_cols * co * 2)
    cost = pl.CostEstimate(flops=int(flops), transcendentals=0,
                           bytes_accessed=int(bytes_accessed))

    return pl.pallas_call(
        kernel,
        out_shape=jax.ShapeDtypeStruct((n, n_ph, n_rows * n_cols, co), jnp.bfloat16),
        grid=(n, n_row, n_co, n_cx),
        in_specs=[
            # TODO(synk): handle the halo via an output-row index_map (pl.Element) instead of a
            # full padded spatial plane per Cin tile, to avoid the HBM-materialized jnp.pad.
            pl.BlockSpec((1, hp, wp, cx_t), lambda i, r, j, k: (i, 0, 0, k)),
            pl.BlockSpec((n_ph, t_h, t_w, cx_t, co_t), lambda i, r, j, k: (0, 0, 0, k, j)),
        ],
        out_specs=pl.BlockSpec((1, n_ph, row_tile * n_cols, co_t),
                               lambda i, r, j, k: (i, 0, r, j)),
        scratch_shapes=[pltpu.VMEM((n_ph, row_tile * n_cols, co_t), jnp.float32)],
        compiler_params=pltpu.CompilerParams(
            dimension_semantics=("parallel", "parallel", "parallel", "arbitrary"),
            vmem_limit_bytes=vmem_limit),
        cost_estimate=cost,
    )(xp_nhwc.astype(jnp.bfloat16), e_phases.astype(jnp.bfloat16))


# ----------------------------------------------------------------------------
# Fused UpConvsample2d: convT(stride=2) + crop + 4x4 FIR in one Pallas kernel
# ----------------------------------------------------------------------------
def _upsample_conv2d_pallas(x_nchw, w, fir, factor, pad0, pad1):
    n, cx, h_in, w_in = x_nchw.shape
    in_c_u, out_c_u, k_h, k_w = w.shape
    assert cx == out_c_u
    wt = w.reshape(out_c_u, in_c_u, k_h, k_w)      # raw reshape, exactly as torch
    co = in_c_u
    f = factor
    fir_np = np.asarray(fir, np.float32)
    f_h, f_w = fir_np.shape

    h_t = (h_in - 1) * f + k_h                     # conv_transpose output sizes
    w_t = (w_in - 1) * f + k_w
    # TODO(synk): only the crop-style pads produced by this module (pad0=0, pad1<=0) are
    # supported (kernel_size=1 would give pad0=1 and hit this assert).
    assert pad0 == 0 and pad1 <= 0
    y_h = h_t + pad0 + pad1 - f_h + 1              # size after crop + valid FIR
    y_w = w_t + pad0 + pad1 - f_w + 1

    # ---- sub-pixel phase tap ranges (no zero-dilated HBM intermediate) ------
    def _taps(k_sz, f_sz):
        d_min = [-((k_sz - 1 - p_) // f) for p_ in range(f)]   # ceil((p-k+1)/f)
        d_max = [(p_ + f_sz - 1) // f for p_ in range(f)]
        t = max(dmx - dmn + 1 for dmn, dmx in zip(d_min, d_max))
        return d_min, d_max, t

    dmin_h, dmax_h, t_h = _taps(k_h, f_h)
    dmin_w, dmax_w, t_w = _taps(k_w, f_w)
    l_h, l_w = max(0, -min(dmin_h)), max(0, -min(dmin_w))
    # round the per-phase output grid up to sublane-friendly sizes; extras are sliced off
    n_rows = _round_up(-(-y_h // f), 8)
    n_cols = _round_up(-(-y_w // f), 8)
    r_h = max(0, max(n_rows + t_h - 1 + dmin_h[p_] - h_in for p_ in range(f)))
    r_w = max(0, max(n_cols + t_w - 1 + dmin_w[p_] - w_in for p_ in range(f)))

    # ---- numpy tap-mapping tensor: fold FIR into per-phase effective taps ----
    # e_phases[p,a,b,ci,co] = sum_{kh,kw} T[p,a,b,kh,kw] * wt[ci,co,kh,kw]
    u_min = -(k_h - 1)
    T = np.zeros((f * f, t_h, t_w, k_h, k_w), np.float32)
    offs = []
    for ph in range(f):
        for pw in range(f):
            p = ph * f + pw
            offs.append((dmin_h[ph] + l_h, dmin_w[pw] + l_w))
            for a in range(dmax_h[ph] - dmin_h[ph] + 1):
                u = f * (a + dmin_h[ph]) - ph
                for b in range(dmax_w[pw] - dmin_w[pw] + 1):
                    v = f * (b + dmin_w[pw]) - pw
                    for kh in range(k_h):
                        fh = kh + u
                        if not (0 <= fh < f_h):
                            continue
                        for kw in range(k_w):
                            fw = kw + v
                            if 0 <= fw < f_w:
                                T[p, a, b, kh, kw] = fir_np[fh, fw]
    del u_min
    act = np.any(T != 0.0, axis=(3, 4))
    tap_active = tuple(tuple(tuple(bool(v) for v in row) for row in ph_m) for ph_m in act)
    # single small weight-side einsum (runs every forward, keep it in full precision)
    e_phases = jnp.einsum("pabhw,cdhw->pabcd", jnp.asarray(T), wt.astype(jnp.float32),
                          precision=jax.lax.Precision.HIGHEST)

    # ---- activation: NHWC, bf16, edge-padded --------------------------------
    x_nhwc = jnp.transpose(x_nchw, (0, 2, 3, 1)).astype(jnp.bfloat16)
    xp = jnp.pad(x_nhwc, ((0, 0), (l_h, r_h), (l_w, r_w), (0, 0)))

    out = _conv_phases_pallas(xp, e_phases, n_rows, n_cols, offs, tap_active)
    out = out.reshape(n, f, f, n_rows, n_cols, co)

    # ---- de-interleave phases with a transpose+reshape (no multi-axis gather)
    full = jnp.transpose(out, (0, 3, 1, 4, 2, 5)).reshape(n, n_rows * f, n_cols * f, co)
    full = full[:, :y_h, :y_w, :]

    # ---- nearest-neighbour size fixup (faithful to the torch module) --------
    if h_t != 1 or h_t % 2 != 0:
        a_h = a_w = _approximate_size(h_t)
    else:
        a_h, a_w = y_h, y_w
    if (a_h, a_w) != (y_h, y_w):
        hi = np.minimum(np.floor(np.arange(a_h) * (y_h / a_h)).astype(np.int32), y_h - 1)
        wi = np.minimum(np.floor(np.arange(a_w) * (y_w / a_w)).astype(np.int32), y_w - 1)
        full = jnp.take(full, jnp.asarray(hi), axis=1)
        full = jnp.take(full, jnp.asarray(wi), axis=2)
    return jnp.transpose(full, (0, 3, 1, 2))       # (n, co, a_h, a_w)


# ----------------------------------------------------------------------------
# Plain modulated conv (up=False path): F.conv2d(x, w, padding=k//2)
# ----------------------------------------------------------------------------
def _conv2d_same_pallas(x_nchw, w_oihw, pad):
    n, ci, h, w_sp = x_nchw.shape
    co, ci2, k_h, k_w = w_oihw.shape
    assert ci == ci2
    n_rows = _round_up(h, 8)
    n_cols = _round_up(w_sp, 8)
    x_nhwc = jnp.transpose(x_nchw, (0, 2, 3, 1)).astype(jnp.bfloat16)
    xp = jnp.pad(x_nhwc, ((0, 0),
                          (pad, pad + (n_rows - h)),
                          (pad, pad + (n_cols - w_sp)),
                          (0, 0)))
    e = jnp.transpose(w_oihw.astype(jnp.float32), (2, 3, 1, 0))[None]  # (1, kh, kw, ci, co)
    out = _conv_phases_pallas(xp, e, n_rows, n_cols, [(0, 0)])         # (n, 1, n_rows*n_cols, co)
    out = out.reshape(n, n_rows, n_cols, co)[:, :h, :w_sp, :]
    return jnp.transpose(out, (0, 3, 1, 2))


# ----------------------------------------------------------------------------
# pure-JAX / XLA references for validation (same bf16 matmul precision class)
# ----------------------------------------------------------------------------
def _reference_upsample(x, w, fir, factor, pad0, pad1):
    in_c_u, out_c_u, k_h, k_w = w.shape
    w2 = w.reshape(out_c_u, in_c_u, k_h, k_w)
    w_oihw = jnp.transpose(w2, (1, 0, 2, 3))[:, :, ::-1, ::-1]
    xt = jax.lax.conv_general_dilated(
        x.astype(jnp.bfloat16), w_oihw.astype(jnp.bfloat16),
        window_strides=(1, 1),
        padding=[(k_h - 1, k_h - 1), (k_w - 1, k_w - 1)],
        lhs_dilation=(factor, factor),
        dimension_numbers=("NCHW", "OIHW", "NCHW"),
        preferred_element_type=jnp.float32)
    h_t = xt.shape[2]
    y = jnp.pad(xt, ((0, 0), (0, 0),
                     (max(pad0, 0), max(pad1, 0)),
                     (max(pad0, 0), max(pad1, 0))))
    y = y[:, :,
          max(-pad0, 0): y.shape[2] - max(-pad1, 0),
          max(-pad0, 0): y.shape[3] - max(-pad1, 0)]
    c = y.shape[1]
    kd = jnp.broadcast_to(jnp.asarray(fir, jnp.float32)[None, None],
                          (c, 1, fir.shape[0], fir.shape[1]))
    y = jax.lax.conv_general_dilated(
        y.astype(jnp.bfloat16), kd.astype(jnp.bfloat16),
        window_strides=(1, 1), padding="VALID",
        dimension_numbers=("NCHW", "OIHW", "NCHW"), feature_group_count=c,
        preferred_element_type=jnp.float32)
    if h_t != 1 or h_t % 2 != 0:
        a = _approximate_size(h_t)
        y = _nearest_resize(y, a, a)
    return y


# ----------------------------------------------------------------------------
# ModulatedConv2d module
# ----------------------------------------------------------------------------
class ModulatedConv2dPallas:
    def __init__(self, input_channels, output_channels, kernel_size, *, key,
                 k=(1, 3, 3, 1), dlatent_size=512, up=False, down=False,
                 demodulate=True, gain=1, use_wscale=True, lrmul=1,
                 fused_modconv=True):
        assert kernel_size >= 1 and kernel_size % 2 == 1
        # TODO(synk): non-fused modconv branch (per-sample weights) is not implemented.
        assert fused_modconv
        self.up, self.down = up, down
        self.demodulate = demodulate
        self.fmaps = output_channels
        self.kernel_size = kernel_size

        he_std = gain / (input_channels * output_channels * kernel_size ** 2) ** 0.5
        if use_wscale:
            init_std, self.w_lrmul = 1.0 / lrmul, he_std * lrmul
        else:
            init_std, self.w_lrmul = he_std / lrmul, lrmul
        key_w, key_d = jax.random.split(key)
        self.w = jax.random.normal(
            key_w, (output_channels, input_channels, kernel_size, kernel_size),
            jnp.float32) * init_std

        # FC 'dense' (mode='modulate', act='lrelu')
        fc_he = gain / (dlatent_size * input_channels) ** 0.5
        if use_wscale:
            fc_init, self.fc_w_lrmul = 1.0 / lrmul, fc_he * lrmul
        else:
            fc_init, self.fc_w_lrmul = fc_he / lrmul, lrmul
        self.fc_w = jax.random.normal(key_d, (input_channels, dlatent_size),
                                      jnp.float32) * fc_init
        self.fc_b = jnp.zeros((input_channels,), jnp.float32)
        self.fc_b_lrmul = lrmul

        # UpConvsample2d submodule config (factor=2, gain=1 inside the submodule)
        self.factor = 2
        self.fir = _setup_kernel(k) * (1 * self.factor ** 2)      # (4, 4) numpy taps
        p = 1 - self.factor - (kernel_size - 1)   # self.k.shape[0] after unsqueezes == 1
        self.pad0 = (p + 1) // 2 + self.factor - 1
        self.pad1 = p // 2 + 1

    # ---- plain-JAX glue: style dense + (de)modulation ----------------------
    def _style(self, latent):
        if latent.ndim > 2:
            latent = jnp.squeeze(latent, axis=1)
        s = latent @ (self.fc_w * self.fc_w_lrmul).T + self.fc_b * self.fc_b_lrmul + 1.0
        s = jnp.where(s >= 0.0, s, 0.2 * s) * float(np.sqrt(2.0))
        return s

    def _modulate(self, x, latent):
        s = self._style(latent)                                   # (B, I)
        b = s.shape[0]
        o, i, kk, _ = self.w.shape
        ww = jnp.broadcast_to(self.w[None], (b, o, i, kk, kk))
        ww = jnp.transpose(ww, (0, 3, 4, 1, 2))                   # (B,K,K,O,I)
        ww = ww * s[:, None, None, None, :]
        ww = jnp.transpose(ww, (0, 1, 2, 4, 3))                   # (B,K,K,I,O)
        if self.demodulate:
            d = jax.lax.rsqrt(jnp.mean(ww * ww, axis=(1, 2, 3)) + 1e-8)
            ww = ww * d[:, None, None, None, :]
        # NOTE: faithful to the torch module -- fused modconv uses a raw reshape to
        # (O, B*I, K, K) with no grouped conv, so samples mix and batch collapses to 1.
        x_view = x.reshape(1, -1, x.shape[2], x.shape[3])         # (1, B*I, H, W)
        w_new = jnp.transpose(ww, (0, 4, 3, 1, 2)).reshape(
            -1, x_view.shape[1], kk, kk)                          # (O, B*I, K, K)
        return x_view, w_new

    # ---- Pallas forward -----------------------------------------------------
    def __call__(self, x, latent):
        x_view, w_new = self._modulate(x, latent)
        if self.up:
            # NOTE: faithful to torch -- w_lrmul is NOT applied on the up path.
            out = _upsample_conv2d_pallas(x_view, w_new, self.fir, self.factor,
                                          self.pad0, self.pad1)
        elif self.down:
            out = x_view                                          # torch does `pass`
        else:
            out = _conv2d_same_pallas(x_view, w_new * self.w_lrmul,
                                      self.kernel_size // 2)
        return out.reshape(-1, self.fmaps, out.shape[2], out.shape[3])

    # ---- XLA reference -------------------------------------------------------
    def reference(self, x, latent):
        x_view, w_new = self._modulate(x, latent)
        if self.up:
            out = _reference_upsample(x_view, w_new, self.fir, self.factor,
                                      self.pad0, self.pad1)
        elif self.down:
            out = x_view
        else:
            out = jax.lax.conv_general_dilated(
                x_view.astype(jnp.bfloat16),
                (w_new * self.w_lrmul).astype(jnp.bfloat16),
                window_strides=(1, 1),
                padding=[(self.kernel_size // 2,) * 2] * 2,
                dimension_numbers=("NCHW", "OIHW", "NCHW"),
                preferred_element_type=jnp.float32)
        return out.reshape(-1, self.fmaps, out.shape[2], out.shape[3])


if __name__ == "__main__":
    key = jax.random.PRNGKey(0)
    k_x, k_lat, k_m1, k_m2 = jax.random.split(key, 4)

    batch, in_ch, out_ch, hw, dlat = 2, 4, 4, 8, 32
    x = jax.random.normal(k_x, (batch, in_ch, hw, hw), jnp.float32)
    latent = jax.random.normal(k_lat, (batch, dlat), jnp.float32)

    # up=True exercises the fused transposed-conv + FIR Pallas kernel
    mod_up = ModulatedConv2dPallas(in_ch, out_ch, 3, key=k_m1,
                                   dlatent_size=dlat, up=True)
    out_up = jax.block_until_ready(mod_up(x, latent))
    ref_up = jax.block_until_ready(mod_up.reference(x, latent))
    # kernel computes in bf16 (f32 accumulation) and writes bf16; reference matches precision
    np.testing.assert_allclose(np.asarray(out_up.astype(jnp.float32)),
                               np.asarray(ref_up.astype(jnp.float32)),
                               rtol=5e-2, atol=1e-1)
    assert out_up.shape == (1, out_ch, 16, 16), out_up.shape

    # default path (up=False): plain modulated conv, same Pallas kernel machinery
    mod = ModulatedConv2dPallas(in_ch, out_ch, 3, key=k_m2,
                                dlatent_size=dlat, up=False)
    out = jax.block_until_ready(mod(x, latent))
    ref = jax.block_until_ready(mod.reference(x, latent))
    np.testing.assert_allclose(np.asarray(out.astype(jnp.float32)),
                               np.asarray(ref.astype(jnp.float32)),
                               rtol=5e-2, atol=1e-1)
    assert out.shape == (1, out_ch, hw, hw), out.shape

    print("KERNEL_OK")
</pallas_src>

<mosaic_0001>
module attributes {stable_mosaic.version = 11 : i64} {
  func.func @kernel(%arg0: i32, %arg1: i32, %arg2: i32, %arg3: i32, %arg4: memref<1x11x11x8xbf16, #tpu.memory_space<vmem>>, %arg5: memref<4x3x3x8x4xbf16, #tpu.memory_space<vmem>>, %arg6: memref<1x4x64x4xbf16, #tpu.memory_space<vmem>>, %arg7: memref<4x64x4xf32, #tpu.memory_space<vmem>>) attributes {dimension_semantics = [#tpu.dimension_semantics<parallel>, #tpu.dimension_semantics<parallel>, #tpu.dimension_semantics<parallel>, #tpu.dimension_semantics<arbitrary>], iteration_bounds = array<i64: 1, 1, 1, 1>, scalar_prefetch = 0 : i64, scratch_operands = 1 : i64, tpu.core_type = #tpu.core_type<tc>, window_params = [{transform_indices = @transform_0, window_bounds = array<i64: 1, 11, 11, 8>}, {transform_indices = @transform_1, window_bounds = array<i64: 4, 3, 3, 8, 4>}, {transform_indices = @transform_2, window_bounds = array<i64: 1, 4, 64, 4>}]} {
    %c0_i32 = arith.constant 0 : i32
    %0 = arith.cmpi eq, %arg3, %c0_i32 : i32
    %1 = arith.extui %0 : i1 to i32
    %c0_i32_0 = arith.constant 0 : i32
    %2 = arith.cmpi ne, %1, %c0_i32_0 : i32
    scf.if %2 {
      %cst_420 = arith.constant 0.000000e+00 : f32
      %396 = vector.broadcast %cst_420 : f32 to vector<4x64x4xf32>
      %c0_421 = arith.constant 0 : index
      %c0_422 = arith.constant 0 : index
      %c0_423 = arith.constant 0 : index
      %397 = vector.load %arg7[%c0_421, %c0_422, %c0_423] : memref<4x64x4xf32, #tpu.memory_space<vmem>>, vector<4x64x4xf32>
      tpu.vector_store %arg7[%c0_421, %c0_422, %c0_423], %396 {strides = array<i32>} : memref<4x64x4xf32, #tpu.memory_space<vmem>>, vector<4x64x4xf32>,
    } else {
    }
    %c8_i32 = arith.constant 8 : i32
    %3 = arith.muli %arg1, %c8_i32 : i32
    %4 = tpu.assume_multiple %3, 8 : i32
    %cst = arith.constant 0.000000e+00 : f32
    %5 = vector.broadcast %cst : f32 to vector<64x4xf32>
    %c0_i32_1 = arith.constant 0 : i32
    %6 = arith.addi %4, %c0_i32_1 : i32
    %c0_i32_2 = arith.constant 0 : i32
    %7 = arith.addi %6, %c0_i32_2 : i32
    %c0 = arith.constant 0 : index
    %8 = arith.index_cast %7 : i32 to index
    %c0_3 = arith.constant 0 : index
    %c0_4 = arith.constant 0 : index
    %9 = vector.load %arg4[%c0, %8, %c0_3, %c0_4] : memref<1x11x11x8xbf16, #tpu.memory_space<vmem>>, vector<1x8x8x8xbf16>
    %10 = vector.shape_cast %9 : vector<1x8x8x8xbf16> to vector<8x8x8xbf16>
    %11 = vector.shape_cast %10 : vector<8x8x8xbf16> to vector<64x8xbf16>
    %c0_5 = arith.constant 0 : index
    %c0_6 = arith.constant 0 : index
    %c0_7 = arith.constant 0 : index
    %c0_8 = arith.constant 0 : index
    %c0_9 = arith.constant 0 : index
    %12 = vector.load %arg5[%c0_5, %c0_6, %c0_7, %c0_8, %c0_9] : memref<4x3x3x8x4xbf16, #tpu.memory_space<vmem>>, vector<1x1x1x8x4xbf16>
    %13 = vector.shape_cast %12 : vector<1x1x1x8x4xbf16> to vector<8x4xbf16>
    %cst_10 = arith.constant dense<0.000000e+00> : vector<64x4xf32>
    %14 = tpu.matmul %11, %13, %cst_10 {dimension_numbers = #tpu.dot_dimension_numbers<[1], [0], [0], [1], [0, 0, 1, 1], [], []>} : vector<64x8xbf16>, vector<8x4xbf16>, vector<64x4xf32> -> vector<64x4xf32>
    %15 = arith.addf %5, %14 : vector<64x4xf32>
    %c0_i32_11 = arith.constant 0 : i32
    %16 = arith.addi %4, %c0_i32_11 : i32
    %c0_i32_12 = arith.constant 0 : i32
    %17 = arith.addi %16, %c0_i32_12 : i32
    %c0_13 = arith.constant 0 : index
    %18 = arith.index_cast %17 : i32 to index
    %c1 = arith.constant 1 : index
    %c0_14 = arith.constant 0 : index
    %19 = vector.load %arg4[%c0_13, %18, %c1, %c0_14] : memref<1x11x11x8xbf16, #tpu.memory_space<vmem>>, vector<1x8x8x8xbf16>
    %20 = vector.shape_cast %19 : vector<1x8x8x8xbf16> to vector<8x8x8xbf16>
    %21 = vector.shape_cast %20 : vector<8x8x8xbf16> to vector<64x8xbf16>
    %c0_15 = arith.constant 0 : index
    %c0_16 = arith.constant 0 : index
    %c1_17 = arith.constant 1 : index
    %c0_18 = arith.constant 0 : index
    %c0_19 = arith.constant 0 : index
    %22 = vector.load %arg5[%c0_15, %c0_16, %c1_17, %c0_18, %c0_19] : memref<4x3x3x8x4xbf16, #tpu.memory_space<vmem>>, vector<1x1x1x8x4xbf16>
    %23 = vector.shape_cast %22 : vector<1x1x1x8x4xbf16> to vector<8x4xbf16>
    %cst_20 = arith.constant dense<0.000000e+00> : vector<64x4xf32>
    %24 = tpu.matmul %21, %23, %cst_20 {dimension_numbers = #tpu.dot_dimension_numbers<[1], [0], [0], [1], [0, 0, 1, 1], [], []>} : vector<64x8xbf16>, vector<8x4xbf16>, vector<64x4xf32> -> vector<64x4xf32>
    %25 = arith.addf %15, %24 : vector<64x4xf32>
    %c0_i32_21 = arith.constant 0 : i32
    %26 = arith.addi %4, %c0_i32_21 : i32
    %c0_i32_22 = arith.constant 0 : i32
    %27 = arith.addi %26, %c0_i32_22 : i32
    %c0_23 = arith.constant 0 : index
    %28 = arith.index_cast %27 : i32 to index
    %c2 = arith.constant 2 : index
    %c0_24 = arith.constant 0 : index
    %29 = vector.load %arg4[%c0_23, %28, %c2, %c0_24] : memref<1x11x11x8xbf16, #tpu.memory_space<vmem>>, vector<1x8x8x8xbf16>
    %30 = vector.shape_cast %29 : vector<1x8x8x8xbf16> to vector<8x8x8xbf16>
    %31 = vector.shape_cast %30 : vector<8x8x8xbf16> to vector<64x8xbf16>
    %c0_25 = arith.constant 0 : index
    %c0_26 = arith.constant 0 : index
    %c2_27 = arith.constant 2 : index
    %c0_28 = arith.constant 0 : index
    %c0_29 = arith.constant 0 : index
    %32 = vector.load %arg5[%c0_25, %c0_26, %c2_27, %c0_28, %c0_29] : memref<4x3x3x8x4xbf16, #tpu.memory_space<vmem>>, vector<1x1x1x8x4xbf16>
    %33 = vector.shape_cast %32 : vector<1x1x1x8x4xbf16> to vector<8x4xbf16>
    %cst_30 = arith.constant dense<0.000000e+00> : vector<64x4xf32>
    %34 = tpu.matmul %31, %33, %cst_30 {dimension_numbers = #tpu.dot_dimension_numbers<[1], [0], [0], [1], [0, 0, 1, 1], [], []>} : vector<64x8xbf16>, vector<8x4xbf16>, vector<64x4xf32> -> vector<64x4xf32>
    %35 = arith.addf %25, %34 : vector<64x4xf32>
    %c1_i32 = arith.constant 1 : i32
    %36 = arith.addi %4, %c1_i32 : i32
    %c0_i32_31 = arith.constant 0 : i32
    %37 = arith.addi %36, %c0_i32_31 : i32
    %c0_32 = arith.constant 0 : index
    %38 = arith.index_cast %37 : i32 to index
    %c0_33 = arith.constant 0 : index
    %c0_34 = arith.constant 0 : index
    %39 = vector.load %arg4[%c0_32, %38, %c0_33, %c0_34] : memref<1x11x11x8xbf16, #tpu.memory_space<vmem>>, vector<1x8x8x8xbf16>
    %40 = vector.shape_cast %39 : vector<1x8x8x8xbf16> to vector<8x8x8xbf16>
    %41 = vector.shape_cast %40 : vector<8x8x8xbf16> to vector<64x8xbf16>
    %c0_35 = arith.constant 0 : index
    %c1_36 = arith.constant 1 : index
    %c0_37 = arith.constant 0 : index
    %c0_38 = arith.constant 0 : index
    %c0_39 = arith.constant 0 : index
    %42 = vector.load %arg5[%c0_35, %c1_36, %c0_37, %c0_38, %c0_39] : memref<4x3x3x8x4xbf16, #tpu.memory_space<vmem>>, vector<1x1x1x8x4xbf16>
    %43 = vector.shape_cast %42 : vector<1x1x1x8x4xbf16> to vector<8x4xbf16>
    %cst_40 = arith.constant dense<0.000000e+00> : vector<64x4xf32>
    %44 = tpu.matmul %41, %43, %cst_40 {dimension_numbers = #tpu.dot_dimension_numbers<[1], [0], [0], [1], [0, 0, 1, 1], [], []>} : vector<64x8xbf16>, vector<8x4xbf16>, vector<64x4xf32> -> vector<64x4xf32>
    %45 = arith.addf %35, %44 : vector<64x4xf32>
    %c1_i32_41 = arith.constant 1 : i32
    %46 = arith.addi %4, %c1_i32_41 : i32
    %c0_i32_42 = arith.constant 0 : i32
    %47 = arith.addi %46, %c0_i32_42 : i32
    %c0_43 = arith.constant 0 : index
    %48 = arith.index_cast %47 : i32 to index
    %c1_44 = arith.constant 1 : index
    %c0_45 = arith.constant 0 : index
    %49 = vector.load %arg4[%c0_43, %48, %c1_44, %c0_45] : memref<1x11x11x8xbf16, #tpu.memory_space<vmem>>, vector<1x8x8x8xbf16>
    %50 = vector.shape_cast %49 : vector<1x8x8x8xbf16> to vector<8x8x8xbf16>
    %51 = vector.shape_cast %50 : vector<8x8x8xbf16> to vector<64x8xbf16>
    %c0_46 = arith.constant 0 : index
    %c1_47 = arith.constant 1 : index
    %c1_48 = arith.constant 1 : index
    %c0_49 = arith.constant 0 : index
    %c0_50 = arith.constant 0 : index
    %52 = vector.load %arg5[%c0_46, %c1_47, %c1_48, %c0_49, %c0_50] : memref<4x3x3x8x4xbf16, #tpu.memory_space<vmem>>, vector<1x1x1x8x4xbf16>
    %53 = vector.shape_cast %52 : vector<1x1x1x8x4xbf16> to vector<8x4xbf16>
    %cst_51 = arith.constant dense<0.000000e+00> : vector<64x4xf32>
    %54 = tpu.matmul %51, %53, %cst_51 {dimension_numbers = #tpu.dot_dimension_numbers<[1], [0], [0], [1], [0, 0, 1, 1], [], []>} : vector<64x8xbf16>, vector<8x4xbf16>, vector<64x4xf32> -> vector<64x4xf32>
    %55 = arith.addf %45, %54 : vector<64x4xf32>
    %c1_i32_52 = arith.constant 1 : i32
    %56 = arith.addi %4, %c1_i32_52 : i32
    %c0_i32_53 = arith.constant 0 : i32
    %57 = arith.addi %56, %c0_i32_53 : i32
    %c0_54 = arith.constant 0 : index
    %58 = arith.index_cast %57 : i32 to index
    %c2_55 = arith.constant 2 : index
    %c0_56 = arith.constant 0 : index
    %59 = vector.load %arg4[%c0_54, %58, %c2_55, %c0_56] : memref<1x11x11x8xbf16, #tpu.memory_space<vmem>>, vector<1x8x8x8xbf16>
    %60 = vector.shape_cast %59 : vector<1x8x8x8xbf16> to vector<8x8x8xbf16>
    %61 = vector.shape_cast %60 : vector<8x8x8xbf16> to vector<64x8xbf16>
    %c0_57 = arith.constant 0 : index
    %c1_58 = arith.constant 1 : index
    %c2_59 = arith.constant 2 : index
    %c0_60 = arith.constant 0 : index
    %c0_61 = arith.constant 0 : index
    %62 = vector.load %arg5[%c0_57, %c1_58, %c2_59, %c0_60, %c0_61] : memref<4x3x3x8x4xbf16, #tpu.memory_space<vmem>>, vector<1x1x1x8x4xbf16>
    %63 = vector.shape_cast %62 : vector<1x1x1x8x4xbf16> to vector<8x4xbf16>
    %cst_62 = arith.constant dense<0.000000e+00> : vector<64x4xf32>
    %64 = tpu.matmul %61, %63, %cst_62 {dimension_numbers = #tpu.dot_dimension_numbers<[1], [0], [0], [1], [0, 0, 1, 1], [], []>} : vector<64x8xbf16>, vector<8x4xbf16>, vector<64x4xf32> -> vector<64x4xf32>
    %65 = arith.addf %55, %64 : vector<64x4xf32>
    %c2_i32 = arith.constant 2 : i32
    %66 = arith.addi %4, %c2_i32 : i32
    %c0_i32_63 = arith.constant 0 : i32
    %67 = arith.addi %66, %c0_i32_63 : i32
    %c0_64 = arith.constant 0 : index
    %68 = arith.index_cast %67 : i32 to index
    %c0_65 = arith.constant 0 : index
    %c0_66 = arith.constant 0 : index
    %69 = vector.load %arg4[%c0_64, %68, %c0_65, %c0_66] : memref<1x11x11x8xbf16, #tpu.memory_space<vmem>>, vector<1x8x8x8xbf16>
    %70 = vector.shape_cast %69 : vector<1x8x8x8xbf16> to vector<8x8x8xbf16>
    %71 = vector.shape_cast %70 : vector<8x8x8xbf16> to vector<64x8xbf16>
    %c0_67 = arith.constant 0 : index
    %c2_68 = arith.constant 2 : index
    %c0_69 = arith.constant 0 : index
    %c0_70 = arith.constant 0 : index
    %c0_71 = arith.constant 0 : index
    %72 = vector.load %arg5[%c0_67, %c2_68, %c0_69, %c0_70, %c0_71] : memref<4x3x3x8x4xbf16, #tpu.memory_space<vmem>>, vector<1x1x1x8x4xbf16>
    %73 = vector.shape_cast %72 : vector<1x1x1x8x4xbf16> to vector<8x4xbf16>
    %cst_72 = arith.constant dense<0.000000e+00> : vector<64x4xf32>
    %74 = tpu.matmul %71, %73, %cst_72 {dimension_numbers = #tpu.dot_dimension_numbers<[1], [0], [0], [1], [0, 0, 1, 1], [], []>} : vector<64x8xbf16>, vector<8x4xbf16>, vector<64x4xf32> -> vector<64x4xf32>
    %75 = arith.addf %65, %74 : vector<64x4xf32>
    %c2_i32_73 = arith.constant 2 : i32
    %76 = arith.addi %4, %c2_i32_73 : i32
    %c0_i32_74 = arith.constant 0 : i32
    %77 = arith.addi %76, %c0_i32_74 : i32
    %c0_75 = arith.constant 0 : index
    %78 = arith.index_cast %77 : i32 to index
    %c1_76 = arith.constant 1 : index
    %c0_77 = arith.constant 0 : index
    %79 = vector.load %arg4[%c0_75, %78, %c1_76, %c0_77] : memref<1x11x11x8xbf16, #tpu.memory_space<vmem>>, vector<1x8x8x8xbf16>
    %80 = vector.shape_cast %79 : vector<1x8x8x8xbf16> to vector<8x8x8xbf16>
    %81 = vector.shape_cast %80 : vector<8x8x8xbf16> to vector<64x8xbf16>
    %c0_78 = arith.constant 0 : index
    %c2_79 = arith.constant 2 : index
    %c1_80 = arith.constant 1 : index
    %c0_81 = arith.constant 0 : index
    %c0_82 = arith.constant 0 : index
    %82 = vector.load %arg5[%c0_78, %c2_79, %c1_80, %c0_81, %c0_82] : memref<4x3x3x8x4xbf16, #tpu.memory_space<vmem>>, vector<1x1x1x8x4xbf16>
    %83 = vector.shape_cast %82 : vector<1x1x1x8x4xbf16> to vector<8x4xbf16>
    %cst_83 = arith.constant dense<0.000000e+00> : vector<64x4xf32>
    %84 = tpu.matmul %81, %83, %cst_83 {dimension_numbers = #tpu.dot_dimension_numbers<[1], [0], [0], [1], [0, 0, 1, 1], [], []>} : vector<64x8xbf16>, vector<8x4xbf16>, vector<64x4xf32> -> vector<64x4xf32>
    %85 = arith.addf %75, %84 : vector<64x4xf32>
    %c2_i32_84 = arith.constant 2 : i32
    %86 = arith.addi %4, %c2_i32_84 : i32
    %c0_i32_85 = arith.constant 0 : i32
    %87 = arith.addi %86, %c0_i32_85 : i32
    %c0_86 = arith.constant 0 : index
    %88 = arith.index_cast %87 : i32 to index
    %c2_87 = arith.constant 2 : index
    %c0_88 = arith.constant 0 : index
    %89 = vector.load %arg4[%c0_86, %88, %c2_87, %c0_88] : memref<1x11x11x8xbf16, #tpu.memory_space<vmem>>, vector<1x8x8x8xbf16>
    %90 = vector.shape_cast %89 : vector<1x8x8x8xbf16> to vector<8x8x8xbf16>
    %91 = vector.shape_cast %90 : vector<8x8x8xbf16> to vector<64x8xbf16>
    %c0_89 = arith.constant 0 : index
    %c2_90 = arith.constant 2 : index
    %c2_91 = arith.constant 2 : index
    %c0_92 = arith.constant 0 : index
    %c0_93 = arith.constant 0 : index
    %92 = vector.load %arg5[%c0_89, %c2_90, %c2_91, %c0_92, %c0_93] : memref<4x3x3x8x4xbf16, #tpu.memory_space<vmem>>, vector<1x1x1x8x4xbf16>
    %93 = vector.shape_cast %92 : vector<1x1x1x8x4xbf16> to vector<8x4xbf16>
    %cst_94 = arith.constant dense<0.000000e+00> : vector<64x4xf32>
    %94 = tpu.matmul %91, %93, %cst_94 {dimension_numbers = #tpu.dot_dimension_numbers<[1], [0], [0], [1], [0, 0, 1, 1], [], []>} : vector<64x8xbf16>, vector<8x4xbf16>, vector<64x4xf32> -> vector<64x4xf32>
    %95 = arith.addf %85, %94 : vector<64x4xf32>
    %c0_95 = arith.constant 0 : index
    %c0_96 = arith.constant 0 : index
    %c0_97 = arith.constant 0 : index
    %96 = vector.load %arg7[%c0_95, %c0_96, %c0_97] : memref<4x64x4xf32, #tpu.memory_space<vmem>>, vector<1x64x4xf32>
    %97 = vector.shape_cast %96 : vector<1x64x4xf32> to vector<64x4xf32>
    %98 = arith.addf %97, %95 : vector<64x4xf32>
    %c0_98 = arith.constant 0 : index
    %c0_99 = arith.constant 0 : index
    %c0_100 = arith.constant 0 : index
    %99 = vector.load %arg7[%c0_98, %c0_99, %c0_100] : memref<4x64x4xf32, #tpu.memory_space<vmem>>, vector<1x64x4xf32>
    %100 = vector.shape_cast %99 : vector<1x64x4xf32> to vector<64x4xf32>
    %101 = vector.shape_cast %98 : vector<64x4xf32> to vector<1x64x4xf32>
    tpu.vector_store %arg7[%c0_98, %c0_99, %c0_100], %101 {strides = array<i32>} : memref<4x64x4xf32, #tpu.memory_space<vmem>>, vector<1x64x4xf32>,
    %cst_101 = arith.constant 0.000000e+00 : f32
    %102 = vector.broadcast %cst_101 : f32 to vector<64x4xf32>
    %c0_i32_102 = arith.constant 0 : i32
    %103 = arith.addi %4, %c0_i32_102 : i32
    %c0_i32_103 = arith.constant 0 : i32
    %104 = arith.addi %103, %c0_i32_103 : i32
    %c0_104 = arith.constant 0 : index
    %105 = arith.index_cast %104 : i32 to index
    %c1_105 = arith.constant 1 : index
    %c0_106 = arith.constant 0 : index
    %106 = vector.load %arg4[%c0_104, %105, %c1_105, %c0_106] : memref<1x11x11x8xbf16, #tpu.memory_space<vmem>>, vector<1x8x8x8xbf16>
    %107 = vector.shape_cast %106 : vector<1x8x8x8xbf16> to vector<8x8x8xbf16>
    %108 = vector.shape_cast %107 : vector<8x8x8xbf16> to vector<64x8xbf16>
    %c1_107 = arith.constant 1 : index
    %c0_108 = arith.constant 0 : index
    %c0_109 = arith.constant 0 : index
    %c0_110 = arith.constant 0 : index
    %c0_111 = arith.constant 0 : index
    %109 = vector.load %arg5[%c1_107, %c0_108, %c0_109, %c0_110, %c0_111] : memref<4x3x3x8x4xbf16, #tpu.memory_space<vmem>>, vector<1x1x1x8x4xbf16>
    %110 = vector.shape_cast %109 : vector<1x1x1x8x4xbf16> to vector<8x4xbf16>
    %cst_112 = arith.constant dense<0.000000e+00> : vector<64x4xf32>
    %111 = tpu.matmul %108, %110, %cst_112 {dimension_numbers = #tpu.dot_dimension_numbers<[1], [0], [0], [1], [0, 0, 1, 1], [], []>} : vector<64x8xbf16>, vector<8x4xbf16>, vector<64x4xf32> -> vector<64x4xf32>
    %112 = arith.addf %102, %111 : vector<64x4xf32>
    %c0_i32_113 = arith.constant 0 : i32
    %113 = arith.addi %4, %c0_i32_113 : i32
    %c0_i32_114 = arith.constant 0 : i32
    %114 = arith.addi %113, %c0_i32_114 : i32
    %c0_115 = arith.constant 0 : index
    %115 = arith.index_cast %114 : i32 to index
    %c2_116 = arith.constant 2 : index
    %c0_117 = arith.constant 0 : index
    %116 = vector.load %arg4[%c0_115, %115, %c2_116, %c0_117] : memref<1x11x11x8xbf16, #tpu.memory_space<vmem>>, vector<1x8x8x8xbf16>
    %117 = vector.shape_cast %116 : vector<1x8x8x8xbf16> to vector<8x8x8xbf16>
    %118 = vector.shape_cast %117 : vector<8x8x8xbf16> to vector<64x8xbf16>
    %c1_118 = arith.constant 1 : index
    %c0_119 = arith.constant 0 : index
    %c1_120 = arith.constant 1 : index
    %c0_121 = arith.constant 0 : index
    %c0_122 = arith.constant 0 : index
    %119 = vector.load %arg5[%c1_118, %c0_119, %c1_120, %c0_121, %c0_122] : memref<4x3x3x8x4xbf16, #tpu.memory_space<vmem>>, vector<1x1x1x8x4xbf16>
    %120 = vector.shape_cast %119 : vector<1x1x1x8x4xbf16> to vector<8x4xbf16>
    %cst_123 = arith.constant dense<0.000000e+00> : vector<64x4xf32>
    %121 = tpu.matmul %118, %120, %cst_123 {dimension_numbers = #tpu.dot_dimension_numbers<[1], [0], [0], [1], [0, 0, 1, 1], [], []>} : vector<64x8xbf16>, vector<8x4xbf16>, vector<64x4xf32> -> vector<64x4xf32>
    %122 = arith.addf %112, %121 : vector<64x4xf32>
    %c0_i32_124 = arith.constant 0 : i32
    %123 = arith.addi %4, %c0_i32_124 : i32
    %c0_i32_125 = arith.constant 0 : i32
    %124 = arith.addi %123, %c0_i32_125 : i32
    %c0_126 = arith.constant 0 : index
    %125 = arith.index_cast %124 : i32 to index
    %c3 = arith.constant 3 : index
    %c0_127 = arith.constant 0 : index
    %126 = vector.load %arg4[%c0_126, %125, %c3, %c0_127] : memref<1x11x11x8xbf16, #tpu.memory_space<vmem>>, vector<1x8x8x8xbf16>
    %127 = vector.shape_cast %126 : vector<1x8x8x8xbf16> to vector<8x8x8xbf16>
    %128 = vector.shape_cast %127 : vector<8x8x8xbf16> to vector<64x8xbf16>
    %c1_128 = arith.constant 1 : index
    %c0_129 = arith.constant 0 : index
    %c2_130 = arith.constant 2 : index
    %c0_131 = arith.constant 0 : index
    %c0_132 = arith.constant 0 : index
    %129 = vector.load %arg5[%c1_128, %c0_129, %c2_130, %c0_131, %c0_132] : memref<4x3x3x8x4xbf16, #tpu.memory_space<vmem>>, vector<1x1x1x8x4xbf16>
    %130 = vector.shape_cast %129 : vector<1x1x1x8x4xbf16> to vector<8x4xbf16>
    %cst_133 = arith.constant dense<0.000000e+00> : vector<64x4xf32>
    %131 = tpu.matmul %128, %130, %cst_133 {dimension_numbers = #tpu.dot_dimension_numbers<[1], [0], [0], [1], [0, 0, 1, 1], [], []>} : vector<64x8xbf16>, vector<8x4xbf16>, vector<64x4xf32> -> vector<64x4xf32>
    %132 = arith.addf %122, %131 : vector<64x4xf32>
    %c1_i32_134 = arith.constant 1 : i32
    %133 = arith.addi %4, %c1_i32_134 : i32
    %c0_i32_135 = arith.constant 0 : i32
    %134 = arith.addi %133, %c0_i32_135 : i32
    %c0_136 = arith.constant 0 : index
    %135 = arith.index_cast %134 : i32 to index
    %c1_137 = arith.constant 1 : index
    %c0_138 = arith.constant 0 : index
    %136 = vector.load %arg4[%c0_136, %135, %c1_137, %c0_138] : memref<1x11x11x8xbf16, #tpu.memory_space<vmem>>, vector<1x8x8x8xbf16>
    %137 = vector.shape_cast %136 : vector<1x8x8x8xbf16> to vector<8x8x8xbf16>
    %138 = vector.shape_cast %137 : vector<8x8x8xbf16> to vector<64x8xbf16>
    %c1_139 = arith.constant 1 : index
    %c1_140 = arith.constant 1 : index
    %c0_141 = arith.constant 0 : index
    %c0_142 = arith.constant 0 : index
    %c0_143 = arith.constant 0 : index
    %139 = vector.load %arg5[%c1_139, %c1_140, %c0_141, %c0_142, %c0_143] : memref<4x3x3x8x4xbf16, #tpu.memory_space<vmem>>, vector<1x1x1x8x4xbf16>
    %140 = vector.shape_cast %139 : vector<1x1x1x8x4xbf16> to vector<8x4xbf16>
    %cst_144 = arith.constant dense<0.000000e+00> : vector<64x4xf32>
    %141 = tpu.matmul %138, %140, %cst_144 {dimension_numbers = #tpu.dot_dimension_numbers<[1], [0], [0], [1], [0, 0, 1, 1], [], []>} : vector<64x8xbf16>, vector<8x4xbf16>, vector<64x4xf32> -> vector<64x4xf32>
    %142 = arith.addf %132, %141 : vector<64x4xf32>
    %c1_i32_145 = arith.constant 1 : i32
    %143 = arith.addi %4, %c1_i32_145 : i32
    %c0_i32_146 = arith.constant 0 : i32
    %144 = arith.addi %143, %c0_i32_146 : i32
    %c0_147 = arith.constant 0 : index
    %145 = arith.index_cast %144 : i32 to index
    %c2_148 = arith.constant 2 : index
    %c0_149 = arith.constant 0 : index
    %146 = vector.load %arg4[%c0_147, %145, %c2_148, %c0_149] : memref<1x11x11x8xbf16, #tpu.memory_space<vmem>>, vector<1x8x8x8xbf16>
    %147 = vector.shape_cast %146 : vector<1x8x8x8xbf16> to vector<8x8x8xbf16>
    %148 = vector.shape_cast %147 : vector<8x8x8xbf16> to vector<64x8xbf16>
    %c1_150 = arith.constant 1 : index
    %c1_151 = arith.constant 1 : index
    %c1_152 = arith.constant 1 : index
    %c0_153 = arith.constant 0 : index
    %c0_154 = arith.constant 0 : index
    %149 = vector.load %arg5[%c1_150, %c1_151, %c1_152, %c0_153, %c0_154] : memref<4x3x3x8x4xbf16, #tpu.memory_space<vmem>>, vector<1x1x1x8x4xbf16>
    %150 = vector.shape_cast %149 : vector<1x1x1x8x4xbf16> to vector<8x4xbf16>
    %cst_155 = arith.constant dense<0.000000e+00> : vector<64x4xf32>
    %151 = tpu.matmul %148, %150, %cst_155 {dimension_numbers = #tpu.dot_dimension_numbers<[1], [0], [0], [1], [0, 0, 1, 1], [], []>} : vector<64x8xbf16>, vector<8x4xbf16>, vector<64x4xf32> -> vector<64x4xf32>
    %152 = arith.addf %142, %151 : vector<64x4xf32>
    %c1_i32_156 = arith.constant 1 : i32
    %153 = arith.addi %4, %c1_i32_156 : i32
    %c0_i32_157 = arith.constant 0 : i32
    %154 = arith.addi %153, %c0_i32_157 : i32
    %c0_158 = arith.constant 0 : index
    %155 = arith.index_cast %154 : i32 to index
    %c3_159 = arith.constant 3 : index
    %c0_160 = arith.constant 0 : index
    %156 = vector.load %arg4[%c0_158, %155, %c3_159, %c0_160] : memref<1x11x11x8xbf16, #tpu.memory_space<vmem>>, vector<1x8x8x8xbf16>
    %157 = vector.shape_cast %156 : vector<1x8x8x8xbf16> to vector<8x8x8xbf16>
    %158 = vector.shape_cast %157 : vector<8x8x8xbf16> to vector<64x8xbf16>
    %c1_161 = arith.constant 1 : index
    %c1_162 = arith.constant 1 : index
    %c2_163 = arith.constant 2 : index
    %c0_164 = arith.constant 0 : index
    %c0_165 = arith.constant 0 : index
    %159 = vector.load %arg5[%c1_161, %c1_162, %c2_163, %c0_164, %c0_165] : memref<4x3x3x8x4xbf16, #tpu.memory_space<vmem>>, vector<1x1x1x8x4xbf16>
    %160 = vector.shape_cast %159 : vector<1x1x1x8x4xbf16> to vector<8x4xbf16>
    %cst_166 = arith.constant dense<0.000000e+00> : vector<64x4xf32>
    %161 = tpu.matmul %158, %160, %cst_166 {dimension_numbers = #tpu.dot_dimension_numbers<[1], [0], [0], [1], [0, 0, 1, 1], [], []>} : vector<64x8xbf16>, vector<8x4xbf16>, vector<64x4xf32> -> vector<64x4xf32>
    %162 = arith.addf %152, %161 : vector<64x4xf32>
    %c2_i32_167 = arith.constant 2 : i32
    %163 = arith.addi %4, %c2_i32_167 : i32
    %c0_i32_168 = arith.constant 0 : i32
    %164 = arith.addi %163, %c0_i32_168 : i32
    %c0_169 = arith.constant 0 : index
    %165 = arith.index_cast %164 : i32 to index
    %c1_170 = arith.constant 1 : index
    %c0_171 = arith.constant 0 : index
    %166 = vector.load %arg4[%c0_169, %165, %c1_170, %c0_171] : memref<1x11x11x8xbf16, #tpu.memory_space<vmem>>, vector<1x8x8x8xbf16>
    %167 = vector.shape_cast %166 : vector<1x8x8x8xbf16> to vector<8x8x8xbf16>
    %168 = vector.shape_cast %167 : vector<8x8x8xbf16> to vector<64x8xbf16>
    %c1_172 = arith.constant 1 : index
    %c2_173 = arith.constant 2 : index
    %c0_174 = arith.constant 0 : index
    %c0_175 = arith.constant 0 : index
    %c0_176 = arith.constant 0 : index
    %169 = vector.load %arg5[%c1_172, %c2_173, %c0_174, %c0_175, %c0_176] : memref<4x3x3x8x4xbf16, #tpu.memory_space<vmem>>, vector<1x1x1x8x4xbf16>
    %170 = vector.shape_cast %169 : vector<1x1x1x8x4xbf16> to vector<8x4xbf16>
    %cst_177 = arith.constant dense<0.000000e+00> : vector<64x4xf32>
    %171 = tpu.matmul %168, %170, %cst_177 {dimension_numbers = #tpu.dot_dimension_numbers<[1], [0], [0], [1], [0, 0, 1, 1], [], []>} : vector<64x8xbf16>, vector<8x4xbf16>, vector<64x4xf32> -> vector<64x4xf32>
    %172 = arith.addf %162, %171 : vector<64x4xf32>
    %c2_i32_178 = arith.constant 2 : i32
    %173 = arith.addi %4, %c2_i32_178 : i32
    %c0_i32_179 = arith.constant 0 : i32
    %174 = arith.addi %173, %c0_i32_179 : i32
    %c0_180 = arith.constant 0 : index
    %175 = arith.index_cast %174 : i32 to index
    %c2_181 = arith.constant 2 : index
    %c0_182 = arith.constant 0 : index
    %176 = vector.load %arg4[%c0_180, %175, %c2_181, %c0_182] : memref<1x11x11x8xbf16, #tpu.memory_space<vmem>>, vector<1x8x8x8xbf16>
    %177 = vector.shape_cast %176 : vector<1x8x8x8xbf16> to vector<8x8x8xbf16>
    %178 = vector.shape_cast %177 : vector<8x8x8xbf16> to vector<64x8xbf16>
    %c1_183 = arith.constant 1 : index
    %c2_184 = arith.constant 2 : index
    %c1_185 = arith.constant 1 : index
    %c0_186 = arith.constant 0 : index
    %c0_187 = arith.constant 0 : index
    %179 = vector.load %arg5[%c1_183, %c2_184, %c1_185, %c0_186, %c0_187] : memref<4x3x3x8x4xbf16, #tpu.memory_space<vmem>>, vector<1x1x1x8x4xbf16>
    %180 = vector.shape_cast %179 : vector<1x1x1x8x4xbf16> to vector<8x4xbf16>
    %cst_188 = arith.constant dense<0.000000e+00> : vector<64x4xf32>
    %181 = tpu.matmul %178, %180, %cst_188 {dimension_numbers = #tpu.dot_dimension_numbers<[1], [0], [0], [1], [0, 0, 1, 1], [], []>} : vector<64x8xbf16>, vector<8x4xbf16>, vector<64x4xf32> -> vector<64x4xf32>
    %182 = arith.addf %172, %181 : vector<64x4xf32>
    %c2_i32_189 = arith.constant 2 : i32
    %183 = arith.addi %4, %c2_i32_189 : i32
    %c0_i32_190 = arith.constant 0 : i32
    %184 = arith.addi %183, %c0_i32_190 : i32
    %c0_191 = arith.constant 0 : index
    %185 = arith.index_cast %184 : i32 to index
    %c3_192 = arith.constant 3 : index
    %c0_193 = arith.constant 0 : index
    %186 = vector.load %arg4[%c0_191, %185, %c3_192, %c0_193] : memref<1x11x11x8xbf16, #tpu.memory_space<vmem>>, vector<1x8x8x8xbf16>
    %187 = vector.shape_cast %186 : vector<1x8x8x8xbf16> to vector<8x8x8xbf16>
    %188 = vector.shape_cast %187 : vector<8x8x8xbf16> to vector<64x8xbf16>
    %c1_194 = arith.constant 1 : index
    %c2_195 = arith.constant 2 : index
    %c2_196 = arith.constant 2 : index
    %c0_197 = arith.constant 0 : index
    %c0_198 = arith.constant 0 : index
    %189 = vector.load %arg5[%c1_194, %c2_195, %c2_196, %c0_197, %c0_198] : memref<4x3x3x8x4xbf16, #tpu.memory_space<vmem>>, vector<1x1x1x8x4xbf16>
    %190 = vector.shape_cast %189 : vector<1x1x1x8x4xbf16> to vector<8x4xbf16>
    %cst_199 = arith.constant dense<0.000000e+00> : vector<64x4xf32>
    %191 = tpu.matmul %188, %190, %cst_199 {dimension_numbers = #tpu.dot_dimension_numbers<[1], [0], [0], [1], [0, 0, 1, 1], [], []>} : vector<64x8xbf16>, vector<8x4xbf16>, vector<64x4xf32> -> vector<64x4xf32>
    %192 = arith.addf %182, %191 : vector<64x4xf32>
    %c1_200 = arith.constant 1 : index
    %c0_201 = arith.constant 0 : index
    %c0_202 = arith.constant 0 : index
    %193 = vector.load %arg7[%c1_200, %c0_201, %c0_202] : memref<4x64x4xf32, #tpu.memory_space<vmem>>, vector<1x64x4xf32>
    %194 = vector.shape_cast %193 : vector<1x64x4xf32> to vector<64x4xf32>
    %195 = arith.addf %194, %192 : vector<64x4xf32>
    %c1_203 = arith.constant 1 : index
    %c0_204 = arith.constant 0 : index
    %c0_205 = arith.constant 0 : index
    %196 = vector.load %arg7[%c1_203, %c0_204, %c0_205] : memref<4x64x4xf32, #tpu.memory_space<vmem>>, vector<1x64x4xf32>
    %197 = vector.shape_cast %196 : vector<1x64x4xf32> to vector<64x4xf32>
    %198 = vector.shape_cast %195 : vector<64x4xf32> to vector<1x64x4xf32>
    tpu.vector_store %arg7[%c1_203, %c0_204, %c0_205], %198 {strides = array<i32>} : memref<4x64x4xf32, #tpu.memory_space<vmem>>, vector<1x64x4xf32>,
    %cst_206 = arith.constant 0.000000e+00 : f32
    %199 = vector.broadcast %cst_206 : f32 to vector<64x4xf32>
    %c0_i32_207 = arith.constant 0 : i32
    %200 = arith.addi %4, %c0_i32_207 : i32
    %c1_i32_208 = arith.constant 1 : i32
    %201 = arith.addi %200, %c1_i32_208 : i32
    %c0_209 = arith.constant 0 : index
    %202 = arith.index_cast %201 : i32 to index
    %c0_210 = arith.constant 0 : index
    %c0_211 = arith.constant 0 : index
    %203 = vector.load %arg4[%c0_209, %202, %c0_210, %c0_211] : memref<1x11x11x8xbf16, #tpu.memory_space<vmem>>, vector<1x8x8x8xbf16>
    %204 = vector.shape_cast %203 : vector<1x8x8x8xbf16> to vector<8x8x8xbf16>
    %205 = vector.shape_cast %204 : vector<8x8x8xbf16> to vector<64x8xbf16>
    %c2_212 = arith.constant 2 : index
    %c0_213 = arith.constant 0 : index
    %c0_214 = arith.constant 0 : index
    %c0_215 = arith.constant 0 : index
    %c0_216 = arith.constant 0 : index
    %206 = vector.load %arg5[%c2_212, %c0_213, %c0_214, %c0_215, %c0_216] : memref<4x3x3x8x4xbf16, #tpu.memory_space<vmem>>, vector<1x1x1x8x4xbf16>
    %207 = vector.shape_cast %206 : vector<1x1x1x8x4xbf16> to vector<8x4xbf16>
    %cst_217 = arith.constant dense<0.000000e+00> : vector<64x4xf32>
    %208 = tpu.matmul %205, %207, %cst_217 {dimension_numbers = #tpu.dot_dimension_numbers<[1], [0], [0], [1], [0, 0, 1, 1], [], []>} : vector<64x8xbf16>, vector<8x4xbf16>, vector<64x4xf32> -> vector<64x4xf32>
    %209 = arith.addf %199, %208 : vector<64x4xf32>
    %c0_i32_218 = arith.constant 0 : i32
    %210 = arith.addi %4, %c0_i32_218 : i32
    %c1_i32_219 = arith.constant 1 : i32
    %211 = arith.addi %210, %c1_i32_219 : i32
    %c0_220 = arith.constant 0 : index
    %212 = arith.index_cast %211 : i32 to index
    %c1_221 = arith.constant 1 : index
    %c0_222 = arith.constant 0 : index
    %213 = vector.load %arg4[%c0_220, %212, %c1_221, %c0_222] : memref<1x11x11x8xbf16, #tpu.memory_space<vmem>>, vector<1x8x8x8xbf16>
    %214 = vector.shape_cast %213 : vector<1x8x8x8xbf16> to vector<8x8x8xbf16>
    %215 = vector.shape_cast %214 : vector<8x8x8xbf16> to vector<64x8xbf16>
    %c2_223 = arith.constant 2 : index
    %c0_224 = arith.constant 0 : index
    %c1_225 = arith.constant 1 : index
    %c0_226 = arith.constant 0 : index
    %c0_227 = arith.constant 0 : index
    %216 = vector.load %arg5[%c2_223, %c0_224, %c1_225, %c0_226, %c0_227] : memref<4x3x3x8x4xbf16, #tpu.memory_space<vmem>>, vector<1x1x1x8x4xbf16>
    %217 = vector.shape_cast %216 : vector<1x1x1x8x4xbf16> to vector<8x4xbf16>
    %cst_228 = arith.constant dense<0.000000e+00> : vector<64x4xf32>
    %218 = tpu.matmul %215, %217, %cst_228 {dimension_numbers = #tpu.dot_dimension_numbers<[1], [0], [0], [1], [0, 0, 1, 1], [], []>} : vector<64x8xbf16>, vector<8x4xbf16>, vector<64x4xf32> -> vector<64x4xf32>
    %219 = arith.addf %209, %218 : vector<64x4xf32>
    %c0_i32_229 = arith.constant 0 : i32
    %220 = arith.addi %4, %c0_i32_229 : i32
    %c1_i32_230 = arith.constant 1 : i32
    %221 = arith.addi %220, %c1_i32_230 : i32
    %c0_231 = arith.constant 0 : index
    %222 = arith.index_cast %221 : i32 to index
    %c2_232 = arith.constant 2 : index
    %c0_233 = arith.constant 0 : index
    %223 = vector.load %arg4[%c0_231, %222, %c2_232, %c0_233] : memref<1x11x11x8xbf16, #tpu.memory_space<vmem>>, vector<1x8x8x8xbf16>
    %224 = vector.shape_cast %223 : vector<1x8x8x8xbf16> to vector<8x8x8xbf16>
    %225 = vector.shape_cast %224 : vector<8x8x8xbf16> to vector<64x8xbf16>
    %c2_234 = arith.constant 2 : index
    %c0_235 = arith.constant 0 : index
    %c2_236 = arith.constant 2 : index
    %c0_237 = arith.constant 0 : index
    %c0_238 = arith.constant 0 : index
    %226 = vector.load %arg5[%c2_234, %c0_235, %c2_236, %c0_237, %c0_238] : memref<4x3x3x8x4xbf16, #tpu.memory_space<vmem>>, vector<1x1x1x8x4xbf16>
    %227 = vector.shape_cast %226 : vector<1x1x1x8x4xbf16> to vector<8x4xbf16>
    %cst_239 = arith.constant dense<0.000000e+00> : vector<64x4xf32>
    %228 = tpu.matmul %225, %227, %cst_239 {dimension_numbers = #tpu.dot_dimension_numbers<[1], [0], [0], [1], [0, 0, 1, 1], [], []>} : vector<64x8xbf16>, vector<8x4xbf16>, vector<64x4xf32> -> vector<64x4xf32>
    %229 = arith.addf %219, %228 : vector<64x4xf32>
    %c1_i32_240 = arith.constant 1 : i32
    %230 = arith.addi %4, %c1_i32_240 : i32
    %c1_i32_241 = arith.constant 1 : i32
    %231 = arith.addi %230, %c1_i32_241 : i32
    %c0_242 = arith.constant 0 : index
    %232 = arith.index_cast %231 : i32 to index
    %c0_243 = arith.constant 0 : index
    %c0_244 = arith.constant 0 : index
    %233 = vector.load %arg4[%c0_242, %232, %c0_243, %c0_244] : memref<1x11x11x8xbf16, #tpu.memory_space<vmem>>, vector<1x8x8x8xbf16>
    %234 = vector.shape_cast %233 : vector<1x8x8x8xbf16> to vector<8x8x8xbf16>
    %235 = vector.shape_cast %234 : vector<8x8x8xbf16> to vector<64x8xbf16>
    %c2_245 = arith.constant 2 : index
    %c1_246 = arith.constant 1 : index
    %c0_247 = arith.constant 0 : index
    %c0_248 = arith.constant 0 : index
    %c0_249 = arith.constant 0 : index
    %236 = vector.load %arg5[%c2_245, %c1_246, %c0_247, %c0_248, %c0_249] : memref<4x3x3x8x4xbf16, #tpu.memory_space<vmem>>, vector<1x1x1x8x4xbf16>
    %237 = vector.shape_cast %236 : vector<1x1x1x8x4xbf16> to vector<8x4xbf16>
    %cst_250 = arith.constant dense<0.000000e+00> : vector<64x4xf32>
    %238 = tpu.matmul %235, %237, %cst_250 {dimension_numbers = #tpu.dot_dimension_numbers<[1], [0], [0], [1], [0, 0, 1, 1], [], []>} : vector<64x8xbf16>, vector<8x4xbf16>, vector<64x4xf32> -> vector<64x4xf32>
    %239 = arith.addf %229, %238 : vector<64x4xf32>
    %c1_i32_251 = arith.constant 1 : i32
    %240 = arith.addi %4, %c1_i32_251 : i32
    %c1_i32_252 = arith.constant 1 : i32
    %241 = arith.addi %240, %c1_i32_252 : i32
    %c0_253 = arith.constant 0 : index
    %242 = arith.index_cast %241 : i32 to index
    %c1_254 = arith.constant 1 : index
    %c0_255 = arith.constant 0 : index
    %243 = vector.load %arg4[%c0_253, %242, %c1_254, %c0_255] : memref<1x11x11x8xbf16, #tpu.memory_space<vmem>>, vector<1x8x8x8xbf16>
    %244 = vector.shape_cast %243 : vector<1x8x8x8xbf16> to vector<8x8x8xbf16>
    %245 = vector.shape_cast %244 : vector<8x8x8xbf16> to vector<64x8xbf16>
    %c2_256 = arith.constant 2 : index
    %c1_257 = arith.constant 1 : index
    %c1_258 = arith.constant 1 : index
    %c0_259 = arith.constant 0 : index
    %c0_260 = arith.constant 0 : index
    %246 = vector.load %arg5[%c2_256, %c1_257, %c1_258, %c0_259, %c0_260] : memref<4x3x3x8x4xbf16, #tpu.memory_space<vmem>>, vector<1x1x1x8x4xbf16>
    %247 = vector.shape_cast %246 : vector<1x1x1x8x4xbf16> to vector<8x4xbf16>
    %cst_261 = arith.constant dense<0.000000e+00> : vector<64x4xf32>
    %248 = tpu.matmul %245, %247, %cst_261 {dimension_numbers = #tpu.dot_dimension_numbers<[1], [0], [0], [1], [0, 0, 1, 1], [], []>} : vector<64x8xbf16>, vector<8x4xbf16>, vector<64x4xf32> -> vector<64x4xf32>
    %249 = arith.addf %239, %248 : vector<64x4xf32>
    %c1_i32_262 = arith.constant 1 : i32
    %250 = arith.addi %4, %c1_i32_262 : i32
    %c1_i32_263 = arith.constant 1 : i32
    %251 = arith.addi %250, %c1_i32_263 : i32
    %c0_264 = arith.constant 0 : index
    %252 = arith.index_cast %251 : i32 to index
    %c2_265 = arith.constant 2 : index
    %c0_266 = arith.constant 0 : index
    %253 = vector.load %arg4[%c0_264, %252, %c2_265, %c0_266] : memref<1x11x11x8xbf16, #tpu.memory_space<vmem>>, vector<1x8x8x8xbf16>
    %254 = vector.shape_cast %253 : vector<1x8x8x8xbf16> to vector<8x8x8xbf16>
    %255 = vector.shape_cast %254 : vector<8x8x8xbf16> to vector<64x8xbf16>
    %c2_267 = arith.constant 2 : index
    %c1_268 = arith.constant 1 : index
    %c2_269 = arith.constant 2 : index
    %c0_270 = arith.constant 0 : index
    %c0_271 = arith.constant 0 : index
    %256 = vector.load %arg5[%c2_267, %c1_268, %c2_269, %c0_270, %c0_271] : memref<4x3x3x8x4xbf16, #tpu.memory_space<vmem>>, vector<1x1x1x8x4xbf16>
    %257 = vector.shape_cast %256 : vector<1x1x1x8x4xbf16> to vector<8x4xbf16>
    %cst_272 = arith.constant dense<0.000000e+00> : vector<64x4xf32>
    %258 = tpu.matmul %255, %257, %cst_272 {dimension_numbers = #tpu.dot_dimension_numbers<[1], [0], [0], [1], [0, 0, 1, 1], [], []>} : vector<64x8xbf16>, vector<8x4xbf16>, vector<64x4xf32> -> vector<64x4xf32>
    %259 = arith.addf %249, %258 : vector<64x4xf32>
    %c2_i32_273 = arith.constant 2 : i32
    %260 = arith.addi %4, %c2_i32_273 : i32
    %c1_i32_274 = arith.constant 1 : i32
    %261 = arith.addi %260, %c1_i32_274 : i32
    %c0_275 = arith.constant 0 : index
    %262 = arith.index_cast %261 : i32 to index
    %c0_276 = arith.constant 0 : index
    %c0_277 = arith.constant 0 : index
    %263 = vector.load %arg4[%c0_275, %262, %c0_276, %c0_277] : memref<1x11x11x8xbf16, #tpu.memory_space<vmem>>, vector<1x8x8x8xbf16>
    %264 = vector.shape_cast %263 : vector<1x8x8x8xbf16> to vector<8x8x8xbf16>
    %265 = vector.shape_cast %264 : vector<8x8x8xbf16> to vector<64x8xbf16>
    %c2_278 = arith.constant 2 : index
    %c2_279 = arith.constant 2 : index
    %c0_280 = arith.constant 0 : index
    %c0_281 = arith.constant 0 : index
    %c0_282 = arith.constant 0 : index
    %266 = vector.load %arg5[%c2_278, %c2_279, %c0_280, %c0_281, %c0_282] : memref<4x3x3x8x4xbf16, #tpu.memory_space<vmem>>, vector<1x1x1x8x4xbf16>
    %267 = vector.shape_cast %266 : vector<1x1x1x8x4xbf16> to vector<8x4xbf16>
    %cst_283 = arith.constant dense<0.000000e+00> : vector<64x4xf32>
    %268 = tpu.matmul %265, %267, %cst_283 {dimension_numbers = #tpu.dot_dimension_numbers<[1], [0], [0], [1], [0, 0, 1, 1], [], []>} : vector<64x8xbf16>, vector<8x4xbf16>, vector<64x4xf32> -> vector<64x4xf32>
    %269 = arith.addf %259, %268 : vector<64x4xf32>
    %c2_i32_284 = arith.constant 2 : i32
    %270 = arith.addi %4, %c2_i32_284 : i32
    %c1_i32_285 = arith.constant 1 : i32
    %271 = arith.addi %270, %c1_i32_285 : i32
    %c0_286 = arith.constant 0 : index
    %272 = arith.index_cast %271 : i32 to index
    %c1_287 = arith.constant 1 : index
    %c0_288 = arith.constant 0 : index
    %273 = vector.load %arg4[%c0_286, %272, %c1_287, %c0_288] : memref<1x11x11x8xbf16, #tpu.memory_space<vmem>>, vector<1x8x8x8xbf16>
    %274 = vector.shape_cast %273 : vector<1x8x8x8xbf16> to vector<8x8x8xbf16>
    %275 = vector.shape_cast %274 : vector<8x8x8xbf16> to vector<64x8xbf16>
    %c2_289 = arith.constant 2 : index
    %c2_290 = arith.constant 2 : index
    %c1_291 = arith.constant 1 : index
    %c0_292 = arith.constant 0 : index
    %c0_293 = arith.constant 0 : index
    %276 = vector.load %arg5[%c2_289, %c2_290, %c1_291, %c0_292, %c0_293] : memref<4x3x3x8x4xbf16, #tpu.memory_space<vmem>>, vector<1x1x1x8x4xbf16>
    %277 = vector.shape_cast %276 : vector<1x1x1x8x4xbf16> to vector<8x4xbf16>
    %cst_294 = arith.constant dense<0.000000e+00> : vector<64x4xf32>
    %278 = tpu.matmul %275, %277, %cst_294 {dimension_numbers = #tpu.dot_dimension_numbers<[1], [0], [0], [1], [0, 0, 1, 1], [], []>} : vector<64x8xbf16>, vector<8x4xbf16>, vector<64x4xf32> -> vector<64x4xf32>
    %279 = arith.addf %269, %278 : vector<64x4xf32>
    %c2_i32_295 = arith.constant 2 : i32
    %280 = arith.addi %4, %c2_i32_295 : i32
    %c1_i32_296 = arith.constant 1 : i32
    %281 = arith.addi %280, %c1_i32_296 : i32
    %c0_297 = arith.constant 0 : index
    %282 = arith.index_cast %281 : i32 to index
    %c2_298 = arith.constant 2 : index
    %c0_299 = arith.constant 0 : index
    %283 = vector.load %arg4[%c0_297, %282, %c2_298, %c0_299] : memref<1x11x11x8xbf16, #tpu.memory_space<vmem>>, vector<1x8x8x8xbf16>
    %284 = vector.shape_cast %283 : vector<1x8x8x8xbf16> to vector<8x8x8xbf16>
    %285 = vector.shape_cast %284 : vector<8x8x8xbf16> to vector<64x8xbf16>
    %c2_300 = arith.constant 2 : index
    %c2_301 = arith.constant 2 : index
    %c2_302 = arith.constant 2 : index
    %c0_303 = arith.constant 0 : index
    %c0_304 = arith.constant 0 : index
    %286 = vector.load %arg5[%c2_300, %c2_301, %c2_302, %c0_303, %c0_304] : memref<4x3x3x8x4xbf16, #tpu.memory_space<vmem>>, vector<1x1x1x8x4xbf16>
    %287 = vector.shape_cast %286 : vector<1x1x1x8x4xbf16> to vector<8x4xbf16>
    %cst_305 = arith.constant dense<0.000000e+00> : vector<64x4xf32>
    %288 = tpu.matmul %285, %287, %cst_305 {dimension_numbers = #tpu.dot_dimension_numbers<[1], [0], [0], [1], [0, 0, 1, 1], [], []>} : vector<64x8xbf16>, vector<8x4xbf16>, vector<64x4xf32> -> vector<64x4xf32>
    %289 = arith.addf %279, %288 : vector<64x4xf32>
    %c2_306 = arith.constant 2 : index
    %c0_307 = arith.constant 0 : index
    %c0_308 = arith.constant 0 : index
    %290 = vector.load %arg7[%c2_306, %c0_307, %c0_308] : memref<4x64x4xf32, #tpu.memory_space<vmem>>, vector<1x64x4xf32>
    %291 = vector.shape_cast %290 : vector<1x64x4xf32> to vector<64x4xf32>
    %292 = arith.addf %291, %289 : vector<64x4xf32>
    %c2_309 = arith.constant 2 : index
    %c0_310 = arith.constant 0 : index
    %c0_311 = arith.constant 0 : index
    %293 = vector.load %arg7[%c2_309, %c0_310, %c0_311] : memref<4x64x4xf32, #tpu.memory_space<vmem>>, vector<1x64x4xf32>
    %294 = vector.shape_cast %293 : vector<1x64x4xf32> to vector<64x4xf32>
    %295 = vector.shape_cast %292 : vector<64x4xf32> to vector<1x64x4xf32>
    tpu.vector_store %arg7[%c2_309, %c0_310, %c0_311], %295 {strides = array<i32>} : memref<4x64x4xf32, #tpu.memory_space<vmem>>, vector<1x64x4xf32>,
    %cst_312 = arith.constant 0.000000e+00 : f32
    %296 = vector.broadcast %cst_312 : f32 to vector<64x4xf32>
    %c0_i32_313 = arith.constant 0 : i32
    %297 = arith.addi %4, %c0_i32_313 : i32
    %c1_i32_314 = arith.constant 1 : i32
    %298 = arith.addi %297, %c1_i32_314 : i32
    %c0_315 = arith.constant 0 : index
    %299 = arith.index_cast %298 : i32 to index
    %c1_316 = arith.constant 1 : index
    %c0_317 = arith.constant 0 : index
    %300 = vector.load %arg4[%c0_315, %299, %c1_316, %c0_317] : memref<1x11x11x8xbf16, #tpu.memory_space<vmem>>, vector<1x8x8x8xbf16>
    %301 = vector.shape_cast %300 : vector<1x8x8x8xbf16> to vector<8x8x8xbf16>
    %302 = vector.shape_cast %301 : vector<8x8x8xbf16> to vector<64x8xbf16>
    %c3_318 = arith.constant 3 : index
    %c0_319 = arith.constant 0 : index
    %c0_320 = arith.constant 0 : index
    %c0_321 = arith.constant 0 : index
    %c0_322 = arith.constant 0 : index
    %303 = vector.load %arg5[%c3_318, %c0_319, %c0_320, %c0_321, %c0_322] : memref<4x3x3x8x4xbf16, #tpu.memory_space<vmem>>, vector<1x1x1x8x4xbf16>
    %304 = vector.shape_cast %303 : vector<1x1x1x8x4xbf16> to vector<8x4xbf16>
    %cst_323 = arith.constant dense<0.000000e+00> : vector<64x4xf32>
    %305 = tpu.matmul %302, %304, %cst_323 {dimension_numbers = #tpu.dot_dimension_numbers<[1], [0], [0], [1], [0, 0, 1, 1], [], []>} : vector<64x8xbf16>, vector<8x4xbf16>, vector<64x4xf32> -> vector<64x4xf32>
    %306 = arith.addf %296, %305 : vector<64x4xf32>
    %c0_i32_324 = arith.constant 0 : i32
    %307 = arith.addi %4, %c0_i32_324 : i32
    %c1_i32_325 = arith.constant 1 : i32
    %308 = arith.addi %307, %c1_i32_325 : i32
    %c0_326 = arith.constant 0 : index
    %309 = arith.index_cast %308 : i32 to index
    %c2_327 = arith.constant 2 : index
    %c0_328 = arith.constant 0 : index
    %310 = vector.load %arg4[%c0_326, %309, %c2_327, %c0_328] : memref<1x11x11x8xbf16, #tpu.memory_space<vmem>>, vector<1x8x8x8xbf16>
    %311 = vector.shape_cast %310 : vector<1x8x8x8xbf16> to vector<8x8x8xbf16>
    %312 = vector.shape_cast %311 : vector<8x8x8xbf16> to vector<64x8xbf16>
    %c3_329 = arith.constant 3 : index
    %c0_330 = arith.constant 0 : index
    %c1_331 = arith.constant 1 : index
    %c0_332 = arith.constant 0 : index
    %c0_333 = arith.constant 0 : index
    %313 = vector.load %arg5[%c3_329, %c0_330, %c1_331, %c0_332, %c0_333] : memref<4x3x3x8x4xbf16, #tpu.memory_space<vmem>>, vector<1x1x1x8x4xbf16>
    %314 = vector.shape_cast %313 : vector<1x1x1x8x4xbf16> to vector<8x4xbf16>
    %cst_334 = arith.constant dense<0.000000e+00> : vector<64x4xf32>
    %315 = tpu.matmul %312, %314, %cst_334 {dimension_numbers = #tpu.dot_dimension_numbers<[1], [0], [0], [1], [0, 0, 1, 1], [], []>} : vector<64x8xbf16>, vector<8x4xbf16>, vector<64x4xf32> -> vector<64x4xf32>
    %316 = arith.addf %306, %315 : vector<64x4xf32>
    %c0_i32_335 = arith.constant 0 : i32
    %317 = arith.addi %4, %c0_i32_335 : i32
    %c1_i32_336 = arith.constant 1 : i32
    %318 = arith.addi %317, %c1_i32_336 : i32
    %c0_337 = arith.constant 0 : index
    %319 = arith.index_cast %318 : i32 to index
    %c3_338 = arith.constant 3 : index
    %c0_339 = arith.constant 0 : index
    %320 = vector.load %arg4[%c0_337, %319, %c3_338, %c0_339] : memref<1x11x11x8xbf16, #tpu.memory_space<vmem>>, vector<1x8x8x8xbf16>
    %321 = vector.shape_cast %320 : vector<1x8x8x8xbf16> to vector<8x8x8xbf16>
    %322 = vector.shape_cast %321 : vector<8x8x8xbf16> to vector<64x8xbf16>
    %c3_340 = arith.constant 3 : index
    %c0_341 = arith.constant 0 : index
    %c2_342 = arith.constant 2 : index
    %c0_343 = arith.constant 0 : index
    %c0_344 = arith.constant 0 : index
    %323 = vector.load %arg5[%c3_340, %c0_341, %c2_342, %c0_343, %c0_344] : memref<4x3x3x8x4xbf16, #tpu.memory_space<vmem>>, vector<1x1x1x8x4xbf16>
    %324 = vector.shape_cast %323 : vector<1x1x1x8x4xbf16> to vector<8x4xbf16>
    %cst_345 = arith.constant dense<0.000000e+00> : vector<64x4xf32>
    %325 = tpu.matmul %322, %324, %cst_345 {dimension_numbers = #tpu.dot_dimension_numbers<[1], [0], [0], [1], [0, 0, 1, 1], [], []>} : vector<64x8xbf16>, vector<8x4xbf16>, vector<64x4xf32> -> vector<64x4xf32>
    %326 = arith.addf %316, %325 : vector<64x4xf32>
    %c1_i32_346 = arith.constant 1 : i32
    %327 = arith.addi %4, %c1_i32_346 : i32
    %c1_i32_347 = arith.constant 1 : i32
    %328 = arith.addi %327, %c1_i32_347 : i32
    %c0_348 = arith.constant 0 : index
    %329 = arith.index_cast %328 : i32 to index
    %c1_349 = arith.constant 1 : index
    %c0_350 = arith.constant 0 : index
    %330 = vector.load %arg4[%c0_348, %329, %c1_349, %c0_350] : memref<1x11x11x8xbf16, #tpu.memory_space<vmem>>, vector<1x8x8x8xbf16>
    %331 = vector.shape_cast %330 : vector<1x8x8x8xbf16> to vector<8x8x8xbf16>
    %332 = vector.shape_cast %331 : vector<8x8x8xbf16> to vector<64x8xbf16>
    %c3_351 = arith.constant 3 : index
    %c1_352 = arith.constant 1 : index
    %c0_353 = arith.constant 0 : index
    %c0_354 = arith.constant 0 : index
    %c0_355 = arith.constant 0 : index
    %333 = vector.load %arg5[%c3_351, %c1_352, %c0_353, %c0_354, %c0_355] : memref<4x3x3x8x4xbf16, #tpu.memory_space<vmem>>, vector<1x1x1x8x4xbf16>
    %334 = vector.shape_cast %333 : vector<1x1x1x8x4xbf16> to vector<8x4xbf16>
    %cst_356 = arith.constant dense<0.000000e+00> : vector<64x4xf32>
    %335 = tpu.matmul %332, %334, %cst_356 {dimension_numbers = #tpu.dot_dimension_numbers<[1], [0], [0], [1], [0, 0, 1, 1], [], []>} : vector<64x8xbf16>, vector<8x4xbf16>, vector<64x4xf32> -> vector<64x4xf32>
    %336 = arith.addf %326, %335 : vector<64x4xf32>
    %c1_i32_357 = arith.constant 1 : i32
    %337 = arith.addi %4, %c1_i32_357 : i32
    %c1_i32_358 = arith.constant 1 : i32
    %338 = arith.addi %337, %c1_i32_358 : i32
    %c0_359 = arith.constant 0 : index
    %339 = arith.index_cast %338 : i32 to index
    %c2_360 = arith.constant 2 : index
    %c0_361 = arith.constant 0 : index
    %340 = vector.load %arg4[%c0_359, %339, %c2_360, %c0_361] : memref<1x11x11x8xbf16, #tpu.memory_space<vmem>>, vector<1x8x8x8xbf16>
    %341 = vector.shape_cast %340 : vector<1x8x8x8xbf16> to vector<8x8x8xbf16>
    %342 = vector.shape_cast %341 : vector<8x8x8xbf16> to vector<64x8xbf16>
    %c3_362 = arith.constant 3 : index
    %c1_363 = arith.constant 1 : index
    %c1_364 = arith.constant 1 : index
    %c0_365 = arith.constant 0 : index
    %c0_366 = arith.constant 0 : index
    %343 = vector.load %arg5[%c3_362, %c1_363, %c1_364, %c0_365, %c0_366] : memref<4x3x3x8x4xbf16, #tpu.memory_space<vmem>>, vector<1x1x1x8x4xbf16>
    %344 = vector.shape_cast %343 : vector<1x1x1x8x4xbf16> to vector<8x4xbf16>
    %cst_367 = arith.constant dense<0.000000e+00> : vector<64x4xf32>
    %345 = tpu.matmul %342, %344, %cst_367 {dimension_numbers = #tpu.dot_dimension_numbers<[1], [0], [0], [1], [0, 0, 1, 1], [], []>} : vector<64x8xbf16>, vector<8x4xbf16>, vector<64x4xf32> -> vector<64x4xf32>
    %346 = arith.addf %336, %345 : vector<64x4xf32>
    %c1_i32_368 = arith.constant 1 : i32
    %347 = arith.addi %4, %c1_i32_368 : i32
    %c1_i32_369 = arith.constant 1 : i32
    %348 = arith.addi %347, %c1_i32_369 : i32
    %c0_370 = arith.constant 0 : index
    %349 = arith.index_cast %348 : i32 to index
    %c3_371 = arith.constant 3 : index
    %c0_372 = arith.constant 0 : index
    %350 = vector.load %arg4[%c0_370, %349, %c3_371, %c0_372] : memref<1x11x11x8xbf16, #tpu.memory_space<vmem>>, vector<1x8x8x8xbf16>
    %351 = vector.shape_cast %350 : vector<1x8x8x8xbf16> to vector<8x8x8xbf16>
    %352 = vector.shape_cast %351 : vector<8x8x8xbf16> to vector<64x8xbf16>
    %c3_373 = arith.constant 3 : index
    %c1_374 = arith.constant 1 : index
    %c2_375 = arith.constant 2 : index
    %c0_376 = arith.constant 0 : index
    %c0_377 = arith.constant 0 : index
    %353 = vector.load %arg5[%c3_373, %c1_374, %c2_375, %c0_376, %c0_377] : memref<4x3x3x8x4xbf16, #tpu.memory_space<vmem>>, vector<1x1x1x8x4xbf16>
    %354 = vector.shape_cast %353 : vector<1x1x1x8x4xbf16> to vector<8x4xbf16>
    %cst_378 = arith.constant dense<0.000000e+00> : vector<64x4xf32>
    %355 = tpu.matmul %352, %354, %cst_378 {dimension_numbers = #tpu.dot_dimension_numbers<[1], [0], [0], [1], [0, 0, 1, 1], [], []>} : vector<64x8xbf16>, vector<8x4xbf16>, vector<64x4xf32> -> vector<64x4xf32>
    %356 = arith.addf %346, %355 : vector<64x4xf32>
    %c2_i32_379 = arith.constant 2 : i32
    %357 = arith.addi %4, %c2_i32_379 : i32
    %c1_i32_380 = arith.constant 1 : i32
    %358 = arith.addi %357, %c1_i32_380 : i32
    %c0_381 = arith.constant 0 : index
    %359 = arith.index_cast %358 : i32 to index
    %c1_382 = arith.constant 1 : index
    %c0_383 = arith.constant 0 : index
    %360 = vector.load %arg4[%c0_381, %359, %c1_382, %c0_383] : memref<1x11x11x8xbf16, #tpu.memory_space<vmem>>, vector<1x8x8x8xbf16>
    %361 = vector.shape_cast %360 : vector<1x8x8x8xbf16> to vector<8x8x8xbf16>
    %362 = vector.shape_cast %361 : vector<8x8x8xbf16> to vector<64x8xbf16>
    %c3_384 = arith.constant 3 : index
    %c2_385 = arith.constant 2 : index
    %c0_386 = arith.constant 0 : index
    %c0_387 = arith.constant 0 : index
    %c0_388 = arith.constant 0 : index
    %363 = vector.load %arg5[%c3_384, %c2_385, %c0_386, %c0_387, %c0_388] : memref<4x3x3x8x4xbf16, #tpu.memory_space<vmem>>, vector<1x1x1x8x4xbf16>
    %364 = vector.shape_cast %363 : vector<1x1x1x8x4xbf16> to vector<8x4xbf16>
    %cst_389 = arith.constant dense<0.000000e+00> : vector<64x4xf32>
    %365 = tpu.matmul %362, %364, %cst_389 {dimension_numbers = #tpu.dot_dimension_numbers<[1], [0], [0], [1], [0, 0, 1, 1], [], []>} : vector<64x8xbf16>, vector<8x4xbf16>, vector<64x4xf32> -> vector<64x4xf32>
    %366 = arith.addf %356, %365 : vector<64x4xf32>
    %c2_i32_390 = arith.constant 2 : i32
    %367 = arith.addi %4, %c2_i32_390 : i32
    %c1_i32_391 = arith.constant 1 : i32
    %368 = arith.addi %367, %c1_i32_391 : i32
    %c0_392 = arith.constant 0 : index
    %369 = arith.index_cast %368 : i32 to index
    %c2_393 = arith.constant 2 : index
    %c0_394 = arith.constant 0 : index
    %370 = vector.load %arg4[%c0_392, %369, %c2_393, %c0_394] : memref<1x11x11x8xbf16, #tpu.memory_space<vmem>>, vector<1x8x8x8xbf16>
    %371 = vector.shape_cast %370 : vector<1x8x8x8xbf16> to vector<8x8x8xbf16>
    %372 = vector.shape_cast %371 : vector<8x8x8xbf16> to vector<64x8xbf16>
    %c3_395 = arith.constant 3 : index
    %c2_396 = arith.constant 2 : index
    %c1_397 = arith.constant 1 : index
    %c0_398 = arith.constant 0 : index
    %c0_399 = arith.constant 0 : index
    %373 = vector.load %arg5[%c3_395, %c2_396, %c1_397, %c0_398, %c0_399] : memref<4x3x3x8x4xbf16, #tpu.memory_space<vmem>>, vector<1x1x1x8x4xbf16>
    %374 = vector.shape_cast %373 : vector<1x1x1x8x4xbf16> to vector<8x4xbf16>
    %cst_400 = arith.constant dense<0.000000e+00> : vector<64x4xf32>
    %375 = tpu.matmul %372, %374, %cst_400 {dimension_numbers = #tpu.dot_dimension_numbers<[1], [0], [0], [1], [0, 0, 1, 1], [], []>} : vector<64x8xbf16>, vector<8x4xbf16>, vector<64x4xf32> -> vector<64x4xf32>
    %376 = arith.addf %366, %375 : vector<64x4xf32>
    %c2_i32_401 = arith.constant 2 : i32
    %377 = arith.addi %4, %c2_i32_401 : i32
    %c1_i32_402 = arith.constant 1 : i32
    %378 = arith.addi %377, %c1_i32_402 : i32
    %c0_403 = arith.constant 0 : index
    %379 = arith.index_cast %378 : i32 to index
    %c3_404 = arith.constant 3 : index
    %c0_405 = arith.constant 0 : index
    %380 = vector.load %arg4[%c0_403, %379, %c3_404, %c0_405] : memref<1x11x11x8xbf16, #tpu.memory_space<vmem>>, vector<1x8x8x8xbf16>
    %381 = vector.shape_cast %380 : vector<1x8x8x8xbf16> to vector<8x8x8xbf16>
    %382 = vector.shape_cast %381 : vector<8x8x8xbf16> to vector<64x8xbf16>
    %c3_406 = arith.constant 3 : index
    %c2_407 = arith.constant 2 : index
    %c2_408 = arith.constant 2 : index
    %c0_409 = arith.constant 0 : index
    %c0_410 = arith.constant 0 : index
    %383 = vector.load %arg5[%c3_406, %c2_407, %c2_408, %c0_409, %c0_410] : memref<4x3x3x8x4xbf16, #tpu.memory_space<vmem>>, vector<1x1x1x8x4xbf16>
    %384 = vector.shape_cast %383 : vector<1x1x1x8x4xbf16> to vector<8x4xbf16>
    %cst_411 = arith.constant dense<0.000000e+00> : vector<64x4xf32>
    %385 = tpu.matmul %382, %384, %cst_411 {dimension_numbers = #tpu.dot_dimension_numbers<[1], [0], [0], [1], [0, 0, 1, 1], [], []>} : vector<64x8xbf16>, vector<8x4xbf16>, vector<64x4xf32> -> vector<64x4xf32>
    %386 = arith.addf %376, %385 : vector<64x4xf32>
    %c3_412 = arith.constant 3 : index
    %c0_413 = arith.constant 0 : index
    %c0_414 = arith.constant 0 : index
    %387 = vector.load %arg7[%c3_412, %c0_413, %c0_414] : memref<4x64x4xf32, #tpu.memory_space<vmem>>, vector<1x64x4xf32>
    %388 = vector.shape_cast %387 : vector<1x64x4xf32> to vector<64x4xf32>
    %389 = arith.addf %388, %386 : vector<64x4xf32>
    %c3_415 = arith.constant 3 : index
    %c0_416 = arith.constant 0 : index
    %c0_417 = arith.constant 0 : index
    %390 = vector.load %arg7[%c3_415, %c0_416, %c0_417] : memref<4x64x4xf32, #tpu.memory_space<vmem>>, vector<1x64x4xf32>
    %391 = vector.shape_cast %390 : vector<1x64x4xf32> to vector<64x4xf32>
    %392 = vector.shape_cast %389 : vector<64x4xf32> to vector<1x64x4xf32>
    tpu.vector_store %arg7[%c3_415, %c0_416, %c0_417], %392 {strides = array<i32>} : memref<4x64x4xf32, #tpu.memory_space<vmem>>, vector<1x64x4xf32>,
    %c0_i32_418 = arith.constant 0 : i32
    %393 = arith.cmpi eq, %arg3, %c0_i32_418 : i32
    %394 = arith.extui %393 : i1 to i32
    %c0_i32_419 = arith.constant 0 : i32
    %395 = arith.cmpi ne, %394, %c0_i32_419 : i32
    scf.if %395 {
      %c0_420 = arith.constant 0 : index
      %c0_421 = arith.constant 0 : index
      %c0_422 = arith.constant 0 : index
      %396 = vector.load %arg7[%c0_420, %c0_421, %c0_422] : memref<4x64x4xf32, #tpu.memory_space<vmem>>, vector<4x64x4xf32>
      %397 = arith.truncf %396 : vector<4x64x4xf32> to vector<4x64x4xbf16>
      %c0_423 = arith.constant 0 : index
      %c0_424 = arith.constant 0 : index
      %c0_425 = arith.constant 0 : index
      %c0_426 = arith.constant 0 : index
      %398 = vector.load %arg6[%c0_423, %c0_424, %c0_425, %c0_426] : memref<1x4x64x4xbf16, #tpu.memory_space<vmem>>, vector<1x4x64x4xbf16>
      %399 = vector.shape_cast %398 : vector<1x4x64x4xbf16> to vector<4x64x4xbf16>
      %400 = vector.shape_cast %397 : vector<4x64x4xbf16> to vector<1x4x64x4xbf16>
      tpu.vector_store %arg6[%c0_423, %c0_424, %c0_425, %c0_426], %400 {strides = array<i32>} : memref<1x4x64x4xbf16, #tpu.memory_space<vmem>>, vector<1x4x64x4xbf16>,
    } else {
    }
    return
  }
  func.func @transform_0(%arg0: i32, %arg1: i32, %arg2: i32, %arg3: i32) -> (i32, i32, i32, i32) {
    %c0_i32 = arith.constant 0 : i32
    %c0_i32_0 = arith.constant 0 : i32
    %c0_i32_1 = arith.constant 0 : i32
    return %arg0, %c0_i32, %c0_i32_0, %arg3 : i32, i32, i32, i32
  }
  func.func @transform_1(%arg0: i32, %arg1: i32, %arg2: i32, %arg3: i32) -> (i32, i32, i32, i32, i32) {
    %c0_i32 = arith.constant 0 : i32
    %c0_i32_0 = arith.constant 0 : i32
    %c0_i32_1 = arith.constant 0 : i32
    %c0_i32_2 = arith.constant 0 : i32
    return %c0_i32, %c0_i32_0, %c0_i32_1, %arg3, %arg2 : i32, i32, i32, i32, i32
  }
  func.func @transform_2(%arg0: i32, %arg1: i32, %arg2: i32, %arg3: i32) -> (i32, i32, i32, i32) {
    %c0_i32 = arith.constant 0 : i32
    %c0_i32_0 = arith.constant 0 : i32
    return %arg0, %c0_i32, %arg1, %arg2 : i32, i32, i32, i32
  }
}

</mosaic_0001>

<bundles_post_ra>
// kernel: tpu_custom_call.1
= control target key start
LH: loop header
LB: loop body
LE: loop exit
PB: predicated region body
PF: predicated region fallthrough
CT: control target
= control target key end

     0   :  { %vm212_vm0 = vcmask 1043456   ;;  %vm199_vm1 = vcmask 64512   ;;  %vm70_vm2 = vsmask.f32 3328  ;;  %vm71_vm3 = vsmask.f32 7440  ;;  %s12199_s1 = inlined_call_operand.vmem [shape: bf16[4,3,3,8,4], index: 1, kind: input, shape index: {}]   ;;  %s12200_s0 = inlined_call_operand.vmem [shape: bf16[1,11,11,8], index: 0, kind: input, shape index: {}]   ;;  %s12201_s2 = inlined_call_operand.vmem [shape: bf16[1,4,64,4], index: 2, kind: output, shape index: {}]  }
   0x1   :  { %v61_v0 = vld [vmem:[%s12199_s1] sm:$0xf]  ;;  %v7186_v1 = vld [vmem:[%s12199_s1 + $0x4] sm:$0xf]  ;;  %v54_v4 = vld [vmem:[%s12200_s0 + $0x8] sm:$0xf] }
   0x2   :  { %v53_v2 = vld [vmem:[%s12200_s0] sm:$0xf]  ;;  %8522 = vmatprep.subr.msk.bf16.mxu1 %vm212_vm0, %v61_v0  ;;  %v314_v3 = vsel %vm212_vm0, %v61_v0, 0  ;;  %8521 = vmatprep.subr.msk.bf16.mxu0 %vm212_vm0, %v7186_v1  ;;  %v214_v7 = vsel %vm212_vm0, %v7186_v1, 0  ;;  %v88_v8 = vshrl.u32 %v54_v4, 16  ;;  %v91_v9 = vshll.u32 %v54_v4, 16  ;;  %vm8649_vm4 = vmor %vm70_vm2, %vm71_vm3 }
   0x3   :  { %v74_v5 = vshrl.u32 %v53_v2, 16  ;;  %v77_v6 = vshll.u32 %v53_v2, 16  ;;  %8172 = vmatpush3.bf16.msra.mxu1 %v314_v3  ;;  %v7195_v10 = vcombine.low %v53_v2, %v54_v4  ;;  %8162 = vmatpush3.bf16.msra.mxu0 %v214_v7  ;;  %v55_v11 = vld [vmem:[%s12200_s0 + $0x10] sm:$0xf]  ;;  %v56_v12 = vld [vmem:[%s12200_s0 + $0x18] sm:$0xf] }
   0x4   :  { %v102_v15 = vshrl.u32 %v55_v11, 16  ;;  %v105_v16 = vshll.u32 %v55_v11, 16  ;;  %v8623_v17 = vld [vmem:[%s12200_s0 + $0x4] sm:$0x1]  ;;  %v90_v18 = vrot.slane %v88_v8, 4  ;;  %v93_v19 = vrot.slane %v91_v9, 5 }
   0x5   :  { %v76_v13 = vrot.slane %v74_v5, 4  ;;  %v79_v14 = vrot.slane %v77_v6, 5  ;;  %8173 = vmatprep.mubr.msk.bf16.mxu1 %vm199_vm1, %v7195_v10  ;;  %v116_v20 = vshrl.u32 %v56_v12, 16  ;;  %v119_v21 = vshll.u32 %v56_v12, 16  ;;  %v8629_v22 = vld [vmem:[%s12200_s0 + $0xc] sm:$0x1] }
   0x6   :  { %v104_v23 = vrot.slane %v102_v15, 4  ;;  %v107_v24 = vrot.slane %v105_v16, 5  ;;  %v7196_v25 = vcombine.low %v55_v11, %v56_v12  ;;  %v7211_v27 = vld [vmem:[%s12199_s1 + $0x8] sm:$0xf]  ;;  %v8637_v28 = vld [vmem:[%s12200_s0 + $0x14] sm:$0x1]  ;;  %v94_v32 = vor.u32 %v93_v19, %v90_v18 }
   0x7   :  { %v80_v26 = vor.u32 %v79_v14, %v76_v13  ;;  %v118_v29 = vrot.slane %v116_v20, 4  ;;  %v121_v30 = vrot.slane %v119_v21, 5  ;;  %v83_v31 = vshll.u32 %v8623_v17, 16  ;;  %8523 = vmatprep.subr.msk.bf16.mxu0 %vm212_vm0, %v7211_v27  ;;  %v8644_v33 = vld [vmem:[%s12200_s0 + $0x1c] sm:$0x1] }
   0x8   :  { %8174 = vmatmul.mubr.msk.bf16.vlgmr.msra.gmra.mxu1 %vm199_vm1, %v7196_v25  ;;  %v97_v36 = vshll.u32 %v8629_v22, 16  ;;  %v410_v37 = vrot.slane %v8623_v17, 5  ;;  %v414_v38 = vrot.slane %v8629_v22, 5  ;;  %v7228_v39 = vld [vmem:[%s12199_s1 + $0xc] sm:$0xf]  ;;  %v95_v41 = vrot.slane %v94_v32, 4 }
   0x9   :  { %v81_v35 = vrot.slane %v80_v26, 4  ;;  %v85_v40 = vrot.slane %v83_v31, 5  ;;  %v108_v42 = vor.u32 %v107_v24, %v104_v23  ;;  %v111_v43 = vshll.u32 %v8637_v28, 16  ;;  %8524 = vmatprep.subr.msk.bf16.mxu1 %vm212_vm0, %v7228_v39  ;;  %v57_v48 = vld [vmem:[%s12200_s0 + $0x20] sm:$0xf] }
   0xa   :  { %v99_v44 = vrot.slane %v97_v36, 5  ;;  %v122_v45 = vor.u32 %v121_v30, %v118_v29  ;;  %v125_v46 = vshll.u32 %v8644_v33, 16  ;;  %v418_v47 = vrot.slane %v8637_v28, 5  ;;  %v58_v53 = vld [vmem:[%s12200_s0 + $0x28] sm:$0xf] }
   0xb   :  { %v86_v49 = vsel %vm8649_vm4, %v81_v35, %v85_v40  ;;  %v109_v50 = vrot.slane %v108_v42, 4  ;;  %v113_v51 = vrot.slane %v111_v43, 5  ;;  %v422_v52 = vrot.slane %v8644_v33, 5  ;;  %v59_v58 = vld [vmem:[%s12200_s0 + $0x30] sm:$0xf] }
   0xc   :  { %v100_v54 = vsel %vm8649_vm4, %v95_v41, %v99_v44  ;;  %v123_v55 = vrot.slane %v122_v45, 4  ;;  %v127_v56 = vrot.slane %v125_v46, 5  ;;  %v467_v57 = vsel %vm212_vm0, %v7211_v27, 0  ;;  %v60_v63 = vld [vmem:[%s12200_s0 + $0x38] sm:$0xf] }
   0xd   :  { %v7187_v59 = vcombine.low %v86_v49, %v100_v54  ;;  %v114_v60 = vsel %vm8649_vm4, %v109_v50, %v113_v51  ;;  %v589_v61 = vsel %vm212_vm0, %v7228_v39, 0  ;;  %v130_v62 = vshrl.u32 %v57_v48, 16  ;;  %v8687_v0 = vld [vmem:[%s12200_s0 + $0x24] sm:$0x1]  ;;  %v8694_v5 = vld [vmem:[%s12200_s0 + $0x2c] sm:$0x1] }
   0xe   :  { %v128_v1 = vsel %vm8649_vm4, %v123_v55, %v127_v56  ;;  %8192 = vmatpush3.bf16.msra.mxu1 %v589_v61  ;;  %v133_v2 = vshll.u32 %v57_v48, 16  ;;  %v144_v3 = vshrl.u32 %v58_v53, 16  ;;  %v147_v4 = vshll.u32 %v58_v53, 16  ;;  %v8700_v10 = vld [vmem:[%s12200_s0 + $0x34] sm:$0x1] }
   0xf   :  { %8163 = vmatprep.mubr.msk.bf16.mxu0 %vm199_vm1, %v7187_v59  ;;  %v7188_v6 = vcombine.low %v114_v60, %v128_v1  ;;  %v132_v7 = vrot.slane %v130_v62, 4  ;;  %v7197_v8 = vcombine.low %v57_v48, %v58_v53  ;;  %v158_v9 = vshrl.u32 %v59_v58, 16  ;;  %v8705_v15 = vld [vmem:[%s12200_s0 + $0x3c] sm:$0x1]  ;;  %v8562_v21 = vld [vmem:[%s12200_s0 + $0x8] ss:$8 sps:$4 sm:$0xff]  }
  0x10   :  { %v135_v11 = vrot.slane %v133_v2, 5  ;;  %v146_v12 = vrot.slane %v144_v3, 4  ;;  %v149_v13 = vrot.slane %v147_v4, 5  ;;  %v161_v14 = vshll.u32 %v59_v58, 16  ;;  %v381_v40 = vld [vmem:[%s12200_s0] sm:$0xe] }
  0x11   :  { %8164 = vmatmul.mubr.msk.bf16.vlgmr.msra.gmra.mxu0 %vm199_vm1, %v7188_v6  ;;  %8177 = vmatprep.mubr.msk.bf16.mxu1 %vm199_vm1, %v7197_v8  ;;  %v160_v16 = vrot.slane %v158_v9, 4  ;;  %v172_v18 = vshrl.u32 %v60_v63, 16  ;;  %v175_v19 = vshll.u32 %v60_v63, 16  ;;  %v7198_v20 = vcombine.low %v59_v58, %v60_v63  ;;  %v8563_v45 = vld [vmem:[%s12200_s0 + $0x18] ss:$8 sps:$4 sm:$0xff]  }
  0x12   :  { %8182 = vmatpush3.bf16.msra.mxu0 %v467_v57  ;;  %v163_v23 = vrot.slane %v161_v14, 5  ;;  %v136_v24 = vor.u32 %v135_v11, %v132_v7  ;;  %v139_v25 = vshll.u32 %v8687_v0, 16  ;;  %v150_v26 = vor.u32 %v149_v13, %v146_v12  ;;  %v382_v46 = vld [vmem:[%s12200_s0 + $0x8] sm:$0xe]  ;;  %v7253_v50 = vld [vmem:[%s12199_s1 + $0x10] sm:$0xf] }
  0x13   :  { %v174_v27 = vrot.slane %v172_v18, 4  ;;  %v177_v29 = vrot.slane %v175_v19, 5  ;;  %8178 = vmatmul.mubr.msk.bf16.gmra.mxu1 %vm199_vm1, %v7198_v20  ;;  %v153_v30 = vshll.u32 %v8694_v5, 16  ;;  %v167_v31 = vshll.u32 %v8700_v10, 16  ;;  %8525 = vmatprep.subr.msk.bf16.mxu0 %vm212_vm0, %v7253_v50  ;;  %v383_v57 = vld [vmem:[%s12200_s0 + $0x10] sm:$0xe] }
  0x14   :  { %v137_v32 = vrot.slane %v136_v24, 4  ;;  %v141_v35 = vrot.slane %v139_v25, 5  ;;  %v151_v36 = vrot.slane %v150_v26, 4  ;;  %v164_v39 = vor.u32 %v163_v23, %v160_v16  ;;  %8193 = vmatprep.mubr.msk.bf16.mxu1 %vm199_vm1, %v8562_v21  ;;  %v384_v61 = vld [vmem:[%s12200_s0 + $0x18] sm:$0xe] }
  0x15   :  { %v155_v41 = vrot.slane %v153_v30, 5  ;;  %v169_v42 = vrot.slane %v167_v31, 5  ;;  %v178_v43 = vor.u32 %v177_v29, %v174_v27  ;;  %v181_v44 = vshll.u32 %v8705_v15, 16  ;;  %v7278_v63 = vld [vmem:[%s12199_s1 + $0x14] sm:$0xf] }
  0x16   :  { %v142_v48 = vsel %vm8649_vm4, %v137_v32, %v141_v35  ;;  %v165_v49 = vrot.slane %v164_v39, 4  ;;  %vm405_vm5 = vcmask 1042432   ;;  %vm406_vm6 = vcmask 1046532   ;;  %8526 = vmatprep.subr.msk.bf16.mxu1 %vm212_vm0, %v7278_v63  ;;  %v8564_v17 = vld [vmem:[%s12200_s0 + $0x28] ss:$8 sps:$4 sm:$0xff]  }
  0x17   :  { %v156_v51 = vsel %vm8649_vm4, %v151_v36, %v155_v41  ;;  %v179_v53 = vrot.slane %v178_v43, 4  ;;  %v183_v54 = vrot.slane %v181_v44, 5  ;;  %vm8734_vm7 = vmor %vm405_vm5, %vm406_vm6  ;;  %v7203_v56 = vrot.slane %v381_v40, 9  ;;  %v385_v22 = vld [vmem:[%s12200_s0 + $0x20] sm:$0xe] }
  0x18   :  { %v7189_v58 = vcombine.low %v142_v48, %v156_v51  ;;  %v170_v59 = vsel %vm8649_vm4, %v165_v49, %v169_v42  ;;  %v7204_v60 = vrot.slane %v382_v46, 9  ;;  %v7205_v62 = vrot.slane %v383_v57, 9  ;;  %v386_v28 = vld [vmem:[%s12200_s0 + $0x28] sm:$0xe]  ;;  %v8565_v33 = vld [vmem:[%s12200_s0 + $0x38] ss:$8 sps:$4 sm:$0xff]  }
  0x19   :  { %v184_v1 = vsel %vm8649_vm4, %v179_v53, %v183_v54  ;;  %v411_v2 = vsel %vm8734_vm7, %v7203_v56, %v410_v37  ;;  %v7206_v3 = vrot.slane %v384_v61, 9  ;;  %v977_v7 = vsel %vm212_vm0, %v7278_v63, 0  ;;  %v388_v14 = vld [vmem:[%s12200_s0 + $0x38] sm:$0xe]  ;;  %v7238_v20 = vld [vmem:[%s12200_s0 + $0xc] sm:$0x1] }
  0x1a   :  { %8167 = vmatprep.mubr.msk.bf16.mxu0 %vm199_vm1, %v7189_v58  ;;  %v7190_v4 = vcombine.low %v170_v59, %v184_v1  ;;  %v415_v6 = vsel %vm8734_vm7, %v7204_v60, %v414_v38  ;;  %v419_v8 = vsel %vm8734_vm7, %v7205_v62, %v418_v47  ;;  %v819_v9 = vsel %vm212_vm0, %v7253_v50, 0  ;;  %v7240_v24 = vld [vmem:[%s12200_s0 + $0x14] sm:$0x1]  ;;  %v7242_v30 = vld [vmem:[%s12200_s0 + $0x1c] sm:$0x1] }
  0x1b   :  { %8194 = vmatmul.mubr.msk.bf16.vlgmr.msra.gmra.mxu1 %vm199_vm1, %v8563_v45  ;;  %v7212_v37 = vcombine.low %v411_v2, %v415_v6  ;;  %v423_v38 = vsel %vm8734_vm7, %v7206_v3, %v422_v52  ;;  %v7207_v11 = vrot.slane %v385_v22, 9  ;;  %v426_v47 = vrot.slane %v8687_v0, 5  ;;  %v387_v52 = vld [vmem:[%s12200_s0 + $0x30] sm:$0xe]  ;;  %v8828_v31 = vld [vmem:[%s12200_s0 + $0x24] sm:$0x1] }
  0x1c   :  { %8168 = vmatmul.mubr.msk.bf16.gmra.mxu0 %vm199_vm1, %v7190_v4  ;;  %8212 = vmatpush3.bf16.msra.mxu1 %v977_v7  ;;  %v430_v12 = vrot.slane %v8694_v5, 5  ;;  %v7208_v13 = vrot.slane %v386_v28, 9  ;;  %v434_v0 = vrot.slane %v8700_v10, 5  ;;  %v7209_v16 = vrot.slane %v387_v52, 9  ;;  %v7262_v10 = vld [vmem:[%s12200_s0 + $0x8] sm:$0xe] }
  0x1d   :  { %8183 = vmatprep.mubr.msk.bf16.mxu0 %vm199_vm1, %v7212_v37  ;;  %8197 = vmatprep.mubr.msk.bf16.mxu1 %vm199_vm1, %v8564_v17  ;;  %v427_v5 = vsel %vm8734_vm7, %v7207_v11, %v426_v47  ;;  %v7210_v18 = vrot.slane %v388_v14, 9  ;;  %v438_v19 = vrot.slane %v8705_v15, 5  ;;  %v7213_v21 = vcombine.low %v419_v8, %v423_v38  ;;  %v7263_v15 = vld [vmem:[%s12200_s0 + $0x10] sm:$0xe]  ;;  %v7264_v40 = vld [vmem:[%s12200_s0 + $0x18] sm:$0xe] }
  0x1e   :  { %v431_v23 = vsel %vm8734_vm7, %v7208_v13, %v430_v12  ;;  %v8816_v26 = vsel %vm8734_vm7, %v7209_v16, %v434_v0  ;;  %v7270_v29 = vrot.slane %v7262_v10, 9  ;;  %v920_v35 = vrot.slane %v7238_v20, 5  ;;  %v7265_v41 = vld [vmem:[%s12200_s0 + $0x20] sm:$0xe]  ;;  %v7237_v50 = vld [vmem:[%s12200_s0 + $0x8] sm:$0xf] }
  0x1f   :  { %v7214_v25 = vcombine.low %v427_v5, %v431_v23  ;;  %v8820_v27 = vsel %vm8734_vm7, %v7210_v18, %v438_v19  ;;  %v7271_v36 = vrot.slane %v7263_v15, 9  ;;  %v924_v39 = vrot.slane %v7240_v24, 5  ;;  %v7239_v51 = vld [vmem:[%s12200_s0 + $0x10] sm:$0xf]  ;;  %v7295_v59 = vld [vmem:[%s12199_s1 + $0x18] sm:$0xf] }
  0x20   :  { %v7215_v32 = vcombine.low %v8816_v26, %v8820_v27  ;;  %v7272_v42 = vrot.slane %v7264_v40, 9  ;;  %v928_v43 = vrot.slane %v7242_v30, 5  ;;  %v932_v44 = vrot.slane %v8828_v31, 5  ;;  %v7241_v60 = vld [vmem:[%s12200_s0 + $0x18] sm:$0xf] }
  0x21   :  { %v690_v45 = vshll.u32 %v7238_v20, 16  ;;  %v921_v46 = vsel %vm8734_vm7, %v7270_v29, %v920_v35  ;;  %v925_v48 = vsel %vm8734_vm7, %v7271_v36, %v924_v39  ;;  %v7273_v49 = vrot.slane %v7265_v41, 9  ;;  %v7243_v2 = vld [vmem:[%s12200_s0 + $0x20] sm:$0xf]  ;;  %v7320_v17 = vld [vmem:[%s12199_s1 + $0x1c] sm:$0xf] }
  0x22   :  { %v704_v53 = vshll.u32 %v7240_v24, 16  ;;  %v7279_v54 = vcombine.low %v921_v46, %v925_v48  ;;  %v929_v56 = vsel %vm8734_vm7, %v7272_v42, %v928_v43  ;;  %v681_v57 = vshrl.u32 %v7237_v50, 16  ;;  %8528 = vmatprep.subr.msk.bf16.mxu1 %vm212_vm0, %v7320_v17  ;;  %v7246_v12 = vld [vmem:[%s12200_s0 + $0x2c] sm:$0x1]  ;;  %v8878_v0 = vld [vmem:[%s12200_s0 + $0x34] sm:$0x1] }
  0x23   :  { %8198 = vmatmul.mubr.msk.bf16.gmra.mxu1 %vm199_vm1, %v8565_v33  ;;  %v684_v58 = vshll.u32 %v7237_v50, 16  ;;  %v933_v61 = vsel %vm8734_vm7, %v7273_v49, %v932_v44  ;;  %v692_v62 = vrot.slane %v690_v45, 5  ;;  %v695_v63 = vshrl.u32 %v7239_v51, 16  ;;  %v7266_v5 = vld [vmem:[%s12200_s0 + $0x28] sm:$0xe] }
  0x24   :  { %8184 = vmatmul.mubr.msk.bf16.vlgmr.msra.gmra.mxu0 %vm199_vm1, %v7213_v21  ;;  %v698_v1 = vshll.u32 %v7239_v51, 16  ;;  %8213 = vmatprep.mubr.msk.bf16.mxu1 %vm199_vm1, %v7279_v54  ;;  %v7280_v3 = vcombine.low %v929_v56, %v933_v61  ;;  %v683_v4 = vrot.slane %v681_v57, 4  ;;  %v706_v7 = vrot.slane %v704_v53, 5  ;;  %v7267_v21 = vld [vmem:[%s12200_s0 + $0x30] sm:$0xe] }
  0x25   :  { %8202 = vmatpush3.bf16.msra.mxu0 %v819_v9  ;;  %8187 = vmatprep.mubr.msk.bf16.mxu0 %vm199_vm1, %v7214_v25  ;;  %v686_v6 = vrot.slane %v684_v58, 5  ;;  %v697_v37 = vrot.slane %v695_v63, 4  ;;  %v709_v9 = vshrl.u32 %v7241_v60, 16  ;;  %v712_v22 = vshll.u32 %v7241_v60, 16  ;;  %v8891_v25 = vld [vmem:[%s12200_s0 + $0x3c] sm:$0x1] }
  0x26   :  { %8527 = vmatprep.subr.msk.bf16.mxu0 %vm212_vm0, %v7295_v59  ;;  %v700_v8 = vrot.slane %v698_v1, 5  ;;  %v718_v28 = vshll.u32 %v7242_v30, 16  ;;  %v723_v11 = vshrl.u32 %v7243_v2, 16  ;;  %v726_v47 = vshll.u32 %v7243_v2, 16  ;;  %v8903_v36 = vld [vmem:[%s12200_s0 + $0x44] sm:$0x1] }
  0x27   :  { %v687_v38 = vor.u32 %v686_v6, %v683_v4  ;;  %v711_v13 = vrot.slane %v709_v9, 4  ;;  %v714_v52 = vrot.slane %v712_v22, 5  ;;  %v732_v14 = vshll.u32 %v8828_v31, 16  ;;  %v7268_v39 = vld [vmem:[%s12200_s0 + $0x38] sm:$0xe] }
  0x28   :  { %v701_v33 = vor.u32 %v700_v8, %v697_v37  ;;  %v720_v18 = vrot.slane %v718_v28, 5  ;;  %v725_v19 = vrot.slane %v723_v11, 4  ;;  %v728_v20 = vrot.slane %v726_v47, 5  ;;  %v7269_v41 = vld [vmem:[%s12200_s0 + $0x40] sm:$0xe] }
  0x29   :  { %v688_v16 = vrot.slane %v687_v38, 4  ;;  %v715_v24 = vor.u32 %v714_v52, %v711_v13  ;;  %v734_v10 = vrot.slane %v732_v14, 5  ;;  %v1099_v15 = vsel %vm212_vm0, %v7295_v59, 0  ;;  %v7245_v46 = vld [vmem:[%s12200_s0 + $0x28] sm:$0xf] }
  0x2a   :  { %v702_v23 = vrot.slane %v701_v33, 4  ;;  %v729_v30 = vor.u32 %v728_v20, %v725_v19  ;;  %v1329_v31 = vsel %vm212_vm0, %v7320_v17, 0  ;;  %v7274_v35 = vrot.slane %v7266_v5, 9  ;;  %v7247_v53 = vld [vmem:[%s12200_s0 + $0x30] sm:$0xf] }
  0x2b   :  { %8214 = vmatmul.mubr.msk.bf16.vlgmr.msra.gmra.mxu1 %vm199_vm1, %v7280_v3  ;;  %v693_v29 = vsel %vm8649_vm4, %v688_v16, %v692_v62  ;;  %v716_v27 = vrot.slane %v715_v24, 4  ;;  %v7275_v40 = vrot.slane %v7267_v21, 9  ;;  %v940_v44 = vrot.slane %v8878_v0, 5  ;;  %v7249_v63 = vld [vmem:[%s12200_s0 + $0x38] sm:$0xf] }
  0x2c   :  { %8188 = vmatmul.mubr.msk.bf16.gmra.mxu0 %vm199_vm1, %v7215_v32  ;;  %v707_v26 = vsel %vm8649_vm4, %v702_v23, %v706_v7  ;;  %8232 = vmatpush3.bf16.msra.mxu1 %v1329_v31  ;;  %v936_v32 = vrot.slane %v7246_v12, 5  ;;  %v730_v43 = vrot.slane %v729_v30, 4  ;;  %v7276_v45 = vrot.slane %v7268_v39, 9  ;;  %v7251_v8 = vld [vmem:[%s12200_s0 + $0x40] sm:$0xf] }
  0x2d   :  { %v7254_v42 = vcombine.low %v693_v29, %v707_v26  ;;  %v721_v48 = vsel %vm8649_vm4, %v716_v27, %v720_v18  ;;  %v944_v50 = vrot.slane %v8891_v25, 5  ;;  %v7277_v51 = vrot.slane %v7269_v41, 9  ;;  %v7304_v11 = vld [vmem:[%s12200_s0 + $0x10] sm:$0xf]  ;;  %v8952_v52 = vld [vmem:[%s12200_s0 + $0x14] sm:$0x1] }
  0x2e   :  { %v937_v49 = vsel %vm8734_vm7, %v7274_v35, %v936_v32  ;;  %v735_v54 = vsel %vm8649_vm4, %v730_v43, %v734_v10  ;;  %v941_v56 = vsel %vm8734_vm7, %v7275_v40, %v940_v44  ;;  %v948_v57 = vrot.slane %v8903_v36, 5  ;;  %v7306_v18 = vld [vmem:[%s12200_s0 + $0x18] sm:$0xf]  ;;  %v7308_v26 = vld [vmem:[%s12200_s0 + $0x20] sm:$0xf] }
  0x2f   :  { %8203 = vmatprep.mubr.msk.bf16.mxu0 %vm199_vm1, %v7254_v42  ;;  %v737_v58 = vshrl.u32 %v7245_v46, 16  ;;  %v7255_v59 = vcombine.low %v721_v48, %v735_v54  ;;  %v7281_v60 = vcombine.low %v937_v49, %v941_v56  ;;  %v945_v61 = vsel %vm8734_vm7, %v7276_v45, %v944_v50  ;;  %v7345_v42 = vld [vmem:[%s12199_s1 + $0x20] sm:$0xf]  ;;  %v7310_v48 = vld [vmem:[%s12200_s0 + $0x28] sm:$0xf] }
  0x30   :  { %v740_v62 = vshll.u32 %v7245_v46, 16  ;;  %v949_v1 = vsel %vm8734_vm7, %v7277_v51, %v948_v57  ;;  %v746_v3 = vshll.u32 %v7246_v12, 16  ;;  %v751_v4 = vshrl.u32 %v7247_v53, 16  ;;  %v8988_v54 = vld [vmem:[%s12200_s0 + $0x2c] sm:$0x1] }
  0x31   :  { %v739_v2 = vrot.slane %v737_v58, 4  ;;  %8217 = vmatprep.mubr.msk.bf16.mxu1 %vm199_vm1, %v7281_v60  ;;  %v7282_v6 = vcombine.low %v945_v61, %v949_v1  ;;  %v754_v17 = vshll.u32 %v7247_v53, 16  ;;  %v760_v37 = vshll.u32 %v8878_v0, 16  ;;  %v7363_v60 = vld [vmem:[%s12199_s1 + $0x28] sm:$0xf] }
  0x32   :  { %v742_v7 = vrot.slane %v740_v62, 5  ;;  %v748_v9 = vrot.slane %v746_v3, 5  ;;  %v753_v22 = vrot.slane %v751_v4, 4  ;;  %v765_v38 = vshrl.u32 %v7249_v63, 16  ;;  %8530 = vmatprep.subr.msk.bf16.mxu1 %vm212_vm0, %v7363_v60 }
  0x33   :  { %v768_v28 = vshll.u32 %v7249_v63, 16  ;;  %8218 = vmatmul.mubr.msk.bf16.gmra.mxu1 %vm199_vm1, %v7282_v6  ;;  %v756_v12 = vrot.slane %v754_v17, 5  ;;  %v762_v33 = vrot.slane %v760_v37, 5  ;;  %v774_v13 = vshll.u32 %v8891_v25, 16  ;;  %v8961_v25 = vld [vmem:[%s12200_s0 + $0x1c] sm:$0x1] }
  0x34   :  { %8204 = vmatmul.mubr.msk.bf16.vlgmr.msra.gmra.mxu0 %vm199_vm1, %v7255_v59  ;;  %v743_v47 = vor.u32 %v742_v7, %v739_v2  ;;  %v767_v14 = vrot.slane %v765_v38, 4  ;;  %v779_v5 = vshrl.u32 %v7251_v8, 16  ;;  %v782_v16 = vshll.u32 %v7251_v8, 16  ;;  %v8566_v2 = vld [vmem:[%s12200_s0 + $0x10] ss:$8 sps:$4 sm:$0xff]  }
  0x35   :  { %8222 = vmatpush3.bf16.msra.mxu0 %v1099_v15  ;;  %v770_v0 = vrot.slane %v768_v28, 5  ;;  %v757_v20 = vor.u32 %v756_v12, %v753_v22  ;;  %v776_v21 = vrot.slane %v774_v13, 5  ;;  %v788_v23 = vshll.u32 %v8903_v36, 16  ;;  %v8971_v36 = vld [vmem:[%s12200_s0 + $0x24] sm:$0x1] }
  0x36   :  { %v744_v19 = vrot.slane %v743_v47, 4  ;;  %v781_v10 = vrot.slane %v779_v5, 4  ;;  %v784_v15 = vrot.slane %v782_v16, 5  ;;  %v1191_v29 = vshrl.u32 %v7304_v11, 16  ;;  %8529 = vmatprep.subr.msk.bf16.mxu0 %vm212_vm0, %v7345_v42  ;;  %v7312_v17 = vld [vmem:[%s12200_s0 + $0x30] sm:$0xf] }
  0x37   :  { %v771_v24 = vor.u32 %v770_v0, %v767_v14  ;;  %v758_v31 = vrot.slane %v757_v20, 4  ;;  %v790_v35 = vrot.slane %v788_v23, 5  ;;  %v1194_v39 = vshll.u32 %v7304_v11, 16  ;;  %v9008_v37 = vld [vmem:[%s12200_s0 + $0x34] sm:$0x1] }
  0x38   :  { %v749_v30 = vsel %vm8649_vm4, %v744_v19, %v748_v9  ;;  %v785_v32 = vor.u32 %v784_v15, %v781_v10  ;;  %v1193_v40 = vrot.slane %v1191_v29, 4  ;;  %v1200_v41 = vshll.u32 %v8952_v52, 16  ;;  %v7314_v28 = vld [vmem:[%s12200_s0 + $0x38] sm:$0xf]  ;;  %v9020_v13 = vld [vmem:[%s12200_s0 + $0x3c] sm:$0x1] }
  0x39   :  { %v772_v27 = vrot.slane %v771_v24, 4  ;;  %v763_v43 = vsel %vm8649_vm4, %v758_v31, %v762_v33  ;;  %v1196_v44 = vrot.slane %v1194_v39, 5  ;;  %v1205_v45 = vshrl.u32 %v7306_v18, 16  ;;  %v8567_v23 = vld [vmem:[%s12200_s0 + $0x20] ss:$8 sps:$4 sm:$0xff]  }
  0x3a   :  { %v1208_v46 = vshll.u32 %v7306_v18, 16  ;;  %v7256_v49 = vcombine.low %v749_v30, %v763_v43  ;;  %v786_v51 = vrot.slane %v785_v32, 4  ;;  %v1202_v53 = vrot.slane %v1200_v41, 5  ;;  %v7316_v18 = vld [vmem:[%s12200_s0 + $0x40] sm:$0xf] }
  0x3b   :  { %v777_v50 = vsel %vm8649_vm4, %v772_v27, %v776_v21  ;;  %v1197_v56 = vor.u32 %v1196_v44, %v1193_v40  ;;  %v1207_v57 = vrot.slane %v1205_v45, 4  ;;  %v1214_v59 = vshll.u32 %v8961_v25, 16  ;;  %v9036_v10 = vld [vmem:[%s12200_s0 + $0x44] sm:$0x1]  ;;  %v9049_v44 = vld [vmem:[%s12200_s0 + $0x4c] sm:$0x1] }
  0x3c   :  { %v1210_v58 = vrot.slane %v1208_v46, 5  ;;  %8207 = vmatprep.mubr.msk.bf16.mxu0 %vm199_vm1, %v7256_v49  ;;  %v791_v61 = vsel %vm8649_vm4, %v786_v51, %v790_v35  ;;  %v1219_v62 = vshrl.u32 %v7308_v26, 16  ;;  %v1222_v63 = vshll.u32 %v7308_v26, 16  ;;  %v7318_v35 = vld [vmem:[%s12200_s0 + $0x48] sm:$0xf] }
  0x3d   :  { %v1228_v1 = vshll.u32 %v8971_v36, 16  ;;  %v7257_v3 = vcombine.low %v777_v50, %v791_v61  ;;  %v1198_v4 = vrot.slane %v1197_v56, 4  ;;  %v1216_v7 = vrot.slane %v1214_v59, 5  ;;  %v8568_v50 = vld [vmem:[%s12200_s0 + $0x30] ss:$8 sps:$4 sm:$0xff]  }
  0x3e   :  { %v1211_v6 = vor.u32 %v1210_v58, %v1207_v57  ;;  %v1221_v8 = vrot.slane %v1219_v62, 4  ;;  %v1224_v9 = vrot.slane %v1222_v63, 5  ;;  %v1233_v38 = vshrl.u32 %v7310_v48, 16 }
  0x3f   :  { %v1230_v22 = vrot.slane %v1228_v1, 5  ;;  %8208 = vmatmul.mubr.msk.bf16.gmra.mxu0 %vm199_vm1, %v7257_v3  ;;  %v1203_v11 = vsel %vm8649_vm4, %v1198_v4, %v1202_v53  ;;  %v1236_v12 = vshll.u32 %v7310_v48, 16  ;;  %v1242_v33 = vshll.u32 %v8988_v54, 16  ;;  %v9062_v3 = vld [vmem:[%s12200_s0 + $0x4] sm:$0x1] }
  0x40   :  { %v1212_v47 = vrot.slane %v1211_v6, 4  ;;  %v1225_v14 = vor.u32 %v1224_v9, %v1221_v8  ;;  %v1235_v0 = vrot.slane %v1233_v38, 4  ;;  %8223 = vmatprep.mubr.msk.bf16.mxu0 %vm199_vm1, %v8566_v2  ;;  %v1487_v5 = vsel %vm212_vm0, %v7345_v42, 0  ;;  %v8569_v8 = vld [vmem:[%s12200_s0 + $0x40] ss:$8 sps:$4 sm:$0xff]  }
  0x41   :  { %v1800_v16 = vsel %vm212_vm0, %v7363_v60, 0  ;;  %v1238_v20 = vrot.slane %v1236_v12, 5  ;;  %v1244_v21 = vrot.slane %v1242_v33, 5  ;;  %v1247_v24 = vshrl.u32 %v7312_v17, 16  ;;  %v9071_v9 = vld [vmem:[%s12200_s0 + $0xc] sm:$0x1] }
  0x42   :  { %v1217_v19 = vsel %vm8649_vm4, %v1212_v47, %v1216_v7  ;;  %v1226_v29 = vrot.slane %v1225_v14, 4  ;;  %v1250_v30 = vshll.u32 %v7312_v17, 16  ;;  %v1256_v31 = vshll.u32 %v9008_v37, 16 }
  0x43   :  { %v7321_v15 = vcombine.low %v1203_v11, %v1217_v19  ;;  %v1239_v39 = vor.u32 %v1238_v20, %v1235_v0  ;;  %v1249_v26 = vrot.slane %v1247_v24, 4  ;;  %v1261_v27 = vshrl.u32 %v7314_v28, 16  ;;  %v9084_v11 = vld [vmem:[%s12200_s0 + $0x8] sm:$0xe] }
  0x44   :  { %v1264_v32 = vshll.u32 %v7314_v28, 16  ;;  %v1231_v40 = vsel %vm8649_vm4, %v1226_v29, %v1230_v22  ;;  %v1252_v41 = vrot.slane %v1250_v30, 5  ;;  %v1258_v42 = vrot.slane %v1256_v31, 5  ;;  %v9079_v28 = vld [vmem:[%s12200_s0] sm:$0xe] }
  0x45   :  { %8233 = vmatprep.mubr.msk.bf16.mxu1 %vm199_vm1, %v7321_v15  ;;  %v1270_v43 = vshll.u32 %v9020_v13, 16  ;;  %v1240_v45 = vrot.slane %v1239_v39, 4  ;;  %v1263_v46 = vrot.slane %v1261_v27, 4  ;;  %v1275_v49 = vshrl.u32 %v7316_v18, 16  ;;  %v9112_v29 = vld [vmem:[%s12200_s0 + $0x18] sm:$0xe] }
  0x46   :  { %v1266_v48 = vrot.slane %v1264_v32, 5  ;;  %v1253_v51 = vor.u32 %v1252_v41, %v1249_v26  ;;  %v1278_v56 = vshll.u32 %v7316_v18, 16  ;;  %v1284_v57 = vshll.u32 %v9036_v10, 16  ;;  %v9094_v18 = vld [vmem:[%s12200_s0 + $0x14] sm:$0x1] }
  0x47   :  { %v1272_v53 = vrot.slane %v1270_v43, 5  ;;  %v1245_v58 = vsel %vm8649_vm4, %v1240_v45, %v1244_v21  ;;  %8224 = vmatmul.mubr.msk.bf16.vlgmr.msra.gmra.mxu0 %vm199_vm1, %v8567_v23  ;;  %v1277_v60 = vrot.slane %v1275_v49, 4  ;;  %v1289_v61 = vshrl.u32 %v7318_v35, 16  ;;  %v9105_v23 = vld [vmem:[%s12200_s0 + $0x10] sm:$0xe] }
  0x48   :  { %v1267_v59 = vor.u32 %v1266_v48, %v1263_v46  ;;  %v7322_v62 = vcombine.low %v1231_v40, %v1245_v58  ;;  %8242 = vmatpush3.bf16.msra.mxu0 %v1487_v5  ;;  %v1254_v63 = vrot.slane %v1253_v51, 4  ;;  %v1280_v1 = vrot.slane %v1278_v56, 5  ;;  %8227 = vmatprep.mubr.msk.bf16.mxu0 %vm199_vm1, %v8568_v50  ;;  %v7330_v40 = vld [vmem:[%s12200_s0 + $0x18] sm:$0xe]  ;;  %v7354_v41 = vld [vmem:[%s12199_s1 + $0x24] sm:$0xf] }
  0x49   :  { %v1286_v2 = vrot.slane %v1284_v57, 5  ;;  %v1291_v6 = vrot.slane %v1289_v61, 4  ;;  %v1292_v7 = vshll.u32 %v7318_v35, 16  ;;  %v1298_v17 = vshll.u32 %v9049_v44, 16  ;;  %v7329_v35 = vld [vmem:[%s12200_s0 + $0x10] sm:$0xe]  ;;  %8531 = vmatprep.subr.msk.bf16.mxu0 %vm212_vm0, %v7354_v41 }
  0x4a   :  { %v1268_v4 = vrot.slane %v1267_v59, 4  ;;  %8234 = vmatmul.mubr.msk.bf16.vlgmr.msra.gmra.mxu1 %vm199_vm1, %v7322_v62  ;;  %v1259_v22 = vsel %vm8649_vm4, %v1254_v63, %v1258_v42  ;;  %v1281_v38 = vor.u32 %v1280_v1, %v1277_v60  ;;  %v1743_v47 = vrot.slane %v9062_v3, 5  ;;  %v7331_v48 = vld [vmem:[%s12200_s0 + $0x20] sm:$0xe]  ;;  %v7332_v49 = vld [vmem:[%s12200_s0 + $0x28] sm:$0xe] }
  0x4b   :  { %v1747_v12 = vrot.slane %v9071_v9, 5  ;;  %8252 = vmatpush3.bf16.msra.mxu1 %v1800_v16  ;;  %v1294_v14 = vrot.slane %v1292_v7, 5  ;;  %v1300_v0 = vrot.slane %v1298_v17, 5  ;;  %v7355_v5 = vrot.slane %v9079_v28, 9  ;;  %v9100_v16 = vld [vmem:[%s12200_s0 + $0x1c] sm:$0x1] }
  0x4c   :  { %v1273_v33 = vsel %vm8649_vm4, %v1268_v4, %v1272_v53  ;;  %v1282_v20 = vrot.slane %v1281_v38, 4  ;;  %v7356_v21 = vrot.slane %v9084_v11, 9  ;;  %v7357_v30 = vrot.slane %v9105_v23, 9  ;;  %v7380_v57 = vld [vmem:[%s12199_s1 + $0x2c] sm:$0xf] }
  0x4d   :  { %v7323_v19 = vcombine.low %v1259_v22, %v1273_v33  ;;  %v1295_v24 = vor.u32 %v1294_v14, %v1291_v6  ;;  %v1744_v15 = vsel %vm8734_vm7, %v7355_v5, %v1743_v47  ;;  %v1751_v31 = vrot.slane %v9094_v18, 5  ;;  %8532 = vmatprep.subr.msk.bf16.mxu1 %vm212_vm0, %v7380_v57  ;;  %v9181_v4 = vld [vmem:[%s12200_s0 + $0x28] sm:$0xe]  ;;  %v9190_v22 = vld [vmem:[%s12200_s0 + $0x34] sm:$0x1] }
  0x4e   :  { %v1287_v39 = vsel %vm8649_vm4, %v1282_v20, %v1286_v2  ;;  %v1748_v26 = vsel %vm8734_vm7, %v7356_v21, %v1747_v12  ;;  %v7358_v27 = vrot.slane %v9112_v29, 9  ;;  %v1755_v32 = vrot.slane %v9100_v16, 5  ;;  %v9176_v2 = vld [vmem:[%s12200_s0 + $0x20] sm:$0xe]  ;;  %v9195_v38 = vld [vmem:[%s12200_s0 + $0x3c] sm:$0x1] }
  0x4f   :  { %8237 = vmatprep.mubr.msk.bf16.mxu1 %vm199_vm1, %v7323_v19  ;;  %v1296_v42 = vrot.slane %v1295_v24, 4  ;;  %8228 = vmatmul.mubr.msk.bf16.gmra.mxu0 %vm199_vm1, %v8569_v8  ;;  %v7364_v43 = vcombine.low %v1744_v15, %v1748_v26  ;;  %v9135_v45 = vsel %vm8734_vm7, %v7357_v30, %v1751_v31  ;;  %v7337_v46 = vrot.slane %v7329_v35, 9  ;;  %v9205_v14 = vld [vmem:[%s12200_s0 + $0x30] sm:$0xe]  ;;  %v9215_v19 = vld [vmem:[%s12200_s0 + $0x38] sm:$0xe] }
  0x50   :  { %v9146_v50 = vsel %vm8734_vm7, %v7358_v27, %v1755_v32  ;;  %v1430_v51 = vrot.slane %v8952_v52, 5  ;;  %v7338_v53 = vrot.slane %v7330_v40, 9  ;;  %v1434_v56 = vrot.slane %v8961_v25, 5  ;;  %v9162_v52 = vld [vmem:[%s12200_s0 + $0x24] sm:$0x1] }
  0x51   :  { %v1301_v58 = vsel %vm8649_vm4, %v1296_v42, %v1300_v0  ;;  %v7365_v59 = vcombine.low %v9135_v45, %v9146_v50  ;;  %v7339_v60 = vrot.slane %v7331_v48, 9  ;;  %v1438_v61 = vrot.slane %v8971_v36, 5  ;;  %v9167_v25 = vld [vmem:[%s12200_s0 + $0x2c] sm:$0x1]  ;;  %v7333_v35 = vld [vmem:[%s12200_s0 + $0x30] sm:$0xe] }
  0x52   :  { %v7324_v62 = vcombine.low %v1287_v39, %v1301_v58  ;;  %v1431_v63 = vsel %vm8734_vm7, %v7337_v46, %v1430_v51  ;;  %v1435_v1 = vsel %vm8734_vm7, %v7338_v53, %v1434_v56  ;;  %v7340_v36 = vrot.slane %v7332_v49, 9  ;;  %v7334_v39 = vld [vmem:[%s12200_s0 + $0x38] sm:$0xe]  ;;  %v7336_v42 = vld [vmem:[%s12200_s0 + $0x48] sm:$0xe] }
  0x53   :  { %v7346_v6 = vcombine.low %v1431_v63, %v1435_v1  ;;  %v1439_v7 = vsel %vm8734_vm7, %v7339_v60, %v1438_v61  ;;  %v1442_v17 = vrot.slane %v8988_v54, 5  ;;  %v1892_v8 = vsel %vm212_vm0, %v7354_v41, 0  ;;  %v7335_v41 = vld [vmem:[%s12200_s0 + $0x40] sm:$0xe]  ;;  %v1960_v63 = vld [vmem:[%s12200_s0 + $0xc] sm:$0x3] }
  0x54   :  { %8238 = vmatmul.mubr.msk.bf16.gmra.mxu1 %vm199_vm1, %v7324_v62  ;;  %v2141_v47 = vsel %vm212_vm0, %v7380_v57, 0  ;;  %v7359_v12 = vrot.slane %v9176_v2, 9  ;;  %v1759_v54 = vrot.slane %v9162_v52, 5  ;;  %v7360_v33 = vrot.slane %v9181_v4, 9  ;;  %v1959_v57 = vld [vmem:[%s12200_s0 + $0x4] sm:$0x3] }
  0x55   :  { %8253 = vmatprep.mubr.msk.bf16.mxu1 %vm199_vm1, %v7364_v43  ;;  %8243 = vmatprep.mubr.msk.bf16.mxu0 %vm199_vm1, %v7346_v6  ;;  %v1443_v0 = vsel %vm8734_vm7, %v7340_v36, %v1442_v17  ;;  %v1763_v5 = vrot.slane %v9167_v25, 5  ;;  %v7361_v20 = vrot.slane %v9205_v14, 9  ;;  %v1767_v21 = vrot.slane %v9190_v22, 5 }
  0x56   :  { %v7347_v24 = vcombine.low %v1439_v7, %v1443_v0  ;;  %v1760_v15 = vsel %vm8734_vm7, %v7359_v12, %v1759_v54  ;;  %v7362_v30 = vrot.slane %v9215_v19, 9  ;;  %v1771_v31 = vrot.slane %v9195_v38, 5  ;;  %v9275_v7 = vld [vmem:[%s12199_s1 + $0x30] sm:$0xf] }
  0x57   :  { %v1764_v26 = vsel %vm8734_vm7, %v7360_v33, %v1763_v5  ;;  %v9233_v27 = vsel %vm8734_vm7, %v7361_v20, %v1767_v21  ;;  %v7341_v32 = vrot.slane %v7333_v35, 9  ;;  %v1446_v40 = vrot.slane %v9008_v37, 5  ;;  %v1961_v33 = vld [vmem:[%s12200_s0 + $0x14] sm:$0x3] }
  0x58   :  { %8244 = vmatmul.mubr.msk.bf16.vlgmr.msra.gmra.mxu0 %vm199_vm1, %v7347_v24  ;;  %v7366_v43 = vcombine.low %v1760_v15, %v1764_v26  ;;  %v9245_v46 = vsel %vm8734_vm7, %v7362_v30, %v1771_v31  ;;  %v7342_v48 = vrot.slane %v7334_v39, 9  ;;  %v1450_v49 = vrot.slane %v9020_v13, 5 }
  0x59   :  { %8262 = vmatpush3.bf16.msra.mxu0 %v1892_v8  ;;  %v7367_v37 = vcombine.low %v9233_v27, %v9245_v46  ;;  %v1447_v51 = vsel %vm8734_vm7, %v7341_v32, %v1446_v40  ;;  %v7343_v53 = vrot.slane %v7335_v41, 9  ;;  %v1454_v56 = vrot.slane %v9036_v10, 5  ;;  %v1962_v40 = vld [vmem:[%s12200_s0 + $0x1c] sm:$0x3] }
  0x5a   :  { %v1451_v58 = vsel %vm8734_vm7, %v7342_v48, %v1450_v49  ;;  %v7344_v60 = vrot.slane %v7336_v42, 9  ;;  %v1458_v13 = vrot.slane %v9049_v44, 5  ;;  %vm1967_vm8 = vsmask.f32 2304  ;;  %8533 = vmatprep.subr.msk.bf16.mxu0 %vm212_vm0, %v9275_v7 }
  0x5b   :  { %v7348_v61 = vcombine.low %v1447_v51, %v1451_v58  ;;  %v1455_v62 = vsel %vm8734_vm7, %v7343_v53, %v1454_v56  ;;  %vm1968_vm9 = vsmask.f32 6416  ;;  %v1971_v10 = vshrl.u32 %v9079_v28, 16  ;;  %v1587_v51 = vld [vmem:[%s12200_s0] sm:$0xf] }
  0x5c   :  { %8254 = vmatmul.mubr.msk.bf16.vlgmr.msra.gmra.mxu1 %vm199_vm1, %v7365_v59  ;;  %v1459_v44 = vsel %vm8734_vm7, %v7344_v60, %v1458_v13  ;;  %v1974_v1 = vshll.u32 %v9079_v28, 16  ;;  %v1980_v36 = vshrl.u32 %v1959_v57, 16  ;;  %v1983_v6 = vshll.u32 %v1959_v57, 16  ;;  %vm9298_vm10 = vmor %vm1967_vm8, %vm1968_vm9 }
  0x5d   :  { %8272 = vmatpush3.bf16.msra.mxu1 %v2141_v47  ;;  %8257 = vmatprep.mubr.msk.bf16.mxu1 %vm199_vm1, %v7366_v43  ;;  %v7349_v17 = vcombine.low %v1455_v62, %v1459_v44  ;;  %v1973_v8 = vrot.slane %v1971_v10, 5  ;;  %v1989_v45 = vshrl.u32 %v9084_v11, 16  ;;  %v1992_v50 = vshll.u32 %v9084_v11, 16  ;;  %v9290_v11 = vld [vmem:[%s12199_s1 + $0x34] sm:$0xf] }
  0x5e   :  { %8247 = vmatprep.mubr.msk.bf16.mxu0 %vm199_vm1, %v7348_v61  ;;  %v1976_v59 = vrot.slane %v1974_v1, 6  ;;  %v1982_v28 = vrot.slane %v1980_v36, 5  ;;  %v1985_v12 = vrot.slane %v1983_v6, 6  ;;  %v1998_v54 = vshrl.u32 %v1960_v63, 16  ;;  %8534 = vmatprep.subr.msk.bf16.mxu1 %vm212_vm0, %v9290_v11 }
  0x5f   :  { %v1991_v47 = vrot.slane %v1989_v45, 5  ;;  %v1994_v0 = vrot.slane %v1992_v50, 6  ;;  %v2001_v5 = vshll.u32 %v1960_v63, 16  ;;  %v2007_v20 = vshrl.u32 %v9105_v23, 16 }
  0x60   :  { %8248 = vmatmul.mubr.msk.bf16.gmra.mxu0 %vm199_vm1, %v7349_v17  ;;  %v1977_v21 = vor.u32 %v1976_v59, %v1973_v8  ;;  %v1986_v24 = vor.u32 %v1985_v12, %v1982_v28  ;;  %v2000_v15 = vrot.slane %v1998_v54, 5  ;;  %v2010_v30 = vshll.u32 %v9105_v23, 16  ;;  %v1591_v8 = vld [vmem:[%s12200_s0 + $0x10] sm:$0xf] }
  0x61   :  { %v1995_v35 = vor.u32 %v1994_v0, %v1991_v47  ;;  %v2003_v39 = vrot.slane %v2001_v5, 6  ;;  %v2009_v26 = vrot.slane %v2007_v20, 5  ;;  %v2016_v27 = vshrl.u32 %v1961_v33, 16 }
  0x62   :  { %v1978_v32 = vrot.slane %v1977_v21, 4  ;;  %v2012_v41 = vrot.slane %v2010_v30, 6  ;;  %v2019_v23 = vshll.u32 %v1961_v33, 16  ;;  %v2025_v42 = vshrl.u32 %v9112_v29, 16  ;;  %v1593_v21 = vld [vmem:[%s12200_s0 + $0x18] sm:$0xf] }
  0x63   :  { %v1996_v43 = vrot.slane %v1995_v35, 4  ;;  %v2004_v46 = vor.u32 %v2003_v39, %v2000_v15  ;;  %v2018_v48 = vrot.slane %v2016_v27, 5  ;;  %v2028_v49 = vshll.u32 %v9112_v29, 16  ;;  %v1589_v29 = vld [vmem:[%s12200_s0 + $0x8] sm:$0xf] }
  0x64   :  { %8258 = vmatmul.mubr.msk.bf16.gmra.mxu1 %vm199_vm1, %v7367_v37  ;;  %v1987_v53 = vsel %vm9298_vm10, %v1978_v32, %v1986_v24  ;;  %v2013_v56 = vor.u32 %v2012_v41, %v2009_v26  ;;  %v2021_v57 = vrot.slane %v2019_v23, 6  ;;  %v2027_v58 = vrot.slane %v2025_v42, 5 }
  0x65   :  { %v2005_v60 = vsel %vm9298_vm10, %v1996_v43, %v2004_v46  ;;  %v2030_v13 = vrot.slane %v2028_v49, 6  ;;  %v2034_v61 = vshrl.u32 %v1962_v40, 16  ;;  %v2037_v62 = vshll.u32 %v1962_v40, 16  ;;  %v1963_v49 = vld [vmem:[%s12200_s0 + $0x24] sm:$0x3] }
  0x66   :  { %v7381_v63 = vcombine.low %v1987_v53, %v2005_v60  ;;  %v2014_v10 = vrot.slane %v2013_v56, 4  ;;  %v2022_v44 = vor.u32 %v2021_v57, %v2018_v48  ;;  %v1604_v37 = vshrl.u32 %v1587_v51, 16 }
  0x67   :  { %v2031_v1 = vor.u32 %v2030_v13, %v2027_v58  ;;  %v2036_v36 = vrot.slane %v2034_v61, 5  ;;  %v2039_v6 = vrot.slane %v2037_v62, 6  ;;  %v1607_v17 = vshll.u32 %v1587_v51, 16  ;;  %v1964_v62 = vld [vmem:[%s12200_s0 + $0x2c] sm:$0x3] }
  0x68   :  { %8273 = vmatprep.mubr.msk.bf16.mxu1 %vm199_vm1, %v7381_v63  ;;  %v2023_v45 = vsel %vm9298_vm10, %v2014_v10, %v2022_v44  ;;  %v1606_v50 = vrot.slane %v1604_v37, 4  ;;  %v1613_v59 = vshll.u32 %v9062_v3, 16  ;;  %v1618_v28 = vshrl.u32 %v1589_v29, 16 }
  0x69   :  { %v2032_v12 = vrot.slane %v2031_v1, 4  ;;  %v2040_v54 = vor.u32 %v2039_v6, %v2036_v36  ;;  %v1609_v33 = vrot.slane %v1607_v17, 5  ;;  %v1621_v47 = vshll.u32 %v1589_v29, 16 }
  0x6a   :  { %v1615_v0 = vrot.slane %v1613_v59, 5  ;;  %v1620_v5 = vrot.slane %v1618_v28, 4  ;;  %v1627_v20 = vshll.u32 %v9071_v9, 16  ;;  %v1632_v24 = vshrl.u32 %v1591_v8, 16 }
  0x6b   :  { %v2041_v15 = vsel %vm9298_vm10, %v2032_v12, %v2040_v54  ;;  %v1610_v30 = vor.u32 %v1609_v33, %v1606_v50  ;;  %v1623_v35 = vrot.slane %v1621_v47, 5  ;;  %v1635_v3 = vshll.u32 %v1591_v8, 16  ;;  %v1965_v54 = vld [vmem:[%s12200_s0 + $0x34] sm:$0x3] }
  0x6c   :  { %v7382_v39 = vcombine.low %v2023_v45, %v2041_v15  ;;  %v1629_v26 = vrot.slane %v1627_v20, 5  ;;  %v1634_v27 = vrot.slane %v1632_v24, 4  ;;  %v1641_v32 = vshll.u32 %v9094_v18, 16 }
  0x6d   :  { %v1611_v40 = vrot.slane %v1610_v30, 4  ;;  %v1624_v41 = vor.u32 %v1623_v35, %v1620_v5  ;;  %v1637_v23 = vrot.slane %v1635_v3, 5  ;;  %v1646_v9 = vshrl.u32 %v1593_v21, 16 }
  0x6e   :  { %8274 = vmatmul.mubr.msk.bf16.vlgmr.msra.gmra.mxu1 %vm199_vm1, %v7382_v39  ;;  %v1643_v42 = vrot.slane %v1641_v32, 5  ;;  %v1649_v43 = vshll.u32 %v1593_v21, 16  ;;  %v1655_v46 = vshll.u32 %v9100_v16, 16  ;;  %v2371_v48 = vsel %vm212_vm0, %v9275_v7, 0  ;;  %v9347_v7 = vld [vmem:[%s12199_s1 + $0x3c] sm:$0xf] }
  0x6f   :  { %v1616_v18 = vsel %vm8649_vm4, %v1611_v40, %v1615_v0  ;;  %v1625_v51 = vrot.slane %v1624_v41, 4  ;;  %v1638_v53 = vor.u32 %v1637_v23, %v1634_v27  ;;  %v1648_v56 = vrot.slane %v1646_v9, 4  ;;  %v9375_v27 = vld [vmem:[%s12199_s1 + $0x38] sm:$0xf] }
  0x70   :  { %v1651_v57 = vrot.slane %v1649_v43, 5  ;;  %v1657_v58 = vrot.slane %v1655_v46, 5  ;;  %v2529_v60 = vsel %vm212_vm0, %v9290_v11, 0  ;;  %v2043_v16 = vshrl.u32 %v9176_v2, 16 }
  0x71   :  { %v1630_v13 = vsel %vm8649_vm4, %v1625_v51, %v1629_v26  ;;  %v1639_v61 = vrot.slane %v1638_v53, 4  ;;  %8292 = vmatpush3.bf16.msra.mxu1 %v2529_v60  ;;  %v2046_v29 = vshll.u32 %v9176_v2, 16  ;;  %v2052_v63 = vshrl.u32 %v1963_v49, 16 }
  0x72   :  { %v7372_v11 = vcombine.low %v1616_v18, %v1630_v13  ;;  %v1652_v10 = vor.u32 %v1651_v57, %v1648_v56  ;;  %v2045_v44 = vrot.slane %v2043_v16, 5  ;;  %v2055_v37 = vshll.u32 %v1963_v49, 16  ;;  %8536 = vmatprep.subr.msk.bf16.mxu1 %vm212_vm0, %v9347_v7 }
  0x73   :  { %v1644_v1 = vsel %vm8649_vm4, %v1639_v61, %v1643_v42  ;;  %v2048_v36 = vrot.slane %v2046_v29, 6  ;;  %v2054_v6 = vrot.slane %v2052_v63, 5  ;;  %v2061_v17 = vshrl.u32 %v9181_v4, 16 }
  0x74   :  { %8263 = vmatprep.mubr.msk.bf16.mxu0 %vm199_vm1, %v7372_v11  ;;  %v1653_v8 = vrot.slane %v1652_v10, 4  ;;  %v2057_v45 = vrot.slane %v2055_v37, 6  ;;  %v2064_v2 = vshll.u32 %v9181_v4, 16  ;;  %v2070_v50 = vshrl.u32 %v1964_v62, 16  ;;  %v1966_v4 = vld [vmem:[%s12200_s0 + $0x3c] sm:$0x3] }
  0x75   :  { %v2049_v59 = vor.u32 %v2048_v36, %v2045_v44  ;;  %v2063_v28 = vrot.slane %v2061_v17, 5  ;;  %v2073_v12 = vshll.u32 %v1964_v62, 16  ;;  %v2079_v33 = vshrl.u32 %v9205_v14, 16  ;;  %v1599_v10 = vld [vmem:[%s12200_s0 + $0x30] sm:$0xf] }
  0x76   :  { %v1658_v47 = vsel %vm8649_vm4, %v1653_v8, %v1657_v58  ;;  %v2058_v0 = vor.u32 %v2057_v45, %v2054_v6  ;;  %v2066_v5 = vrot.slane %v2064_v2, 6  ;;  %v2072_v20 = vrot.slane %v2070_v50, 5 }
  0x77   :  { %v7373_v21 = vcombine.low %v1644_v1, %v1658_v47  ;;  %v2050_v24 = vrot.slane %v2049_v59, 4  ;;  %v2075_v15 = vrot.slane %v2073_v12, 6  ;;  %v2081_v30 = vrot.slane %v2079_v33, 5 }
  0x78   :  { %v2067_v35 = vor.u32 %v2066_v5, %v2063_v28  ;;  %v2082_v3 = vshll.u32 %v9205_v14, 16  ;;  %v2088_v39 = vshrl.u32 %v1965_v54, 16  ;;  %v2091_v26 = vshll.u32 %v1965_v54, 16  ;;  %v1595_v14 = vld [vmem:[%s12200_s0 + $0x20] sm:$0xf] }
  0x79   :  { %8264 = vmatmul.mubr.msk.bf16.vlgmr.msra.gmra.mxu0 %vm199_vm1, %v7373_v21  ;;  %v2059_v32 = vsel %vm9298_vm10, %v2050_v24, %v2058_v0  ;;  %v2076_v40 = vor.u32 %v2075_v15, %v2072_v20  ;;  %v2097_v41 = vshrl.u32 %v9215_v19, 16  ;;  %v2100_v23 = vshll.u32 %v9215_v19, 16  ;;  %v7390_v0 = vld [vmem:[%s12200_s0 + $0xc] sm:$0x1]  ;;  %v9417_v15 = vld [vmem:[%s12200_s0 + $0x14] sm:$0x1] }
  0x7a   :  { %8282 = vmatpush3.bf16.msra.mxu0 %v2371_v48  ;;  %v2068_v9 = vrot.slane %v2067_v35, 4  ;;  %v2084_v42 = vrot.slane %v2082_v3, 6  ;;  %v2090_v43 = vrot.slane %v2088_v39, 5  ;;  %v2093_v46 = vrot.slane %v2091_v26, 6  ;;  %v1597_v48 = vld [vmem:[%s12200_s0 + $0x28] sm:$0xf] }
  0x7b   :  { %v2099_v49 = vrot.slane %v2097_v41, 5  ;;  %v2102_v18 = vrot.slane %v2100_v23, 6  ;;  %v2106_v51 = vshrl.u32 %v1966_v4, 16  ;;  %v2109_v53 = vshll.u32 %v1966_v4, 16  ;;  %8535 = vmatprep.subr.msk.bf16.mxu0 %vm212_vm0, %v9375_v27  ;;  %v9424_v39 = vld [vmem:[%s12200_s0 + $0x10] sm:$0xe] }
  0x7c   :  { %v2077_v56 = vsel %vm9298_vm10, %v2068_v9, %v2076_v40  ;;  %v2085_v19 = vor.u32 %v2084_v42, %v2081_v30  ;;  %v2094_v57 = vor.u32 %v2093_v46, %v2090_v43  ;;  %v1660_v58 = vshrl.u32 %v1595_v14, 16  ;;  %v9430_v41 = vld [vmem:[%s12200_s0 + $0x18] sm:$0xe]  ;;  %v7394_v42 = vld [vmem:[%s12200_s0 + $0x1c] sm:$0x1] }
  0x7d   :  { %v7383_v60 = vcombine.low %v2059_v32, %v2077_v56  ;;  %v2103_v16 = vor.u32 %v2102_v18, %v2099_v49  ;;  %v2108_v13 = vrot.slane %v2106_v51, 5  ;;  %v2111_v61 = vrot.slane %v2109_v53, 6  ;;  %v9440_v43 = vld [vmem:[%s12200_s0 + $0x20] sm:$0xe]  ;;  %v9449_v53 = vld [vmem:[%s12200_s0 + $0x24] sm:$0x1] }
  0x7e   :  { %v2086_v62 = vrot.slane %v2085_v19, 4  ;;  %v1662_v29 = vrot.slane %v1660_v58, 4  ;;  %v1663_v63 = vshll.u32 %v1595_v14, 16  ;;  %v1669_v11 = vshll.u32 %v9162_v52, 16  ;;  %v1601_v52 = vld [vmem:[%s12200_s0 + $0x38] sm:$0xf] }
  0x7f   :  { %8277 = vmatprep.mubr.msk.bf16.mxu1 %vm199_vm1, %v7383_v60  ;;  %v2104_v44 = vrot.slane %v2103_v16, 4  ;;  %v2112_v37 = vor.u32 %v2111_v61, %v2108_v13  ;;  %v1674_v1 = vshrl.u32 %v1597_v48, 16  ;;  %v1677_v36 = vshll.u32 %v1597_v48, 16  ;;  %v7389_v58 = vld [vmem:[%s12200_s0 + $0x8] sm:$0xf] }
  0x80   :  { %v2095_v6 = vsel %vm9298_vm10, %v2086_v62, %v2094_v57  ;;  %v1665_v17 = vrot.slane %v1663_v63, 5  ;;  %v1671_v8 = vrot.slane %v1669_v11, 5  ;;  %v1683_v45 = vshll.u32 %v9167_v25, 16  ;;  %v9411_v25 = vld [vmem:[%s12200_s0 + $0x8] sm:$0xe] }
  0x81   :  { %v2113_v2 = vsel %vm9298_vm10, %v2104_v44, %v2112_v37  ;;  %v1676_v50 = vrot.slane %v1674_v1, 4  ;;  %v1679_v59 = vrot.slane %v1677_v36, 5  ;;  %v1688_v28 = vshrl.u32 %v1599_v10, 16  ;;  %v7391_v62 = vld [vmem:[%s12200_s0 + $0x10] sm:$0xf] }
  0x82   :  { %v7384_v12 = vcombine.low %v2095_v6, %v2113_v2  ;;  %v1666_v54 = vor.u32 %v1665_v17, %v1662_v29  ;;  %v1685_v33 = vrot.slane %v1683_v45, 5  ;;  %v1691_v47 = vshll.u32 %v1599_v10, 16 }
  0x83   :  { %v1680_v5 = vor.u32 %v1679_v59, %v1676_v50  ;;  %v1690_v20 = vrot.slane %v1688_v28, 4  ;;  %v1697_v21 = vshll.u32 %v9190_v22, 16  ;;  %v1702_v24 = vshrl.u32 %v1601_v52, 16 }
  0x84   :  { %8278 = vmatmul.mubr.msk.bf16.gmra.mxu1 %vm199_vm1, %v7384_v12  ;;  %v1667_v4 = vrot.slane %v1666_v54, 4  ;;  %v1693_v30 = vrot.slane %v1691_v47, 5  ;;  %v1705_v35 = vshll.u32 %v1601_v52, 16  ;;  %v1711_v3 = vshll.u32 %v9195_v38, 16  ;;  %v7393_v52 = vld [vmem:[%s12200_s0 + $0x18] sm:$0xf] }
  0x85   :  { %v1681_v26 = vrot.slane %v1680_v5, 4  ;;  %v1699_v22 = vrot.slane %v1697_v21, 5  ;;  %v1704_v32 = vrot.slane %v1702_v24, 4  ;;  %v7422_v40 = vrot.slane %v9411_v25, 9  ;;  %v7395_v12 = vld [vmem:[%s12200_s0 + $0x20] sm:$0xf] }
  0x86   :  { %v1672_v23 = vsel %vm8649_vm4, %v1667_v4, %v1671_v8  ;;  %v1694_v14 = vor.u32 %v1693_v30, %v1690_v20  ;;  %v1707_v38 = vrot.slane %v1705_v35, 5  ;;  %v1713_v9 = vrot.slane %v1711_v3, 5 }
  0x87   :  { %v1686_v46 = vsel %vm8649_vm4, %v1681_v26, %v1685_v33  ;;  %v2472_v49 = vrot.slane %v7390_v0, 5  ;;  %v7423_v18 = vrot.slane %v9424_v39, 9  ;;  %v2476_v51 = vrot.slane %v9417_v15, 5  ;;  %v9486_v26 = vld [vmem:[%s12200_s0 + $0x2c] sm:$0x1] }
  0x88   :  { %v7374_v56 = vcombine.low %v1672_v23, %v1686_v46  ;;  %v1695_v19 = vrot.slane %v1694_v14, 4  ;;  %v1708_v57 = vor.u32 %v1707_v38, %v1704_v32  ;;  %v7424_v48 = vrot.slane %v9430_v41, 9  ;;  %v9496_v14 = vld [vmem:[%s12200_s0 + $0x34] sm:$0x1]  ;;  %v9501_v38 = vld [vmem:[%s12200_s0 + $0x30] sm:$0xe] }
  0x89   :  { %v2473_v60 = vsel %vm8734_vm7, %v7422_v40, %v2472_v49  ;;  %v2477_v16 = vsel %vm8734_vm7, %v7423_v18, %v2476_v51  ;;  %v2480_v13 = vrot.slane %v7394_v42, 5  ;;  %v7425_v61 = vrot.slane %v9440_v43, 9  ;;  %v9507_v18 = vld [vmem:[%s12199_s1 + $0x44] sm:$0xf] }
  0x8a   :  { %8267 = vmatprep.mubr.msk.bf16.mxu0 %vm199_vm1, %v7374_v56  ;;  %v1700_v29 = vsel %vm8649_vm4, %v1695_v19, %v1699_v22  ;;  %v1709_v63 = vrot.slane %v1708_v57, 4  ;;  %v7431_v11 = vcombine.low %v2473_v60, %v2477_v16  ;;  %v2484_v10 = vrot.slane %v9449_v53, 5 }
  0x8b   :  { %v2481_v44 = vsel %vm8734_vm7, %v7424_v48, %v2480_v13  ;;  %v2233_v37 = vshrl.u32 %v7389_v58, 16  ;;  %v2236_v1 = vshll.u32 %v7389_v58, 16  ;;  %v2242_v36 = vshll.u32 %v7390_v0, 16  ;;  %v7402_v48 = vld [vmem:[%s12200_s0 + $0x3c] sm:$0x1] }
  0x8c   :  { %v1714_v6 = vsel %vm8649_vm4, %v1709_v63, %v1713_v9  ;;  %8293 = vmatprep.mubr.msk.bf16.mxu1 %vm199_vm1, %v7431_v11  ;;  %v2485_v17 = vsel %vm8734_vm7, %v7425_v61, %v2484_v10  ;;  %v2247_v8 = vshrl.u32 %v7391_v62, 16  ;;  %v2250_v45 = vshll.u32 %v7391_v62, 16  ;;  %v9534_v13 = vld [vmem:[%s12200_s0 + $0x40] sm:$0xe]  ;;  %v7397_v11 = vld [vmem:[%s12200_s0 + $0x28] sm:$0xf] }
  0x8d   :  { %v7375_v2 = vcombine.low %v1700_v29, %v1714_v6  ;;  %v7432_v50 = vcombine.low %v2481_v44, %v2485_v17  ;;  %v2235_v59 = vrot.slane %v2233_v37, 4  ;;  %v2238_v28 = vrot.slane %v2236_v1, 5 }
  0x8e   :  { %v2244_v54 = vrot.slane %v2242_v36, 5  ;;  %v2249_v33 = vrot.slane %v2247_v8, 4  ;;  %v2252_v47 = vrot.slane %v2250_v45, 5  ;;  %v2256_v0 = vshll.u32 %v9417_v15, 16  ;;  %v9491_v15 = vld [vmem:[%s12200_s0 + $0x28] sm:$0xe] }
  0x8f   :  { %8268 = vmatmul.mubr.msk.bf16.gmra.mxu0 %vm199_vm1, %v7375_v2  ;;  %8294 = vmatmul.mubr.msk.bf16.vlgmr.msra.gmra.mxu1 %vm199_vm1, %v7432_v50  ;;  %v2239_v5 = vor.u32 %v2238_v28, %v2235_v59  ;;  %v2261_v20 = vshrl.u32 %v7393_v52, 16  ;;  %v2264_v21 = vshll.u32 %v7393_v52, 16  ;;  %v2270_v24 = vshll.u32 %v7394_v42, 16  ;;  %v7399_v45 = vld [vmem:[%s12200_s0 + $0x30] sm:$0xf] }
  0x90   :  { %v2253_v4 = vor.u32 %v2252_v47, %v2249_v33  ;;  %v2258_v30 = vrot.slane %v2256_v0, 5  ;;  %v2275_v35 = vshrl.u32 %v7395_v12, 16  ;;  %v2278_v3 = vshll.u32 %v7395_v12, 16  ;;  %v7401_v28 = vld [vmem:[%s12200_s0 + $0x38] sm:$0xf] }
  0x91   :  { %v2240_v22 = vrot.slane %v2239_v5, 4  ;;  %v2263_v32 = vrot.slane %v2261_v20, 4  ;;  %v2266_v40 = vrot.slane %v2264_v21, 5  ;;  %v2272_v23 = vrot.slane %v2270_v24, 5  ;;  %v9570_v24 = vld [vmem:[%s12199_s1 + $0x40] sm:$0xf] }
  0x92   :  { %v2254_v9 = vrot.slane %v2253_v4, 4  ;;  %v2277_v42 = vrot.slane %v2275_v35, 4  ;;  %v2280_v46 = vrot.slane %v2278_v3, 5  ;;  %v2284_v49 = vshll.u32 %v9449_v53, 16  ;;  %v9521_v53 = vld [vmem:[%s12200_s0 + $0x38] sm:$0xe] }
  0x93   :  { %v2245_v51 = vsel %vm8649_vm4, %v2240_v22, %v2244_v54  ;;  %v2267_v56 = vor.u32 %v2266_v40, %v2263_v32  ;;  %v2783_v19 = vsel %vm212_vm0, %v9375_v27, 0  ;;  %v3013_v57 = vsel %vm212_vm0, %v9347_v7, 0  ;;  %v9529_v7 = vld [vmem:[%s12200_s0 + $0x44] sm:$0x1]  ;;  %v7403_v3 = vld [vmem:[%s12200_s0 + $0x40] sm:$0xf] }
  0x94   :  { %v2259_v58 = vsel %vm8649_vm4, %v2254_v9, %v2258_v30  ;;  %v2281_v60 = vor.u32 %v2280_v46, %v2277_v42  ;;  %v2286_v16 = vrot.slane %v2284_v49, 5  ;;  %8312 = vmatpush3.bf16.msra.mxu1 %v3013_v57  ;;  %v7426_v27 = vrot.slane %v9491_v15, 9  ;;  %v7456_v9 = vld [vmem:[%s12200_s0 + $0x10] sm:$0xf] }
  0x95   :  { %v7406_v61 = vcombine.low %v2245_v51, %v2259_v58  ;;  %v2268_v62 = vrot.slane %v2267_v56, 4  ;;  %v2488_v29 = vrot.slane %v9486_v26, 5  ;;  %v7427_v63 = vrot.slane %v9501_v38, 9  ;;  %8538 = vmatprep.subr.msk.bf16.mxu1 %vm212_vm0, %v9507_v18  ;;  %v9587_v58 = vld [vmem:[%s12200_s0 + $0x14] sm:$0x1] }
  0x96   :  { %v2282_v10 = vrot.slane %v2281_v60, 4  ;;  %v2492_v44 = vrot.slane %v9496_v14, 5  ;;  %v7428_v37 = vrot.slane %v9521_v53, 9  ;;  %v2496_v1 = vrot.slane %v7402_v48, 5 }
  0x97   :  { %8283 = vmatprep.mubr.msk.bf16.mxu0 %vm199_vm1, %v7406_v61  ;;  %v2273_v36 = vsel %vm8649_vm4, %v2268_v62, %v2272_v23  ;;  %v2489_v6 = vsel %vm8734_vm7, %v7426_v27, %v2488_v29  ;;  %v7429_v17 = vrot.slane %v9534_v13, 9  ;;  %v2500_v8 = vrot.slane %v9529_v7, 5  ;;  %v7458_v27 = vld [vmem:[%s12200_s0 + $0x18] sm:$0xf] }
  0x98   :  { %v2287_v52 = vsel %vm8649_vm4, %v2282_v10, %v2286_v16  ;;  %v2493_v2 = vsel %vm8734_vm7, %v7427_v63, %v2492_v44  ;;  %v2497_v50 = vsel %vm8734_vm7, %v7428_v37, %v2496_v1  ;;  %v2289_v59 = vshrl.u32 %v7397_v11, 16 }
  0x99   :  { %v7407_v12 = vcombine.low %v2273_v36, %v2287_v52  ;;  %v7433_v54 = vcombine.low %v2489_v6, %v2493_v2  ;;  %v2501_v33 = vsel %vm8734_vm7, %v7429_v17, %v2500_v8  ;;  %v2292_v47 = vshll.u32 %v7397_v11, 16  ;;  %v9596_v11 = vld [vmem:[%s12200_s0 + $0x1c] sm:$0x1] }
  0x9a   :  { %v7434_v0 = vcombine.low %v2497_v50, %v2501_v33  ;;  %v2291_v5 = vrot.slane %v2289_v59, 4  ;;  %v2298_v20 = vshll.u32 %v9486_v26, 16  ;;  %v2303_v21 = vshrl.u32 %v7399_v45, 16  ;;  %v7460_v59 = vld [vmem:[%s12200_s0 + $0x20] sm:$0xf] }
  0x9b   :  { %8284 = vmatmul.mubr.msk.bf16.vlgmr.msra.gmra.mxu0 %vm199_vm1, %v7407_v12  ;;  %8297 = vmatprep.mubr.msk.bf16.mxu1 %vm199_vm1, %v7433_v54  ;;  %v2294_v4 = vrot.slane %v2292_v47, 5  ;;  %v2306_v30 = vshll.u32 %v7399_v45, 16  ;;  %v2312_v35 = vshll.u32 %v9496_v14, 16  ;;  %v2317_v22 = vshrl.u32 %v7401_v28, 16  ;;  %v9612_v47 = vld [vmem:[%s12200_s0 + $0x24] sm:$0x1] }
  0x9c   :  { %8302 = vmatpush3.bf16.msra.mxu0 %v2783_v19  ;;  %8298 = vmatmul.mubr.msk.bf16.gmra.mxu1 %vm199_vm1, %v7434_v0  ;;  %v2300_v26 = vrot.slane %v2298_v20, 5  ;;  %v2305_v32 = vrot.slane %v2303_v21, 4  ;;  %v2320_v40 = vshll.u32 %v7401_v28, 16  ;;  %v2326_v23 = vshll.u32 %v7402_v48, 16  ;;  %v7462_v0 = vld [vmem:[%s12200_s0 + $0x28] sm:$0xf] }
  0x9d   :  { %v2295_v42 = vor.u32 %v2294_v4, %v2291_v5  ;;  %v2308_v46 = vrot.slane %v2306_v30, 5  ;;  %v2314_v49 = vrot.slane %v2312_v35, 5  ;;  %v2319_v14 = vrot.slane %v2317_v22, 4  ;;  %8537 = vmatprep.subr.msk.bf16.mxu0 %vm212_vm0, %v9570_v24 }
  0x9e   :  { %v2322_v51 = vrot.slane %v2320_v40, 5  ;;  %v2328_v56 = vrot.slane %v2326_v23, 5  ;;  %v2331_v19 = vshrl.u32 %v7403_v3, 16  ;;  %v2334_v57 = vshll.u32 %v7403_v3, 16  ;;  %v9623_v3 = vld [vmem:[%s12200_s0 + $0x2c] sm:$0x1] }
  0x9f   :  { %v2296_v48 = vrot.slane %v2295_v42, 4  ;;  %v2309_v60 = vor.u32 %v2308_v46, %v2305_v32  ;;  %v2340_v16 = vshll.u32 %v9529_v7, 16  ;;  %v2875_v61 = vshrl.u32 %v7456_v9, 16  ;;  %v7439_v42 = vld [vmem:[%s12200_s0 + $0xc] sm:$0x3] }
  0xa0   :  { %v2323_v62 = vor.u32 %v2322_v51, %v2319_v14  ;;  %v2333_v29 = vrot.slane %v2331_v19, 4  ;;  %v2336_v63 = vrot.slane %v2334_v57, 5  ;;  %v2878_v10 = vshll.u32 %v7456_v9, 16 }
  0xa1   :  { %v2301_v44 = vsel %vm8649_vm4, %v2296_v48, %v2300_v26  ;;  %v2310_v37 = vrot.slane %v2309_v60, 4  ;;  %v2342_v1 = vrot.slane %v2340_v16, 5  ;;  %v2877_v7 = vrot.slane %v2875_v61, 4 }
  0xa2   :  { %v2324_v36 = vrot.slane %v2323_v62, 4  ;;  %v2337_v6 = vor.u32 %v2336_v63, %v2333_v29  ;;  %v2880_v17 = vrot.slane %v2878_v10, 5  ;;  %v2884_v8 = vshll.u32 %v9587_v58, 16 }
  0xa3   :  { %v2315_v45 = vsel %vm8649_vm4, %v2310_v37, %v2314_v49  ;;  %v2889_v52 = vshrl.u32 %v7458_v27, 16  ;;  %v2892_v2 = vshll.u32 %v7458_v27, 16  ;;  %v2898_v50 = vshll.u32 %v9596_v11, 16  ;;  %v7440_v27 = vld [vmem:[%s12200_s0 + $0x14] sm:$0x3] }
  0xa4   :  { %v7408_v28 = vcombine.low %v2301_v44, %v2315_v45  ;;  %v2329_v12 = vsel %vm8649_vm4, %v2324_v36, %v2328_v56  ;;  %v2338_v54 = vrot.slane %v2337_v6, 4  ;;  %v2881_v33 = vor.u32 %v2880_v17, %v2877_v7 }
  0xa5   :  { %v2886_v5 = vrot.slane %v2884_v8, 5  ;;  %v2891_v20 = vrot.slane %v2889_v52, 4  ;;  %v2894_v21 = vrot.slane %v2892_v2, 5  ;;  %v2900_v4 = vrot.slane %v2898_v50, 5 }
  0xa6   :  { %8287 = vmatprep.mubr.msk.bf16.mxu0 %vm199_vm1, %v7408_v28  ;;  %v2343_v30 = vsel %vm8649_vm4, %v2338_v54, %v2342_v1  ;;  %v2882_v35 = vrot.slane %v2881_v33, 4  ;;  %v2903_v22 = vshrl.u32 %v7460_v59, 16  ;;  %v2906_v26 = vshll.u32 %v7460_v59, 16  ;;  %v7441_v33 = vld [vmem:[%s12200_s0 + $0x1c] sm:$0x3] }
  0xa7   :  { %v7409_v32 = vcombine.low %v2329_v12, %v2343_v30  ;;  %v2895_v40 = vor.u32 %v2894_v21, %v2891_v20  ;;  %v2912_v23 = vshll.u32 %v9612_v47, 16  ;;  %v2917_v9 = vshrl.u32 %v7462_v0, 16 }
  0xa8   :  { %v2887_v46 = vsel %vm8649_vm4, %v2882_v35, %v2886_v5  ;;  %v2905_v49 = vrot.slane %v2903_v22, 4  ;;  %v2908_v14 = vrot.slane %v2906_v26, 5  ;;  %v2920_v51 = vshll.u32 %v7462_v0, 16 }
  0xa9   :  { %8288 = vmatmul.mubr.msk.bf16.gmra.mxu0 %vm199_vm1, %v7409_v32  ;;  %v2896_v56 = vrot.slane %v2895_v40, 4  ;;  %v2914_v19 = vrot.slane %v2912_v23, 5  ;;  %v2919_v57 = vrot.slane %v2917_v9, 4  ;;  %v2926_v48 = vshll.u32 %v9623_v3, 16 }
  0xaa   :  { %v2909_v60 = vor.u32 %v2908_v14, %v2905_v49  ;;  %v2922_v16 = vrot.slane %v2920_v51, 5  ;;  %v2613_v61 = vshrl.u32 %v9411_v25, 16  ;;  %v2616_v62 = vshll.u32 %v9411_v25, 16  ;;  %v7464_v14 = vld [vmem:[%s12200_s0 + $0x30] sm:$0xf] }
  0xab   :  { %v2901_v29 = vsel %vm8649_vm4, %v2896_v56, %v2900_v4  ;;  %v2928_v63 = vrot.slane %v2926_v48, 5  ;;  %v2622_v10 = vshrl.u32 %v7439_v42, 16  ;;  %v2625_v44 = vshll.u32 %v7439_v42, 16 }
  0xac   :  { %v7473_v37 = vcombine.low %v2887_v46, %v2901_v29  ;;  %v2910_v1 = vrot.slane %v2909_v60, 4  ;;  %v2923_v7 = vor.u32 %v2922_v16, %v2919_v57  ;;  %v2615_v36 = vrot.slane %v2613_v61, 5  ;;  %v9666_v57 = vld [vmem:[%s12200_s0 + $0x34] sm:$0x1] }
  0xad   :  { %v2618_v6 = vrot.slane %v2616_v62, 6  ;;  %v2624_v17 = vrot.slane %v2622_v10, 5  ;;  %v2627_v8 = vrot.slane %v2625_v44, 6  ;;  %v2631_v45 = vshrl.u32 %v9424_v39, 16  ;;  %v9678_v10 = vld [vmem:[%s12200_s0 + $0x3c] sm:$0x1] }
  0xae   :  { %8313 = vmatprep.mubr.msk.bf16.mxu1 %vm199_vm1, %v7473_v37  ;;  %v2915_v25 = vsel %vm8649_vm4, %v2910_v1, %v2914_v19  ;;  %v2924_v52 = vrot.slane %v2923_v7, 4  ;;  %v2634_v2 = vshll.u32 %v9424_v39, 16  ;;  %v2640_v50 = vshrl.u32 %v7440_v27, 16  ;;  %v7442_v39 = vld [vmem:[%s12200_s0 + $0x24] sm:$0x3] }
  0xaf   :  { %v2619_v59 = vor.u32 %v2618_v6, %v2615_v36  ;;  %v2628_v28 = vor.u32 %v2627_v8, %v2624_v17  ;;  %v2633_v12 = vrot.slane %v2631_v45, 5  ;;  %v2643_v54 = vshll.u32 %v7440_v27, 16  ;;  %v9683_v36 = vld [vmem:[%s12199_s1 + $0x48] sm:$0xf]  ;;  %v7468_v45 = vld [vmem:[%s12200_s0 + $0x40] sm:$0xf] }
  0xb0   :  { %v2929_v0 = vsel %vm8649_vm4, %v2924_v52, %v2928_v63  ;;  %v2636_v5 = vrot.slane %v2634_v2, 6  ;;  %v2642_v20 = vrot.slane %v2640_v50, 5  ;;  %v2649_v21 = vshrl.u32 %v9430_v41, 16 }
  0xb1   :  { %v7474_v4 = vcombine.low %v2915_v25, %v2929_v0  ;;  %v2620_v30 = vrot.slane %v2619_v59, 4  ;;  %v2645_v35 = vrot.slane %v2643_v54, 6  ;;  %v2652_v22 = vshll.u32 %v9430_v41, 16  ;;  %v9697_v54 = vld [vmem:[%s12200_s0 + $0x44] sm:$0x1] }
  0xb2   :  { %v2637_v26 = vor.u32 %v2636_v5, %v2633_v12  ;;  %v2651_v32 = vrot.slane %v2649_v21, 5  ;;  %v2658_v40 = vshrl.u32 %v7441_v33, 16  ;;  %v2661_v23 = vshll.u32 %v7441_v33, 16 }
  0xb3   :  { %8314 = vmatmul.mubr.msk.bf16.vlgmr.msra.gmra.mxu1 %vm199_vm1, %v7474_v4  ;;  %v2629_v9 = vsel %vm9298_vm10, %v2620_v30, %v2628_v28  ;;  %v2646_v42 = vor.u32 %v2645_v35, %v2642_v20  ;;  %v2654_v46 = vrot.slane %v2652_v22, 6  ;;  %v2667_v49 = vshrl.u32 %v9440_v43, 16  ;;  %v7470_v20 = vld [vmem:[%s12200_s0 + $0x48] sm:$0xf] }
  0xb4   :  { %v2638_v51 = vrot.slane %v2637_v26, 4  ;;  %v2660_v56 = vrot.slane %v2658_v40, 5  ;;  %v2663_v41 = vrot.slane %v2661_v23, 6  ;;  %v2670_v19 = vshll.u32 %v9440_v43, 16  ;;  %v7466_v43 = vld [vmem:[%s12200_s0 + $0x38] sm:$0xf] }
  0xb5   :  { %v2655_v48 = vor.u32 %v2654_v46, %v2651_v32  ;;  %v2669_v60 = vrot.slane %v2667_v49, 5  ;;  %v2676_v16 = vshrl.u32 %v7442_v39, 16  ;;  %v2679_v27 = vshll.u32 %v7442_v39, 16  ;;  %v9710_v39 = vld [vmem:[%s12200_s0 + $0x4c] sm:$0x1] }
  0xb6   :  { %v2647_v61 = vsel %vm9298_vm10, %v2638_v51, %v2646_v42  ;;  %v2664_v62 = vor.u32 %v2663_v41, %v2660_v56  ;;  %v2672_v29 = vrot.slane %v2670_v19, 6  ;;  %v3171_v63 = vsel %vm212_vm0, %v9570_v24, 0  ;;  %v7443_v19 = vld [vmem:[%s12200_s0 + $0x2c] sm:$0x3] }
  0xb7   :  { %v7448_v44 = vcombine.low %v2629_v9, %v2647_v61  ;;  %v2656_v37 = vrot.slane %v2655_v48, 4  ;;  %v2678_v1 = vrot.slane %v2676_v16, 5  ;;  %v2681_v7 = vrot.slane %v2679_v27, 6 }
  0xb8   :  { %v2673_v6 = vor.u32 %v2672_v29, %v2669_v60  ;;  %v3425_v24 = vsel %vm212_vm0, %v9507_v18, 0  ;;  %v2931_v17 = vshrl.u32 %v7464_v14, 16  ;;  %v2934_v8 = vshll.u32 %v7464_v14, 16  ;;  %v9716_v14 = vld [vmem:[%s12199_s1 + $0x4c] sm:$0xf] }
  0xb9   :  { %8303 = vmatprep.mubr.msk.bf16.mxu0 %vm199_vm1, %v7448_v44  ;;  %v2665_v25 = vsel %vm9298_vm10, %v2656_v37, %v2664_v62  ;;  %v2682_v52 = vor.u32 %v2681_v7, %v2678_v1  ;;  %8332 = vmatpush3.bf16.msra.mxu1 %v3425_v24  ;;  %v2940_v2 = vshll.u32 %v9666_v57, 16  ;;  %v2945_v50 = vshrl.u32 %v7466_v43, 16 }
  0xba   :  { %v2674_v59 = vrot.slane %v2673_v6, 4  ;;  %v2933_v28 = vrot.slane %v2931_v17, 4  ;;  %v2936_v12 = vrot.slane %v2934_v8, 5  ;;  %v2948_v18 = vshll.u32 %v7466_v43, 16  ;;  %8540 = vmatprep.subr.msk.bf16.mxu1 %vm212_vm0, %v9683_v36 }
  0xbb   :  { %v2942_v33 = vrot.slane %v2940_v2, 5  ;;  %v2947_v0 = vrot.slane %v2945_v50, 4  ;;  %v2954_v5 = vshll.u32 %v9678_v10, 16  ;;  %v2959_v21 = vshrl.u32 %v7468_v45, 16 }
  0xbc   :  { %v2683_v4 = vsel %vm9298_vm10, %v2674_v59, %v2682_v52  ;;  %v2937_v30 = vor.u32 %v2936_v12, %v2933_v28  ;;  %v2950_v35 = vrot.slane %v2948_v18, 5  ;;  %v2962_v22 = vshll.u32 %v7468_v45, 16 }
  0xbd   :  { %v7449_v26 = vcombine.low %v2665_v25, %v2683_v4  ;;  %v2956_v32 = vrot.slane %v2954_v5, 5  ;;  %v2961_v40 = vrot.slane %v2959_v21, 4  ;;  %v2968_v23 = vshll.u32 %v9697_v54, 16  ;;  %v7445_v5 = vld [vmem:[%s12200_s0 + $0x3c] sm:$0x3] }
  0xbe   :  { %v2938_v9 = vrot.slane %v2937_v30, 4  ;;  %v2951_v42 = vor.u32 %v2950_v35, %v2947_v0  ;;  %v2964_v46 = vrot.slane %v2962_v22, 5  ;;  %v2973_v49 = vshrl.u32 %v7470_v20, 16 }
  0xbf   :  { %8304 = vmatmul.mubr.msk.bf16.vlgmr.msra.gmra.mxu0 %vm199_vm1, %v7449_v26  ;;  %v2970_v51 = vrot.slane %v2968_v23, 5  ;;  %v2976_v56 = vshll.u32 %v7470_v20, 16  ;;  %v2982_v41 = vshll.u32 %v9710_v39, 16  ;;  %v2685_v48 = vshrl.u32 %v9491_v15, 16 }
  0xc0   :  { %8322 = vmatpush3.bf16.msra.mxu0 %v3171_v63  ;;  %v2943_v60 = vsel %vm8649_vm4, %v2938_v9, %v2942_v33  ;;  %v2952_v16 = vrot.slane %v2951_v42, 4  ;;  %v2965_v27 = vor.u32 %v2964_v46, %v2961_v40  ;;  %v2975_v61 = vrot.slane %v2973_v49, 4  ;;  %v7444_v63 = vld [vmem:[%s12200_s0 + $0x34] sm:$0x3]  ;;  %v7446_v40 = vld [vmem:[%s12200_s0 + $0x44] sm:$0x3] }
  0xc1   :  { %v2978_v62 = vrot.slane %v2976_v56, 5  ;;  %v2984_v29 = vrot.slane %v2982_v41, 5  ;;  %v2687_v43 = vrot.slane %v2685_v48, 5  ;;  %v2688_v44 = vshll.u32 %v9491_v15, 16  ;;  %8539 = vmatprep.subr.msk.bf16.mxu0 %vm212_vm0, %v9716_v14  ;;  %v9761_v48 = vld [vmem:[%s12200_s0 + $0x10] sm:$0xe] }
  0xc2   :  { %v2957_v37 = vsel %vm8649_vm4, %v2952_v16, %v2956_v32  ;;  %v2966_v1 = vrot.slane %v2965_v27, 4  ;;  %v2694_v7 = vshrl.u32 %v7443_v19, 16  ;;  %v2697_v6 = vshll.u32 %v7443_v19, 16 }
  0xc3   :  { %v7475_v24 = vcombine.low %v2943_v60, %v2957_v37  ;;  %v2979_v17 = vor.u32 %v2978_v62, %v2975_v61  ;;  %v2690_v8 = vrot.slane %v2688_v44, 6  ;;  %v2703_v45 = vshrl.u32 %v9501_v38, 16  ;;  %v9766_v62 = vld [vmem:[%s12200_s0 + $0x18] sm:$0xe] }
  0xc4   :  { %v2971_v15 = vsel %vm8649_vm4, %v2966_v1, %v2970_v51  ;;  %v2696_v25 = vrot.slane %v2694_v7, 5  ;;  %v2699_v52 = vrot.slane %v2697_v6, 6  ;;  %v2706_v2 = vshll.u32 %v9501_v38, 16  ;;  %v7506_v1 = vld [vmem:[%s12200_s0 + $0x14] sm:$0x3] }
  0xc5   :  { %8317 = vmatprep.mubr.msk.bf16.mxu1 %vm199_vm1, %v7475_v24  ;;  %v2980_v50 = vrot.slane %v2979_v17, 4  ;;  %v2691_v59 = vor.u32 %v2690_v8, %v2687_v43  ;;  %v2705_v28 = vrot.slane %v2703_v45, 5  ;;  %v2712_v12 = vshrl.u32 %v7444_v63, 16 }
  0xc6   :  { %v2700_v18 = vor.u32 %v2699_v52, %v2696_v25  ;;  %v2708_v33 = vrot.slane %v2706_v2, 6  ;;  %v2715_v0 = vshll.u32 %v7444_v63, 16  ;;  %v2721_v20 = vshrl.u32 %v9521_v53, 16  ;;  %v7507_v52 = vld [vmem:[%s12200_s0 + $0x1c] sm:$0x3] }
  0xc7   :  { %v2985_v38 = vsel %vm8649_vm4, %v2980_v50, %v2984_v29  ;;  %v2692_v4 = vrot.slane %v2691_v59, 4  ;;  %v2714_v30 = vrot.slane %v2712_v12, 5  ;;  %v2724_v35 = vshll.u32 %v9521_v53, 16 }
  0xc8   :  { %v9743_v21 = vpop.f32.mrf.mxu1  ;;  %v7476_v22 = vcombine.low %v2971_v15, %v2985_v38  ;;  %v2709_v26 = vor.u32 %v2708_v33, %v2705_v28  ;;  %v2717_v32 = vrot.slane %v2715_v0, 6  ;;  %v2723_v23 = vrot.slane %v2721_v20, 5  ;;  %v9791_v20 = vld [vmem:[%s12200_s0 + $0x20] sm:$0xe] }
  0xc9   :  { %v2701_v42 = vsel %vm9298_vm10, %v2692_v4, %v2700_v18  ;;  %v2726_v46 = vrot.slane %v2724_v35, 6  ;;  %v2730_v49 = vshrl.u32 %v7445_v5, 16  ;;  %v2733_v51 = vshll.u32 %v7445_v5, 16 }
  0xca   :  { %v9751_v9 = vpop.f32.mrf.mxu1  ;;  %8318 = vmatmul.mubr.msk.bf16.gmra.mxu1 %vm199_vm1, %v7476_v22  ;;  %v2710_v56 = vrot.slane %v2709_v26, 4  ;;  %v2718_v53 = vor.u32 %v2717_v32, %v2714_v30  ;;  %v2739_v41 = vshrl.u32 %v9534_v13, 16  ;;  %v2742_v19 = vshll.u32 %v9534_v13, 16 }
  0xcb   :  { %v2727_v60 = vor.u32 %v2726_v46, %v2723_v23  ;;  %v2732_v16 = vrot.slane %v2730_v49, 5  ;;  %v2735_v27 = vrot.slane %v2733_v51, 6  ;;  %v2748_v61 = vshrl.u32 %v7446_v40, 16 }
  0xcc   :  { %v9768_v29 = vpop.f32.mrf.mxu1  ;;  %v2719_v43 = vsel %vm9298_vm10, %v2710_v56, %v2718_v53  ;;  %v2741_v13 = vrot.slane %v2739_v41, 5  ;;  %v2744_v44 = vrot.slane %v2742_v19, 6  ;;  %v2751_v37 = vshll.u32 %v7446_v40, 16  ;;  %v9804_v56 = vld [vmem:[%s12200_s0 + $0x28] sm:$0xe] }
  0xcd   :  { %v7450_v63 = vcombine.low %v2701_v42, %v2719_v43  ;;  %v2728_v7 = vrot.slane %v2727_v60, 4  ;;  %v2736_v6 = vor.u32 %v2735_v27, %v2732_v16  ;;  %v2750_v24 = vrot.slane %v2748_v61, 5  ;;  %v7508_v42 = vld [vmem:[%s12200_s0 + $0x24] sm:$0x3]  ;;  %v7509_v53 = vld [vmem:[%s12200_s0 + $0x2c] sm:$0x3] }
  0xce   :  { %v2745_v17 = vor.u32 %v2744_v44, %v2741_v13  ;;  %v2753_v8 = vrot.slane %v2751_v37, 6  ;;  %v3255_v45 = vshrl.u32 %v9761_v48, 16  ;;  %v3258_v15 = vshll.u32 %v9761_v48, 16  ;;  %v9786_v12 = vpop.f32.mrf.mxu1 }
  0xcf   :  { %8307 = vmatprep.mubr.msk.bf16.mxu0 %vm199_vm1, %v7450_v63  ;;  %v2737_v25 = vsel %vm9298_vm10, %v2728_v7, %v2736_v6  ;;  %v3264_v2 = vshrl.u32 %v7506_v1, 16  ;;  %v3267_v50 = vshll.u32 %v7506_v1, 16  ;;  %v3273_v59 = vshrl.u32 %v9766_v62, 16 }
  0xd0   :  { %v2746_v18 = vrot.slane %v2745_v17, 4  ;;  %v2754_v33 = vor.u32 %v2753_v8, %v2750_v24  ;;  %v3257_v0 = vrot.slane %v3255_v45, 5  ;;  %v3260_v5 = vrot.slane %v3258_v15, 6 }
  0xd1   :  { %v9784_v28 = vpop.f32.mrf.mxu0  ;;  %v3266_v38 = vrot.slane %v3264_v2, 5  ;;  %v3269_v4 = vrot.slane %v3267_v50, 6  ;;  %v3275_v30 = vrot.slane %v3273_v59, 5  ;;  %v3276_v35 = vshll.u32 %v9766_v62, 16 }
  0xd2   :  { %v2755_v26 = vsel %vm9298_vm10, %v2746_v18, %v2754_v33  ;;  %v3261_v32 = vor.u32 %v3260_v5, %v3257_v0  ;;  %v3282_v40 = vshrl.u32 %v7507_v52, 16  ;;  %v3285_v23 = vshll.u32 %v7507_v52, 16 }
  0xd3   :  { %v9794_v22 = vpop.f32.mrf.mxu0  ;;  %v7451_v46 = vcombine.low %v2737_v25, %v2755_v26  ;;  %v3270_v49 = vor.u32 %v3269_v4, %v3266_v38  ;;  %v3278_v51 = vrot.slane %v3276_v35, 6  ;;  %v3291_v41 = vshrl.u32 %v9791_v20, 16  ;;  %v9812_v60 = vpop.f32.mrf.mxu1 }
  0xd4   :  { %v3262_v16 = vrot.slane %v3261_v32, 4  ;;  %v3284_v27 = vrot.slane %v3282_v40, 5  ;;  %v3287_v61 = vrot.slane %v3285_v23, 6  ;;  %v3294_v43 = vshll.u32 %v9791_v20, 16 }
  0xd5   :  { %v9810_v19 = vpop.f32.mrf.mxu0  ;;  %8308 = vmatmul.mubr.msk.bf16.gmra.mxu0 %vm199_vm1, %v7451_v46  ;;  %v3279_v13 = vor.u32 %v3278_v51, %v3275_v30  ;;  %v3293_v44 = vrot.slane %v3291_v41, 5  ;;  %v3300_v37 = vshrl.u32 %v7508_v42, 16  ;;  %v3303_v1 = vshll.u32 %v7508_v42, 16  ;;  %v9822_v52 = vpop.f32.mrf.mxu1 }
  0xd6   :  { %v3271_v63 = vsel %vm9298_vm10, %v3262_v16, %v3270_v49  ;;  %v3288_v7 = vor.u32 %v3287_v61, %v3284_v27  ;;  %v3296_v6 = vrot.slane %v3294_v43, 6  ;;  %v3309_v24 = vshrl.u32 %v9804_v56, 16 }
  0xd7   :  { %v9819_v17 = vpop.f32.mrf.mxu0  ;;  %v3280_v8 = vrot.slane %v3279_v13, 4  ;;  %v3302_v45 = vrot.slane %v3300_v37, 5  ;;  %v3305_v15 = vrot.slane %v3303_v1, 6  ;;  %v3312_v25 = vshll.u32 %v9804_v56, 16  ;;  %v9832_v49 = vpop.f32.mrf.mxu1  ;;  %v7511_v37 = vld [vmem:[%s12200_s0 + $0x3c] sm:$0x3] }
  0xd8   :  { %v3297_v2 = vor.u32 %v3296_v6, %v3293_v44  ;;  %v3311_v50 = vrot.slane %v3309_v24, 5  ;;  %v3318_v59 = vshrl.u32 %v7509_v53, 16  ;;  %v3321_v18 = vshll.u32 %v7509_v53, 16  ;;  %v9870_v1 = vld [vmem:[%s12200_s0 + $0x40] sm:$0xe] }
  0xd9   :  { %v3289_v33 = vsel %vm9298_vm10, %v3280_v8, %v3288_v7  ;;  %v3306_v0 = vor.u32 %v3305_v15, %v3302_v45  ;;  %v3314_v5 = vrot.slane %v3312_v25, 6  ;;  %v7489_v38 = vrot.slane %v9761_v48, 9  ;;  %v7512_v25 = vld [vmem:[%s12200_s0 + $0x44] sm:$0x3] }
  0xda   :  { %v7515_v4 = vcombine.low %v3271_v63, %v3289_v33  ;;  %v3298_v30 = vrot.slane %v3297_v2, 4  ;;  %v3320_v35 = vrot.slane %v3318_v59, 5  ;;  %v3323_v26 = vrot.slane %v3321_v18, 6  ;;  %v9894_v2 = vld [vmem:[%s12199_s1 + $0x54] sm:$0xf] }
  0xdb   :  { %v3315_v40 = vor.u32 %v3314_v5, %v3311_v50  ;;  %v3114_v23 = vrot.slane %v9587_v58, 5  ;;  %v7490_v42 = vrot.slane %v9766_v62, 9  ;;  %v3118_v46 = vrot.slane %v9596_v11, 5  ;;  %v9842_v58 = vld [vmem:[%s12200_s0 + $0x30] sm:$0xe] }
  0xdc   :  { %v9827_v32 = vpop.f32.mrf.mxu0  ;;  %8333 = vmatprep.mubr.msk.bf16.mxu1 %vm199_vm1, %v7515_v4  ;;  %v3307_v48 = vsel %vm9298_vm10, %v3298_v30, %v3306_v0  ;;  %v3324_v51 = vor.u32 %v3323_v26, %v3320_v35  ;;  %v7491_v53 = vrot.slane %v9791_v20, 9  ;;  %v3122_v41 = vrot.slane %v9612_v47, 5  ;;  %v9852_v20 = vld [vmem:[%s12200_s0 + $0x38] sm:$0xe]  ;;  %v7510_v47 = vld [vmem:[%s12200_s0 + $0x34] sm:$0x3] }
  0xdd   :  { %v3316_v62 = vrot.slane %v3315_v40, 4  ;;  %v3115_v11 = vsel %vm8734_vm7, %v7489_v38, %v3114_v23  ;;  %v3119_v16 = vsel %vm8734_vm7, %v7490_v42, %v3118_v46  ;;  %v7492_v27 = vrot.slane %v9804_v56, 9  ;;  %v9905_v23 = vld [vmem:[%s12200_s0 + $0x48] sm:$0xe] }
  0xde   :  { %v9857_v61 = vpop.f32.mrf.mxu0  ;;  %v7498_v43 = vcombine.low %v3115_v11, %v3119_v16  ;;  %v3123_v13 = vsel %vm8734_vm7, %v7491_v53, %v3122_v41  ;;  %v3126_v44 = vrot.slane %v9623_v3, 5  ;;  %v3682_v56 = vsel %vm212_vm0, %v9716_v14, 0  ;;  %v9878_v14 = vpop.f32.mrf.mxu1 }
  0xdf   :  { %v3325_v63 = vsel %vm9298_vm10, %v3316_v62, %v3324_v51  ;;  %v3782_v7 = vsel %vm212_vm0, %v9683_v36, 0  ;;  %v3327_v3 = vshrl.u32 %v9842_v58, 16  ;;  %v3330_v6 = vshll.u32 %v9842_v58, 16  ;;  %v9889_v36 = vld [vmem:[%s12199_s1 + $0x50] sm:$0xf] }
  0xe0   :  { %v7516_v24 = vcombine.low %v3307_v48, %v3325_v63  ;;  %8323 = vmatprep.mubr.msk.bf16.mxu0 %vm199_vm1, %v7498_v43  ;;  %v3127_v8 = vsel %vm8734_vm7, %v7492_v27, %v3126_v44  ;;  %v3336_v45 = vshrl.u32 %v7510_v47, 16  ;;  %v3339_v15 = vshll.u32 %v7510_v47, 16  ;;  %v9897_v0 = vpop.f32.mrf.mxu0  ;;  %v9908_v46 = vpop.f32.mrf.mxu1 }
  0xe1   :  { %v7499_v50 = vcombine.low %v3123_v13, %v3127_v8  ;;  %v3329_v59 = vrot.slane %v3327_v3, 5  ;;  %v3332_v18 = vrot.slane %v3330_v6, 6  ;;  %v3345_v33 = vshrl.u32 %v9852_v20, 16  ;;  %v7513_v13 = vld [vmem:[%s12200_s0 + $0x4c] sm:$0x3] }
  0xe2   :  { %8334 = vmatmul.mubr.msk.bf16.vlgmr.msra.gmra.mxu1 %vm199_vm1, %v7516_v24  ;;  %v3338_v5 = vrot.slane %v3336_v45, 5  ;;  %v3341_v38 = vrot.slane %v3339_v15, 6  ;;  %v3348_v4 = vshll.u32 %v9852_v20, 16  ;;  %v3354_v30 = vshrl.u32 %v7511_v37, 16  ;;  %v9915_v47 = vpop.f32.mrf.mxu0  ;;  %v9924_v24 = vpop.f32.mrf.mxu1 }
  0xe3   :  { %8324 = vmatmul.mubr.msk.bf16.vlgmr.msra.gmra.mxu0 %vm199_vm1, %v7499_v50  ;;  %8352 = vmatpush3.bf16.msra.mxu1 %v3782_v7  ;;  %v3333_v35 = vor.u32 %v3332_v18, %v3329_v59  ;;  %v3347_v26 = vrot.slane %v3345_v33, 5  ;;  %v3357_v40 = vshll.u32 %v7511_v37, 16  ;;  %v3363_v42 = vshrl.u32 %v9870_v1, 16 }
  0xe4   :  { %8342 = vmatpush3.bf16.msra.mxu0 %v3682_v56  ;;  %v3342_v48 = vor.u32 %v3341_v38, %v3338_v5  ;;  %v3350_v51 = vrot.slane %v3348_v4, 6  ;;  %v3356_v53 = vrot.slane %v3354_v30, 5  ;;  %v3366_v41 = vshll.u32 %v9870_v1, 16  ;;  %8542 = vmatprep.subr.msk.bf16.mxu1 %vm212_vm0, %v9894_v2  ;;  %v9927_v5 = vpop.f32.mrf.mxu0 }
  0xe5   :  { %v3334_v62 = vrot.slane %v3333_v35, 4  ;;  %v3359_v11 = vrot.slane %v3357_v40, 6  ;;  %v3365_v16 = vrot.slane %v3363_v42, 5  ;;  %v3372_v27 = vshrl.u32 %v7512_v25, 16  ;;  %8541 = vmatprep.subr.msk.bf16.mxu0 %vm212_vm0, %v9889_v36 }
  0xe6   :  { %v3351_v43 = vor.u32 %v3350_v51, %v3347_v26  ;;  %v3368_v44 = vrot.slane %v3366_v41, 6  ;;  %v3375_v56 = vshll.u32 %v7512_v25, 16  ;;  %v3381_v37 = vshrl.u32 %v9905_v23, 16  ;;  %v7523_v51 = vld [vmem:[%s12200_s0 + $0x8] sm:$0xf] }
  0xe7   :  { %v3343_v63 = vsel %vm9298_vm10, %v3334_v62, %v3342_v48  ;;  %v3360_v7 = vor.u32 %v3359_v11, %v3356_v53  ;;  %v3374_v3 = vrot.slane %v3372_v27, 5  ;;  %v3384_v6 = vshll.u32 %v9905_v23, 16  ;;  %v9935_v53 = vpop.f32.mrf.mxu1 }
  0xe8   :  { %v3352_v8 = vrot.slane %v3351_v43, 4  ;;  %v3369_v45 = vor.u32 %v3368_v44, %v3365_v16  ;;  %v3377_v15 = vrot.slane %v3375_v56, 6  ;;  %v3383_v50 = vrot.slane %v3381_v37, 5  ;;  %v9949_v44 = vpop.f32.mrf.mxu0 }
  0xe9   :  { %v3386_v59 = vrot.slane %v3384_v6, 6  ;;  %v3390_v18 = vshrl.u32 %v7513_v13, 16  ;;  %v3393_v33 = vshll.u32 %v7513_v13, 16  ;;  %v7493_v25 = vrot.slane %v9842_v58, 9  ;;  %v7524_v13 = vld [vmem:[%s12200_s0 + $0x10] sm:$0xf] }
  0xea   :  { %v3361_v38 = vsel %vm9298_vm10, %v3352_v8, %v3360_v7  ;;  %v3370_v4 = vrot.slane %v3369_v45, 4  ;;  %v3378_v30 = vor.u32 %v3377_v15, %v3374_v3  ;;  %v3130_v35 = vrot.slane %v9666_v57, 5  ;;  %v7525_v3 = vld [vmem:[%s12200_s0 + $0x18] sm:$0xf]  ;;  %v7526_v6 = vld [vmem:[%s12200_s0 + $0x20] sm:$0xf] }
  0xeb   :  { %v7517_v26 = vcombine.low %v3343_v63, %v3361_v38  ;;  %v3387_v40 = vor.u32 %v3386_v59, %v3383_v50  ;;  %v3392_v42 = vrot.slane %v3390_v18, 5  ;;  %v3395_v48 = vrot.slane %v3393_v33, 6  ;;  %v9975_v38 = vpop.f32.mrf.mxu0 }
  0xec   :  { %v3379_v58 = vsel %vm9298_vm10, %v3370_v4, %v3378_v30  ;;  %v3131_v41 = vsel %vm8734_vm7, %v7493_v25, %v3130_v35  ;;  %v7494_v62 = vrot.slane %v9852_v20, 9  ;;  %v3134_v57 = vrot.slane %v9678_v10, 5  ;;  %v9973_v25 = vld [vmem:[%s12200_s0 + $0xc] sm:$0x1] }
  0xed   :  { %8337 = vmatprep.mubr.msk.bf16.mxu1 %vm199_vm1, %v7517_v26  ;;  %v3388_v11 = vrot.slane %v3387_v40, 4  ;;  %v3396_v16 = vor.u32 %v3395_v48, %v3392_v42  ;;  %v7495_v27 = vrot.slane %v9870_v1, 9  ;;  %v3138_v43 = vrot.slane %v9697_v54, 5  ;;  %v9981_v40 = vld [vmem:[%s12200_s0 + $0x14] sm:$0x1] }
  0xee   :  { %v3135_v56 = vsel %vm8734_vm7, %v7494_v62, %v3134_v57  ;;  %v7496_v20 = vrot.slane %v9905_v23, 9  ;;  %v3142_v10 = vrot.slane %v9710_v39, 5  ;;  %v3544_v37 = vshrl.u32 %v7523_v51, 16  ;;  %v9965_v23 = vpop.f32.mrf.mxu1  ;;  %v9993_v62 = vld [vmem:[%s12200_s0 + $0x24] sm:$0x1] }
  0xef   :  { %v3397_v63 = vsel %vm9298_vm10, %v3388_v11, %v3396_v16  ;;  %v7500_v1 = vcombine.low %v3131_v41, %v3135_v56  ;;  %v3139_v54 = vsel %vm8734_vm7, %v7495_v27, %v3138_v43  ;;  %v3547_v7 = vshll.u32 %v7523_v51, 16  ;;  %v9988_v41 = vld [vmem:[%s12200_s0 + $0x1c] sm:$0x1] }
  0xf0   :  { %v7518_v39 = vcombine.low %v3379_v58, %v3397_v63  ;;  %v3143_v8 = vsel %vm8734_vm7, %v7496_v20, %v3142_v10  ;;  %v3546_v45 = vrot.slane %v3544_v37, 4  ;;  %v3558_v15 = vshrl.u32 %v7524_v13, 16  ;;  %v9995_v57 = vpop.f32.mrf.mxu1  ;;  %v9999_v37 = vpop.f32.mrf.mxu0 }
  0xf1   :  { %8327 = vmatprep.mubr.msk.bf16.mxu0 %vm199_vm1, %v7500_v1  ;;  %v7501_v50 = vcombine.low %v3139_v54, %v3143_v8  ;;  %v3549_v59 = vrot.slane %v3547_v7, 5  ;;  %v3561_v18 = vshll.u32 %v7524_v13, 16  ;;  %v7549_v33 = vcombine.low %v7523_v51, %v7524_v13  ;;  %12209 = vst [vmem:[#allocation3_spill] sm:$0xff] %v9995_v57 }
  0xf2   :  { %8338 = vmatmul.mubr.msk.bf16.gmra.mxu1 %vm199_vm1, %v7518_v39  ;;  %v3560_v4 = vrot.slane %v3558_v15, 4  ;;  %v3572_v30 = vshrl.u32 %v7525_v3, 16  ;;  %v3575_v35 = vshll.u32 %v7525_v3, 16  ;;  %v3586_v26 = vshrl.u32 %v7526_v6, 16  ;;  %v7528_v15 = vld [vmem:[%s12200_s0 + $0x30] sm:$0xf] }
  0xf3   :  { %8328 = vmatmul.mubr.msk.bf16.gmra.mxu0 %vm199_vm1, %v7501_v50  ;;  %v3563_v42 = vrot.slane %v3561_v18, 5  ;;  %8353 = vmatprep.mubr.msk.bf16.mxu1 %vm199_vm1, %v7549_v33  ;;  %v3589_v48 = vshll.u32 %v7526_v6, 16  ;;  %v7550_v51 = vcombine.low %v7525_v3, %v7526_v6  ;;  %v3550_v58 = vor.u32 %v3549_v59, %v3546_v45  ;;  %v7527_v3 = vld [vmem:[%s12200_s0 + $0x28] sm:$0xf]  ;;  %v10011_v50 = vpop.f32.mrf.mxu1 }
  0xf4   :  { %v3574_v11 = vrot.slane %v3572_v30, 4  ;;  %v3577_v16 = vrot.slane %v3575_v35, 5  ;;  %v3588_v27 = vrot.slane %v3586_v26, 4  ;;  %v3553_v43 = vshll.u32 %v9973_v25, 16  ;;  %12210 = vst [vmem:[#allocation4_spill] sm:$0xff] %v10011_v50 }
  0xf5   :  { %v3591_v13 = vrot.slane %v3589_v48, 5  ;;  %v3551_v56 = vrot.slane %v3550_v58, 4  ;;  %v3564_v20 = vor.u32 %v3563_v42, %v3560_v4  ;;  %v3567_v10 = vshll.u32 %v9981_v40, 16  ;;  %v7529_v30 = vld [vmem:[%s12200_s0 + $0x38] sm:$0xf]  ;;  %v10027_v58 = vpop.f32.mrf.mxu0 }
  0xf6   :  { %v3555_v63 = vrot.slane %v3553_v43, 5  ;;  %v3578_v1 = vor.u32 %v3577_v16, %v3574_v11  ;;  %v3581_v54 = vshll.u32 %v9988_v41, 16  ;;  %v3595_v7 = vshll.u32 %v9993_v62, 16  ;;  %v10025_v48 = vld [vmem:[%s12199_s1 + $0x5c] sm:$0xf] }
  0xf7   :  { %v3565_v6 = vrot.slane %v3564_v20, 4  ;;  %v3569_v39 = vrot.slane %v3567_v10, 5  ;;  %v3592_v8 = vor.u32 %v3591_v13, %v3588_v27  ;;  %v3932_v45 = vsel %vm212_vm0, %v9889_v36, 0 }
  0xf8   :  { %v3556_v59 = vsel %vm8649_vm4, %v3551_v56, %v3555_v63  ;;  %v3579_v18 = vrot.slane %v3578_v1, 4  ;;  %v3583_v33 = vrot.slane %v3581_v54, 5  ;;  %v3597_v4 = vrot.slane %v3595_v7, 5  ;;  %v10045_v63 = vld [vmem:[%s12200_s0 + $0x34] sm:$0x1]  ;;  %v10047_v1 = vpop.f32.mrf.mxu1 }
  0xf9   :  { %v3570_v35 = vsel %vm8649_vm4, %v3565_v6, %v3569_v39  ;;  %v3593_v36 = vrot.slane %v3592_v8, 4  ;;  %v4050_v26 = vsel %vm212_vm0, %v9894_v2, 0  ;;  %v3600_v42 = vshrl.u32 %v7527_v3, 16  ;;  %v7530_v2 = vld [vmem:[%s12200_s0 + $0x40] sm:$0xf]  ;;  %12211 = vst [vmem:[#allocation5_spill] sm:$0xff] %v10047_v1 }
  0xfa   :  { %8354 = vmatmul.mubr.msk.bf16.vlgmr.msra.gmra.mxu1 %vm199_vm1, %v7550_v51  ;;  %v7541_v11 = vcombine.low %v3556_v59, %v3570_v35  ;;  %v3584_v16 = vsel %vm8649_vm4, %v3579_v18, %v3583_v33  ;;  %v3603_v27 = vshll.u32 %v7527_v3, 16  ;;  %v3614_v43 = vshrl.u32 %v7528_v15, 16  ;;  %v10040_v51 = vld [vmem:[%s12200_s0 + $0x2c] sm:$0x1]  ;;  %v10061_v33 = vld [vmem:[%s12199_s1 + $0x58] sm:$0xf] }
  0xfb   :  { %v3598_v13 = vsel %vm8649_vm4, %v3593_v36, %v3597_v4  ;;  %8372 = vmatpush3.bf16.msra.mxu1 %v4050_v26  ;;  %v3602_v56 = vrot.slane %v3600_v42, 4  ;;  %v3617_v20 = vshll.u32 %v7528_v15, 16  ;;  %v7551_v10 = vcombine.low %v7527_v3, %v7528_v15  ;;  %v10053_v3 = vld [vmem:[%s12200_s0 + $0x3c] sm:$0x1]  ;;  %v10063_v4 = vpop.f32.mrf.mxu0  ;;  %v7560_v1 = vld [vmem:[%s12200_s0 + $0x20] sm:$0xe] }
  0xfc   :  { %8343 = vmatprep.mubr.msk.bf16.mxu0 %vm199_vm1, %v7541_v11  ;;  %v7542_v54 = vcombine.low %v3584_v16, %v3598_v13  ;;  %v3605_v7 = vrot.slane %v3603_v27, 5  ;;  %v3616_v6 = vrot.slane %v3614_v43, 4  ;;  %v3628_v39 = vshrl.u32 %v7529_v30, 16  ;;  %8544 = vmatprep.subr.msk.bf16.mxu1 %vm212_vm0, %v10025_v48  ;;  %v10070_v11 = vld [vmem:[%s12200_s0 + $0x44] sm:$0x1] }
  0xfd   :  { %v3619_v8 = vrot.slane %v3617_v20, 5  ;;  %8357 = vmatprep.mubr.msk.bf16.mxu1 %vm199_vm1, %v7551_v10  ;;  %v3631_v15 = vshll.u32 %v7529_v30, 16  ;;  %v3642_v59 = vshrl.u32 %v7530_v2, 16  ;;  %v3645_v18 = vshll.u32 %v7530_v2, 16  ;;  %v8574_v16 = vld [vmem:[%s12200_s0 + $0x10] ss:$8 sps:$4 sm:$0xff]  }
  0xfe   :  { %8344 = vmatmul.mubr.msk.bf16.vlgmr.msra.gmra.mxu0 %vm199_vm1, %v7542_v54  ;;  %v3630_v35 = vrot.slane %v3628_v39, 4  ;;  %v7552_v36 = vcombine.low %v7529_v30, %v7530_v2  ;;  %v3606_v26 = vor.u32 %v3605_v7, %v3602_v56  ;;  %v3609_v42 = vshll.u32 %v10040_v51, 16  ;;  %v7557_v30 = vld [vmem:[%s12200_s0 + $0x8] sm:$0xe]  ;;  %v10078_v2 = vpop.f32.mrf.mxu1 }
  0xff   :  { %8362 = vmatpush3.bf16.msra.mxu0 %v3932_v45  ;;  %v3633_v27 = vrot.slane %v3631_v15, 5  ;;  %v3644_v43 = vrot.slane %v3642_v59, 4  ;;  %v3647_v13 = vrot.slane %v3645_v18, 5  ;;  %v3620_v20 = vor.u32 %v3619_v8, %v3616_v6  ;;  %12212 = vst [vmem:[#allocation6_spill] sm:$0xff] %v10078_v2  ;;  %v7558_v8 = vld [vmem:[%s12200_s0 + $0x10] sm:$0xe]  ;;  %v10091_v18 = vpop.f32.mrf.mxu0 }
 0x100   :  { %v3607_v56 = vrot.slane %v3606_v26, 4  ;;  %v3611_v10 = vrot.slane %v3609_v42, 5  ;;  %v3623_v54 = vshll.u32 %v10045_v63, 16  ;;  %v3637_v7 = vshll.u32 %v10053_v3, 16  ;;  %8543 = vmatprep.subr.msk.bf16.mxu0 %vm212_vm0, %v10061_v33  ;;  %v7559_v59 = vld [vmem:[%s12200_s0 + $0x18] sm:$0xe]  ;;  %v10101_v50 = vpop.f32.mrf.mxu1 }
 0x101   :  { %v3621_v45 = vrot.slane %v3620_v20, 4  ;;  %v3634_v39 = vor.u32 %v3633_v27, %v3630_v35  ;;  %v3648_v15 = vor.u32 %v3647_v13, %v3644_v43  ;;  %v3651_v6 = vshll.u32 %v10070_v11, 16  ;;  %12213 = vst [vmem:[#allocation7_spill] sm:$0xff] %v10101_v50 }
 0x102   :  { %8358 = vmatmul.mubr.msk.bf16.gmra.mxu1 %vm199_vm1, %v7552_v36  ;;  %v3612_v26 = vsel %vm8649_vm4, %v3607_v56, %v3611_v10  ;;  %v3625_v42 = vrot.slane %v3623_v54, 5  ;;  %v3639_v35 = vrot.slane %v3637_v7, 5  ;;  %v7565_v27 = vrot.slane %v7557_v30, 9  ;;  %v8575_v30 = vld [vmem:[%s12200_s0 + $0x20] ss:$8 sps:$4 sm:$0xff]  }
 0x103   :  { %v3635_v43 = vrot.slane %v3634_v39, 4  ;;  %v3649_v13 = vrot.slane %v3648_v15, 4  ;;  %v3653_v20 = vrot.slane %v3651_v6, 5  ;;  %8373 = vmatprep.mubr.msk.bf16.mxu1 %vm199_vm1, %v8574_v16  ;;  %v3875_v2 = vrot.slane %v9973_v25, 5  ;;  %v7561_v25 = vld [vmem:[%s12200_s0 + $0x28] sm:$0xe] }
 0x104   :  { %v3626_v36 = vsel %vm8649_vm4, %v3621_v45, %v3625_v42  ;;  %v7566_v56 = vrot.slane %v7558_v8, 9  ;;  %v3879_v10 = vrot.slane %v9981_v40, 5  ;;  %v7567_v54 = vrot.slane %v7559_v59, 9  ;;  %v8576_v15 = vld [vmem:[%s12200_s0 + $0x30] ss:$8 sps:$4 sm:$0xff]   ;;  %v10130_v59 = vpop.f32.mrf.mxu0 }
 0x105   :  { %v7543_v16 = vcombine.low %v3612_v26, %v3626_v36  ;;  %v3640_v7 = vsel %vm8649_vm4, %v3635_v43, %v3639_v35  ;;  %v3654_v39 = vsel %vm8649_vm4, %v3649_v13, %v3653_v20  ;;  %v3876_v45 = vsel %vm8734_vm7, %v7565_v27, %v3875_v2  ;;  %v7562_v40 = vld [vmem:[%s12200_s0 + $0x30] sm:$0xe]  ;;  %v7563_v6 = vld [vmem:[%s12200_s0 + $0x38] sm:$0xe]  ;;  %v7564_v8 = vld [vmem:[%s12200_s0 + $0x40] sm:$0xe] }
 0x106   :  { %v7544_v26 = vcombine.low %v3640_v7, %v3654_v39  ;;  %v3880_v2 = vsel %vm8734_vm7, %v7566_v56, %v3879_v10  ;;  %v3883_v42 = vrot.slane %v9988_v41, 5  ;;  %v7568_v35 = vrot.slane %v7560_v1, 9  ;;  %v10138_v27 = vld [vmem:[%s12200_s0 + $0x14] sm:$0x1]  ;;  %v7624_v43 = vld [vmem:[%s12200_s0 + $0x10] sm:$0xe]  ;;  %v10157_v10 = vpop.f32.mrf.mxu1 }
 0x107   :  { %8347 = vmatprep.mubr.msk.bf16.mxu0 %vm199_vm1, %v7543_v16  ;;  %v7574_v13 = vcombine.low %v3876_v45, %v3880_v2  ;;  %v3887_v20 = vrot.slane %v9993_v62, 5  ;;  %v4280_v36 = vsel %vm212_vm0, %v10061_v33, 0  ;;  %v4438_v41 = vsel %vm212_vm0, %v10025_v48, 0  ;;  %v10152_v1 = vld [vmem:[%s12200_s0 + $0x1c] sm:$0x1]  ;;  %12214 = vst [vmem:[#allocation8_spill] sm:$0xff] %v10157_v10 }
 0x108   :  { %v7625_v56 = vld [vmem:[%s12200_s0 + $0x18] sm:$0xe]  ;;  %8348 = vmatmul.mubr.msk.bf16.gmra.mxu0 %vm199_vm1, %v7544_v26  ;;  %v3884_v62 = vsel %vm8734_vm7, %v7567_v54, %v3883_v42  ;;  %v7569_v33 = vrot.slane %v7561_v25, 9  ;;  %v3891_v16 = vrot.slane %v10040_v51, 5  ;;  %v7570_v48 = vrot.slane %v7562_v40, 9  ;;  %v10178_v54 = vpop.f32.mrf.mxu0 }
 0x109   :  { %v10166_v7 = vld [vmem:[%s12200_s0 + $0x24] sm:$0x1]  ;;  %8363 = vmatprep.mubr.msk.bf16.mxu0 %vm199_vm1, %v7574_v13  ;;  %v3888_v39 = vsel %vm8734_vm7, %v7568_v35, %v3887_v20  ;;  %v3895_v45 = vrot.slane %v10045_v63, 5  ;;  %v7571_v26 = vrot.slane %v7563_v6, 9  ;;  %v3899_v2 = vrot.slane %v10053_v3, 5 }
 0x10a   :  { %v10176_v51 = vld [vmem:[%s12199_s1 + $0x64] sm:$0xf]  ;;  %8374 = vmatmul.mubr.msk.bf16.vlgmr.msra.gmra.mxu1 %vm199_vm1, %v8575_v30  ;;  %v7575_v25 = vcombine.low %v3884_v62, %v3888_v39  ;;  %v3892_v40 = vsel %vm8734_vm7, %v7569_v33, %v3891_v16  ;;  %v7572_v42 = vrot.slane %v7564_v8, 9  ;;  %v3903_v35 = vrot.slane %v10070_v11, 5  ;;  %v10187_v63 = vld [vmem:[%s12200_s0 + $0x2c] sm:$0x1] }
 0x10b   :  { %v7626_v3 = vld [vmem:[%s12200_s0 + $0x20] sm:$0xe]  ;;  %8392 = vmatpush3.bf16.msra.mxu1 %v4438_v41  ;;  %8377 = vmatprep.mubr.msk.bf16.mxu1 %vm199_vm1, %v8576_v15  ;;  %v3896_v30 = vsel %vm8734_vm7, %v7570_v48, %v3895_v45  ;;  %v10197_v6 = vsel %vm8734_vm7, %v7571_v26, %v3899_v2  ;;  %v7632_v11 = vrot.slane %v7624_v43, 9  ;;  %v4381_v8 = vrot.slane %v10138_v27, 5  ;;  %v7627_v13 = vld [vmem:[%s12200_s0 + $0x28] sm:$0xe]  ;;  %v10206_v41 = vpop.f32.mrf.mxu1  ;;  %v10223_v2 = vpop.f32.mrf.mxu0 }
 0x10c   :  { %v7599_v20 = vld [vmem:[%s12200_s0 + $0x10] sm:$0xf]  ;;  %12215 = vst [vmem:[#allocation9_spill] sm:$0xff] %v10206_v41  ;;  %v7576_v15 = vcombine.low %v3892_v40, %v3896_v30  ;;  %v10210_v62 = vsel %vm8734_vm7, %v7572_v42, %v3903_v35  ;;  %v7633_v33 = vrot.slane %v7625_v56, 9  ;;  %v4385_v43 = vrot.slane %v10152_v1, 5  ;;  %8546 = vmatprep.subr.msk.bf16.mxu1 %vm212_vm0, %v10176_v51 }
 0x10d   :  { %v4382_v48 = vsel %vm8734_vm7, %v7632_v11, %v4381_v8  ;;  %v7634_v39 = vrot.slane %v7626_v3, 9  ;;  %v4389_v45 = vrot.slane %v10166_v7, 5  ;;  %v7601_v26 = vld [vmem:[%s12200_s0 + $0x18] sm:$0xf]  ;;  %v8577_v56 = vld [vmem:[%s12200_s0 + $0x40] ss:$8 sps:$4 sm:$0xff]   ;;  %v10256_v10 = vpop.f32.mrf.mxu0 }
 0x10e   :  { %v4386_v40 = vsel %vm8734_vm7, %v7633_v33, %v4385_v43  ;;  %v7635_v42 = vrot.slane %v7627_v13, 9  ;;  %v4393_v35 = vrot.slane %v10187_v63, 5  ;;  %v4142_v30 = vshrl.u32 %v7599_v20, 16  ;;  %v7657_v41 = vld [vmem:[%s12199_s1 + $0x60] sm:$0xf]  ;;  %v10242_v13 = vpop.f32.mrf.mxu1  ;;  %12217 = vst [vmem:[#allocation11_spill] sm:$0xff] %v10256_v10 }
 0x10f   :  { %v7641_v3 = vcombine.low %v4382_v48, %v4386_v40  ;;  %v10233_v11 = vsel %vm8734_vm7, %v7634_v39, %v4389_v45  ;;  %v4145_v8 = vshll.u32 %v7599_v20, 16  ;;  %v4151_v16 = vshll.u32 %v10138_v27, 16  ;;  %v7603_v33 = vld [vmem:[%s12200_s0 + $0x20] sm:$0xf]  ;;  %12216 = vst [vmem:[#allocation10_spill] sm:$0xff] %v10242_v13 }
 0x110   :  { %8364 = vmatmul.mubr.msk.bf16.vlgmr.msra.gmra.mxu0 %vm199_vm1, %v7575_v25  ;;  %v10247_v43 = vsel %vm8734_vm7, %v7635_v42, %v4393_v35  ;;  %v4144_v48 = vrot.slane %v4142_v30, 4  ;;  %v4156_v20 = vshrl.u32 %v7601_v26, 16  ;;  %v4159_v39 = vshll.u32 %v7601_v26, 16  ;;  %v7605_v27 = vld [vmem:[%s12200_s0 + $0x28] sm:$0xf] }
 0x111   :  { %8382 = vmatpush3.bf16.msra.mxu0 %v4280_v36  ;;  %8367 = vmatprep.mubr.msk.bf16.mxu0 %vm199_vm1, %v7576_v15  ;;  %v7642_v45 = vcombine.low %v10233_v11, %v10247_v43  ;;  %v4147_v40 = vrot.slane %v4145_v8, 5  ;;  %v4153_v13 = vrot.slane %v4151_v16, 5  ;;  %v4165_v25 = vshll.u32 %v10152_v1, 16  ;;  %v10265_v1 = vld [vmem:[%s12200_s0 + $0x34] sm:$0x1] }
 0x112   :  { %8378 = vmatmul.mubr.msk.bf16.gmra.mxu1 %vm199_vm1, %v8577_v56  ;;  %v4158_v42 = vrot.slane %v4156_v20, 4  ;;  %v4161_v26 = vrot.slane %v4159_v39, 5  ;;  %8545 = vmatprep.subr.msk.bf16.mxu0 %vm212_vm0, %v7657_v41  ;;  %v4170_v35 = vshrl.u32 %v7603_v33, 16  ;;  %v4173_v30 = vshll.u32 %v7603_v33, 16  ;;  %v7628_v16 = vld [vmem:[%s12200_s0 + $0x30] sm:$0xe]  ;;  %v10270_v56 = vpop.f32.mrf.mxu1 }
 0x113   :  { %8393 = vmatprep.mubr.msk.bf16.mxu1 %vm199_vm1, %v7641_v3  ;;  %v4148_v36 = vor.u32 %v4147_v40, %v4144_v48  ;;  %v4167_v15 = vrot.slane %v4165_v25, 5  ;;  %v4179_v11 = vshll.u32 %v10166_v7, 16  ;;  %v4184_v8 = vshrl.u32 %v7605_v27, 16  ;;  %12218 = vst [vmem:[#allocation12_spill] sm:$0xff] %v10270_v56  ;;  %v10275_v7 = vld [vmem:[%s12200_s0 + $0x3c] sm:$0x1] }
 0x114   :  { %v4162_v43 = vor.u32 %v4161_v26, %v4158_v42  ;;  %v4172_v33 = vrot.slane %v4170_v35, 4  ;;  %v4175_v20 = vrot.slane %v4173_v30, 5  ;;  %v4187_v3 = vshll.u32 %v7605_v27, 16  ;;  %v7629_v48 = vld [vmem:[%s12200_s0 + $0x38] sm:$0xe]  ;;  %v10286_v27 = vpop.f32.mrf.mxu0 }
 0x115   :  { %v4149_v39 = vrot.slane %v4148_v36, 4  ;;  %v4181_v40 = vrot.slane %v4179_v11, 5  ;;  %v4186_v25 = vrot.slane %v4184_v8, 4  ;;  %v4193_v50 = vshll.u32 %v10187_v63, 16  ;;  %v10284_v42 = vld [vmem:[%s12200_s0 + $0x44] sm:$0x1] }
 0x116   :  { %12219 = vst [vmem:[#allocation13_spill] sm:$0xff] %v10286_v27  ;;  %v4163_v26 = vrot.slane %v4162_v43, 4  ;;  %v4176_v35 = vor.u32 %v4175_v20, %v4172_v33  ;;  %v4189_v30 = vrot.slane %v4187_v3, 5  ;;  %v4560_v56 = vsel %vm212_vm0, %v7657_v41, 0  ;;  %v7630_v36 = vld [vmem:[%s12200_s0 + $0x40] sm:$0xe]  ;;  %v10301_v33 = vpop.f32.mrf.mxu1 }
 0x117   :  { %v4154_v11 = vsel %vm8649_vm4, %v4149_v39, %v4153_v13  ;;  %v4195_v63 = vrot.slane %v4193_v50, 5  ;;  %v4790_v8 = vsel %vm212_vm0, %v10176_v51, 0  ;;  %v7636_v57 = vrot.slane %v7628_v16, 9  ;;  %v10299_v43 = vld [vmem:[%s12200_s0 + $0x4c] sm:$0x1]  ;;  %12220 = vst [vmem:[#allocation14_spill] sm:$0xff] %v10301_v33 }
 0x118   :  { %v12221_v41 = vcombine.low %v10197_v6, %v10210_v62  ;;  %v4168_v13 = vsel %vm8649_vm4, %v4163_v26, %v4167_v15  ;;  %v4177_v50 = vrot.slane %v4176_v35, 4  ;;  %v4190_v20 = vor.u32 %v4189_v30, %v4186_v25  ;;  %v7631_v16 = vld [vmem:[%s12200_s0 + $0x48] sm:$0xe]  ;;  %v7607_v3 = vld [vmem:[%s12200_s0 + $0x30] sm:$0xf]  ;;  %v10322_v25 = vpop.f32.mrf.mxu0 }
 0x119   :  { %v4397_v51 = vrot.slane %v10265_v1, 5  ;;  %v7616_v39 = vcombine.low %v4154_v11, %v4168_v13  ;;  %v7637_v33 = vrot.slane %v7629_v48, 9  ;;  %v4401_v6 = vrot.slane %v10275_v7, 5  ;;  %v10320_v15 = vld [vmem:[%s12199_s1 + $0x70] sm:$0xf]  ;;  %12222 = vst [vmem:[#allocation15_spill] sm:$0xff] %v10322_v25  ;;  %v10337_v13 = vpop.f32.mrf.mxu1 }
 0x11a   :  { %8368 = vmatmul.mubr.msk.bf16.gmra.mxu0 %vm199_vm1, %v12221_v41  ;;  %v7638_v62 = vrot.slane %v7630_v36, 9  ;;  %8394 = vmatmul.mubr.msk.bf16.vlgmr.msra.gmra.mxu1 %vm199_vm1, %v7642_v45  ;;  %v4182_v26 = vsel %vm8649_vm4, %v4177_v50, %v4181_v40  ;;  %v4191_v35 = vrot.slane %v4190_v20, 4  ;;  %v4405_v48 = vrot.slane %v10284_v42, 5  ;;  %v7609_v45 = vld [vmem:[%s12200_s0 + $0x38] sm:$0xf]  ;;  %12223 = vst [vmem:[#allocation16_spill] sm:$0xff] %v10337_v13 }
 0x11b   :  { %v4398_v30 = vsel %vm8734_vm7, %v7636_v57, %v4397_v51  ;;  %8383 = vmatprep.mubr.msk.bf16.mxu0 %vm199_vm1, %v7616_v39  ;;  %8412 = vmatpush3.bf16.msra.mxu1 %v4790_v8  ;;  %v4402_v36 = vsel %vm8734_vm7, %v7637_v33, %v4401_v6  ;;  %v7639_v11 = vrot.slane %v7631_v16, 9  ;;  %v4409_v41 = vrot.slane %v10299_v43, 5  ;;  %v7611_v33 = vld [vmem:[%s12200_s0 + $0x40] sm:$0xf] }
 0x11c   :  { %v4198_v40 = vshrl.u32 %v7607_v3, 16  ;;  %v4196_v57 = vsel %vm8649_vm4, %v4191_v35, %v4195_v63  ;;  %v7643_v50 = vcombine.low %v4398_v30, %v4402_v36  ;;  %v4406_v8 = vsel %vm8734_vm7, %v7638_v62, %v4405_v48  ;;  %8548 = vmatprep.subr.msk.bf16.mxu1 %vm212_vm0, %v10320_v15  ;;  %v10351_v63 = vpop.f32.mrf.mxu0  ;;  %v7613_v48 = vld [vmem:[%s12200_s0 + $0x48] sm:$0xf] }
 0x11d   :  { %v4201_v20 = vshll.u32 %v7607_v3, 16  ;;  %v7617_v51 = vcombine.low %v4182_v26, %v4196_v57  ;;  %v4410_v16 = vsel %vm8734_vm7, %v7639_v11, %v4409_v41  ;;  %v4207_v6 = vshll.u32 %v10265_v1, 16  ;;  %12224 = vst [vmem:[#allocation17_spill] sm:$0xff] %v10351_v63  ;;  %v10361_v1 = vld [vmem:[%s12199_s1 + $0x68] sm:$0xf]  ;;  %v10363_v41 = vpop.f32.mrf.mxu1 }
 0x11e   :  { %v4200_v39 = vrot.slane %v4198_v40, 4  ;;  %8397 = vmatprep.mubr.msk.bf16.mxu1 %vm199_vm1, %v7643_v50  ;;  %v7644_v62 = vcombine.low %v4406_v8, %v4410_v16  ;;  %v4212_v35 = vshrl.u32 %v7609_v45, 16  ;;  %v4215_v30 = vshll.u32 %v7609_v45, 16  ;;  %12225 = vst [vmem:[#allocation18_spill] sm:$0xff] %v10363_v41  ;;  %v10370_v13 = vpop.f32.mrf.mxu0 }
 0x11f   :  { %v4203_v3 = vrot.slane %v4201_v20, 5  ;;  %v4209_v36 = vrot.slane %v4207_v6, 5  ;;  %v4221_v26 = vshll.u32 %v10275_v7, 16  ;;  %v4226_v57 = vshrl.u32 %v7611_v33, 16  ;;  %v7666_v7 = vld [vmem:[%s12200_s0 + $0x18] sm:$0xf] }
 0x120   :  { %v4229_v11 = vshll.u32 %v7611_v33, 16  ;;  %v4214_v45 = vrot.slane %v4212_v35, 4  ;;  %v4217_v50 = vrot.slane %v4215_v30, 5  ;;  %v4235_v8 = vshll.u32 %v10284_v42, 16  ;;  %12226 = vst [vmem:[#allocation19_spill] sm:$0xff] %v10370_v13 }
 0x121   :  { %v4204_v40 = vor.u32 %v4203_v3, %v4200_v39  ;;  %v4223_v20 = vrot.slane %v4221_v26, 5  ;;  %v4228_v33 = vrot.slane %v4226_v57, 4  ;;  %v4240_v6 = vshrl.u32 %v7613_v48, 16  ;;  %v10376_v42 = vld [vmem:[%s12200_s0 + $0x1c] sm:$0x1]  ;;  %v10384_v57 = vpop.f32.mrf.mxu1 }
 0x122   :  { %8384 = vmatmul.mubr.msk.bf16.vlgmr.msra.gmra.mxu0 %vm199_vm1, %v7617_v51  ;;  %v4231_v16 = vrot.slane %v4229_v11, 5  ;;  %8398 = vmatmul.mubr.msk.bf16.gmra.mxu1 %vm199_vm1, %v7644_v62  ;;  %v4218_v51 = vor.u32 %v4217_v50, %v4214_v45  ;;  %v4237_v39 = vrot.slane %v4235_v8, 5  ;;  %v4243_v3 = vshll.u32 %v7613_v48, 16  ;;  %v7668_v62 = vld [vmem:[%s12200_s0 + $0x20] sm:$0xf]  ;;  %12227 = vst [vmem:[#allocation20_spill] sm:$0xff] %v10384_v57 }
 0x123   :  { %8402 = vmatpush3.bf16.msra.mxu0 %v4560_v56  ;;  %v4205_v41 = vrot.slane %v4204_v40, 4  ;;  %v4242_v35 = vrot.slane %v4240_v6, 4  ;;  %v4249_v30 = vshll.u32 %v10299_v43, 16  ;;  %v4652_v26 = vshrl.u32 %v7666_v7, 16  ;;  %v10394_v6 = vpop.f32.mrf.mxu0 }
 0x124   :  { %8547 = vmatprep.subr.msk.bf16.mxu0 %vm212_vm0, %v10361_v1  ;;  %v4232_v56 = vor.u32 %v4231_v16, %v4228_v33  ;;  %v4219_v11 = vrot.slane %v4218_v51, 4  ;;  %v4245_v40 = vrot.slane %v4243_v3, 5  ;;  %v4655_v45 = vshll.u32 %v7666_v7, 16  ;;  %v10391_v33 = vld [vmem:[%s12200_s0 + $0x24] sm:$0x1]  ;;  %12228 = vst [vmem:[#allocation21_spill] sm:$0xff] %v10394_v6 }
 0x125   :  { %v4210_v48 = vsel %vm8649_vm4, %v4205_v41, %v4209_v36  ;;  %v4251_v8 = vrot.slane %v4249_v30, 5  ;;  %v4654_v43 = vrot.slane %v4652_v26, 4  ;;  %v4661_v16 = vshll.u32 %v10376_v42, 16  ;;  %v7670_v7 = vld [vmem:[%s12200_s0 + $0x28] sm:$0xf] }
 0x126   :  { %v4233_v50 = vrot.slane %v4232_v56, 4  ;;  %v4224_v57 = vsel %vm8649_vm4, %v4219_v11, %v4223_v20  ;;  %v4246_v13 = vor.u32 %v4245_v40, %v4242_v35  ;;  %v4657_v36 = vrot.slane %v4655_v45, 5  ;;  %v10404_v51 = vld [vmem:[%s12200_s0 + $0x2c] sm:$0x1]  ;;  %v7672_v20 = vld [vmem:[%s12200_s0 + $0x30] sm:$0xf]  ;;  %v10411_v35 = vpop.f32.mrf.mxu1 }
 0x127   :  { %v4666_v41 = vshrl.u32 %v7668_v62, 16  ;;  %v7618_v3 = vcombine.low %v4210_v48, %v4224_v57  ;;  %v4663_v30 = vrot.slane %v4661_v16, 5  ;;  %v4669_v26 = vshll.u32 %v7668_v62, 16  ;;  %12229 = vst [vmem:[#allocation22_spill] sm:$0xff] %v10411_v35 }
 0x128   :  { %v4238_v56 = vsel %vm8649_vm4, %v4233_v50, %v4237_v39  ;;  %v4247_v11 = vrot.slane %v4246_v13, 4  ;;  %v4658_v40 = vor.u32 %v4657_v36, %v4654_v43  ;;  %v4675_v6 = vshll.u32 %v10391_v33, 16  ;;  %v10418_v39 = vld [vmem:[%s12200_s0 + $0x34] sm:$0x1]  ;;  %v10421_v50 = vpop.f32.mrf.mxu0  ;;  %v10428_v27 = vpop.f32.mrf.mxu1 }
 0x129   :  { %v4668_v45 = vrot.slane %v4666_v41, 4  ;;  %8387 = vmatprep.mubr.msk.bf16.mxu0 %vm199_vm1, %v7618_v3  ;;  %v4671_v63 = vrot.slane %v4669_v26, 5  ;;  %v4680_v62 = vshrl.u32 %v7670_v7, 16  ;;  %v4683_v57 = vshll.u32 %v7670_v7, 16  ;;  %12230 = vst [vmem:[#allocation23_spill] sm:$0xff] %v10421_v50  ;;  %12231 = vst [vmem:[#allocation24_spill] sm:$0xff] %v10428_v27 }
 0x12a   :  { %v4689_v48 = vshll.u32 %v10404_v51, 16  ;;  %v4252_v13 = vsel %vm8649_vm4, %v4247_v11, %v4251_v8  ;;  %v4659_v43 = vrot.slane %v4658_v40, 4  ;;  %v4677_v16 = vrot.slane %v4675_v6, 5  ;;  %v8578_v41 = vld [vmem:[%s12200_s0 + $0x18] ss:$8 sps:$4 sm:$0xff]  }
 0x12b   :  { %v4694_v36 = vshrl.u32 %v7672_v20, 16  ;;  %v7619_v3 = vcombine.low %v4238_v56, %v4252_v13  ;;  %v4672_v26 = vor.u32 %v4671_v63, %v4668_v45  ;;  %v4682_v35 = vrot.slane %v4680_v62, 4  ;;  %v7674_v8 = vld [vmem:[%s12200_s0 + $0x38] sm:$0xf]  ;;  %v10440_v56 = vld [vmem:[%s12200_s0 + $0x3c] sm:$0x1]  ;;  %v10442_v45 = vpop.f32.mrf.mxu0 }
 0x12c   :  { %v4685_v25 = vrot.slane %v4683_v57, 5  ;;  %v4664_v7 = vsel %vm8649_vm4, %v4659_v43, %v4663_v30  ;;  %v4697_v10 = vshll.u32 %v7672_v20, 16  ;;  %v4691_v40 = vrot.slane %v4689_v48, 5  ;;  %12232 = vst [vmem:[#allocation25_spill] sm:$0xff] %v10442_v45  ;;  %v7676_v62 = vld [vmem:[%s12200_s0 + $0x40] sm:$0xf] }
 0x12d   :  { %v4696_v50 = vrot.slane %v4694_v36, 4  ;;  %8388 = vmatmul.mubr.msk.bf16.gmra.mxu0 %vm199_vm1, %v7619_v3  ;;  %v4673_v6 = vrot.slane %v4672_v26, 4  ;;  %v4703_v63 = vshll.u32 %v10418_v39, 16  ;;  %v10447_v20 = vadd.f32 %v9743_v21, %v9784_v28  ;;  %v10463_v21 = vld [vmem:[%s12200_s0 + $0x44] sm:$0x1] }
 0x12e   :  { %v4686_v11 = vor.u32 %v4685_v25, %v4682_v35  ;;  %v4699_v30 = vrot.slane %v4697_v10, 5  ;;  %8403 = vmatprep.mubr.msk.bf16.mxu0 %vm199_vm1, %v8578_v41  ;;  %v4948_v25 = vsel %vm212_vm0, %v10361_v1, 0  ;;  %v10453_v35 = vadd.f32 %v9751_v9, %v9794_v22  ;;  %v10465_v1 = vpop.f32.mrf.mxu1  ;;  %v8579_v22 = vld [vmem:[%s12200_s0 + $0x28] ss:$8 sps:$4 sm:$0xff]  }
 0x12f   :  { %v4678_v10 = vsel %vm8649_vm4, %v4673_v6, %v4677_v16  ;;  %v4705_v48 = vrot.slane %v4703_v63, 5  ;;  %v4708_v28 = vshrl.u32 %v7674_v8, 16  ;;  %12233 = vst [vmem:[#allocation26_spill] sm:$0xff] %v10465_v1  ;;  %v4711_v43 = vshll.u32 %v7674_v8, 16  ;;  %v7678_v16 = vld [vmem:[%s12200_s0 + $0x48] sm:$0xf] }
 0x130   :  { %v4687_v57 = vrot.slane %v4686_v11, 4  ;;  %v7683_v13 = vcombine.low %v4664_v7, %v4678_v10  ;;  %v4700_v9 = vor.u32 %v4699_v30, %v4696_v50  ;;  %v4717_v36 = vshll.u32 %v10440_v56, 16  ;;  %v10479_v50 = vld [vmem:[%s12200_s0 + $0x4c] sm:$0x1]  ;;  %v10481_v7 = vpop.f32.mrf.mxu0  ;;  %v7680_v1 = vld [vmem:[%s12200_s0 + $0x50] sm:$0xf] }
 0x131   :  { %v5261_v41 = vsel %vm212_vm0, %v10320_v15, 0  ;;  %v4710_v3 = vrot.slane %v4708_v28, 4  ;;  %v4722_v26 = vshrl.u32 %v7676_v62, 16  ;;  %v4725_v6 = vshll.u32 %v7676_v62, 16  ;;  %12234 = vst [vmem:[#allocation27_spill] sm:$0xff] %v10481_v7 }
 0x132   :  { %8413 = vmatprep.mubr.msk.bf16.mxu1 %vm199_vm1, %v7683_v13  ;;  %v4692_v8 = vsel %vm8649_vm4, %v4687_v57, %v4691_v40  ;;  %v4701_v11 = vrot.slane %v4700_v9, 4  ;;  %v4713_v63 = vrot.slane %v4711_v43, 5  ;;  %v4731_v30 = vshll.u32 %v10463_v21, 16  ;;  %v8580_v15 = vld [vmem:[%s12200_s0 + $0x38] ss:$8 sps:$4 sm:$0xff]   ;;  %v10493_v13 = vpop.f32.mrf.mxu1 }
 0x133   :  { %v4719_v62 = vrot.slane %v4717_v36, 5  ;;  %v4724_v10 = vrot.slane %v4722_v26, 4  ;;  %v4727_v28 = vrot.slane %v4725_v6, 5  ;;  %v4736_v27 = vshrl.u32 %v7678_v16, 16  ;;  %12235 = vst [vmem:[#allocation28_spill] sm:$0xff] %v10493_v13 }
 0x134   :  { %v4706_v40 = vsel %vm8649_vm4, %v4701_v11, %v4705_v48  ;;  %v4714_v57 = vor.u32 %v4713_v63, %v4710_v3  ;;  %v4733_v9 = vrot.slane %v4731_v30, 5  ;;  %v10500_v43 = vld [vmem:[%s12200_s0 + $0x54] sm:$0x1]  ;;  %v4739_v36 = vshll.u32 %v7678_v16, 16  ;;  %v10505_v26 = vld [vmem:[%s12199_s1 + $0x6c] sm:$0xf]  ;;  %v10509_v3 = vpop.f32.mrf.mxu0 }
 0x135   :  { %v7684_v6 = vcombine.low %v4692_v8, %v4706_v40  ;;  %8404 = vmatmul.mubr.msk.bf16.vlgmr.msra.gmra.mxu0 %vm199_vm1, %v8579_v22  ;;  %v4728_v13 = vor.u32 %v4727_v28, %v4724_v10  ;;  %v4738_v7 = vrot.slane %v4736_v27, 4  ;;  %v4745_v48 = vshll.u32 %v10479_v50, 16  ;;  %12236 = vst [vmem:[#allocation29_spill] sm:$0xff] %v10509_v3  ;;  %v10515_v16 = vld [vmem:[%s12200_s0 + $0xc] sm:$0x1]  ;;  %v10535_v10 = vpop.f32.mrf.mxu1 }
 0x136   :  { %8422 = vmatpush3.bf16.msra.mxu0 %v4948_v25  ;;  %v4715_v11 = vrot.slane %v4714_v57, 4  ;;  %v4741_v63 = vrot.slane %v4739_v36, 5  ;;  %v4750_v30 = vshrl.u32 %v7680_v1, 16  ;;  %v4753_v45 = vshll.u32 %v7680_v1, 16  ;;  %8407 = vmatprep.mubr.msk.bf16.mxu0 %vm199_vm1, %v8580_v15  ;;  %v10520_v27 = vld [vmem:[%s12199_s1 + $0x74] sm:$0xf] }
 0x137   :  { %8414 = vmatmul.mubr.msk.bf16.vlgmr.msra.gmra.mxu1 %vm199_vm1, %v7684_v6  ;;  %v4729_v22 = vrot.slane %v4728_v13, 4  ;;  %v10525_v25 = vadd.f32 %v9768_v29, %v9810_v19  ;;  %v4747_v1 = vrot.slane %v4745_v48, 5  ;;  %v4759_v8 = vshll.u32 %v10500_v43, 16  ;;  %v10531_v15 = vld [vmem:[%s12200_s0 + $0x8] sm:$0xe]  ;;  %8549 = vmatprep.subr.msk.bf16.mxu0 %vm212_vm0, %v10505_v26  ;;  %12237 = vst [vmem:[#allocation30_spill] sm:$0xff] %v10535_v10  ;;  %v10564_v6 = vpop.f32.mrf.mxu0 }
 0x138   :  { %8432 = vmatpush3.bf16.msra.mxu1 %v5261_v41  ;;  %v4720_v28 = vsel %vm8649_vm4, %v4715_v11, %v4719_v62  ;;  %v4742_v13 = vor.u32 %v4741_v63, %v4738_v7  ;;  %v4752_v29 = vrot.slane %v4750_v30, 4  ;;  %v4755_v19 = vrot.slane %v4753_v45, 5  ;;  %v10542_v40 = vld [vmem:[%s12200_s0 + $0x14] sm:$0x1]  ;;  %v10547_v57 = vld [vmem:[%s12200_s0 + $0x10] sm:$0xe] }
 0x139   :  { %v4734_v36 = vsel %vm8649_vm4, %v4729_v22, %v4733_v9  ;;  %v4761_v41 = vrot.slane %v4759_v8, 5  ;;  %v10553_v62 = vadd.f32 %v9786_v12, %v9819_v17  ;;  %v10557_v45 = vadd.f32 %v9812_v60, %v9827_v32  ;;  %v8581_v7 = vld [vmem:[%s12200_s0 + $0x48] ss:$8 sps:$4 sm:$0xff]   ;;  %8550 = vmatprep.subr.msk.bf16.mxu1 %vm212_vm0, %v10520_v27  ;;  %12238 = vst [vmem:[#allocation31_spill] sm:$0xff] %v10564_v6  ;;  %v7721_v12 = vld [vmem:[%s12200_s0 + $0x1c] sm:$0x1]  ;;  %v10596_v6 = vpop.f32.mrf.mxu0 }
 0x13a   :  { %v7685_v48 = vcombine.low %v4720_v28, %v4734_v36  ;;  %v4743_v9 = vrot.slane %v4742_v13, 4  ;;  %v4756_v11 = vor.u32 %v4755_v19, %v4752_v29  ;;  %v7741_v63 = vrot.slane %v10531_v15, 9  ;;  %v7735_v60 = vld [vmem:[%s12200_s0 + $0x18] sm:$0xe]  ;;  %v7723_v8 = vld [vmem:[%s12200_s0 + $0x24] sm:$0x1]  ;;  %v10583_v28 = vpop.f32.mrf.mxu1 }
 0x13b   :  { %v10575_v17 = vadd.f32 %v9822_v52, %v9857_v61  ;;  %v5204_v32 = vrot.slane %v10515_v16, 5  ;;  %v7742_v30 = vrot.slane %v10547_v57, 9  ;;  %v5208_v22 = vrot.slane %v10542_v40, 5  ;;  %12239 = vst [vmem:[#allocation32_spill] sm:$0xff] %v10583_v28  ;;  %v7736_v19 = vld [vmem:[%s12200_s0 + $0x20] sm:$0xe] }
 0x13c   :  { %8417 = vmatprep.mubr.msk.bf16.mxu1 %vm199_vm1, %v7685_v48  ;;  %v4748_v13 = vsel %vm8649_vm4, %v4743_v9, %v4747_v1  ;;  %v4757_v29 = vrot.slane %v4756_v11, 4  ;;  %v5102_v52 = vshll.u32 %v7721_v12, 16  ;;  %v5116_v61 = vshll.u32 %v7723_v8, 16  ;;  %12240 = vst [vmem:[#allocation33_spill] sm:$0xff] %v10596_v6 }
 0x13d   :  { %8408 = vmatmul.mubr.msk.bf16.gmra.mxu0 %vm199_vm1, %v8581_v7  ;;  %v5205_v36 = vsel %vm8734_vm7, %v7741_v63, %v5204_v32  ;;  %v5209_v28 = vsel %vm8734_vm7, %v7742_v30, %v5208_v22  ;;  %v7743_v10 = vrot.slane %v7735_v60, 9  ;;  %v5212_v48 = vrot.slane %v7721_v12, 5  ;;  %v7691_v7 = vld [vmem:[%s12200_s0 + $0x18] sm:$0xe]  ;;  %v10614_v22 = vpop.f32.mrf.mxu1 }
 0x13e   :  { %v4762_v1 = vsel %vm8649_vm4, %v4757_v29, %v4761_v41  ;;  %v7750_v9 = vcombine.low %v5205_v36, %v5209_v28  ;;  %v10602_v11 = vadd.f32 %v9832_v49, %v9897_v0  ;;  %v10604_v3 = vrot.slane %v5102_v52, 5  ;;  %v7692_v41 = vld [vmem:[%s12200_s0 + $0x20] sm:$0xe]  ;;  %12241 = vst [vmem:[#allocation34_spill] sm:$0xff] %v10614_v22  ;;  %v7693_v52 = vld [vmem:[%s12200_s0 + $0x28] sm:$0xe] }
 0x13f   :  { %v7686_v63 = vcombine.low %v4748_v13, %v4762_v1  ;;  %v5213_v12 = vsel %vm8734_vm7, %v7743_v10, %v5212_v48  ;;  %v7744_v32 = vrot.slane %v7736_v19, 9  ;;  %v5216_v30 = vrot.slane %v7723_v8, 5  ;;  %v10628_v48 = vpop.f32.mrf.mxu0 }
 0x140   :  { %v5465_v49 = vshrl.u32 %v7735_v60, 16  ;;  %v5468_v0 = vshll.u32 %v7735_v60, 16  ;;  %v5483_v28 = vshrl.u32 %v7736_v19, 16  ;;  %v5486_v29 = vshll.u32 %v7736_v19, 16  ;;  %v7694_v60 = vld [vmem:[%s12200_s0 + $0x30] sm:$0xe] }
 0x141   :  { %8418 = vmatmul.mubr.msk.bf16.gmra.mxu1 %vm199_vm1, %v7686_v63  ;;  %v10620_v13 = vrot.slane %v5116_v61, 5  ;;  %v5217_v10 = vsel %vm8734_vm7, %v7744_v32, %v5216_v30  ;;  %v7699_v8 = vrot.slane %v7691_v7, 9  ;;  %v4891_v36 = vrot.slane %v10376_v42, 5  ;;  %12242 = vst [vmem:[#allocation35_spill] sm:$0xff] %v10628_v48  ;;  %v10642_v42 = vld [vmem:[%s12200_s0 + $0x2c] sm:$0x1] }
 0x142   :  { %8433 = vmatprep.mubr.msk.bf16.mxu1 %vm199_vm1, %v7750_v9  ;;  %v7751_v19 = vcombine.low %v5213_v12, %v5217_v10  ;;  %v10631_v1 = vrot.slane %v5465_v49, 5  ;;  %v10633_v63 = vrot.slane %v5468_v0, 6  ;;  %v10637_v61 = vadd.f32 %v9878_v14, %v9915_v47  ;;  %v10647_v7 = vld [vmem:[%s12200_s0 + $0x34] sm:$0x1]  ;;  %v10657_v14 = vld [vmem:[%s12200_s0 + $0x28] sm:$0xe]  ;;  %v10659_v47 = vpop.f32.mrf.mxu1 }
 0x143   :  { %12243 = vst [vmem:[#allocation36_spill] sm:$0xff] %v10647_v7  ;;  %v10649_v9 = vrot.slane %v5483_v28, 5  ;;  %v4892_v12 = vsel %vm8734_vm7, %v7699_v8, %v4891_v36  ;;  %v7700_v32 = vrot.slane %v7692_v41, 9  ;;  %v4895_v30 = vrot.slane %v10391_v33, 5  ;;  %12244 = vst [vmem:[#allocation37_spill] sm:$0xff] %v10659_v47 }
 0x144   :  { %v10661_v49 = vrot.slane %v5486_v29, 6  ;;  %v7701_v0 = vrot.slane %v7693_v52, 9  ;;  %v4899_v10 = vrot.slane %v10404_v51, 5  ;;  %v7702_v28 = vrot.slane %v7694_v60, 9  ;;  %v10667_v8 = vld [vmem:[%s12200_s0 + $0x30] sm:$0xe]  ;;  %v10681_v52 = vpop.f32.mrf.mxu0 }
 0x145   :  { %v4896_v33 = vsel %vm8734_vm7, %v7700_v32, %v4895_v30  ;;  %v10673_v41 = vadd.f32 %v9927_v5, %v10447_v20  ;;  %v4903_v36 = vrot.slane %v10418_v39, 5  ;;  %v5353_v29 = vsel %vm212_vm0, %v10505_v26, 0  ;;  %v7729_v51 = vld [vmem:[%s12200_s0 + $0x3c] sm:$0x1]  ;;  %12245 = vst [vmem:[#allocation38_spill] sm:$0xff] %v10681_v52 }
 0x146   :  { %v7708_v60 = vcombine.low %v4892_v12, %v4896_v33  ;;  %v4900_v47 = vsel %vm8734_vm7, %v7701_v0, %v4899_v10  ;;  %v5599_v32 = vsel %vm212_vm0, %v10520_v27, 0  ;;  %v7745_v5 = vrot.slane %v10657_v14, 9  ;;  %v7731_v39 = vld [vmem:[%s12200_s0 + $0x44] sm:$0x1]  ;;  %v7739_v20 = vld [vmem:[%s12200_s0 + $0x38] sm:$0xe]  ;;  %v10702_v10 = vpop.f32.mrf.mxu1 }
 0x147   :  { %v4904_v26 = vsel %vm8734_vm7, %v7702_v28, %v4903_v36  ;;  %v5220_v12 = vrot.slane %v10642_v42, 5  ;;  %v7746_v30 = vrot.slane %v10667_v8, 9  ;;  %v5224_v0 = vrot.slane %v10647_v7, 5  ;;  %v7740_v27 = vld [vmem:[%s12200_s0 + $0x40] sm:$0xe]  ;;  %12246 = vst [vmem:[#allocation39_spill] sm:$0xff] %v10702_v10  ;;  %v10727_v10 = vpop.f32.mrf.mxu0 }
 0x148   :  { %8423 = vmatprep.mubr.msk.bf16.mxu0 %vm199_vm1, %v7708_v60  ;;  %v7709_v33 = vcombine.low %v4900_v47, %v4904_v26  ;;  %v10707_v22 = vadd.f32 %v9949_v44, %v10453_v35  ;;  %v5158_v28 = vshll.u32 %v7729_v51, 16  ;;  %v5172_v36 = vshll.u32 %v7731_v39, 16  ;;  %v10712_v52 = vld [vmem:[%s12199_s1 + $0x7c] sm:$0xf]  ;;  %v7695_v44 = vld [vmem:[%s12200_s0 + $0x38] sm:$0xe] }
 0x149   :  { %8434 = vmatmul.mubr.msk.bf16.vlgmr.msra.gmra.mxu1 %vm199_vm1, %v7751_v19  ;;  %v5221_v48 = vsel %vm8734_vm7, %v7745_v5, %v5220_v12  ;;  %v5225_v60 = vsel %vm8734_vm7, %v7746_v30, %v5224_v0  ;;  %v7747_v47 = vrot.slane %v7739_v20, 9  ;;  %v5228_v26 = vrot.slane %v7729_v51, 5  ;;  %v10725_v35 = vld [vmem:[%s12199_s1 + $0x78] sm:$0xf] }
 0x14a   :  { %8424 = vmatmul.mubr.msk.bf16.vlgmr.msra.gmra.mxu0 %vm199_vm1, %v7709_v33  ;;  %8452 = vmatpush3.bf16.msra.mxu1 %v5599_v32  ;;  %v7752_v19 = vcombine.low %v5221_v48, %v5225_v60  ;;  %v10732_v5 = vadd.f32 %v9975_v38, %v10525_v25  ;;  %v10734_v51 = vrot.slane %v5158_v28, 5  ;;  %v7748_v12 = vrot.slane %v7740_v27, 9  ;;  %v7696_v33 = vld [vmem:[%s12200_s0 + $0x40] sm:$0xe]  ;;  %v10743_v48 = vpop.f32.mrf.mxu1 }
 0x14b   :  { %8442 = vmatpush3.bf16.msra.mxu0 %v5353_v29  ;;  %v5229_v30 = vsel %vm8734_vm7, %v7747_v47, %v5228_v26  ;;  %v5232_v0 = vrot.slane %v7731_v39, 5  ;;  %v5537_v6 = vshrl.u32 %v7739_v20, 16  ;;  %v5540_v7 = vshll.u32 %v7739_v20, 16  ;;  %8552 = vmatprep.subr.msk.bf16.mxu1 %vm212_vm0, %v10712_v52  ;;  %12247 = vst [vmem:[#allocation40_spill] sm:$0xff] %v10743_v48  ;;  %v7697_v39 = vld [vmem:[%s12200_s0 + $0x48] sm:$0xe]  ;;  %v10765_v47 = vpop.f32.mrf.mxu0 }
 0x14c   :  { %8437 = vmatprep.mubr.msk.bf16.mxu1 %vm199_vm1, %v7752_v19  ;;  %v10746_v38 = vrot.slane %v5172_v36, 5  ;;  %v5555_v25 = vshrl.u32 %v7740_v27, 16  ;;  %v5558_v29 = vshll.u32 %v7740_v27, 16  ;;  %v7703_v32 = vrot.slane %v7695_v44, 9  ;;  %8551 = vmatprep.subr.msk.bf16.mxu0 %vm212_vm0, %v10725_v35  ;;  %v7698_v27 = vld [vmem:[%s12200_s0 + $0x50] sm:$0xe]  ;;  %v10779_v48 = vpop.f32.mrf.mxu1 }
 0x14d   :  { %v5233_v20 = vsel %vm8734_vm7, %v7748_v12, %v5232_v0  ;;  %v10755_v28 = vrot.slane %v5537_v6, 5  ;;  %v10759_v60 = vadd.f32 %v9999_v37, %v10553_v62  ;;  %v4907_v36 = vrot.slane %v10440_v56, 5  ;;  %12248 = vst [vmem:[#allocation41_spill] sm:$0xff] %v10765_v47  ;;  %v7766_v6 = vld [vmem:[%s12200_s0 + $0xc] sm:$0x3]  ;;  %12249 = vst [vmem:[#allocation42_spill] sm:$0xff] %v10779_v48 }
 0x14e   :  { %v7753_v26 = vcombine.low %v5229_v30, %v5233_v20  ;;  %v10767_v44 = vrot.slane %v5540_v7, 6  ;;  %v10769_v19 = vrot.slane %v5555_v25, 5  ;;  %v7704_v12 = vrot.slane %v7696_v33, 9  ;;  %v10801_v48 = vpop.f32.mrf.mxu1 }
 0x14f   :  { %v10774_v37 = vrot.slane %v5558_v29, 6  ;;  %v4908_v56 = vsel %vm8734_vm7, %v7703_v32, %v4907_v36  ;;  %v4911_v62 = vrot.slane %v10463_v21, 5  ;;  %v7705_v0 = vrot.slane %v7697_v39, 9  ;;  %v7767_v21 = vld [vmem:[%s12200_s0 + $0x14] sm:$0x3]  ;;  %12250 = vst [vmem:[#allocation43_spill] sm:$0xff] %v10801_v48 }
 0x150   :  { %v10783_v7 = vadd.f32 %v10027_v58, %v10557_v45  ;;  %v4915_v30 = vrot.slane %v10479_v50, 5  ;;  %v7706_v33 = vrot.slane %v7698_v27, 9  ;;  %v4919_v25 = vrot.slane %v10500_v43, 5  ;;  %v10795_v45 = vpop.f32.mrf.mxu0 }
 0x151   :  { %8438 = vmatmul.mubr.msk.bf16.gmra.mxu1 %vm199_vm1, %v7753_v26  ;;  %v4912_v29 = vsel %vm8734_vm7, %v7704_v12, %v4911_v62  ;;  %v5429_v32 = vshrl.u32 %v10531_v15, 16  ;;  %v5432_v39 = vshll.u32 %v10531_v15, 16  ;;  %v5438_v58 = vshrl.u32 %v7766_v6, 16 }
 0x152   :  { %v7710_v50 = vcombine.low %v4908_v56, %v4912_v29  ;;  %v4916_v43 = vsel %vm8734_vm7, %v7705_v0, %v4915_v30  ;;  %v4920_v20 = vsel %vm8734_vm7, %v7706_v33, %v4919_v25  ;;  %v5441_v36 = vshll.u32 %v7766_v6, 16  ;;  %v7768_v0 = vld [vmem:[%s12200_s0 + $0x1c] sm:$0x3]  ;;  %v7769_v25 = vld [vmem:[%s12200_s0 + $0x24] sm:$0x3] }
 0x153   :  { %v7711_v27 = vcombine.low %v4916_v43, %v4920_v20  ;;  %v5431_v26 = vrot.slane %v5429_v32, 5  ;;  %v5434_v12 = vrot.slane %v5432_v39, 6  ;;  %v5440_v62 = vrot.slane %v5438_v58, 5  ;;  %v10819_v32 = vpop.f32.mrf.mxu0 }
 0x154   :  { %8427 = vmatprep.mubr.msk.bf16.mxu0 %vm199_vm1, %v7710_v50  ;;  %v5443_v15 = vrot.slane %v5441_v36, 6  ;;  %v5447_v47 = vshrl.u32 %v10547_v57, 16  ;;  %v5450_v56 = vshll.u32 %v10547_v57, 16  ;;  %v5456_v29 = vshrl.u32 %v7767_v21, 16 }
 0x155   :  { %8428 = vmatmul.mubr.msk.bf16.gmra.mxu0 %vm199_vm1, %v7711_v27  ;;  %v10812_v6 = vadd.f32 %v10063_v4, %v10575_v17  ;;  %v5435_v30 = vor.u32 %v5434_v12, %v5431_v26  ;;  %v5459_v33 = vshll.u32 %v7767_v21, 16  ;;  %v5471_v57 = vor.u32 %v10633_v63, %v10631_v1  ;;  %v10825_v21 = vpop.f32.mrf.mxu1 }
 0x156   :  { %v5444_v39 = vor.u32 %v5443_v15, %v5440_v62  ;;  %v5449_v58 = vrot.slane %v5447_v47, 5  ;;  %v5452_v50 = vrot.slane %v5450_v56, 6  ;;  %v5458_v43 = vrot.slane %v5456_v29, 5  ;;  %12251 = vst [vmem:[#allocation44_spill] sm:$0xff] %v10825_v21  ;;  %v7716_v47 = vld [vmem:[%s12200_s0 + $0x8] sm:$0xf] }
 0x157   :  { %v5436_v20 = vrot.slane %v5435_v30, 4  ;;  %v5461_v36 = vrot.slane %v5459_v33, 6  ;;  %v10823_v4 = vadd.f32 %v10091_v18, %v10602_v11  ;;  %v5474_v17 = vshrl.u32 %v7768_v0, 16  ;;  %v7718_v18 = vld [vmem:[%s12200_s0 + $0x10] sm:$0xf]  ;;  %v10835_v11 = vpop.f32.mrf.mxu0 }
 0x158   :  { %v5453_v27 = vor.u32 %v5452_v50, %v5449_v58  ;;  %v5477_v26 = vshll.u32 %v7768_v0, 16  ;;  %v5489_v1 = vor.u32 %v10661_v49, %v10649_v9  ;;  %v5492_v63 = vshrl.u32 %v7769_v25, 16  ;;  %12252 = vst [vmem:[#allocation45_spill] sm:$0xff] %v10835_v11 }
 0x159   :  { %v5462_v12 = vor.u32 %v5461_v36, %v5458_v43  ;;  %v5472_v62 = vrot.slane %v5471_v57, 4  ;;  %v5476_v15 = vrot.slane %v5474_v17, 5  ;;  %v5495_v56 = vshll.u32 %v7769_v25, 16  ;;  %v10839_v43 = vpop.f32.mrf.mxu1 }
 0x15a   :  { %v5445_v29 = vsel %vm9298_vm10, %v5436_v20, %v5444_v39  ;;  %v5454_v0 = vrot.slane %v5453_v27, 4  ;;  %v5479_v9 = vrot.slane %v5477_v26, 6  ;;  %v5494_v49 = vrot.slane %v5492_v63, 5  ;;  %v7720_v20 = vld [vmem:[%s12200_s0 + $0x18] sm:$0xf]  ;;  %v10847_v27 = vpop.f32.mrf.mxu0 }
 0x15b   :  { %v5490_v30 = vrot.slane %v5489_v1, 4  ;;  %v5497_v33 = vrot.slane %v5495_v56, 6  ;;  %v5065_v58 = vshrl.u32 %v7716_v47, 16  ;;  %v5068_v50 = vshll.u32 %v7716_v47, 16  ;;  %v7722_v47 = vld [vmem:[%s12200_s0 + $0x20] sm:$0xf] }
 0x15c   :  { %v5463_v25 = vsel %vm9298_vm10, %v5454_v0, %v5462_v12  ;;  %v5480_v57 = vor.u32 %v5479_v9, %v5476_v15  ;;  %v5074_v36 = vshll.u32 %v10515_v16, 16  ;;  %v5079_v17 = vshrl.u32 %v7718_v18, 16 }
 0x15d   :  { %v7775_v21 = vcombine.low %v5445_v29, %v5463_v25  ;;  %v5498_v48 = vor.u32 %v5497_v33, %v5494_v49  ;;  %v5067_v11 = vrot.slane %v5065_v58, 4  ;;  %v5070_v39 = vrot.slane %v5068_v50, 5  ;;  %v7770_v50 = vld [vmem:[%s12200_s0 + $0x2c] sm:$0x3] }
 0x15e   :  { %v5481_v26 = vsel %vm9298_vm10, %v5472_v62, %v5480_v57  ;;  %v10853_v1 = vadd.f32 %v10130_v59, %v10637_v61  ;;  %v5081_v63 = vrot.slane %v5079_v17, 4  ;;  %v5082_v16 = vshll.u32 %v7718_v18, 16  ;;  %v10862_v62 = vpop.f32.mrf.mxu1 }
 0x15f   :  { %8453 = vmatprep.mubr.msk.bf16.mxu1 %vm199_vm1, %v7775_v21  ;;  %v5499_v12 = vsel %vm9298_vm10, %v5490_v30, %v5498_v48  ;;  %v5071_v15 = vor.u32 %v5070_v39, %v5067_v11  ;;  %v5076_v56 = vrot.slane %v5074_v36, 5  ;;  %v5088_v29 = vshll.u32 %v10542_v40, 16  ;;  %12253 = vst [vmem:[#allocation46_spill] sm:$0xff] %v10862_v62  ;;  %v10866_v21 = vpop.f32.mrf.mxu0  ;;  %v10882_v36 = vld [vmem:[%s12199_s1 + $0x84] sm:$0xf] }
 0x160   :  { %v7776_v0 = vcombine.low %v5481_v26, %v5499_v12  ;;  %v5084_v59 = vrot.slane %v5082_v16, 5  ;;  %v5093_v61 = vshrl.u32 %v7720_v20, 16  ;;  %v5096_v9 = vshll.u32 %v7720_v20, 16  ;;  %v10884_v17 = vpop.f32.mrf.mxu1 }
 0x161   :  { %v5072_v18 = vrot.slane %v5071_v15, 4  ;;  %v5090_v49 = vrot.slane %v5088_v29, 5  ;;  %v658_v33 = vadd.f32 %v9908_v46, %v10673_v41  ;;  %v5107_v58 = vshrl.u32 %v7722_v47, 16  ;;  %12254 = vst [vmem:[#allocation47_spill] sm:$0xff] %v10884_v17  ;;  %v10892_v12 = vpop.f32.mrf.mxu0 }
 0x162   :  { %8454 = vmatmul.mubr.msk.bf16.vlgmr.msra.gmra.mxu1 %vm199_vm1, %v7776_v0  ;;  %v5085_v48 = vor.u32 %v5084_v59, %v5081_v63  ;;  %v5095_v11 = vrot.slane %v5093_v61, 4  ;;  %v5098_v30 = vrot.slane %v5096_v9, 5  ;;  %v5110_v40 = vshll.u32 %v7722_v47, 16  ;;  %v10901_v61 = vpop.f32.mrf.mxu1 }
 0x163   :  { %v5077_v25 = vsel %vm8649_vm4, %v5072_v18, %v5076_v56  ;;  %v10875_v57 = vadd.f32 %v10178_v54, %v658_v33  ;;  %v5109_v46 = vrot.slane %v5107_v58, 4  ;;  %v5829_v41 = vsel %vm212_vm0, %v10725_v35, 0  ;;  %12255 = vst [vmem:[#allocation48_spill] sm:$0xff] %v10901_v61 }
 0x164   :  { %v5086_v39 = vrot.slane %v5085_v48, 4  ;;  %v5099_v20 = vor.u32 %v5098_v30, %v5095_v11  ;;  %v5112_v26 = vrot.slane %v5110_v40, 5  ;;  %v5987_v63 = vsel %vm212_vm0, %v10712_v52, 0  ;;  %v7771_v52 = vld [vmem:[%s12200_s0 + $0x34] sm:$0x3] }
 0x165   :  { %v656_v54 = vadd.f32 %v9924_v24, %v10707_v22  ;;  %8472 = vmatpush3.bf16.msra.mxu1 %v5987_v63  ;;  %v5501_v16 = vshrl.u32 %v10657_v14, 16  ;;  %v5504_v35 = vshll.u32 %v10657_v14, 16  ;;  %v5510_v47 = vshrl.u32 %v7770_v50, 16  ;;  %v7772_v40 = vld [vmem:[%s12200_s0 + $0x3c] sm:$0x3] }
 0x166   :  { %v5091_v15 = vsel %vm8649_vm4, %v5086_v39, %v5090_v49  ;;  %v5100_v56 = vrot.slane %v5099_v20, 4  ;;  %v5113_v29 = vor.u32 %v5112_v26, %v5109_v46  ;;  %v5513_v0 = vshll.u32 %v7770_v50, 16  ;;  %8554 = vmatprep.subr.msk.bf16.mxu1 %vm212_vm0, %v10882_v36  ;;  %v10912_v50 = vpop.f32.mrf.mxu0 }
 0x167   :  { %v7758_v24 = vcombine.low %v5077_v25, %v5091_v15  ;;  %v5503_v22 = vrot.slane %v5501_v16, 5  ;;  %v5506_v59 = vrot.slane %v5504_v35, 6  ;;  %v5512_v14 = vrot.slane %v5510_v47, 5  ;;  %v10914_v25 = vpop.f32.mrf.mxu1  ;;  %v7773_v35 = vld [vmem:[%s12200_s0 + $0x44] sm:$0x3] }
 0x168   :  { %v5105_v9 = vsel %vm8649_vm4, %v5100_v56, %v10604_v3  ;;  %v5114_v18 = vrot.slane %v5113_v29, 4  ;;  %v5515_v49 = vrot.slane %v5513_v0, 6  ;;  %v5519_v33 = vshrl.u32 %v10667_v8, 16  ;;  %12256 = vst [vmem:[#allocation49_spill] sm:$0xff] %v10914_v25 }
 0x169   :  { %8443 = vmatprep.mubr.msk.bf16.mxu0 %vm199_vm1, %v7758_v24  ;;  %v5507_v58 = vor.u32 %v5506_v59, %v5503_v22  ;;  %v5522_v48 = vshll.u32 %v10667_v8, 16  ;;  %v5528_v11 = vshrl.u32 %v7771_v52, 16  ;;  %v5531_v30 = vshll.u32 %v7771_v52, 16 }
 0x16a   :  { %v5119_v3 = vsel %vm8649_vm4, %v5114_v18, %v10620_v13  ;;  %v10920_v46 = vadd.f32 %v10223_v2, %v656_v54  ;;  %v5516_v39 = vor.u32 %v5515_v49, %v5512_v14  ;;  %v5521_v20 = vrot.slane %v5519_v33, 5  ;;  %v10932_v2 = vld [vmem:[%s12199_s1 + $0x80] sm:$0xf]  ;;  %v7726_v33 = vld [vmem:[%s12200_s0 + $0x30] sm:$0xf] }
 0x16b   :  { %v7759_v8 = vcombine.low %v5105_v9, %v5119_v3  ;;  %v5508_v26 = vrot.slane %v5507_v58, 4  ;;  %v5524_v63 = vrot.slane %v5522_v48, 6  ;;  %v5530_v16 = vrot.slane %v5528_v11, 5 }
 0x16c   :  { %v5533_v47 = vrot.slane %v5531_v30, 6  ;;  %v659_v15 = vadd.f32 %v9935_v53, %v10732_v5  ;;  %v5543_v13 = vor.u32 %v10767_v44, %v10755_v28  ;;  %v5546_v56 = vshrl.u32 %v7772_v40, 16  ;;  %v7724_v53 = vld [vmem:[%s12200_s0 + $0x28] sm:$0xf]  ;;  %v10942_v5 = vpop.f32.mrf.mxu0  ;;  %v10944_v28 = vpop.f32.mrf.mxu1 }
 0x16d   :  { %8444 = vmatmul.mubr.msk.bf16.vlgmr.msra.gmra.mxu0 %vm199_vm1, %v7759_v8  ;;  %v5517_v54 = vsel %vm9298_vm10, %v5508_v26, %v5516_v39  ;;  %v5525_v29 = vor.u32 %v5524_v63, %v5521_v20  ;;  %v5549_v52 = vshll.u32 %v7772_v40, 16  ;;  %v5561_v0 = vor.u32 %v10774_v37, %v10769_v19  ;;  %12257 = vst [vmem:[#allocation50_spill] sm:$0xff] %v10944_v28  ;;  %v12259_v8 = vld [vmem:[#allocation11_spill] sm:$0xff]  ;;  %v7728_v63 = vld [vmem:[%s12200_s0 + $0x38] sm:$0xf] }
 0x16e   :  { %8462 = vmatpush3.bf16.msra.mxu0 %v5829_v41  ;;  %v5534_v44 = vor.u32 %v5533_v47, %v5530_v16  ;;  %v5544_v24 = vrot.slane %v5543_v13, 4  ;;  %v5548_v22 = vrot.slane %v5546_v56, 5  ;;  %v5564_v59 = vshrl.u32 %v7773_v35, 16  ;;  %v10956_v3 = vpop.f32.mrf.mxu0  ;;  %v10958_v39 = vpop.f32.mrf.mxu1  ;;  %v12260_v47 = vld [vmem:[#allocation13_spill] sm:$0xff] }
 0x16f   :  { %v5526_v14 = vrot.slane %v5525_v29, 4  ;;  %v5551_v9 = vrot.slane %v5549_v52, 6  ;;  %v5562_v18 = vrot.slane %v5561_v0, 4  ;;  %v5567_v49 = vshll.u32 %v7773_v35, 16  ;;  %8553 = vmatprep.subr.msk.bf16.mxu0 %vm212_vm0, %v10932_v2  ;;  %12258 = vst [vmem:[#allocation51_spill] sm:$0xff] %v10958_v39  ;;  %v12261_v29 = vld [vmem:[#allocation36_spill] sm:$0xff] }
 0x170   :  { %v5566_v19 = vrot.slane %v5564_v59, 5  ;;  %v657_v37 = vadd.f32 %v9965_v23, %v10759_v60  ;;  %v5121_v41 = vshrl.u32 %v7724_v53, 16  ;;  %v5124_v58 = vshll.u32 %v7724_v53, 16  ;;  %v7730_v0 = vld [vmem:[%s12200_s0 + $0x40] sm:$0xf]  ;;  %v10978_v59 = vpop.f32.mrf.mxu0 }
 0x171   :  { %v5535_v48 = vsel %vm9298_vm10, %v5526_v14, %v5534_v44  ;;  %v5552_v11 = vor.u32 %v5551_v9, %v5548_v22  ;;  %v5569_v30 = vrot.slane %v5567_v49, 6  ;;  %v5130_v40 = vshll.u32 %v10642_v42, 16  ;;  %v10980_v14 = vpop.f32.mrf.mxu1 }
 0x172   :  { %v7777_v20 = vcombine.low %v5517_v54, %v5535_v48  ;;  %v10961_v23 = vadd.f32 %v12259_v8, %v659_v15  ;;  %v5123_v60 = vrot.slane %v5121_v41, 4  ;;  %v5126_v26 = vrot.slane %v5124_v58, 5  ;;  %12262 = vst [vmem:[#allocation11_spill] sm:$0xff] %v10980_v14  ;;  %v10987_v41 = vld [vmem:[%s12200_s0 + $0x14] sm:$0x1] }
 0x173   :  { %v5553_v16 = vsel %vm9298_vm10, %v5544_v24, %v5552_v11  ;;  %v5570_v35 = vor.u32 %v5569_v30, %v5566_v19  ;;  %v10969_v42 = vadd.f32 %v12260_v47, %v657_v37  ;;  %v5135_v13 = vshrl.u32 %v7726_v33, 16  ;;  %v12263_v37 = vld [vmem:[#allocation3_spill] sm:$0xff] }
 0x174   :  { %8457 = vmatprep.mubr.msk.bf16.mxu1 %vm199_vm1, %v7777_v20  ;;  %v5127_v56 = vor.u32 %v5126_v26, %v5123_v60  ;;  %v5132_v54 = vrot.slane %v5130_v40, 5  ;;  %v5138_v15 = vshll.u32 %v7726_v33, 16  ;;  %v5144_v52 = vshll.u32 %v12261_v29, 16  ;;  %v10997_v40 = vld [vmem:[%s12200_s0 + $0x18] sm:$0xe]  ;;  %v11001_v20 = vpop.f32.mrf.mxu1  ;;  %v12265_v26 = vld [vmem:[#allocation15_spill] sm:$0xff] }
 0x175   :  { %v5571_v53 = vsel %vm9298_vm10, %v5562_v18, %v5570_v35  ;;  %v5137_v44 = vrot.slane %v5135_v13, 4  ;;  %v5149_v24 = vshrl.u32 %v7728_v63, 16  ;;  %v5152_v22 = vshll.u32 %v7728_v63, 16  ;;  %v10992_v18 = vld [vmem:[%s12200_s0 + $0x10] sm:$0xe]  ;;  %12264 = vst [vmem:[#allocation13_spill] sm:$0xff] %v11001_v20 }
 0x176   :  { %v7778_v9 = vcombine.low %v5553_v16, %v5571_v53  ;;  %v5128_v49 = vrot.slane %v5127_v56, 4  ;;  %v5140_v19 = vrot.slane %v5138_v15, 5  ;;  %v662_v33 = vadd.f32 %v12263_v37, %v10783_v7  ;;  %v10999_v7 = vpop.f32.mrf.mxu0  ;;  %v11012_v35 = vld [vmem:[%s12200_s0 + $0x1c] sm:$0x1]  ;;  %v11017_v47 = vld [vmem:[%s12200_s0 + $0x24] sm:$0x1] }
 0x177   :  { %v5146_v58 = vrot.slane %v5144_v52, 5  ;;  %v5151_v48 = vrot.slane %v5149_v24, 4  ;;  %v5154_v11 = vrot.slane %v5152_v22, 5  ;;  %v5163_v30 = vshrl.u32 %v7730_v0, 16  ;;  %v11024_v29 = vld [vmem:[%s12200_s0 + $0x20] sm:$0xe] }
 0x178   :  { %8458 = vmatmul.mubr.msk.bf16.gmra.mxu1 %vm199_vm1, %v7778_v9  ;;  %v5133_v8 = vsel %vm8649_vm4, %v5128_v49, %v5132_v54  ;;  %v5141_v60 = vor.u32 %v5140_v19, %v5137_v44  ;;  %v11007_v63 = vadd.f32 %v12265_v26, %v662_v33  ;;  %v5166_v16 = vshll.u32 %v7730_v0, 16  ;;  %v11026_v52 = vpop.f32.mrf.mxu0  ;;  %v11028_v0 = vpop.f32.mrf.mxu1  ;;  %v12267_v24 = vld [vmem:[#allocation4_spill] sm:$0xff]  ;;  %v12268_v33 = vld [vmem:[#allocation5_spill] sm:$0xff] }
 0x179   :  { %v5155_v13 = vor.u32 %v5154_v11, %v5151_v48  ;;  %v5165_v56 = vrot.slane %v5163_v30, 4  ;;  %v7816_v15 = vrot.slane %v10992_v18, 9  ;;  %v5930_v54 = vrot.slane %v10987_v41, 5  ;;  %12266 = vst [vmem:[#allocation36_spill] sm:$0xff] %v11028_v0  ;;  %v11041_v11 = vld [vmem:[%s12200_s0 + $0x28] sm:$0xe] }
 0x17a   :  { %v5142_v53 = vrot.slane %v5141_v60, 4  ;;  %v5168_v44 = vrot.slane %v5166_v16, 5  ;;  %v660_v22 = vadd.f32 %v12267_v24, %v10812_v6  ;;  %v7817_v9 = vrot.slane %v10997_v40, 9  ;;  %v11043_v30 = vpop.f32.mrf.mxu0  ;;  %v11045_v60 = vpop.f32.mrf.mxu1  ;;  %v11052_v16 = vld [vmem:[%s12200_s0 + $0x2c] sm:$0x1] }
 0x17b   :  { %v5156_v49 = vrot.slane %v5155_v13, 4  ;;  %v5931_v19 = vsel %vm8734_vm7, %v7816_v15, %v5930_v54  ;;  %v5934_v37 = vrot.slane %v11012_v35, 5  ;;  %v663_v48 = vadd.f32 %v12268_v33, %v10823_v4  ;;  %12269 = vst [vmem:[#allocation3_spill] sm:$0xff] %v11045_v60  ;;  %v7783_v15 = vld [vmem:[%s12200_s0 + $0x10] sm:$0xf] }
 0x17c   :  { %v5147_v6 = vsel %vm8649_vm4, %v5142_v53, %v5146_v58  ;;  %v5169_v26 = vor.u32 %v5168_v44, %v5165_v56  ;;  %v7818_v4 = vrot.slane %v11024_v29, 9  ;;  %v5938_v13 = vrot.slane %v11017_v47, 5  ;;  %v12270_v58 = vld [vmem:[#allocation17_spill] sm:$0xff]  ;;  %v7785_v44 = vld [vmem:[%s12200_s0 + $0x18] sm:$0xf]  ;;  %v11070_v33 = vpop.f32.mrf.mxu0  ;;  %v11072_v60 = vpop.f32.mrf.mxu1 }
 0x17d   :  { %v7760_v54 = vcombine.low %v5133_v8, %v5147_v6  ;;  %v5161_v24 = vsel %vm8649_vm4, %v5156_v49, %v10734_v51  ;;  %v11063_v56 = vadd.f32 %v12270_v58, %v660_v22  ;;  %v5935_v53 = vsel %vm8734_vm7, %v7817_v9, %v5934_v37  ;;  %12271 = vst [vmem:[#allocation15_spill] sm:$0xff] %v11070_v33  ;;  %v12273_v6 = vld [vmem:[#allocation19_spill] sm:$0xff] }
 0x17e   :  { %12272 = vst [vmem:[#allocation4_spill] sm:$0xff] %v11072_v60  ;;  %v5170_v0 = vrot.slane %v5169_v26, 4  ;;  %v7825_v8 = vcombine.low %v5931_v19, %v5935_v53  ;;  %v11075_v20 = vadd.f32 %v12273_v6, %v663_v48  ;;  %v7819_v51 = vrot.slane %v11041_v11, 9  ;;  %v11082_v58 = vpop.f32.mrf.mxu0  ;;  %v11084_v14 = vpop.f32.mrf.mxu1  ;;  %v12276_v53 = vld [vmem:[#allocation6_spill] sm:$0xff] }
 0x17f   :  { %8447 = vmatprep.mubr.msk.bf16.mxu0 %vm199_vm1, %v7760_v54  ;;  %v5939_v22 = vsel %vm8734_vm7, %v7818_v4, %v5938_v13  ;;  %v5942_v9 = vrot.slane %v11052_v16, 5  ;;  %v5691_v49 = vshrl.u32 %v7783_v15, 16  ;;  %v5694_v37 = vshll.u32 %v7783_v15, 16  ;;  %12274 = vst [vmem:[#allocation5_spill] sm:$0xff] %v11082_v58  ;;  %12275 = vst [vmem:[#allocation17_spill] sm:$0xff] %v11084_v14  ;;  %v12297_v58 = vld [vmem:[#allocation27_spill] sm:$0xff] }
 0x180   :  { %v5175_v19 = vsel %vm8649_vm4, %v5170_v0, %v10746_v38  ;;  %8473 = vmatprep.mubr.msk.bf16.mxu1 %vm199_vm1, %v7825_v8  ;;  %v5700_v48 = vshll.u32 %v10987_v41, 16  ;;  %v5705_v26 = vshrl.u32 %v7785_v44, 16  ;;  %v5708_v54 = vshll.u32 %v7785_v44, 16  ;;  %v7787_v4 = vld [vmem:[%s12200_s0 + $0x20] sm:$0xf]  ;;  %v11101_v0 = vpop.f32.mrf.mxu0  ;;  %v11103_v41 = vpop.f32.mrf.mxu1 }
 0x181   :  { %v7761_v13 = vcombine.low %v5161_v24, %v5175_v19  ;;  %v5943_v15 = vsel %vm8734_vm7, %v7819_v51, %v5942_v9  ;;  %v661_v6 = vadd.f32 %v12276_v53, %v10853_v1  ;;  %v5693_v14 = vrot.slane %v5691_v49, 4  ;;  %v7789_v38 = vld [vmem:[%s12200_s0 + $0x28] sm:$0xf]  ;;  %12277 = vst [vmem:[#allocation19_spill] sm:$0xff] %v11101_v0  ;;  %12278 = vst [vmem:[#allocation6_spill] sm:$0xff] %v11103_v41  ;;  %v12279_v1 = vld [vmem:[#allocation7_spill] sm:$0xff] }
 0x182   :  { %v7826_v44 = vcombine.low %v5939_v22, %v5943_v15  ;;  %v5696_v8 = vrot.slane %v5694_v37, 5  ;;  %v5702_v60 = vrot.slane %v5700_v48, 5  ;;  %v5707_v39 = vrot.slane %v5705_v26, 4  ;;  %v11109_v19 = vpop.f32.mrf.mxu0  ;;  %v11111_v53 = vpop.f32.mrf.mxu1  ;;  %v12282_v26 = vld [vmem:[#allocation21_spill] sm:$0xff] }
 0x183   :  { %8448 = vmatmul.mubr.msk.bf16.gmra.mxu0 %vm199_vm1, %v7761_v13  ;;  %v5710_v24 = vrot.slane %v5708_v54, 5  ;;  %v5714_v51 = vshll.u32 %v11012_v35, 16  ;;  %v1046_v9 = vadd.f32 %v12279_v1, %v10875_v57  ;;  %v5719_v49 = vshrl.u32 %v7787_v4, 16  ;;  %12280 = vst [vmem:[#allocation7_spill] sm:$0xff] %v11109_v19  ;;  %12281 = vst [vmem:[#allocation52_spill] sm:$0xff] %v11111_v53 }
 0x184   :  { %8474 = vmatmul.mubr.msk.bf16.vlgmr.msra.gmra.mxu1 %vm199_vm1, %v7826_v44  ;;  %v5697_v41 = vor.u32 %v5696_v8, %v5693_v14  ;;  %v5722_v22 = vshll.u32 %v7787_v4, 16  ;;  %v5728_v37 = vshll.u32 %v11017_v47, 16  ;;  %v5733_v48 = vshrl.u32 %v7789_v38, 16  ;;  %v11121_v57 = vld [vmem:[%s12200_s0 + $0x34] sm:$0x1]  ;;  %v11123_v1 = vpop.f32.mrf.mxu0  ;;  %v11125_v53 = vpop.f32.mrf.mxu1  ;;  %v12285_v4 = vld [vmem:[#allocation23_spill] sm:$0xff] }
 0x185   :  { %v11116_v13 = vadd.f32 %v12282_v26, %v661_v6  ;;  %v5711_v54 = vor.u32 %v5710_v24, %v5707_v39  ;;  %v5716_v35 = vrot.slane %v5714_v51, 5  ;;  %v5721_v15 = vrot.slane %v5719_v49, 4  ;;  %12283 = vst [vmem:[#allocation21_spill] sm:$0xff] %v11123_v1  ;;  %12284 = vst [vmem:[#allocation53_spill] sm:$0xff] %v11125_v53  ;;  %v11133_v39 = vld [vmem:[%s12200_s0 + $0x3c] sm:$0x1] }
 0x186   :  { %v5698_v14 = vrot.slane %v5697_v41, 4  ;;  %v11128_v44 = vadd.f32 %v12285_v4, %v1046_v9  ;;  %v5724_v47 = vrot.slane %v5722_v22, 5  ;;  %v5730_v8 = vrot.slane %v5728_v37, 5  ;;  %v11138_v6 = vld [vmem:[%s12200_s0 + $0x30] sm:$0xe]  ;;  %v11146_v22 = vpop.f32.mrf.mxu0  ;;  %v11148_v37 = vpop.f32.mrf.mxu1  ;;  %v12288_v53 = vld [vmem:[#allocation8_spill] sm:$0xff] }
 0x187   :  { %v5712_v24 = vrot.slane %v5711_v54, 4  ;;  %v5735_v51 = vrot.slane %v5733_v48, 4  ;;  %v5736_v49 = vshll.u32 %v7789_v38, 16  ;;  %v5742_v41 = vshll.u32 %v11052_v16, 16  ;;  %v11144_v9 = vld [vmem:[%s12199_s1 + $0x8c] sm:$0xf] }
 0x188   :  { %12286 = vst [vmem:[#allocation23_spill] sm:$0xff] %v11146_v22  ;;  %12287 = vst [vmem:[#allocation54_spill] sm:$0xff] %v11148_v37  ;;  %v5703_v26 = vsel %vm8649_vm4, %v5698_v14, %v5702_v60  ;;  %v5725_v4 = vor.u32 %v5724_v47, %v5721_v15  ;;  %v1044_v54 = vadd.f32 %v12288_v53, %v10920_v46  ;;  %v6471_v38 = vsel %vm212_vm0, %v10882_v36, 0  ;;  %v11159_v16 = vld [vmem:[%s12200_s0 + $0x38] sm:$0xe]  ;;  %v11176_v14 = vpop.f32.mrf.mxu0  ;;  %v11178_v47 = vpop.f32.mrf.mxu1  ;;  %v12291_v1 = vld [vmem:[#allocation25_spill] sm:$0xff] }
 0x189   :  { %v11164_v48 = vld [vmem:[%s12200_s0 + $0x44] sm:$0x1]  ;;  %v5717_v60 = vsel %vm8649_vm4, %v5712_v24, %v5716_v35  ;;  %v5738_v15 = vrot.slane %v5736_v49, 5  ;;  %v6241_v46 = vsel %vm212_vm0, %v10932_v2, 0  ;;  %8492 = vmatpush3.bf16.msra.mxu1 %v6471_v38  ;;  %v7820_v36 = vrot.slane %v11138_v6, 9  ;;  %12289 = vst [vmem:[#allocation8_spill] sm:$0xff] %v11176_v14 }
 0x18a   :  { %v11174_v53 = vld [vmem:[%s12200_s0 + $0x40] sm:$0xe]  ;;  %12290 = vst [vmem:[#allocation55_spill] sm:$0xff] %v11178_v47  ;;  %v7800_v37 = vcombine.low %v5703_v26, %v5717_v60  ;;  %v5726_v22 = vrot.slane %v5725_v4, 4  ;;  %v11181_v35 = vadd.f32 %v12291_v1, %v1044_v54  ;;  %v5946_v24 = vrot.slane %v11121_v57, 5  ;;  %8556 = vmatprep.subr.msk.bf16.mxu1 %vm212_vm0, %v11144_v9  ;;  %v11198_v4 = vpop.f32.mrf.mxu0  ;;  %v11200_v54 = vpop.f32.mrf.mxu1 }
 0x18b   :  { %v11187_v2 = vld [vmem:[%s12200_s0 + $0x48] sm:$0xe]  ;;  %v5739_v49 = vor.u32 %v5738_v15, %v5735_v51  ;;  %v5744_v38 = vrot.slane %v5742_v41, 5  ;;  %v7821_v14 = vrot.slane %v11159_v16, 9  ;;  %v5950_v26 = vrot.slane %v11133_v39, 5  ;;  %12292 = vst [vmem:[#allocation25_spill] sm:$0xff] %v11198_v4 }
 0x18c   :  { %v11196_v1 = vld [vmem:[%s12200_s0 + $0x4c] sm:$0x1]  ;;  %12293 = vst [vmem:[#allocation56_spill] sm:$0xff] %v11200_v54  ;;  %8463 = vmatprep.mubr.msk.bf16.mxu0 %vm199_vm1, %v7800_v37  ;;  %v5947_v60 = vsel %vm8734_vm7, %v7820_v36, %v5946_v24  ;;  %v12294_v51 = vld [vmem:[#allocation9_spill] sm:$0xff]  ;;  %v7822_v15 = vrot.slane %v11174_v53, 9  ;;  %v5954_v47 = vrot.slane %v11164_v48, 5  ;;  %v5731_v4 = vsel %vm8649_vm4, %v5726_v22, %v5730_v8  ;;  %v11220_v24 = vpop.f32.mrf.mxu0 }
 0x18d   :  { %v1047_v41 = vadd.f32 %v12294_v51, %v10961_v23  ;;  %v7791_v19 = vld [vmem:[%s12200_s0 + $0x30] sm:$0xf]  ;;  %v5740_v54 = vrot.slane %v5739_v49, 4  ;;  %v5951_v37 = vsel %vm8734_vm7, %v7821_v14, %v5950_v26  ;;  %v7823_v36 = vrot.slane %v11187_v2, 9  ;;  %v7793_v23 = vld [vmem:[%s12200_s0 + $0x38] sm:$0xf]  ;;  %v11222_v51 = vpop.f32.mrf.mxu1 }
 0x18e   :  { %12295 = vst [vmem:[#allocation9_spill] sm:$0xff] %v11220_v24  ;;  %12296 = vst [vmem:[#allocation57_spill] sm:$0xff] %v11222_v51  ;;  %v7827_v0 = vcombine.low %v5947_v60, %v5951_v37  ;;  %v5955_v8 = vsel %vm8734_vm7, %v7822_v15, %v5954_v47  ;;  %v5958_v22 = vrot.slane %v11196_v1, 5  ;;  %v5747_v49 = vshrl.u32 %v7791_v19, 16  ;;  %v11233_v61 = vpop.f32.mrf.mxu0  ;;  %v12300_v47 = vld [vmem:[#allocation10_spill] sm:$0xff] }
 0x18f   :  { %v11225_v28 = vadd.f32 %v12297_v58, %v1047_v41  ;;  %v5745_v14 = vsel %vm8649_vm4, %v5740_v54, %v5744_v38  ;;  %v5750_v26 = vshll.u32 %v7791_v19, 16  ;;  %v5756_v25 = vshll.u32 %v11121_v57, 16  ;;  %12298 = vst [vmem:[#allocation27_spill] sm:$0xff] %v11233_v61  ;;  %v11235_v24 = vpop.f32.mrf.mxu1  ;;  %v7795_v19 = vld [vmem:[%s12200_s0 + $0x40] sm:$0xf] }
 0x190   :  { %12299 = vst [vmem:[#allocation58_spill] sm:$0xff] %v11235_v24  ;;  %v7801_v60 = vcombine.low %v5731_v4, %v5745_v14  ;;  %8477 = vmatprep.mubr.msk.bf16.mxu1 %vm199_vm1, %v7827_v0  ;;  %v5959_v58 = vsel %vm8734_vm7, %v7823_v36, %v5958_v22  ;;  %v1045_v41 = vadd.f32 %v12300_v47, %v10969_v42  ;;  %v5761_v15 = vshrl.u32 %v7793_v23, 16  ;;  %v7797_v57 = vld [vmem:[%s12200_s0 + $0x48] sm:$0xf]  ;;  %v11253_v36 = vpop.f32.mrf.mxu0 }
 0x191   :  { %v7828_v38 = vcombine.low %v5955_v8, %v5959_v58  ;;  %v5749_v54 = vrot.slane %v5747_v49, 4  ;;  %v5752_v4 = vrot.slane %v5750_v26, 5  ;;  %v5758_v37 = vrot.slane %v5756_v25, 5  ;;  %v11251_v0 = vld [vmem:[%s12199_s1 + $0x88] sm:$0xf]  ;;  %12301 = vst [vmem:[#allocation10_spill] sm:$0xff] %v11253_v36  ;;  %v11255_v42 = vpop.f32.mrf.mxu1 }
 0x192   :  { %12302 = vst [vmem:[#allocation59_spill] sm:$0xff] %v11255_v42  ;;  %8464 = vmatmul.mubr.msk.bf16.vlgmr.msra.gmra.mxu0 %vm199_vm1, %v7801_v60  ;;  %v5763_v22 = vrot.slane %v5761_v15, 4  ;;  %v5764_v14 = vshll.u32 %v7793_v23, 16  ;;  %v5770_v47 = vshll.u32 %v11133_v39, 16  ;;  %v12303_v8 = vld [vmem:[#allocation12_spill] sm:$0xff]  ;;  %v5775_v26 = vshrl.u32 %v7795_v19, 16  ;;  %v11263_v51 = vpop.f32.mrf.mxu0 }
 0x193   :  { %v1050_v49 = vadd.f32 %v12303_v8, %v11007_v63  ;;  %8482 = vmatpush3.bf16.msra.mxu0 %v6241_v46  ;;  %8478 = vmatmul.mubr.msk.bf16.gmra.mxu1 %vm199_vm1, %v7828_v38  ;;  %v5753_v25 = vor.u32 %v5752_v4, %v5749_v54  ;;  %v5778_v58 = vshll.u32 %v7795_v19, 16  ;;  %v5784_v24 = vshll.u32 %v11164_v48, 16  ;;  %12304 = vst [vmem:[#allocation12_spill] sm:$0xff] %v11263_v51  ;;  %v11265_v42 = vpop.f32.mrf.mxu1  ;;  %v12306_v60 = vld [vmem:[#allocation29_spill] sm:$0xff]  ;;  %v7850_v63 = vld [vmem:[%s12200_s0 + $0x18] sm:$0xf] }
 0x194   :  { %12305 = vst [vmem:[#allocation60_spill] sm:$0xff] %v11265_v42  ;;  %v11268_v15 = vadd.f32 %v12306_v60, %v1045_v41  ;;  %v5766_v23 = vrot.slane %v5764_v14, 5  ;;  %v5772_v39 = vrot.slane %v5770_v47, 5  ;;  %v5789_v36 = vshrl.u32 %v7797_v57, 16  ;;  %8555 = vmatprep.subr.msk.bf16.mxu0 %vm212_vm0, %v11251_v0  ;;  %v12307_v19 = vld [vmem:[#allocation31_spill] sm:$0xff]  ;;  %v11278_v4 = vpop.f32.mrf.mxu0 }
 0x195   :  { %v5754_v46 = vrot.slane %v5753_v25, 4  ;;  %v11276_v48 = vadd.f32 %v12307_v19, %v1050_v49  ;;  %v5777_v38 = vrot.slane %v5775_v26, 4  ;;  %v5780_v54 = vrot.slane %v5778_v58, 5  ;;  %12308 = vst [vmem:[#allocation29_spill] sm:$0xff] %v11278_v4  ;;  %v11284_v60 = vld [vmem:[%s12200_s0 + $0x1c] sm:$0x1]  ;;  %v11286_v42 = vpop.f32.mrf.mxu1 }
 0x196   :  { %v5767_v41 = vor.u32 %v5766_v23, %v5763_v22  ;;  %v5791_v8 = vrot.slane %v5789_v36, 4  ;;  %v5792_v14 = vshll.u32 %v7797_v57, 16  ;;  %v5798_v47 = vshll.u32 %v11196_v1, 16  ;;  %12309 = vst [vmem:[#allocation31_spill] sm:$0xff] %v11286_v42  ;;  %v7852_v22 = vld [vmem:[%s12200_s0 + $0x20] sm:$0xf]  ;;  %v11293_v57 = vpop.f32.mrf.mxu0 }
 0x197   :  { %v5759_v49 = vsel %vm8649_vm4, %v5754_v46, %v5758_v37  ;;  %v5781_v25 = vor.u32 %v5780_v54, %v5777_v38  ;;  %v5786_v26 = vrot.slane %v5784_v24, 5  ;;  %v6333_v36 = vshrl.u32 %v7850_v63, 16  ;;  %12310 = vst [vmem:[#allocation61_spill] sm:$0xff] %v11293_v57  ;;  %v12311_v23 = vld [vmem:[#allocation14_spill] sm:$0xff]  ;;  %v11300_v37 = vld [vmem:[%s12200_s0 + $0x24] sm:$0x1] }
 0x198   :  { %v5768_v1 = vrot.slane %v5767_v41, 4  ;;  %v5794_v58 = vrot.slane %v5792_v14, 5  ;;  %v1048_v19 = vadd.f32 %v12311_v23, %v11063_v56  ;;  %v6336_v4 = vshll.u32 %v7850_v63, 16  ;;  %v11303_v38 = vpop.f32.mrf.mxu0  ;;  %v7854_v56 = vld [vmem:[%s12200_s0 + $0x28] sm:$0xf]  ;;  %v11310_v63 = vpop.f32.mrf.mxu1 }
 0x199   :  { %v5782_v51 = vrot.slane %v5781_v25, 4  ;;  %v5800_v42 = vrot.slane %v5798_v47, 5  ;;  %v6335_v24 = vrot.slane %v6333_v36, 4  ;;  %v6342_v46 = vshll.u32 %v11284_v60, 16  ;;  %12312 = vst [vmem:[#allocation14_spill] sm:$0xff] %v11303_v38  ;;  %12313 = vst [vmem:[#allocation62_spill] sm:$0xff] %v11310_v63 }
 0x19a   :  { %v5773_v54 = vsel %vm8649_vm4, %v5768_v1, %v5772_v39  ;;  %v5795_v41 = vor.u32 %v5794_v58, %v5791_v8  ;;  %v6338_v14 = vrot.slane %v6336_v4, 5  ;;  %v6347_v57 = vshrl.u32 %v7852_v22, 16  ;;  %v11317_v38 = vld [vmem:[%s12200_s0 + $0x2c] sm:$0x1]  ;;  %v11319_v39 = vpop.f32.mrf.mxu0 }
 0x19b   :  { %v7802_v47 = vcombine.low %v5759_v49, %v5773_v54  ;;  %v5787_v25 = vsel %vm8649_vm4, %v5782_v51, %v5786_v26  ;;  %v6344_v36 = vrot.slane %v6342_v46, 5  ;;  %v6350_v23 = vshll.u32 %v7852_v22, 16  ;;  %12314 = vst [vmem:[#allocation63_spill] sm:$0xff] %v11319_v39  ;;  %v12315_v49 = vld [vmem:[#allocation33_spill] sm:$0xff] }
 0x19c   :  { %v5796_v4 = vrot.slane %v5795_v41, 4  ;;  %v6339_v8 = vor.u32 %v6338_v14, %v6335_v24  ;;  %v6349_v1 = vrot.slane %v6347_v57, 4  ;;  %v6356_v58 = vshll.u32 %v11300_v37, 16  ;;  %v7856_v26 = vld [vmem:[%s12200_s0 + $0x30] sm:$0xf]  ;;  %v12316_v57 = vld [vmem:[#allocation16_spill] sm:$0xff]  ;;  %v11341_v61 = vpop.f32.mrf.mxu0 }
 0x19d   :  { %8467 = vmatprep.mubr.msk.bf16.mxu0 %vm199_vm1, %v7802_v47  ;;  %v11324_v54 = vadd.f32 %v12315_v49, %v1048_v19  ;;  %v6352_v51 = vrot.slane %v6350_v23, 5  ;;  %v6361_v22 = vshrl.u32 %v7854_v56, 16  ;;  %v6364_v46 = vshll.u32 %v7854_v56, 16  ;;  %v11336_v14 = vld [vmem:[%s12200_s0 + $0x34] sm:$0x1]  ;;  %v11339_v47 = vpop.f32.mrf.mxu1 }
 0x19e   :  { %v5801_v63 = vsel %vm8649_vm4, %v5796_v4, %v5800_v42  ;;  %v6340_v41 = vrot.slane %v6339_v8, 4  ;;  %v1051_v24 = vadd.f32 %v12316_v57, %v11075_v20  ;;  %v6370_v19 = vshll.u32 %v11317_v38, 16  ;;  %12317 = vst [vmem:[#allocation33_spill] sm:$0xff] %v11339_v47  ;;  %v12318_v4 = vld [vmem:[#allocation35_spill] sm:$0xff] }
 0x19f   :  { %v7803_v23 = vcombine.low %v5787_v25, %v5801_v63  ;;  %v6353_v49 = vor.u32 %v6352_v51, %v6349_v1  ;;  %v6358_v39 = vrot.slane %v6356_v58, 5  ;;  %v6363_v56 = vrot.slane %v6361_v22, 4  ;;  %v7833_v58 = vld [vmem:[%s12200_s0 + $0x14] sm:$0x3] }
 0x1a0   :  { %v6345_v42 = vsel %vm8649_vm4, %v6340_v41, %v6344_v36  ;;  %v11346_v20 = vadd.f32 %v12318_v4, %v1051_v24  ;;  %v6366_v8 = vrot.slane %v6364_v46, 5  ;;  %v6375_v57 = vshrl.u32 %v7856_v26, 16 }
 0x1a1   :  { %8468 = vmatmul.mubr.msk.bf16.gmra.mxu0 %vm199_vm1, %v7803_v23  ;;  %v6354_v17 = vrot.slane %v6353_v49, 4  ;;  %v6372_v33 = vrot.slane %v6370_v19, 5  ;;  %v6378_v62 = vshll.u32 %v7856_v26, 16  ;;  %v6384_v63 = vshll.u32 %v11336_v14, 16  ;;  %v12320_v26 = vld [vmem:[#allocation18_spill] sm:$0xff] }
 0x1a2   :  { %v6367_v25 = vor.u32 %v6366_v8, %v6363_v56  ;;  %v6377_v1 = vrot.slane %v6375_v57, 4  ;;  %v6071_v36 = vshrl.u32 %v10992_v18, 16  ;;  %v6074_v51 = vshll.u32 %v10992_v18, 16  ;;  %v11355_v22 = vpop.f32.mrf.mxu1  ;;  %v7834_v23 = vld [vmem:[%s12200_s0 + $0x1c] sm:$0x3] }
 0x1a3   :  { %12319 = vst [vmem:[#allocation16_spill] sm:$0xff] %v11355_v22  ;;  %v6359_v46 = vsel %vm8649_vm4, %v6354_v17, %v6358_v39  ;;  %v6380_v41 = vrot.slane %v6378_v62, 5  ;;  %v6386_v24 = vrot.slane %v6384_v63, 5  ;;  %v11361_v19 = vadd.f32 %v12320_v26, %v11116_v13  ;;  %v11366_v49 = vpop.f32.mrf.mxu0 }
 0x1a4   :  { %12321 = vst [vmem:[#allocation35_spill] sm:$0xff] %v11366_v49  ;;  %v7867_v56 = vcombine.low %v6345_v42, %v6359_v46  ;;  %v6368_v4 = vrot.slane %v6367_v25, 4  ;;  %v6073_v18 = vrot.slane %v6071_v36, 5  ;;  %v6076_v8 = vrot.slane %v6074_v51, 6  ;;  %v11373_v26 = vpop.f32.mrf.mxu1 }
 0x1a5   :  { %v6381_v57 = vor.u32 %v6380_v41, %v6377_v1  ;;  %v6080_v47 = vshrl.u32 %v7833_v58, 16  ;;  %v6083_v22 = vshll.u32 %v7833_v58, 16  ;;  %v6089_v62 = vshrl.u32 %v10997_v40, 16  ;;  %12322 = vst [vmem:[#allocation18_spill] sm:$0xff] %v11373_v26  ;;  %v11375_v1 = vpop.f32.mrf.mxu0 }
 0x1a6   :  { %8493 = vmatprep.mubr.msk.bf16.mxu1 %vm199_vm1, %v7867_v56  ;;  %v6373_v17 = vsel %vm8649_vm4, %v6368_v4, %v6372_v33  ;;  %v6077_v13 = vor.u32 %v6076_v8, %v6073_v18  ;;  %v6092_v39 = vshll.u32 %v10997_v40, 16  ;;  %v6098_v63 = vshrl.u32 %v7834_v23, 16  ;;  %v7835_v40 = vld [vmem:[%s12200_s0 + $0x24] sm:$0x3]  ;;  %v12323_v8 = vld [vmem:[#allocation20_spill] sm:$0xff] }
 0x1a7   :  { %v6382_v42 = vrot.slane %v6381_v57, 4  ;;  %v6082_v25 = vrot.slane %v6080_v47, 5  ;;  %v6085_v36 = vrot.slane %v6083_v22, 6  ;;  %v6091_v51 = vrot.slane %v6089_v62, 5  ;;  %v7836_v62 = vld [vmem:[%s12200_s0 + $0x2c] sm:$0x3] }
 0x1a8   :  { %v6078_v58 = vrot.slane %v6077_v13, 4  ;;  %v6094_v46 = vrot.slane %v6092_v39, 6  ;;  %v6100_v41 = vrot.slane %v6098_v63, 5  ;;  %v6101_v49 = vshll.u32 %v7834_v23, 16  ;;  %v11429_v39 = vpop.f32.mrf.mxu0 }
 0x1a9   :  { %v6387_v56 = vsel %vm8649_vm4, %v6382_v42, %v6386_v24  ;;  %v6086_v33 = vor.u32 %v6085_v36, %v6082_v25  ;;  %vm16_vm11 = vcmask 31744   ;;  %v8582_v22 = vmov 0.0   ;;  %v12325_v24 = vld [vmem:[#allocation38_spill] sm:$0xff] }
 0x1aa   :  { %v7868_v4 = vcombine.low %v6373_v17, %v6387_v56  ;;  %v6095_v18 = vor.u32 %v6094_v46, %v6091_v51  ;;  %v6103_v47 = vrot.slane %v6101_v49, 6  ;;  %19 = vst.msk [vmem:[#allocation2 + $0x10] sm:$0xff] %vm16_vm11, %v8582_v22  ;;  %v1398_v57 = vadd.f32 %v12323_v8, %v11128_v44  ;;  %17 = vst.msk [vmem:[#allocation2] sm:$0xff] %vm16_vm11, %v8582_v22  ;;  %v11416_v44 = vpop.f32.mrf.mxu1 }
 0x1ab   :  { %18 = vst.msk [vmem:[#allocation2 + $0x8] sm:$0xff] %vm16_vm11, %v8582_v22  ;;  %20 = vst.msk [vmem:[#allocation2 + $0x18] sm:$0xff] %vm16_vm11, %v8582_v22  ;;  %v11420_v23 = vadd.f32 %v12325_v24, %v11361_v19  ;;  %v6087_v49 = vsel %vm9298_vm10, %v6078_v58, %v6086_v33  ;;  %v6107_v17 = vshrl.u32 %v11024_v29, 16  ;;  %v6110_v13 = vshll.u32 %v11024_v29, 16 }
 0x1ac   :  { %21 = vst.msk [vmem:[#allocation2 + $0x20] sm:$0xff] %vm16_vm11, %v8582_v22  ;;  %22 = vst.msk [vmem:[#allocation2 + $0x28] sm:$0xff] %vm16_vm11, %v8582_v22  ;;  %8494 = vmatmul.mubr.msk.bf16.vlgmr.msra.gmra.mxu1 %vm199_vm1, %v7868_v4  ;;  %v6096_v63 = vrot.slane %v6095_v18, 4  ;;  %v6104_v42 = vor.u32 %v6103_v47, %v6100_v41  ;;  %v1556_v19 = vadd.f32 %v10727_v10, %v1398_v57  ;;  %v6116_v25 = vshrl.u32 %v7835_v40, 16  ;;  %v11437_v8 = vpop.f32.mrf.mxu1  ;;  %v7858_v10 = vld [vmem:[%s12200_s0 + $0x38] sm:$0xf] }
 0x1ad   :  { %23 = vst.msk [vmem:[#allocation2 + $0x30] sm:$0xff] %vm16_vm11, %v8582_v22  ;;  %24 = vst.msk [vmem:[#allocation2 + $0x38] sm:$0xff] %vm16_vm11, %v8582_v22  ;;  %v6109_v36 = vrot.slane %v6107_v17, 5  ;;  %v6112_v51 = vrot.slane %v6110_v13, 6  ;;  %v6119_v58 = vshll.u32 %v7835_v40, 16  ;;  %v6125_v46 = vshrl.u32 %v11041_v11, 16  ;;  %v11442_v40 = vpop.f32.mrf.mxu0 }
 0x1ae   :  { %25 = vst.msk [vmem:[#allocation2 + $0x40] sm:$0xff] %vm16_vm11, %v8582_v22  ;;  %26 = vst.msk [vmem:[#allocation2 + $0x48] sm:$0xff] %vm16_vm11, %v8582_v22  ;;  %v6105_v56 = vsel %vm9298_vm10, %v6096_v63, %v6104_v42  ;;  %v6118_v33 = vrot.slane %v6116_v25, 5  ;;  %v6128_v29 = vshll.u32 %v11041_v11, 16  ;;  %v6137_v17 = vshll.u32 %v7836_v62, 16  ;;  %v12327_v25 = vld [vmem:[#allocation22_spill] sm:$0xff] }
 0x1af   :  { %27 = vst.msk [vmem:[#allocation2 + $0x50] sm:$0xff] %vm16_vm11, %v8582_v22  ;;  %28 = vst.msk [vmem:[#allocation2 + $0x58] sm:$0xff] %vm16_vm11, %v8582_v22  ;;  %v7842_v4 = vcombine.low %v6087_v49, %v6105_v56  ;;  %v6113_v18 = vor.u32 %v6112_v51, %v6109_v36  ;;  %v6121_v41 = vrot.slane %v6119_v58, 6  ;;  %v6127_v47 = vrot.slane %v6125_v46, 5  ;;  %v11449_v11 = vld [vmem:[%s12200_s0 + $0x3c] sm:$0x1] }
 0x1b0   :  { %29 = vst.msk [vmem:[#allocation2 + $0x60] sm:$0xff] %vm16_vm11, %v8582_v22  ;;  %30 = vst.msk [vmem:[#allocation2 + $0x68] sm:$0xff] %vm16_vm11, %v8582_v22  ;;  %v6130_v57 = vrot.slane %v6128_v29, 6  ;;  %v6629_v13 = vsel %vm212_vm0, %v11251_v0, 0  ;;  %v1396_v36 = vadd.f32 %v12327_v25, %v11181_v35  ;;  %v6883_v51 = vsel %vm212_vm0, %v11144_v9, 0  ;;  %v12329_v35 = vld [vmem:[#allocation41_spill] sm:$0xff] }
 0x1b1   :  { %31 = vst.msk [vmem:[#allocation2 + $0x70] sm:$0xff] %vm16_vm11, %v8582_v22  ;;  %32 = vst.msk [vmem:[#allocation2 + $0x78] sm:$0xff] %vm16_vm11, %v8582_v22  ;;  %8483 = vmatprep.mubr.msk.bf16.mxu0 %vm199_vm1, %v7842_v4  ;;  %v1564_v49 = vld [vmem:[#allocation2 + $0x10] sm:$0xff]  ;;  %v6114_v63 = vrot.slane %v6113_v18, 4  ;;  %v6122_v42 = vor.u32 %v6121_v41, %v6118_v33  ;;  %v7860_v0 = vld [vmem:[%s12200_s0 + $0x40] sm:$0xf]  ;;  %8512 = vmatpush3.bf16.msra.mxu1 %v6883_v51 }
 0x1b2   :  { %33 = vst.msk [vmem:[#allocation2 + $0x80] sm:$0xff] %vm16_vm11, %v8582_v22  ;;  %34 = vst.msk [vmem:[#allocation2 + $0x88] sm:$0xff] %vm16_vm11, %v8582_v22  ;;  %v6131_v58 = vor.u32 %v6130_v57, %v6127_v47  ;;  %v6139_v46 = vrot.slane %v6137_v17, 6  ;;  %v1562_v56 = vld [vmem:[#allocation2] sm:$0xff]  ;;  %v6389_v29 = vshrl.u32 %v7858_v10, 16  ;;  %vm7146_vm12 = vcmask 27648  }
 0x1b3   :  { %35 = vst.msk [vmem:[#allocation2 + $0x90] sm:$0xff] %vm16_vm11, %v8582_v22  ;;  %36 = vst.msk [vmem:[#allocation2 + $0x98] sm:$0xff] %vm16_vm11, %v8582_v22  ;;  %v6123_v33 = vsel %vm9298_vm10, %v6114_v63, %v6122_v42  ;;  %v1554_v4 = vadd.f32 %v12329_v35, %v1396_v36  ;;  %v11467_v9 = vld [vmem:[%s12200_s0 + $0x44] sm:$0x1]  ;;  %v6392_v18 = vshll.u32 %v7858_v10, 16  ;;  %v11470_v41 = vpop.f32.mrf.mxu0  ;;  %v6406_v10 = vshll.u32 %v7860_v0, 16 }
 0x1b4   :  { %37 = vst.msk [vmem:[#allocation2 + $0xa0] sm:$0xff] %vm16_vm11, %v8582_v22  ;;  %38 = vst.msk [vmem:[#allocation2 + $0xa8] sm:$0xff] %vm16_vm11, %v8582_v22  ;;  %v6132_v47 = vrot.slane %v6131_v58, 4  ;;  %v6391_v17 = vrot.slane %v6389_v29, 4  ;;  %v7862_v63 = vld [vmem:[%s12200_s0 + $0x48] sm:$0xf] }
 0x1b5   :  { %39 = vst.msk [vmem:[#allocation2 + $0xb0] sm:$0xff] %vm16_vm11, %v8582_v22  ;;  %40 = vst.msk [vmem:[#allocation2 + $0xb8] sm:$0xff] %vm16_vm11, %v8582_v22  ;;  %v1570_v25 = vadd.f32 %v1562_v56, %v1554_v4  ;;  %v6394_v36 = vrot.slane %v6392_v18, 5  ;;  %v11481_v35 = vld [vmem:[%s12200_s0 + $0x4c] sm:$0x1] }
 0x1b6   :  { %41 = vst.msk [vmem:[#allocation2 + $0xc0] sm:$0xff] %vm16_vm11, %v8582_v22  ;;  %42 = vst.msk [vmem:[#allocation2 + $0xc8] sm:$0xff] %vm16_vm11, %v8582_v22  ;;  %v12332_v29 = vld [vmem:[#allocation24_spill] sm:$0xff] }
 0x1b7   :  { %43 = vst.msk [vmem:[#allocation2 + $0xd0] sm:$0xff] %vm16_vm11, %v8582_v22  ;;  %44 = vst.msk [vmem:[#allocation2 + $0xd8] sm:$0xff] %vm16_vm11, %v8582_v22  ;;  %v6395_v18 = vor.u32 %v6394_v36, %v6391_v17 }
 0x1b8   :  { %45 = vst.msk [vmem:[#allocation2 + $0xe0] sm:$0xff] %vm16_vm11, %v8582_v22  ;;  %46 = vst.msk [vmem:[#allocation2 + $0xe8] sm:$0xff] %vm16_vm11, %v8582_v22 }
 0x1b9   :  { %47 = vst.msk [vmem:[#allocation2 + $0xf0] sm:$0xff] %vm16_vm11, %v8582_v22  ;;  %48 = vst.msk [vmem:[#allocation2 + $0xf8] sm:$0xff] %vm16_vm11, %v8582_v22  ;;  %v6134_v22 = vshrl.u32 %v7836_v62, 16  ;;  %v1572_v62 = vadd.f32 %v1564_v49, %v1556_v19  ;;  %v6398_v19 = vshll.u32 %v11449_v11, 16  ;;  %v6403_v49 = vshrl.u32 %v7860_v0, 16 }
 0x1ba   :  { %12324 = vst [vmem:[#allocation20_spill] sm:$0xff] %v11416_v44  ;;  %12326 = vst [vmem:[#allocation38_spill] sm:$0xff] %v11437_v8  ;;  %v7864_v0 = vld [vmem:[%s12200_s0 + $0x50] sm:$0xf]  ;;  %v6417_v8 = vshrl.u32 %v7862_v63, 16  ;;  %v6396_v17 = vrot.slane %v6395_v18, 4 }
 0x1bb   :  { %v6136_v24 = vrot.slane %v6134_v22, 5  ;;  %v11459_v22 = vpop.f32.mrf.mxu1  ;;  %1581 = vst.msk [vmem:[#allocation2 + $0x10] sm:$0xff] %vm16_vm11, %v1572_v62  ;;  %v6400_v51 = vrot.slane %v6398_v19, 5  ;;  %v11483_v62 = vpop.f32.mrf.mxu0  ;;  %v6405_v58 = vrot.slane %v6403_v49, 4  ;;  %1579 = vst.msk [vmem:[#allocation2] sm:$0xff] %vm16_vm11, %v1570_v25  ;;  %v6408_v19 = vrot.slane %v6406_v10, 5 }
 0x1bc   :  { %12328 = vst [vmem:[#allocation22_spill] sm:$0xff] %v11459_v22  ;;  %12331 = vst [vmem:[#allocation64_spill] sm:$0xff] %v11483_v62  ;;  %v1565_v22 = vld [vmem:[#allocation2 + $0x18] sm:$0xff]  ;;  %v6419_v36 = vrot.slane %v6417_v8, 4  ;;  %v6431_v10 = vshrl.u32 %v7864_v0, 16 }
 0x1bd   :  { %v6140_v57 = vor.u32 %v6139_v46, %v6136_v24  ;;  %v11476_v42 = vpop.f32.mrf.mxu1  ;;  %v6412_v46 = vshll.u32 %v11467_v9, 16  ;;  %v6409_v25 = vor.u32 %v6408_v19, %v6405_v58  ;;  %v6401_v26 = vsel %vm8649_vm4, %v6396_v17, %v6400_v51 }
 0x1be   :  { %12330 = vst [vmem:[#allocation41_spill] sm:$0xff] %v11476_v42  ;;  %v1399_v42 = vadd.f32 %v12332_v29, %v11225_v28  ;;  %v11502_v28 = vld [vmem:[%s12200_s0 + $0x54] sm:$0x1]  ;;  %v6420_v29 = vshll.u32 %v7862_v63, 16  ;;  %v6433_v62 = vrot.slane %v6431_v10, 4  ;;  %v6146_v17 = vshll.u32 %v11138_v6, 16 }
 0x1bf   :  { %v6141_v24 = vsel %vm9298_vm10, %v6132_v47, %v6140_v57  ;;  %v11493_v56 = vpop.f32.mrf.mxu1  ;;  %v11496_v47 = vpop.f32.mrf.mxu0  ;;  %v6414_v57 = vrot.slane %v6412_v46, 5 }
 0x1c0   :  { %12333 = vst [vmem:[#allocation24_spill] sm:$0xff] %v11493_v56  ;;  %v7843_v4 = vcombine.low %v6123_v33, %v6141_v24  ;;  %12334 = vst [vmem:[#allocation65_spill] sm:$0xff] %v11496_v47  ;;  %v1557_v49 = vadd.f32 %v10795_v45, %v1399_v42  ;;  %v6426_v56 = vshll.u32 %v11481_v35, 16  ;;  %v6422_v46 = vrot.slane %v6420_v29, 5 }
 0x1c1   :  { %v11505_v33 = vpop.f32.mrf.mxu1  ;;  %v6434_v42 = vshll.u32 %v7864_v0, 16  ;;  %v11510_v44 = vpop.f32.mrf.mxu0  ;;  %v6143_v29 = vshrl.u32 %v11138_v6, 16  ;;  %v7838_v6 = vld [vmem:[%s12200_s0 + $0x3c] sm:$0x3] }
 0x1c2   :  { %12335 = vst [vmem:[#allocation66_spill] sm:$0xff] %v11505_v33  ;;  %8484 = vmatmul.mubr.msk.bf16.vlgmr.msra.gmra.mxu0 %vm199_vm1, %v7843_v4  ;;  %v1573_v24 = vadd.f32 %v1565_v22, %v1557_v49  ;;  %v6428_v45 = vrot.slane %v6426_v56, 5  ;;  %v6988_v63 = vld [vmem:[#allocation2 + $0x10] sm:$0xff]  ;;  %v6410_v33 = vrot.slane %v6409_v25, 4  ;;  %v6440_v4 = vshll.u32 %v11502_v28, 16  ;;  %v12336_v22 = vld [vmem:[#allocation26_spill] sm:$0xff] }
 0x1c3   :  { %8502 = vmatpush3.bf16.msra.mxu0 %v6629_v13  ;;  %v11508_v47 = vpop.f32.mrf.mxu1  ;;  %v7951_v58 = vpack.c.bf16 %v6988_v63, %v6988_v63  ;;  %v6423_v8 = vor.u32 %v6422_v46, %v6419_v36  ;;  %v6436_v13 = vrot.slane %v6434_v42, 5  ;;  %v1397_v0 = vadd.f32 %v12336_v22, %v11268_v15  ;;  %v7837_v56 = vld [vmem:[%s12200_s0 + $0x34] sm:$0x3]  ;;  %v1563_v49 = vld [vmem:[#allocation2 + $0x8] sm:$0xff]  ;;  %v6986_v15 = vld [vmem:[#allocation2] sm:$0xff]  ;;  %v11532_v46 = vpop.f32.mrf.mxu0 }
 0x1c4   :  { %1582 = vst.msk [vmem:[#allocation2 + $0x18] sm:$0xff] %vm16_vm11, %v1573_v24  ;;  %v6415_v51 = vsel %vm8649_vm4, %v6410_v33, %v6414_v57  ;;  %v6442_v19 = vrot.slane %v6440_v4, 5  ;;  %v7949_v33 = vpack.c.bf16 %v6986_v15, %v6986_v15  ;;  %v6145_v42 = vrot.slane %v6143_v29, 5 }
 0x1c5   :  { %v11521_v18 = vpop.f32.mrf.mxu1  ;;  %7149 = vst.msk [vmem:[%s12201_s2 + $0x8] sm:$0xf] %vm7146_vm12, %v7951_v58  ;;  %v7869_v25 = vcombine.low %v6401_v26, %v6415_v51  ;;  %v6424_v36 = vrot.slane %v6423_v8, 4  ;;  %v6437_v10 = vor.u32 %v6436_v13, %v6433_v62  ;;  %v1555_v24 = vadd.f32 %v10819_v32, %v1397_v0  ;;  %v11542_v8 = vpop.f32.mrf.mxu0 }
 0x1c6   :  { %v6148_v63 = vrot.slane %v6146_v17, 6  ;;  %v6152_v4 = vshrl.u32 %v7837_v56, 16  ;;  %v6155_v32 = vshll.u32 %v7837_v56, 16  ;;  %7147 = vst.msk [vmem:[%s12201_s2] sm:$0xf] %vm7146_vm12, %v7949_v33  ;;  %v6161_v51 = vshrl.u32 %v11159_v16, 16 }
 0x1c7   :  { %v11534_v57 = vpop.f32.mrf.mxu1  ;;  %8497 = vmatprep.mubr.msk.bf16.mxu1 %vm199_vm1, %v7869_v25  ;;  %v6429_v26 = vsel %vm8649_vm4, %v6424_v36, %v6428_v45  ;;  %v6438_v62 = vrot.slane %v6437_v10, 4  ;;  %v1571_v58 = vadd.f32 %v1563_v49, %v1555_v24  ;;  %v6164_v29 = vshll.u32 %v11159_v16, 16  ;;  %v11555_v15 = vpop.f32.mrf.mxu0  ;;  %v7839_v16 = vld [vmem:[%s12200_s0 + $0x44] sm:$0x3] }
 0x1c8   :  { %v6149_v22 = vor.u32 %v6148_v63, %v6145_v42  ;;  %v6154_v0 = vrot.slane %v6152_v4, 5  ;;  %v6157_v56 = vrot.slane %v6155_v32, 6  ;;  %v6170_v49 = vshrl.u32 %v7838_v6, 16 }
 0x1c9   :  { %v11544_v13 = vpop.f32.mrf.mxu1  ;;  %v6443_v45 = vsel %vm8649_vm4, %v6438_v62, %v6442_v19  ;;  %1580 = vst.msk [vmem:[#allocation2 + $0x8] sm:$0xff] %vm16_vm11, %v1571_v58  ;;  %v6173_v17 = vshll.u32 %v7838_v6, 16  ;;  %v6163_v33 = vrot.slane %v6161_v51, 5  ;;  %v6166_v42 = vrot.slane %v6164_v29, 6  ;;  %v11562_v62 = vpop.f32.mrf.mxu0 }
 0x1ca   :  { %12337 = vst [vmem:[#allocation26_spill] sm:$0xff] %v11544_v13  ;;  %v7870_v10 = vcombine.low %v6429_v26, %v6443_v45  ;;  %v6150_v24 = vrot.slane %v6149_v22, 4  ;;  %v6158_v19 = vor.u32 %v6157_v56, %v6154_v0  ;;  %v6172_v63 = vrot.slane %v6170_v49, 5  ;;  %v12340_v26 = vld [vmem:[#allocation28_spill] sm:$0xff]  ;;  %v1568_v45 = vld [vmem:[#allocation2 + $0x30] sm:$0xff] }
 0x1cb   :  { %v11557_v25 = vpop.f32.mrf.mxu1  ;;  %v6989_v36 = vld [vmem:[#allocation2 + $0x18] sm:$0xff]  ;;  %v6175_v4 = vrot.slane %v6173_v17, 6  ;;  %v6167_v58 = vor.u32 %v6166_v42, %v6163_v33  ;;  %v1402_v32 = vadd.f32 %v12340_v26, %v11276_v48  ;;  %v6179_v22 = vshrl.u32 %v11174_v53, 16  ;;  %v7840_v56 = vld [vmem:[%s12200_s0 + $0x4c] sm:$0x3] }
 0x1cc   :  { %12338 = vst [vmem:[#allocation67_spill] sm:$0xff] %v11557_v25  ;;  %v7952_v34 = vpack.c.bf16 %v6989_v36, %v6989_v36  ;;  %8498 = vmatmul.mubr.msk.bf16.gmra.mxu1 %vm199_vm1, %v7870_v10  ;;  %v6182_v51 = vshll.u32 %v11174_v53, 16  ;;  %v6159_v0 = vsel %vm9298_vm10, %v6150_v24, %v6158_v19  ;;  %v6188_v49 = vshrl.u32 %v7839_v16, 16  ;;  %v12342_v53 = vld [vmem:[#allocation45_spill] sm:$0xff]  ;;  %v11585_v19 = vpop.f32.mrf.mxu0 }
 0x1cd   :  { %v11564_v6 = vpop.f32.mrf.mxu1  ;;  %v6176_v29 = vor.u32 %v6175_v4, %v6172_v63  ;;  %v6191_v48 = vshll.u32 %v7839_v16, 16  ;;  %v6168_v36 = vrot.slane %v6167_v58, 4  ;;  %v1560_v10 = vadd.f32 %v12342_v53, %v1402_v32  ;;  %12343 = vst [vmem:[#allocation45_spill] sm:$0xff] %v11585_v19  ;;  %v11594_v32 = vld [vmem:[%s12200_s0 + $0x18] sm:$0xe] }
 0x1ce   :  { %12339 = vst [vmem:[#allocation68_spill] sm:$0xff] %v11564_v6  ;;  %7150 = vst.msk [vmem:[%s12201_s2 + $0xc] sm:$0xf] %vm7146_vm12, %v7952_v34  ;;  %v6181_v33 = vrot.slane %v6179_v22, 5  ;;  %v6184_v42 = vrot.slane %v6182_v51, 6  ;;  %v6190_v26 = vrot.slane %v6188_v49, 5  ;;  %v11599_v53 = vpop.f32.mrf.mxu0 }
 0x1cf   :  { %v11580_v17 = vpop.f32.mrf.mxu1  ;;  %v6193_v34 = vrot.slane %v6191_v48, 6  ;;  %v6197_v6 = vshrl.u32 %v11187_v2, 16  ;;  %v6200_v24 = vshll.u32 %v11187_v2, 16  ;;  %v6177_v16 = vsel %vm9298_vm10, %v6168_v36, %v6176_v29  ;;  %v7900_v2 = vld [vmem:[%s12200_s0 + $0x1c] sm:$0x3]  ;;  %12345 = vst [vmem:[#allocation70_spill] sm:$0xff] %v11599_v53 }
 0x1d0   :  { %12341 = vst [vmem:[#allocation28_spill] sm:$0xff] %v11580_v17  ;;  %v6987_v4 = vld [vmem:[#allocation2 + $0x8] sm:$0xff]  ;;  %v1576_v17 = vadd.f32 %v1568_v45, %v1560_v10  ;;  %v6185_v58 = vor.u32 %v6184_v42, %v6181_v33  ;;  %v6206_v25 = vshrl.u32 %v7840_v56, 16  ;;  %v7844_v51 = vcombine.low %v6159_v0, %v6177_v16  ;;  %v12347_v0 = vld [vmem:[#allocation30_spill] sm:$0xff]  ;;  %v11614_v33 = vld [vmem:[%s12200_s0 + $0x20] sm:$0xe]  ;;  %v11618_v42 = vpop.f32.mrf.mxu0 }
 0x1d1   :  { %v11587_v63 = vpop.f32.mrf.mxu1  ;;  %v7950_v22 = vpack.c.bf16 %v6987_v4, %v6987_v4  ;;  %v6194_v49 = vor.u32 %v6193_v34, %v6190_v26  ;;  %v6199_v48 = vrot.slane %v6197_v6, 5  ;;  %v6202_v45 = vrot.slane %v6200_v24, 6  ;;  %12348 = vst [vmem:[#allocation30_spill] sm:$0xff] %v11618_v42  ;;  %v7901_v16 = vld [vmem:[%s12200_s0 + $0x24] sm:$0x3] }
 0x1d2   :  { %12344 = vst [vmem:[#allocation69_spill] sm:$0xff] %v11587_v63  ;;  %1585 = vst.msk [vmem:[#allocation2 + $0x30] sm:$0xff] %vm16_vm11, %v1576_v17  ;;  %v6186_v29 = vrot.slane %v6185_v58, 4  ;;  %v6208_v36 = vrot.slane %v6206_v25, 5  ;;  %v6209_v10 = vshll.u32 %v7840_v56, 16  ;;  %8487 = vmatprep.mubr.msk.bf16.mxu0 %vm199_vm1, %v7844_v51  ;;  %v1400_v6 = vadd.f32 %v12347_v0, %v11324_v54  ;;  %v1566_v54 = vld [vmem:[#allocation2 + $0x20] sm:$0xff]  ;;  %v11628_v53 = vpop.f32.mrf.mxu0 }
 0x1d3   :  { %v11601_v63 = vpop.f32.mrf.mxu1  ;;  %7148 = vst.msk [vmem:[%s12201_s2 + $0x4] sm:$0xf] %vm7146_vm12, %v7950_v22  ;;  %v6713_v17 = vshrl.u32 %v11594_v32, 16  ;;  %v6716_v25 = vshll.u32 %v11594_v32, 16  ;;  %v6722_v56 = vshrl.u32 %v7900_v2, 16  ;;  %v6203_v24 = vor.u32 %v6202_v45, %v6199_v48  ;;  %12350 = vst [vmem:[#allocation73_spill] sm:$0xff] %v11628_v53 }
 0x1d4   :  { %12346 = vst [vmem:[#allocation71_spill] sm:$0xff] %v11601_v63  ;;  %v6195_v34 = vsel %vm9298_vm10, %v6186_v29, %v6194_v49  ;;  %v6211_v4 = vrot.slane %v6209_v10, 6  ;;  %v6725_v58 = vshll.u32 %v7900_v2, 16  ;;  %v1558_v22 = vadd.f32 %v10847_v27, %v1400_v6  ;;  %v11637_v27 = vld [vmem:[%s12200_s0 + $0x28] sm:$0xe]  ;;  %v11639_v2 = vpop.f32.mrf.mxu0 }
 0x1d5   :  { %v11620_v26 = vpop.f32.mrf.mxu1  ;;  %v6715_v51 = vrot.slane %v6713_v17, 5  ;;  %v6718_v0 = vrot.slane %v6716_v25, 6  ;;  %v6724_v63 = vrot.slane %v6722_v56, 5  ;;  %v6731_v48 = vshrl.u32 %v11614_v33, 16  ;;  %12352 = vst [vmem:[#allocation75_spill] sm:$0xff] %v11639_v2 }
 0x1d6   :  { %12349 = vst [vmem:[#allocation72_spill] sm:$0xff] %v11620_v26  ;;  %v6204_v26 = vrot.slane %v6203_v24, 4  ;;  %v6212_v19 = vor.u32 %v6211_v4, %v6208_v36  ;;  %v6727_v49 = vrot.slane %v6725_v58, 6  ;;  %v1574_v29 = vadd.f32 %v1566_v54, %v1558_v22  ;;  %v7902_v24 = vld [vmem:[%s12200_s0 + $0x2c] sm:$0x3] }
 0x1d7   :  { %v11630_v42 = vpop.f32.mrf.mxu1  ;;  %v6719_v45 = vor.u32 %v6718_v0, %v6715_v51  ;;  %v6734_v10 = vshll.u32 %v11614_v33, 16  ;;  %v6740_v13 = vshrl.u32 %v7901_v16, 16  ;;  %v6733_v25 = vrot.slane %v6731_v48, 5  ;;  %v11649_v0 = vpop.f32.mrf.mxu0  ;;  %v1569_v48 = vld [vmem:[#allocation2 + $0x38] sm:$0xff] }
 0x1d8   :  { %12351 = vst [vmem:[#allocation74_spill] sm:$0xff] %v11630_v42  ;;  %v6213_v36 = vsel %vm9298_vm10, %v6204_v26, %v6212_v19  ;;  %v6728_v17 = vor.u32 %v6727_v49, %v6724_v63  ;;  %v6743_v56 = vshll.u32 %v7901_v16, 16  ;;  %1583 = vst.msk [vmem:[#allocation2 + $0x20] sm:$0xff] %vm16_vm11, %v1574_v29  ;;  %v12356_v63 = vld [vmem:[#allocation32_spill] sm:$0xff]  ;;  %v11658_v16 = vld [vmem:[%s12200_s0 + $0x30] sm:$0xe] }
 0x1d9   :  { %v11641_v6 = vpop.f32.mrf.mxu1  ;;  %v6992_v4 = vld [vmem:[#allocation2 + $0x30] sm:$0xff]  ;;  %v7845_v54 = vcombine.low %v6195_v34, %v6213_v36  ;;  %v6720_v58 = vrot.slane %v6719_v45, 4  ;;  %v6736_v22 = vrot.slane %v6734_v10, 6  ;;  %v6742_v51 = vrot.slane %v6740_v13, 5  ;;  %12354 = vst [vmem:[#allocation77_spill] sm:$0xff] %v11649_v0  ;;  %v11668_v10 = vpop.f32.mrf.mxu0 }
 0x1da   :  { %12353 = vst [vmem:[#allocation76_spill] sm:$0xff] %v11641_v6  ;;  %v7955_v42 = vpack.c.bf16 %v6992_v4, %v6992_v4  ;;  %v6745_v19 = vrot.slane %v6743_v56, 6  ;;  %v1403_v26 = vadd.f32 %v12356_v63, %v11346_v20  ;;  %v6749_v34 = vshrl.u32 %v11637_v27, 16  ;;  %v7903_v29 = vld [vmem:[%s12200_s0 + $0x34] sm:$0x3]  ;;  %12357 = vst [vmem:[#allocation32_spill] sm:$0xff] %v11668_v10 }
 0x1db   :  { %v11651_v6 = vpop.f32.mrf.mxu1  ;;  %8488 = vmatmul.mubr.msk.bf16.gmra.mxu0 %vm199_vm1, %v7845_v54  ;;  %v6729_v13 = vsel %vm9298_vm10, %v6720_v58, %v6728_v17  ;;  %v6737_v49 = vor.u32 %v6736_v22, %v6733_v25  ;;  %v6752_v20 = vshll.u32 %v11637_v27, 16  ;;  %v6758_v45 = vshrl.u32 %v7902_v24, 16 }
 0x1dc   :  { %12355 = vst [vmem:[#allocation78_spill] sm:$0xff] %v11651_v6  ;;  %7153 = vst.msk [vmem:[%s12201_s2 + $0x18] sm:$0xf] %vm7146_vm12, %v7955_v42  ;;  %v6746_v56 = vor.u32 %v6745_v19, %v6742_v51  ;;  %v1561_v17 = vadd.f32 %v10866_v21, %v1403_v26  ;;  %v6751_v25 = vrot.slane %v6749_v34, 5  ;;  %v6761_v4 = vshll.u32 %v7902_v24, 16  ;;  %v11678_v6 = vpop.f32.mrf.mxu0 }
 0x1dd   :  { %v11670_v36 = vpop.f32.mrf.mxu1  ;;  %v6738_v54 = vrot.slane %v6737_v49, 4  ;;  %v6754_v58 = vrot.slane %v6752_v20, 6  ;;  %v6760_v22 = vrot.slane %v6758_v45, 5  ;;  %v6767_v63 = vshrl.u32 %v11658_v16, 16  ;;  %12359 = vst [vmem:[#allocation80_spill] sm:$0xff] %v11678_v6  ;;  %v12361_v6 = vld [vmem:[#allocation34_spill] sm:$0xff] }
 0x1de   :  { %12358 = vst [vmem:[#allocation79_spill] sm:$0xff] %v11670_v36  ;;  %v1577_v36 = vadd.f32 %v1569_v48, %v1561_v17  ;;  %v6763_v0 = vrot.slane %v6761_v4, 6  ;;  %v6770_v2 = vshll.u32 %v11658_v16, 16  ;;  %v6776_v53 = vshrl.u32 %v7903_v29, 16  ;;  %v11685_v19 = vpop.f32.mrf.mxu0 }
 0x1df   :  { %v11680_v10 = vpop.f32.mrf.mxu1  ;;  %v6747_v42 = vsel %vm9298_vm10, %v6738_v54, %v6746_v56  ;;  %v6755_v21 = vor.u32 %v6754_v58, %v6751_v25  ;;  %v6769_v51 = vrot.slane %v6767_v63, 5  ;;  %v6779_v24 = vshll.u32 %v7903_v29, 16  ;;  %v6990_v26 = vld [vmem:[#allocation2 + $0x20] sm:$0xff]  ;;  %v1567_v54 = vld [vmem:[#allocation2 + $0x28] sm:$0xff] }
 0x1e0   :  { %12360 = vst [vmem:[#allocation81_spill] sm:$0xff] %v11680_v10  ;;  %v7909_v34 = vcombine.low %v6729_v13, %v6747_v42  ;;  %1586 = vst.msk [vmem:[#allocation2 + $0x38] sm:$0xff] %vm16_vm11, %v1577_v36  ;;  %v6764_v49 = vor.u32 %v6763_v0, %v6760_v22  ;;  %v6772_v20 = vrot.slane %v6770_v2, 6  ;;  %v6778_v45 = vrot.slane %v6776_v53, 5  ;;  %v11692_v25 = vpop.f32.mrf.mxu0 }
 0x1e1   :  { %v11688_v48 = vpop.f32.mrf.mxu1  ;;  %v7953_v17 = vpack.c.bf16 %v6990_v26, %v6990_v26  ;;  %v6756_v4 = vrot.slane %v6755_v21, 4  ;;  %v6781_v10 = vrot.slane %v6779_v24, 6  ;;  %v1401_v56 = vadd.f32 %v12361_v6, %v11420_v23 }
 0x1e2   :  { %8513 = vmatprep.mubr.msk.bf16.mxu1 %vm199_vm1, %v7909_v34  ;;  %v6773_v29 = vor.u32 %v6772_v20, %v6769_v51  ;;  %v7883_v13 = vrot.slane %v11594_v32, 9  ;;  %v6572_v0 = vrot.slane %v11284_v60, 5  ;;  %v7884_v53 = vrot.slane %v11614_v33, 9  ;;  %v11706_v58 = vpop.f32.mrf.mxu0  ;;  %v12362_v33 = vld [vmem:[#allocation37_spill] sm:$0xff] }
 0x1e3   :  { %7151 = vst.msk [vmem:[%s12201_s2 + $0x10] sm:$0xf] %vm7146_vm12, %v7953_v17  ;;  %v6765_v23 = vsel %vm9298_vm10, %v6756_v4, %v6764_v49  ;;  %v6782_v2 = vor.u32 %v6781_v10, %v6778_v45  ;;  %v1559_v6 = vadd.f32 %v10892_v12, %v1401_v56  ;;  %v6576_v36 = vrot.slane %v11300_v37, 5  ;;  %v11718_v10 = vld [vmem:[%s12200_s0 + $0x38] sm:$0xe]  ;;  %v11720_v12 = vpop.f32.mrf.mxu1  ;;  %v12364_v49 = vld [vmem:[#allocation39_spill] sm:$0xff] }
 0x1e4   :  { %v6774_v32 = vrot.slane %v6773_v29, 4  ;;  %v6573_v60 = vsel %vm8734_vm7, %v7883_v13, %v6572_v0  ;;  %v11712_v22 = vadd.f32 %v10912_v50, %v12362_v33  ;;  %v7885_v63 = vrot.slane %v11637_v27, 9  ;;  %12363 = vst [vmem:[#allocation34_spill] sm:$0xff] %v11720_v12  ;;  %v7904_v50 = vld [vmem:[%s12200_s0 + $0x3c] sm:$0x3]  ;;  %v11729_v27 = vpop.f32.mrf.mxu0 }
 0x1e5   :  { %v1575_v37 = vadd.f32 %v1567_v54, %v1559_v6  ;;  %v6577_v42 = vsel %vm8734_vm7, %v7884_v53, %v6576_v36  ;;  %v6580_v21 = vrot.slane %v11317_v38, 5  ;;  %v7886_v51 = vrot.slane %v11658_v16, 9  ;;  %v11741_v38 = vld [vmem:[%s12200_s0 + $0x40] sm:$0xe]  ;;  %v11756_v53 = vpop.f32.mrf.mxu1 }
 0x1e6   :  { %v6783_v24 = vsel %vm9298_vm10, %v6774_v32, %v6782_v2  ;;  %v7892_v26 = vcombine.low %v6573_v60, %v6577_v42  ;;  %v6584_v34 = vrot.slane %v11336_v14, 5  ;;  %v11736_v20 = vadd.f32 %v10942_v5, %v12364_v49  ;;  %v7905_v14 = vld [vmem:[%s12200_s0 + $0x44] sm:$0x3]  ;;  %v11751_v56 = vpop.f32.mrf.mxu0  ;;  %12365 = vst [vmem:[#allocation37_spill] sm:$0xff] %v11756_v53  ;;  %v11763_v32 = vld [vmem:[%s12200_s0 + $0x48] sm:$0xe] }
 0x1e7   :  { %v6993_v16 = vld [vmem:[#allocation2 + $0x38] sm:$0xff]  ;;  %v7910_v45 = vcombine.low %v6765_v23, %v6783_v24  ;;  %1584 = vst.msk [vmem:[#allocation2 + $0x28] sm:$0xff] %vm16_vm11, %v1575_v37  ;;  %v6581_v17 = vsel %vm8734_vm7, %v7885_v63, %v6580_v21  ;;  %v6785_v4 = vshrl.u32 %v11718_v10, 16  ;;  %v6788_v5 = vshll.u32 %v11718_v10, 16  ;;  %v7906_v21 = vld [vmem:[%s12200_s0 + $0x4c] sm:$0x3] }
 0x1e8   :  { %v7956_v29 = vpack.c.bf16 %v6993_v16, %v6993_v16  ;;  %8503 = vmatprep.mubr.msk.bf16.mxu0 %vm199_vm1, %v7892_v26  ;;  %v6585_v54 = vsel %vm8734_vm7, %v7886_v51, %v6584_v34  ;;  %v6794_v13 = vshrl.u32 %v7904_v50, 16  ;;  %v6797_v0 = vshll.u32 %v7904_v50, 16  ;;  %v11765_v60 = vpop.f32.mrf.mxu0  ;;  %v12366_v26 = vld [vmem:[#allocation40_spill] sm:$0xff]  ;;  %v11783_v49 = vld [vmem:[%s12200_s0 + $0x50] sm:$0xe] }
 0x1e9   :  { %8514 = vmatmul.mubr.msk.bf16.vlgmr.msra.gmra.mxu1 %vm199_vm1, %v7910_v45  ;;  %v7893_v23 = vcombine.low %v6581_v17, %v6585_v54  ;;  %v6787_v2 = vrot.slane %v6785_v4, 5  ;;  %v6790_v6 = vrot.slane %v6788_v5, 6  ;;  %v6803_v36 = vshrl.u32 %v11741_v38, 16  ;;  %v11786_v5 = vpop.f32.mrf.mxu1 }
 0x1ea   :  { %7154 = vst.msk [vmem:[%s12201_s2 + $0x1c] sm:$0xf] %vm7146_vm12, %v7956_v29  ;;  %v6796_v33 = vrot.slane %v6794_v13, 5  ;;  %v6799_v63 = vrot.slane %v6797_v0, 6  ;;  %v6806_v37 = vshll.u32 %v11741_v38, 16  ;;  %v6812_v42 = vshrl.u32 %v7905_v14, 16  ;;  %v11788_v29 = vpop.f32.mrf.mxu0 }
 0x1eb   :  { %8504 = vmatmul.mubr.msk.bf16.vlgmr.msra.gmra.mxu0 %vm199_vm1, %v7893_v23  ;;  %v6791_v51 = vor.u32 %v6790_v6, %v6787_v2  ;;  %v6805_v50 = vrot.slane %v6803_v36, 5  ;;  %v6815_v24 = vshll.u32 %v7905_v14, 16  ;;  %v11778_v34 = vadd.f32 %v10956_v3, %v12366_v26  ;;  %12367 = vst [vmem:[#allocation39_spill] sm:$0xff] %v11786_v5  ;;  %v7907_v2 = vld [vmem:[%s12200_s0 + $0x54] sm:$0x3]  ;;  %v11797_v12 = vpop.f32.mrf.mxu1 }
 0x1ec   :  { %v6800_v16 = vor.u32 %v6799_v63, %v6796_v33  ;;  %v6808_v45 = vrot.slane %v6806_v37, 6  ;;  %v6814_v17 = vrot.slane %v6812_v42, 5  ;;  %v6821_v4 = vshrl.u32 %v11763_v32, 16  ;;  %12368 = vst [vmem:[#allocation40_spill] sm:$0xff] %v11797_v12 }
 0x1ed   :  { %v6792_v54 = vrot.slane %v6791_v51, 4  ;;  %v6817_v14 = vrot.slane %v6815_v24, 6  ;;  %v6824_v13 = vshll.u32 %v11763_v32, 16  ;;  %v6830_v3 = vshrl.u32 %v7906_v21, 16 }
 0x1ee   :  { %v6991_v0 = vld [vmem:[#allocation2 + $0x28] sm:$0xff]  ;;  %v6809_v23 = vor.u32 %v6808_v45, %v6805_v50  ;;  %v6823_v6 = vrot.slane %v6821_v4, 5  ;;  %v6833_v36 = vshll.u32 %v7906_v21, 16  ;;  %v6839_v33 = vshrl.u32 %v11783_v49, 16  ;;  %v11799_v50 = vpop.f32.mrf.mxu0 }
 0x1ef   :  { %v7954_v63 = vpack.c.bf16 %v6991_v0, %v6991_v0  ;;  %v6801_v37 = vsel %vm9298_vm10, %v6792_v54, %v6800_v16  ;;  %v6818_v42 = vor.u32 %v6817_v14, %v6814_v17  ;;  %v6826_v51 = vrot.slane %v6824_v13, 6  ;;  %v12369_v14 = vld [vmem:[#allocation42_spill] sm:$0xff] }
 0x1f0   :  { %v6810_v24 = vrot.slane %v6809_v23, 4  ;;  %v6832_v26 = vrot.slane %v6830_v3, 5  ;;  %v6835_v5 = vrot.slane %v6833_v36, 6  ;;  %v6841_v53 = vrot.slane %v6839_v33, 5 }
 0x1f1   :  { %7152 = vst.msk [vmem:[%s12201_s2 + $0x14] sm:$0xf] %vm7146_vm12, %v7954_v63  ;;  %v6827_v21 = vor.u32 %v6826_v51, %v6823_v6  ;;  %v6842_v45 = vshll.u32 %v11783_v49, 16  ;;  %v6848_v4 = vshrl.u32 %v7907_v2, 16  ;;  %v6851_v16 = vshll.u32 %v7907_v2, 16  ;;  %v11814_v51 = vpop.f32.mrf.mxu1 }
 0x1f2   :  { %v6819_v17 = vsel %vm9298_vm10, %v6810_v24, %v6818_v42  ;;  %v6836_v54 = vor.u32 %v6835_v5, %v6832_v26  ;;  %v1932_v13 = vadd.f32 %v10978_v59, %v12369_v14  ;;  %v7887_v3 = vrot.slane %v11718_v10, 9  ;;  %v11816_v42 = vpop.f32.mrf.mxu0  ;;  %v12370_v5 = vld [vmem:[#allocation43_spill] sm:$0xff] }
 0x1f3   :  { %v7911_v0 = vcombine.low %v6801_v37, %v6819_v17  ;;  %v6828_v23 = vrot.slane %v6827_v21, 4  ;;  %v6844_v36 = vrot.slane %v6842_v45, 6  ;;  %v6850_v33 = vrot.slane %v6848_v4, 5  ;;  %v12373_v14 = vld [vmem:[#allocation15_spill] sm:$0xff] }
 0x1f4   :  { %v6853_v12 = vrot.slane %v6851_v16, 6  ;;  %v6588_v6 = vrot.slane %v11449_v11, 5  ;;  %v7888_v63 = vrot.slane %v11741_v38, 9  ;;  %v6592_v2 = vrot.slane %v11467_v9, 5  ;;  %v11829_v21 = vpop.f32.mrf.mxu0 }
 0x1f5   :  { %8517 = vmatprep.mubr.msk.bf16.mxu1 %vm199_vm1, %v7911_v0  ;;  %v6837_v59 = vsel %vm9298_vm10, %v6828_v23, %v6836_v54  ;;  %v6845_v10 = vor.u32 %v6844_v36, %v6841_v53  ;;  %v1953_v37 = vadd.f32 %v10999_v7, %v12370_v5  ;;  %v7889_v24 = vrot.slane %v11763_v32, 9  ;;  %v12372_v54 = vld [vmem:[#allocation46_spill] sm:$0xff]  ;;  %v12378_v5 = vld [vmem:[#allocation5_spill] sm:$0xff] }
 0x1f6   :  { %v6854_v11 = vor.u32 %v6853_v12, %v6850_v33  ;;  %v6589_v38 = vsel %vm8734_vm7, %v7887_v3, %v6588_v6  ;;  %v6593_v9 = vsel %vm8734_vm7, %v7888_v63, %v6592_v2  ;;  %v6596_v26 = vrot.slane %v11481_v35, 5  ;;  %v12371_v12 = vld [vmem:[#allocation44_spill] sm:$0xff]  ;;  %v11841_v3 = vpop.f32.mrf.mxu1  ;;  %v11843_v0 = vpop.f32.mrf.mxu0  ;;  %v12376_v6 = vld [vmem:[#allocation49_spill] sm:$0xff]  ;;  %v12377_v2 = vld [vmem:[#allocation50_spill] sm:$0xff] }
 0x1f7   :  { %v6846_v45 = vrot.slane %v6845_v10, 4  ;;  %v7894_v4 = vcombine.low %v6589_v38, %v6593_v9  ;;  %v7890_v53 = vrot.slane %v11783_v49, 9  ;;  %v6600_v16 = vrot.slane %v11502_v28, 5  ;;  %v12380_v38 = vld [vmem:[#allocation51_spill] sm:$0xff] }
 0x1f8   :  { %v6597_v7 = vsel %vm8734_vm7, %v7889_v24, %v6596_v26  ;;  %v1945_v32 = vadd.f32 %v11026_v52, %v12371_v12  ;;  %v1956_v17 = vadd.f32 %v11043_v30, %v10839_v43  ;;  %v1948_v35 = vadd.f32 %v12373_v14, %v12372_v54  ;;  %v12374_v52 = vld [vmem:[#allocation47_spill] sm:$0xff]  ;;  %v12375_v43 = vld [vmem:[#allocation48_spill] sm:$0xff]  ;;  %v11857_v31 = vpop.f32.mrf.mxu0 }
 0x1f9   :  { %v6855_v49 = vsel %vm9298_vm10, %v6846_v45, %v6854_v11  ;;  %8507 = vmatprep.mubr.msk.bf16.mxu0 %vm199_vm1, %v7894_v4  ;;  %v6601_v28 = vsel %vm8734_vm7, %v7890_v53, %v6600_v16  ;;  %v2210_v23 = vadd.f32 %v12374_v52, %v11712_v22  ;;  %v2208_v30 = vadd.f32 %v12375_v43, %v11736_v20  ;;  %v12379_v11 = vld [vmem:[#allocation19_spill] sm:$0xff]  ;;  %v12383_v45 = vld [vmem:[#allocation21_spill] sm:$0xff]  ;;  %v11868_v53 = vpop.f32.mrf.mxu1  ;;  %v12386_v54 = vld [vmem:[#allocation8_spill] sm:$0xff] }
 0x1fa   :  { %v7912_v36 = vcombine.low %v6837_v59, %v6855_v49  ;;  %v7895_v33 = vcombine.low %v6597_v7, %v6601_v28  ;;  %v2211_v63 = vadd.f32 %v12376_v6, %v11778_v34  ;;  %v2209_v10 = vadd.f32 %v12377_v2, %v1932_v13  ;;  %v12381_v26 = vld [vmem:[#allocation11_spill] sm:$0xff]  ;;  %v12384_v4 = vld [vmem:[#allocation13_spill] sm:$0xff]  ;;  %v11870_v16 = vpop.f32.mrf.mxu0  ;;  %v12387_v14 = vld [vmem:[#allocation36_spill] sm:$0xff] }
 0x1fb   :  { %v2440_v24 = vadd.f32 %v12378_v5, %v2210_v23  ;;  %v2438_v55 = vadd.f32 %v12379_v11, %v2208_v30  ;;  %v2214_v9 = vadd.f32 %v12380_v38, %v1953_v37  ;;  %v2212_v22 = vadd.f32 %v12381_v26, %v1945_v32  ;;  %v12382_v20 = vld [vmem:[#allocation7_spill] sm:$0xff]  ;;  %v12389_v52 = vld [vmem:[#allocation25_spill] sm:$0xff]  ;;  %v12390_v43 = vld [vmem:[#allocation4_spill] sm:$0xff] }
 0x1fc   :  { %8518 = vmatmul.mubr.msk.bf16.gmra.mxu1 %vm199_vm1, %v7912_v36  ;;  %8508 = vmatmul.mubr.msk.bf16.gmra.mxu0 %vm199_vm1, %v7895_v33  ;;  %v2441_v59 = vadd.f32 %v12382_v20, %v2211_v63  ;;  %v2439_v34 = vadd.f32 %v12383_v45, %v2209_v10  ;;  %v2215_v13 = vadd.f32 %v12384_v4, %v1956_v17  ;;  %v12385_v7 = vld [vmem:[#allocation23_spill] sm:$0xff]  ;;  %v12391_v36 = vld [vmem:[#allocation17_spill] sm:$0xff]  ;;  %v12392_v6 = vld [vmem:[#allocation6_spill] sm:$0xff]  ;;  %v11880_v63 = vpop.f32.mrf.mxu0 }
 0x1fd   :  { %v2444_v12 = vadd.f32 %v12385_v7, %v2214_v9  ;;  %v2442_v37 = vadd.f32 %v12386_v54, %v2212_v22  ;;  %v2213_v32 = vadd.f32 %v12387_v14, %v1948_v35  ;;  %v12388_v49 = vld [vmem:[#allocation3_spill] sm:$0xff]  ;;  %v2596_v30 = vadd.f32 %v12390_v43, %v2438_v55  ;;  %v12393_v2 = vld [vmem:[#allocation9_spill] sm:$0xff]  ;;  %v12395_v38 = vld [vmem:[#allocation52_spill] sm:$0xff]  ;;  %v11890_v7 = vpop.f32.mrf.mxu1 }
 0x1fe   :  { %v2598_v28 = vadd.f32 %v12388_v49, %v2440_v24  ;;  %v2445_v23 = vadd.f32 %v12389_v52, %v2215_v13  ;;  %v2599_v33 = vadd.f32 %v12391_v36, %v2441_v59  ;;  %v2597_v17 = vadd.f32 %v12392_v6, %v2439_v34  ;;  %v12394_v5 = vld [vmem:[#allocation27_spill] sm:$0xff]  ;;  %v12396_v26 = vld [vmem:[#allocation53_spill] sm:$0xff]  ;;  %v12397_v22 = vld [vmem:[#allocation10_spill] sm:$0xff]  ;;  %v11892_v34 = vpop.f32.mrf.mxu0 }
 0x1ff   :  { %v2443_v10 = vadd.f32 %v12393_v2, %v2213_v32  ;;  %v2602_v9 = vadd.f32 %v12395_v38, %v2444_v12  ;;  %v2600_v35 = vadd.f32 %v12396_v26, %v2442_v37  ;;  %v2850_v24 = vadd.f32 %v12397_v22, %v2596_v30  ;;  %v12398_v20 = vld [vmem:[#allocation12_spill] sm:$0xff]  ;;  %v12399_v4 = vld [vmem:[#allocation29_spill] sm:$0xff]  ;;  %v12400_v13 = vld [vmem:[#allocation54_spill] sm:$0xff] }
 0x200   :  { %v2852_v11 = vadd.f32 %v12394_v5, %v2598_v28  ;;  %v2853_v45 = vadd.f32 %v12398_v20, %v2599_v33  ;;  %v2851_v55 = vadd.f32 %v12399_v4, %v2597_v17  ;;  %v2603_v59 = vadd.f32 %v12400_v13, %v2445_v23  ;;  %v12401_v54 = vld [vmem:[#allocation61_spill] sm:$0xff]  ;;  %v12402_v32 = vld [vmem:[#allocation14_spill] sm:$0xff]  ;;  %v12403_v28 = vld [vmem:[#allocation55_spill] sm:$0xff]  ;;  %v11902_v5 = vpop.f32.mrf.mxu0 }
 0x201   :  { %v2856_v14 = vadd.f32 %v12401_v54, %v2602_v9  ;;  %v2854_v49 = vadd.f32 %v12402_v32, %v2600_v35  ;;  %v2601_v12 = vadd.f32 %v12403_v28, %v2443_v10  ;;  %v12404_v52 = vld [vmem:[#allocation56_spill] sm:$0xff]  ;;  %v12405_v43 = vld [vmem:[#allocation63_spill] sm:$0xff]  ;;  %v12406_v36 = vld [vmem:[#allocation57_spill] sm:$0xff] }
 0x202   :  { %v3082_v37 = vadd.f32 %v12404_v52, %v2852_v11  ;;  %v2857_v30 = vadd.f32 %v12405_v43, %v2603_v59  ;;  %v3080_v33 = vadd.f32 %v12406_v36, %v2850_v24  ;;  %v12407_v6 = vld [vmem:[#allocation58_spill] sm:$0xff]  ;;  %v12408_v2 = vld [vmem:[#allocation59_spill] sm:$0xff]  ;;  %v12410_v22 = vld [vmem:[#allocation60_spill] sm:$0xff]  ;;  %v11914_v54 = vpop.f32.mrf.mxu0 }
 0x203   :  { %v3083_v17 = vadd.f32 %v12407_v6, %v2853_v45  ;;  %v3081_v23 = vadd.f32 %v12408_v2, %v2851_v55  ;;  %v2855_v38 = vadd.f32 %v11341_v61, %v2601_v12  ;;  %v12409_v26 = vld [vmem:[#allocation35_spill] sm:$0xff]  ;;  %v3086_v35 = vadd.f32 %v12410_v22, %v2856_v14  ;;  %v3503_v4 = vld [vmem:[#allocation2 + $0x50] sm:$0xff]  ;;  %v12412_v45 = vld [vmem:[#allocation62_spill] sm:$0xff]  ;;  %v11912_v55 = vpop.f32.mrf.mxu1 }
 0x204   :  { %v3240_v9 = vadd.f32 %v12409_v26, %v3082_v37  ;;  %v12411_v20 = vld [vmem:[#allocation31_spill] sm:$0xff]  ;;  %v3238_v11 = vadd.f32 %v11375_v1, %v3080_v33  ;;  %v3087_v59 = vadd.f32 %v12412_v45, %v2857_v30  ;;  %v12413_v61 = vld [vmem:[#allocation16_spill] sm:$0xff]  ;;  %v3504_v12 = vld [vmem:[#allocation2 + $0x58] sm:$0xff] }
 0x205   :  { %v3084_v10 = vadd.f32 %v12411_v20, %v2854_v49  ;;  %v3241_v13 = vadd.f32 %v11429_v39, %v3083_v17  ;;  %v3239_v24 = vadd.f32 %v11442_v40, %v3081_v23  ;;  %v3501_v28 = vld [vmem:[#allocation2 + $0x40] sm:$0xff]  ;;  %v3502_v14 = vld [vmem:[#allocation2 + $0x48] sm:$0xff]  ;;  %v3244_v49 = vadd.f32 %v11470_v41, %v3086_v35  ;;  %v12415_v1 = vld [vmem:[#allocation33_spill] sm:$0xff] }
 0x206   :  { %v3494_v32 = vadd.f32 %v12413_v61, %v3240_v9  ;;  %v12414_v52 = vld [vmem:[#allocation64_spill] sm:$0xff]  ;;  %v3085_v43 = vadd.f32 %v12415_v1, %v2855_v38  ;;  %v12416_v39 = vld [vmem:[#allocation18_spill] sm:$0xff]  ;;  %v3507_v17 = vld [vmem:[#allocation2 + $0x70] sm:$0xff]  ;;  %v11924_v9 = vpop.f32.mrf.mxu0 }
 0x207   :  { %v3242_v37 = vadd.f32 %v12414_v52, %v3084_v10  ;;  %v3492_v36 = vadd.f32 %v12416_v39, %v3238_v11  ;;  %v12417_v40 = vld [vmem:[#allocation20_spill] sm:$0xff]  ;;  %v12418_v30 = vld [vmem:[#allocation38_spill] sm:$0xff]  ;;  %v3505_v2 = vld [vmem:[#allocation2 + $0x60] sm:$0xff]  ;;  %v11930_v39 = vpop.f32.mrf.mxu1 }
 0x208   :  { %v3495_v33 = vadd.f32 %v12417_v40, %v3241_v13  ;;  %v3493_v6 = vadd.f32 %v12418_v30, %v3239_v24  ;;  %v12419_v23 = vld [vmem:[#allocation65_spill] sm:$0xff]  ;;  %v3511_v22 = vadd.f32 %v3503_v4, %v3494_v32  ;;  %v12420_v20 = vld [vmem:[#allocation22_spill] sm:$0xff]  ;;  %v3243_v38 = vadd.f32 %v11510_v44, %v3085_v43  ;;  %v12422_v13 = vld [vmem:[#allocation24_spill] sm:$0xff] }
 0x209   :  { %v3245_v26 = vadd.f32 %v12419_v23, %v3087_v59  ;;  %v3498_v45 = vadd.f32 %v12420_v20, %v3244_v49  ;;  %v12421_v41 = vld [vmem:[#allocation41_spill] sm:$0xff]  ;;  %v3508_v10 = vld [vmem:[#allocation2 + $0x78] sm:$0xff]  ;;  %v3509_v61 = vadd.f32 %v3501_v28, %v3492_v36  ;;  %v3506_v24 = vld [vmem:[#allocation2 + $0x68] sm:$0xff]  ;;  %v3827_v49 = vadd.f32 %v11508_v47, %v11532_v46 }
 0x20a   :  { %v3496_v35 = vadd.f32 %v12421_v41, %v3242_v37  ;;  %v3512_v11 = vadd.f32 %v3504_v12, %v3495_v33  ;;  %v3510_v52 = vadd.f32 %v3502_v14, %v3493_v6  ;;  %3519 = vst.msk [vmem:[#allocation2 + $0x50] sm:$0xff] %vm16_vm11, %v3511_v22  ;;  %v12423_v4 = vld [vmem:[#allocation66_spill] sm:$0xff]  ;;  %v11936_v37 = vpop.f32.mrf.mxu0  ;;  %v3819_v28 = vadd.f32 %v11521_v18, %v11542_v8  ;;  %v12425_v46 = vld [vmem:[#allocation45_spill] sm:$0xff]  ;;  %v12426_v36 = vld [vmem:[#allocation67_spill] sm:$0xff] }
 0x20b   :  { %v3499_v1 = vadd.f32 %v12422_v13, %v3245_v26  ;;  %v3515_v59 = vadd.f32 %v3507_v17, %v3498_v45  ;;  %v3497_v32 = vadd.f32 %v12423_v4, %v3243_v38  ;;  %3517 = vst.msk [vmem:[#allocation2 + $0x40] sm:$0xff] %vm16_vm11, %v3509_v61  ;;  %v3830_v12 = vadd.f32 %v11534_v57, %v11555_v15  ;;  %v12424_v14 = vld [vmem:[#allocation26_spill] sm:$0xff]  ;;  %v12428_v6 = vld [vmem:[#allocation68_spill] sm:$0xff]  ;;  %v12431_v57 = vld [vmem:[#allocation73_spill] sm:$0xff] }
 0x20c   :  { %v3513_v40 = vadd.f32 %v3505_v2, %v3496_v35  ;;  %3520 = vst.msk [vmem:[#allocation2 + $0x58] sm:$0xff] %vm16_vm11, %v3512_v11  ;;  %3518 = vst.msk [vmem:[#allocation2 + $0x48] sm:$0xff] %vm16_vm11, %v3510_v52  ;;  %v3822_v43 = vadd.f32 %v12424_v14, %v11562_v62  ;;  %v3843_v33 = vadd.f32 %v12426_v36, %v12425_v46  ;;  %v12427_v30 = vld [vmem:[#allocation70_spill] sm:$0xff]  ;;  %v12430_v23 = vld [vmem:[#allocation28_spill] sm:$0xff]  ;;  %v11961_v35 = vpop.f32.mrf.mxu1  ;;  %v11968_v13 = vpop.f32.mrf.mxu0 }
 0x20d   :  { %v3516_v44 = vadd.f32 %v3508_v10, %v3499_v1  ;;  %3523 = vst.msk [vmem:[#allocation2 + $0x70] sm:$0xff] %vm16_vm11, %v3515_v59  ;;  %v3514_v47 = vadd.f32 %v3506_v24, %v3497_v32  ;;  %v3835_v17 = vadd.f32 %v12428_v6, %v12427_v30  ;;  %v12429_v2 = vld [vmem:[#allocation30_spill] sm:$0xff]  ;;  %v12432_v8 = vld [vmem:[#allocation69_spill] sm:$0xff]  ;;  %v12433_v62 = vld [vmem:[#allocation75_spill] sm:$0xff] }
 0x20e   :  { %3521 = vst.msk [vmem:[#allocation2 + $0x60] sm:$0xff] %vm16_vm11, %v3513_v40  ;;  %v3846_v18 = vadd.f32 %v12430_v23, %v12429_v2  ;;  %v3838_v15 = vadd.f32 %v12432_v8, %v12431_v57  ;;  %v4001_v26 = vadd.f32 %v12433_v62, %v3827_v49  ;;  %v12434_v22 = vld [vmem:[#allocation77_spill] sm:$0xff]  ;;  %v12435_v45 = vld [vmem:[#allocation32_spill] sm:$0xff]  ;;  %v4005_v61 = vadd.f32 %v11685_v19, %v3843_v33  ;;  %v12437_v24 = vld [vmem:[#allocation71_spill] sm:$0xff]  ;;  %v8425_v57 = vpop.f32.mrf.mxu0 }
 0x20f   :  { %3524 = vst.msk [vmem:[#allocation2 + $0x78] sm:$0xff] %vm16_vm11, %v3516_v44  ;;  %v3999_v20 = vadd.f32 %v12434_v22, %v3819_v28  ;;  %v4002_v41 = vadd.f32 %v12435_v45, %v3830_v12  ;;  %3522 = vst.msk [vmem:[#allocation2 + $0x68] sm:$0xff] %vm16_vm11, %v3514_v47  ;;  %v12436_v10 = vld [vmem:[#allocation80_spill] sm:$0xff]  ;;  %v4003_v11 = vadd.f32 %v11692_v25, %v3835_v17  ;;  %v12439_v32 = vld [vmem:[#allocation74_spill] sm:$0xff] }
 0x210   :  { %v4000_v38 = vadd.f32 %v12436_v10, %v3822_v43  ;;  %v4006_v52 = vadd.f32 %v11706_v58, %v3846_v18  ;;  %v4004_v1 = vadd.f32 %v11729_v27, %v3838_v15  ;;  %v4119_v59 = vadd.f32 %v12437_v24, %v4001_v26  ;;  %v12438_v40 = vld [vmem:[#allocation72_spill] sm:$0xff]  ;;  %v12441_v12 = vld [vmem:[#allocation78_spill] sm:$0xff]  ;;  %v12442_v47 = vld [vmem:[#allocation79_spill] sm:$0xff]  ;;  %v4829_v27 = vpop.f32.mrf.mxu1 }
 0x211   :  { %v4117_v4 = vadd.f32 %v12438_v40, %v3999_v20  ;;  %v4120_v49 = vadd.f32 %v12439_v32, %v4002_v41  ;;  %v12440_v44 = vld [vmem:[#allocation76_spill] sm:$0xff]  ;;  %v4123_v14 = vadd.f32 %v12441_v12, %v4005_v61  ;;  %v6996_v43 = vld [vmem:[#allocation2 + $0x50] sm:$0xff]  ;;  %v4121_v46 = vadd.f32 %v12442_v47, %v4003_v11  ;;  %v12444_v20 = vld [vmem:[#allocation34_spill] sm:$0xff]  ;;  %v4984_v41 = vpop.f32.mrf.mxu0 }
 0x212   :  { %v4118_v28 = vadd.f32 %v12440_v44, %v4000_v38  ;;  %v4349_v19 = vadd.f32 %v11751_v56, %v4119_v59  ;;  %v7959_v36 = vpack.c.bf16 %v6996_v43, %v6996_v43  ;;  %v6994_v33 = vld [vmem:[#allocation2 + $0x40] sm:$0xff]  ;;  %v12443_v23 = vld [vmem:[#allocation81_spill] sm:$0xff] }
 0x213   :  { %v4347_v25 = vadd.f32 %v11765_v60, %v4117_v4  ;;  %v4350_v58 = vadd.f32 %v11788_v29, %v4120_v49  ;;  %v6997_v30 = vld [vmem:[#allocation2 + $0x58] sm:$0xff]  ;;  %v6995_v6 = vld [vmem:[#allocation2 + $0x48] sm:$0xff]  ;;  %v4353_v2 = vadd.f32 %v11816_v42, %v4123_v14  ;;  %v4124_v18 = vadd.f32 %v12443_v23, %v4006_v52  ;;  %v12445_v10 = vld [vmem:[#allocation37_spill] sm:$0xff]  ;;  %v8419_v52 = vpop.f32.mrf.mxu1  ;;  %v8426_v49 = vpop.f32.mrf.mxu0 }
 0x214   :  { %v4348_v17 = vadd.f32 %v11799_v50, %v4118_v28  ;;  %v7957_v8 = vpack.c.bf16 %v6994_v33, %v6994_v33  ;;  %v7960_v56 = vpack.c.bf16 %v6997_v30, %v6997_v30  ;;  %v7958_v15 = vpack.c.bf16 %v6995_v6, %v6995_v6  ;;  %v7000_v60 = vld [vmem:[#allocation2 + $0x70] sm:$0xff]  ;;  %7157 = vst.msk [vmem:[%s12201_s2 + $0x28] sm:$0xf] %vm7146_vm12, %v7959_v36  ;;  %v12446_v61 = vld [vmem:[#allocation39_spill] sm:$0xff]  ;;  %v5027_v36 = vld [vmem:[#allocation2 + $0x98] sm:$0xff] }
 0x215   :  { %v6998_v62 = vld [vmem:[#allocation2 + $0x60] sm:$0xff]  ;;  %v4122_v29 = vadd.f32 %v11688_v48, %v4004_v1  ;;  %v7963_v26 = vpack.c.bf16 %v7000_v60, %v7000_v60  ;;  %v4351_v42 = vadd.f32 %v11829_v21, %v4121_v46  ;;  %v4507_v45 = vadd.f32 %v12444_v20, %v4349_v19  ;;  %v12447_v1 = vld [vmem:[#allocation40_spill] sm:$0xff]  ;;  %v4987_v43 = vpop.f32.mrf.mxu0  ;;  %v4842_v19 = vpop.f32.mrf.mxu1 }
 0x216   :  { %v7961_v22 = vpack.c.bf16 %v6998_v62, %v6998_v62  ;;  %v7001_v50 = vld [vmem:[#allocation2 + $0x78] sm:$0xff]  ;;  %7155 = vst.msk [vmem:[%s12201_s2 + $0x20] sm:$0xf] %vm7146_vm12, %v7957_v8  ;;  %7158 = vst.msk [vmem:[%s12201_s2 + $0x2c] sm:$0xf] %vm7146_vm12, %v7960_v56  ;;  %v6999_v21 = vld [vmem:[#allocation2 + $0x68] sm:$0xff]  ;;  %v4505_v38 = vadd.f32 %v12445_v10, %v4347_v25  ;;  %v4508_v11 = vadd.f32 %v12446_v61, %v4350_v58 }
 0x217   :  { %7156 = vst.msk [vmem:[%s12201_s2 + $0x24] sm:$0xf] %vm7146_vm12, %v7958_v15  ;;  %v7964_v48 = vpack.c.bf16 %v7001_v50, %v7001_v50  ;;  %v4506_v24 = vadd.f32 %v12447_v1, %v4348_v17  ;;  %7161 = vst.msk [vmem:[%s12201_s2 + $0x38] sm:$0xf] %vm7146_vm12, %v7963_v26  ;;  %v7962_v59 = vpack.c.bf16 %v6999_v21, %v6999_v21  ;;  %v5031_v26 = vld [vmem:[#allocation2 + $0xb8] sm:$0xff]  ;;  %v5029_v20 = vld [vmem:[#allocation2 + $0xa8] sm:$0xff] }
 0x218   :  { %7159 = vst.msk [vmem:[%s12201_s2 + $0x30] sm:$0xf] %vm7146_vm12, %v7961_v22  ;;  %v4354_v40 = vadd.f32 %v11843_v0, %v4124_v18  ;;  %v4629_v4 = vadd.f32 %v11870_v16, %v4507_v45  ;;  %v4511_v32 = vadd.f32 %v11814_v51, %v4353_v2  ;;  %v4627_v44 = vadd.f32 %v11880_v63, %v4505_v38  ;;  %v5026_v63 = vld [vmem:[#allocation2 + $0x90] sm:$0xff]  ;;  %v8420_v2 = vpop.f32.mrf.mxu1 }
 0x219   :  { %7162 = vst.msk [vmem:[%s12201_s2 + $0x3c] sm:$0xf] %vm7146_vm12, %v7964_v48  ;;  %v4630_v28 = vadd.f32 %v11892_v34, %v4508_v11  ;;  %v4628_v12 = vadd.f32 %v11902_v5, %v4506_v24  ;;  %7160 = vst.msk [vmem:[%s12201_s2 + $0x34] sm:$0xf] %vm7146_vm12, %v7962_v59  ;;  %v4352_v0 = vadd.f32 %v11857_v31, %v4122_v29  ;;  %v5024_v31 = vld [vmem:[#allocation2 + $0x80] sm:$0xff]  ;;  %v5030_v18 = vld [vmem:[#allocation2 + $0xb0] sm:$0xff] }
 0x21a   :  { %v4633_v51 = vadd.f32 %v11914_v54, %v4511_v32  ;;  %v4509_v16 = vadd.f32 %v11841_v3, %v4351_v42  ;;  %v4859_v14 = vadd.f32 %v11912_v55, %v4629_v4  ;;  %v4857_v34 = vadd.f32 %v11930_v39, %v4627_v44  ;;  %v5025_v54 = vld [vmem:[#allocation2 + $0x88] sm:$0xff]  ;;  %v4845_v62 = vpop.f32.mrf.mxu1 }
 0x21b   :  { %v4860_v5 = vadd.f32 %v11961_v35, %v4630_v28  ;;  %v4858_v25 = vadd.f32 %v4829_v27, %v4628_v12  ;;  %v4512_v47 = vadd.f32 %v11868_v53, %v4354_v40  ;;  %v4510_v6 = vadd.f32 %v11890_v7, %v4352_v0 }
 0x21c   :  { %v4631_v58 = vadd.f32 %v11924_v9, %v4509_v16  ;;  %v5017_v46 = vadd.f32 %v8425_v57, %v4859_v14  ;;  %v5015_v33 = vadd.f32 %v4984_v41, %v4857_v34  ;;  %v4863_v39 = vadd.f32 %v8419_v52, %v4633_v51  ;;  %v8429_v9 = vpop.f32.mrf.mxu0  ;;  %v8435_v40 = vpop.f32.mrf.mxu1 }
 0x21d   :  { %v5018_v3 = vadd.f32 %v8426_v49, %v4860_v5  ;;  %v5016_v30 = vadd.f32 %v4987_v43, %v4858_v25  ;;  %v4634_v55 = vadd.f32 %v11936_v37, %v4512_v47  ;;  %v4632_v53 = vadd.f32 %v11968_v13, %v4510_v6  ;;  %v5028_v37 = vld [vmem:[#allocation2 + $0xa0] sm:$0xff] }
 0x21e   :  { %v5034_v17 = vadd.f32 %v5026_v63, %v5017_v46  ;;  %v5032_v35 = vadd.f32 %v5024_v31, %v5015_v33  ;;  %v5021_v57 = vadd.f32 %v8429_v9, %v4863_v39  ;;  %v4861_v8 = vadd.f32 %v4842_v19, %v4631_v58  ;;  %v5000_v7 = vpop.f32.mrf.mxu0  ;;  %v5297_v28 = vpop.f32.mrf.mxu1 }
 0x21f   :  { %v5035_v27 = vadd.f32 %v5027_v36, %v5018_v3  ;;  %v5033_v23 = vadd.f32 %v5025_v54, %v5016_v30  ;;  %v4864_v60 = vadd.f32 %v8420_v2, %v4634_v55  ;;  %v4862_v50 = vadd.f32 %v4845_v62, %v4632_v53 }
 0x220   :  { %5042 = vst.msk [vmem:[#allocation2 + $0x90] sm:$0xff] %vm16_vm11, %v5034_v17  ;;  %5040 = vst.msk [vmem:[#allocation2 + $0x80] sm:$0xff] %vm16_vm11, %v5032_v35  ;;  %v5038_v56 = vadd.f32 %v5030_v18, %v5021_v57  ;;  %v5019_v15 = vadd.f32 %v5000_v7, %v4861_v8  ;;  %v8430_v29 = vpop.f32.mrf.mxu0  ;;  %v8436_v16 = vpop.f32.mrf.mxu1 }
 0x221   :  { %5043 = vst.msk [vmem:[#allocation2 + $0x98] sm:$0xff] %vm16_vm11, %v5035_v27  ;;  %5041 = vst.msk [vmem:[#allocation2 + $0x88] sm:$0xff] %vm16_vm11, %v5033_v23  ;;  %v5022_v22 = vadd.f32 %v8430_v29, %v4864_v60 }
 0x222   :  { %5046 = vst.msk [vmem:[#allocation2 + $0xb0] sm:$0xff] %vm16_vm11, %v5038_v56  ;;  %v5036_v13 = vadd.f32 %v5028_v37, %v5019_v15  ;;  %v5003_v42 = vpop.f32.mrf.mxu0  ;;  %v5300_v14 = vpop.f32.mrf.mxu1 }
 0x223   :  { %v5039_v45 = vadd.f32 %v5031_v26, %v5022_v22  ;;  %v5020_v41 = vadd.f32 %v5003_v42, %v4862_v50 }
 0x224   :  { %5044 = vst.msk [vmem:[#allocation2 + $0xa0] sm:$0xff] %vm16_vm11, %v5036_v13  ;;  %v12078_v43 = vpop.f32.mrf.mxu1 }
 0x225   :  { %5047 = vst.msk [vmem:[#allocation2 + $0xb8] sm:$0xff] %vm16_vm11, %v5039_v45  ;;  %v5037_v11 = vadd.f32 %v5029_v20, %v5020_v41 }
 0x226   :  { %v12080_v19 = vpop.f32.mrf.mxu1 }
 0x227   :  { %v7004_v48 = vld [vmem:[#allocation2 + $0x90] sm:$0xff]  ;;  %v7002_v10 = vld [vmem:[#allocation2 + $0x80] sm:$0xff]  ;;  %5045 = vst.msk [vmem:[#allocation2 + $0xa8] sm:$0xff] %vm16_vm11, %v5037_v11 }
 0x228   :  { %v7967_v21 = vpack.c.bf16 %v7004_v48, %v7004_v48  ;;  %v7005_v38 = vld [vmem:[#allocation2 + $0x98] sm:$0xff]  ;;  %v7003_v61 = vld [vmem:[#allocation2 + $0x88] sm:$0xff]  ;;  %v7965_v52 = vpack.c.bf16 %v7002_v10, %v7002_v10  ;;  %v12082_v63 = vpop.f32.mrf.mxu1 }
 0x229   :  { %v7968_v1 = vpack.c.bf16 %v7005_v38, %v7005_v38  ;;  %v7966_v24 = vpack.c.bf16 %v7003_v61, %v7003_v61  ;;  %v7008_v59 = vld [vmem:[#allocation2 + $0xb0] sm:$0xff] }
 0x22a   :  { %7165 = vst.msk [vmem:[%s12201_s2 + $0x48] sm:$0xf] %vm7146_vm12, %v7967_v21  ;;  %7163 = vst.msk [vmem:[%s12201_s2 + $0x40] sm:$0xf] %vm7146_vm12, %v7965_v52  ;;  %v7971_v4 = vpack.c.bf16 %v7008_v59, %v7008_v59  ;;  %v12084_v34 = vpop.f32.mrf.mxu1 }
 0x22b   :  { %7166 = vst.msk [vmem:[%s12201_s2 + $0x4c] sm:$0xf] %vm7146_vm12, %v7968_v1  ;;  %7164 = vst.msk [vmem:[%s12201_s2 + $0x44] sm:$0xf] %vm7146_vm12, %v7966_v24  ;;  %v7006_v32 = vld [vmem:[#allocation2 + $0xa0] sm:$0xff] }
 0x22c   :  { %7169 = vst.msk [vmem:[%s12201_s2 + $0x58] sm:$0xf] %vm7146_vm12, %v7971_v4  ;;  %v7969_v49 = vpack.c.bf16 %v7006_v32, %v7006_v32  ;;  %v7009_v44 = vld [vmem:[#allocation2 + $0xb8] sm:$0xff]  ;;  %v8455_v5 = vpop.f32.mrf.mxu1 }
 0x22d   :  { %v7972_v12 = vpack.c.bf16 %v7009_v44, %v7009_v44  ;;  %v8445_v25 = vpop.f32.mrf.mxu0 }
 0x22e   :  { %7167 = vst.msk [vmem:[%s12201_s2 + $0x50] sm:$0xf] %vm7146_vm12, %v7969_v49  ;;  %v7007_v0 = vld [vmem:[#allocation2 + $0xa8] sm:$0xff]  ;;  %v5635_v58 = vpop.f32.mrf.mxu1  ;;  %v5398_v10 = vadd.f32 %v8445_v25, %v8435_v40 }
 0x22f   :  { %7170 = vst.msk [vmem:[%s12201_s2 + $0x5c] sm:$0xf] %vm7146_vm12, %v7972_v12  ;;  %v7970_v51 = vpack.c.bf16 %v7007_v0, %v7007_v0  ;;  %v5389_v47 = vpop.f32.mrf.mxu0 }
 0x230   :  { %v8456_v46 = vpop.f32.mrf.mxu1  ;;  %v5390_v61 = vadd.f32 %v5389_v47, %v5297_v28  ;;  %v5668_v1 = vadd.f32 %v8455_v5, %v5398_v10 }
 0x231   :  { %7168 = vst.msk [vmem:[%s12201_s2 + $0x54] sm:$0xf] %vm7146_vm12, %v7970_v51  ;;  %v8446_v31 = vpop.f32.mrf.mxu0 }
 0x232   :  { %v5638_v36 = vpop.f32.mrf.mxu1  ;;  %v5401_v52 = vadd.f32 %v8446_v31, %v8436_v16  ;;  %v5666_v32 = vadd.f32 %v5635_v58, %v5390_v61 }
 0x233   :  { %v5392_v54 = vpop.f32.mrf.mxu0 }
 0x234   :  { %v5393_v59 = vadd.f32 %v5392_v54, %v5300_v14  ;;  %v5669_v12 = vadd.f32 %v8456_v46, %v5401_v52 }
 0x236   :  { %v5667_v40 = vadd.f32 %v5638_v36, %v5393_v59 }
 0x238   :  { %v12086_v33 = vpop.f32.mrf.mxu1 }
 0x23a   :  { %v12088_v30 = vpop.f32.mrf.mxu1 }
 0x23c   :  { %v12092_v6 = vpop.f32.mrf.mxu1 }
 0x23e   :  { %v12096_v39 = vpop.f32.mrf.mxu1 }
 0x243   :  { %v8449_v3 = vpop.f32.mrf.mxu0 }
 0x244   :  { %v8475_v35 = vpop.f32.mrf.mxu1  ;;  %v5414_v46 = vadd.f32 %v8449_v3, %v12078_v43  ;;  %v6959_v43 = vld [vmem:[#allocation2 + $0xc0] sm:$0xff] }
 0x245   :  { %v12090_v55 = vpop.f32.mrf.mxu0 }
 0x246   :  { %v6023_v23 = vpop.f32.mrf.mxu1 }
 0x247   :  { %v12094_v17 = vpop.f32.mrf.mxu0 }
 0x248   :  { %v8476_v18 = vpop.f32.mrf.mxu1 }
 0x249   :  { %v12098_v2 = vpop.f32.mrf.mxu0 }
 0x24a   :  { %v6026_v57 = vpop.f32.mrf.mxu1 }
 0x252   :  { %v8465_v27 = vpop.f32.mrf.mxu0 }
 0x253   :  { %v12100_v7 = vpop.f32.mrf.mxu1  ;;  %v5898_v4 = vadd.f32 %v8465_v27, %v5668_v1 }
 0x254   :  { %v5865_v9 = vpop.f32.mrf.mxu0 }
 0x255   :  { %v12104_v56 = vpop.f32.mrf.mxu1  ;;  %v5896_v44 = vadd.f32 %v5865_v9, %v5666_v32  ;;  %v6056_v25 = vadd.f32 %v8475_v35, %v5898_v4 }
 0x256   :  { %v8466_v53 = vpop.f32.mrf.mxu0 }
 0x257   :  { %v12108_v60 = vpop.f32.mrf.mxu1  ;;  %v5899_v51 = vadd.f32 %v8466_v53, %v5669_v12  ;;  %v6054_v16 = vadd.f32 %v6023_v23, %v5896_v44 }
 0x258   :  { %v5868_v8 = vpop.f32.mrf.mxu0 }
 0x259   :  { %v12112_v29 = vpop.f32.mrf.mxu1  ;;  %v5897_v28 = vadd.f32 %v5868_v8, %v5667_v40  ;;  %v6057_v14 = vadd.f32 %v8476_v18, %v5899_v51  ;;  %v5406_v8 = vadd.f32 %v12090_v55, %v12080_v19  ;;  %v5417_v18 = vadd.f32 %v12094_v17, %v12082_v63 }
 0x25a   :  { %v5409_v19 = vadd.f32 %v12098_v2, %v12084_v34 }
 0x25b   :  { %v6055_v27 = vadd.f32 %v6026_v57, %v5897_v28  ;;  %v5672_v57 = vadd.f32 %v12086_v33, %v5414_v46  ;;  %v5670_v4 = vadd.f32 %v12088_v30, %v5406_v8  ;;  %v5673_v12 = vadd.f32 %v12092_v6, %v5417_v18  ;;  %v6965_v46 = vld [vmem:[#allocation2 + $0xf0] sm:$0xff]  ;;  %v6963_v8 = vld [vmem:[#allocation2 + $0xe0] sm:$0xff] }
 0x25c   :  { %v5671_v30 = vadd.f32 %v12096_v39, %v5409_v19 }
 0x261   :  { %v12102_v37 = vpop.f32.mrf.mxu0 }
 0x262   :  { %v5902_v55 = vadd.f32 %v12102_v37, %v5672_v57 }
 0x263   :  { %v12106_v15 = vpop.f32.mrf.mxu0 }
 0x264   :  { %v5900_v44 = vadd.f32 %v12106_v15, %v5670_v4  ;;  %v6060_v40 = vadd.f32 %v12100_v7, %v5902_v55 }
 0x265   :  { %v12110_v62 = vpop.f32.mrf.mxu0 }
 0x266   :  { %v5903_v37 = vadd.f32 %v12110_v62, %v5673_v12  ;;  %v6058_v6 = vadd.f32 %v12104_v56, %v5900_v44 }
 0x267   :  { %v12114_v26 = vpop.f32.mrf.mxu0 }
 0x268   :  { %v5901_v28 = vadd.f32 %v12114_v26, %v5671_v30 }
 0x26a   :  { %v6059_v7 = vadd.f32 %v12112_v29, %v5901_v28 }
 0x26c   :  { %v8495_v13 = vpop.f32.mrf.mxu1 }
 0x26e   :  { %v6507_v50 = vpop.f32.mrf.mxu1 }
 0x270   :  { %v8496_v20 = vpop.f32.mrf.mxu1 }
 0x272   :  { %v6510_v41 = vpop.f32.mrf.mxu1 }
 0x282   :  { %v8485_v22 = vpop.f32.mrf.mxu0 }
 0x283   :  { %v6310_v47 = vadd.f32 %v8485_v22, %v6056_v25  ;;  %v6961_v22 = vld [vmem:[#allocation2 + $0xd0] sm:$0xff] }
 0x284   :  { %v6277_v42 = vpop.f32.mrf.mxu0 }
 0x285   :  { %v6308_v31 = vadd.f32 %v6277_v42, %v6054_v16  ;;  %v6540_v10 = vadd.f32 %v8495_v13, %v6310_v47  ;;  %v6061_v16 = vadd.f32 %v12108_v60, %v5903_v37 }
 0x286   :  { %v8486_v45 = vpop.f32.mrf.mxu0 }
 0x287   :  { %v6311_v58 = vadd.f32 %v8486_v45, %v6057_v14  ;;  %v6538_v35 = vadd.f32 %v6507_v50, %v6308_v31 }
 0x288   :  { %v6280_v48 = vpop.f32.mrf.mxu0 }
 0x289   :  { %v6309_v53 = vadd.f32 %v6280_v48, %v6055_v27  ;;  %v6541_v42 = vadd.f32 %v8496_v20, %v6311_v58  ;;  %v6962_v20 = vld [vmem:[#allocation2 + $0xd8] sm:$0xff] }
 0x28b   :  { %v6539_v50 = vadd.f32 %v6510_v41, %v6309_v53  ;;  %v6960_v41 = vld [vmem:[#allocation2 + $0xc8] sm:$0xff] }
 0x28c   :  { %v12116_v21 = vpop.f32.mrf.mxu1 }
 0x28d   :  { %12448 = vst [vmem:[#allocation42_spill] sm:$0xff] %v12116_v21 }
 0x28e   :  { %v12120_v11 = vpop.f32.mrf.mxu1 }
 0x290   :  { %v12124_v49 = vpop.f32.mrf.mxu1 }
 0x292   :  { %v12128_v21 = vpop.f32.mrf.mxu1 }
 0x29b   :  { %v12118_v38 = vpop.f32.mrf.mxu0 }
 0x29c   :  { %v6314_v15 = vadd.f32 %v12118_v38, %v6060_v40 }
 0x29d   :  { %v12122_v24 = vpop.f32.mrf.mxu0 }
 0x29e   :  { %v6312_v47 = vadd.f32 %v12122_v24, %v6058_v6 }
 0x29f   :  { %v12126_v0 = vpop.f32.mrf.mxu0 }
 0x2a0   :  { %v6315_v39 = vadd.f32 %v12126_v0, %v6061_v16 }
 0x2a1   :  { %v12130_v5 = vpop.f32.mrf.mxu0 }
 0x2a2   :  { %v6313_v24 = vadd.f32 %v12130_v5, %v6059_v7 }
 0x2a9   :  { %v8515_v54 = vpop.f32.mrf.mxu1 }
 0x2ab   :  { %v6919_v9 = vpop.f32.mrf.mxu1  ;;  %v8505_v61 = vpop.f32.mrf.mxu0 }
 0x2ac   :  { %v6698_v36 = vadd.f32 %v8505_v61, %v6540_v10  ;;  %v6542_v10 = vadd.f32 %v12120_v11, %v6312_v47 }
 0x2ad   :  { %v6665_v23 = vpop.f32.mrf.mxu0  ;;  %v8516_v13 = vpop.f32.mrf.mxu1 }
 0x2ae   :  { %v6952_v52 = vadd.f32 %v8515_v54, %v6698_v36  ;;  %v6696_v1 = vadd.f32 %v6665_v23, %v6538_v35  ;;  %v12449_v54 = vld [vmem:[#allocation42_spill] sm:$0xff]  ;;  %v6545_v35 = vadd.f32 %v12124_v49, %v6315_v39 }
 0x2af   :  { %v8506_v3 = vpop.f32.mrf.mxu0  ;;  %v6922_v51 = vpop.f32.mrf.mxu1  ;;  %v6544_v58 = vadd.f32 %v12449_v54, %v6314_v15  ;;  %v6966_v49 = vld [vmem:[#allocation2 + $0xf8] sm:$0xff] }
 0x2b0   :  { %v6969_v45 = vadd.f32 %v6961_v22, %v6952_v52  ;;  %v6950_v48 = vadd.f32 %v6919_v9, %v6696_v1  ;;  %v6699_v59 = vadd.f32 %v8506_v3, %v6541_v42  ;;  %v6543_v42 = vadd.f32 %v12128_v21, %v6313_v24 }
 0x2b1   :  { %v6668_v32 = vpop.f32.mrf.mxu0 }
 0x2b2   :  { %6977 = vst.msk [vmem:[#allocation2 + $0xd0] sm:$0xff] %vm16_vm11, %v6969_v45  ;;  %v6967_v63 = vadd.f32 %v6959_v43, %v6950_v48  ;;  %v6953_v33 = vadd.f32 %v8516_v13, %v6699_v59  ;;  %v6697_v17 = vadd.f32 %v6668_v32, %v6539_v50  ;;  %v6964_v45 = vld [vmem:[#allocation2 + $0xe8] sm:$0xff] }
 0x2b4   :  { %6975 = vst.msk [vmem:[#allocation2 + $0xc0] sm:$0xff] %vm16_vm11, %v6967_v63  ;;  %v6970_v34 = vadd.f32 %v6962_v20, %v6953_v33  ;;  %v6951_v2 = vadd.f32 %v6922_v51, %v6697_v17 }
 0x2b6   :  { %6978 = vst.msk [vmem:[#allocation2 + $0xd8] sm:$0xff] %vm16_vm11, %v6970_v34  ;;  %v6968_v25 = vadd.f32 %v6960_v41, %v6951_v2 }
 0x2b8   :  { %6976 = vst.msk [vmem:[#allocation2 + $0xc8] sm:$0xff] %vm16_vm11, %v6968_v25 }
 0x2b9   :  { %v7012_v62 = vld [vmem:[#allocation2 + $0xd0] sm:$0xff] }
 0x2ba   :  { %v7975_v31 = vpack.c.bf16 %v7012_v62, %v7012_v62 }
 0x2bb   :  { %v7010_v14 = vld [vmem:[#allocation2 + $0xc0] sm:$0xff] }
 0x2bc   :  { %7173 = vst.msk [vmem:[%s12201_s2 + $0x68] sm:$0xf] %vm7146_vm12, %v7975_v31  ;;  %v7973_v56 = vpack.c.bf16 %v7010_v14, %v7010_v14  ;;  %v8519_v26 = vpop.f32.mrf.mxu1  ;;  %v8509_v38 = vpop.f32.mrf.mxu0 }
 0x2bd   :  { %v7013_v60 = vld [vmem:[#allocation2 + $0xd8] sm:$0xff]  ;;  %v6702_v27 = vadd.f32 %v8509_v38, %v6544_v58 }
 0x2be   :  { %7171 = vst.msk [vmem:[%s12201_s2 + $0x60] sm:$0xf] %vm7146_vm12, %v7973_v56  ;;  %v7976_v29 = vpack.c.bf16 %v7013_v60, %v7013_v60  ;;  %v6935_v0 = vpop.f32.mrf.mxu1  ;;  %v6681_v9 = vpop.f32.mrf.mxu0 }
 0x2bf   :  { %v7011_v61 = vld [vmem:[#allocation2 + $0xc8] sm:$0xff]  ;;  %v6956_v53 = vadd.f32 %v8519_v26, %v6702_v27  ;;  %v6700_v36 = vadd.f32 %v6681_v9, %v6542_v10 }
 0x2c0   :  { %7174 = vst.msk [vmem:[%s12201_s2 + $0x6c] sm:$0xf] %vm7146_vm12, %v7976_v29  ;;  %v7974_v11 = vpack.c.bf16 %v7011_v61, %v7011_v61  ;;  %v8520_v5 = vpop.f32.mrf.mxu1  ;;  %v8510_v22 = vpop.f32.mrf.mxu0 }
 0x2c1   :  { %v6973_v23 = vadd.f32 %v6965_v46, %v6956_v53  ;;  %v6954_v52 = vadd.f32 %v6935_v0, %v6700_v36  ;;  %v6703_v1 = vadd.f32 %v8510_v22, %v6545_v35 }
 0x2c2   :  { %7172 = vst.msk [vmem:[%s12201_s2 + $0x64] sm:$0xf] %vm7146_vm12, %v7974_v11  ;;  %v6684_v18 = vpop.f32.mrf.mxu0  ;;  %v6938_v3 = vpop.f32.mrf.mxu1 }
 0x2c3   :  { %6981 = vst.msk [vmem:[#allocation2 + $0xf0] sm:$0xff] %vm16_vm11, %v6973_v23  ;;  %v6971_v57 = vadd.f32 %v6963_v8, %v6954_v52  ;;  %v6957_v13 = vadd.f32 %v8520_v5, %v6703_v1  ;;  %v6701_v43 = vadd.f32 %v6684_v18, %v6543_v42 }
 0x2c5   :  { %6979 = vst.msk [vmem:[#allocation2 + $0xe0] sm:$0xff] %vm16_vm11, %v6971_v57  ;;  %v6974_v48 = vadd.f32 %v6966_v49, %v6957_v13  ;;  %v6955_v59 = vadd.f32 %v6938_v3, %v6701_v43 }
 0x2c7   :  { %6982 = vst.msk [vmem:[#allocation2 + $0xf8] sm:$0xff] %vm16_vm11, %v6974_v48  ;;  %v6972_v21 = vadd.f32 %v6964_v45, %v6955_v59 }
 0x2c9   :  { %6980 = vst.msk [vmem:[#allocation2 + $0xe8] sm:$0xff] %vm16_vm11, %v6972_v21 }
 0x2ca   :  { %v7016_v50 = vld [vmem:[#allocation2 + $0xf0] sm:$0xff] }
 0x2cb   :  { %v7979_v19 = vpack.c.bf16 %v7016_v50, %v7016_v50 }
 0x2cc   :  { %v7014_v55 = vld [vmem:[#allocation2 + $0xe0] sm:$0xff] }
 0x2cd   :  { %7177 = vst.msk [vmem:[%s12201_s2 + $0x78] sm:$0xf] %vm7146_vm12, %v7979_v19  ;;  %v7977_v4 = vpack.c.bf16 %v7014_v55, %v7014_v55 }
 0x2ce   :  { %v7017_v20 = vld [vmem:[#allocation2 + $0xf8] sm:$0xff] }
 0x2cf   :  { %7175 = vst.msk [vmem:[%s12201_s2 + $0x70] sm:$0xf] %vm7146_vm12, %v7977_v4  ;;  %v7980_v32 = vpack.c.bf16 %v7017_v20, %v7017_v20 }
 0x2d0   :  { %v7015_v63 = vld [vmem:[#allocation2 + $0xe8] sm:$0xff] }
 0x2d1   :  { %7178 = vst.msk [vmem:[%s12201_s2 + $0x7c] sm:$0xf] %vm7146_vm12, %v7980_v32  ;;  %v7978_v33 = vpack.c.bf16 %v7015_v63, %v7015_v63 }
 0x2d3   :  { %7176 = vst.msk [vmem:[%s12201_s2 + $0x74] sm:$0xf] %vm7146_vm12, %v7978_v33 }

</bundles_post_ra>
